<compile_context>
chip_gen: v6e
topology: v6e:2x2x1
jax: 0.10.0
libtpu: 0.0.40
codegen_flags: <defaults>
</compile_context>

<pallas_src>
import jax
import jax.numpy as jnp
from jax.experimental import pallas as pl
from jax.experimental.pallas import tpu as pltpu

# ---- problem sizes ----
N = 2             # batch
C_IMG = 1         # image channels
H = 16
W = 16
HW = H * W        # 256 -> two full 128-lane vregs on the lane axis
HW2 = 2 * HW      # lane width of the fused phi pass (two images side by side)
LOG2W = 4         # W == 16
HID = 8           # hidden channels of the displacement-prediction CNN
DISP_SCALE = 2.0  # max half-displacement (pixels) from the tanh head

CPAD = 8          # channel padding of the im2col patch blocks (sublane tile)
KPATCH = 9 * CPAD  # im2col rows (9 taps x CPAD channels) = 72

assert HID == CPAD and C_IMG == 1 and H == W  # TODO(synk): generalize for C_IMG > 1


# ----------------------------------------------------------------------------
# In-kernel helpers (all operate on lane-dense (C, width) tiles of one batch element)
# ----------------------------------------------------------------------------
def _conv3x3(x, width, w_ref, b_ref, act, patch_ref, masks_ref):
    """3x3 'same' conv (zero padding) as a single MXU matmul over an im2col patch.

    x:         (CPAD, width) lane-dense input; width is HW (one image) or 2*HW (two images
               stacked on the lane axis -- cross-image roll wrap is zeroed by the masks).
    w_ref:     (cout, KPATCH) weights laid out as [tap, channel] (zero-padded channels).
    b_ref:     (cout, 1) bias.
    patch_ref: (KPATCH, 2*HW) VMEM scratch (only the first `width` lanes are used).
    masks_ref: (9, 2*HW) precomputed border-validity masks (one row per tap).
    """
    for k in range(9):
        dy, dx = k // 3 - 1, k % 3 - 1
        off = dy * W + dx
        # out[p] = x[p + off]  (wrap-around is masked away by the border mask)
        shifted = x if off == 0 else pltpu.roll(x, (-off) % width, 1)
        patch_ref[k * CPAD:(k + 1) * CPAD, 0:width] = shifted * masks_ref[k:k + 1, 0:width]
    y = (jnp.dot(w_ref[...], patch_ref[:, 0:width], preferred_element_type=jnp.float32)
         + b_ref[...])
    return act(y)


def _gather_bilinear(vals, c, gy, gx, a_ref, riota_f):
    """Border-clamped SEPARABLE bilinear gather: out[ci, p] = vals sampled at (gy[p], gx[p]).

    Stage 0: relayout vals (c, HW) into a_ref so a_ref[ci*H + r, 0:W] holds source row r
             (static lane rolls + full-row stores; no (HW, HW) matrix anywhere).
    Stage 1: column interpolation as ONE MXU matmul (c*H, W) @ (W, HW) with tent weights wx.
    Stage 2: row interpolation as a weighted 16-sublane reduction with tent weights wy.
    vals: (c, HW); gy, gx: (1, HW) absolute sample coordinates; riota_f: (H, HW) row-index iota.
    """
    gy = jnp.clip(gy, 0.0, H - 1.0)
    gx = jnp.clip(gx, 0.0, W - 1.0)
    wy = jnp.maximum(1.0 - jnp.abs(riota_f - gy), 0.0)      # (H, HW) tent weights over rows
    wx = jnp.maximum(1.0 - jnp.abs(riota_f - gx), 0.0)      # (W, HW) tent weights over cols

    for ci in range(c):
        row = vals[ci:ci + 1, :]                             # (1, HW)
        for r in range(H):
            # roll so source lanes [r*W, r*W + W) land at lanes [0, W)
            shifted = row if r == 0 else pltpu.roll(row, (-r * W) % HW, 1)
            a_ref[ci * H + r:ci * H + r + 1, :] = shifted

    tmp = jnp.dot(a_ref[0:c * H, 0:W], wx, preferred_element_type=jnp.float32)  # (c*H, HW)
    outs = [jnp.sum(tmp[ci * H:(ci + 1) * H, :] * wy, axis=0, keepdims=True)
            for ci in range(c)]
    if c == 1:
        return outs[0]
    cc = jax.lax.broadcasted_iota(jnp.int32, (2, 1), 0)
    return ((cc == 0).astype(jnp.float32) * jnp.broadcast_to(outs[0], (2, HW)) +
            (cc == 1).astype(jnp.float32) * jnp.broadcast_to(outs[1], (2, HW)))


def _two_step_kernel(pairs_ref,
                     w1p_ref, b1p_ref, w2p_ref, b2p_ref,
                     w1s_ref, b1s_ref, w2s_ref, b2s_ref,
                     tm_ref, disp_ref, sse_ref,
                     patch_ref, a_ref, masks_ref):
    relu = lambda a: jnp.maximum(a, 0.0)
    head = lambda a: jnp.tanh(a) * DISP_SCALE

    # ---- hoisted constants (built once per grid step; JAX does not CSE broadcast_in_dim) ----
    p2 = jax.lax.broadcasted_iota(jnp.int32, (1, HW2), 1) & (HW - 1)   # local pixel index
    rows2 = p2 >> LOG2W
    cols2 = p2 & (W - 1)
    for k in range(9):
        dy, dx = k // 3 - 1, k % 3 - 1
        valid = ((rows2 + dy >= 0) & (rows2 + dy < H) &
                 (cols2 + dx >= 0) & (cols2 + dx < W))
        masks_ref[k:k + 1, :] = valid.astype(jnp.float32)
    by = rows2[:, 0:HW].astype(jnp.float32)                  # (1, HW) base sample grid
    bx = cols2[:, 0:HW].astype(jnp.float32)
    riota = jax.lax.broadcasted_iota(jnp.int32, (H, HW), 0).astype(jnp.float32)  # (16, HW)
    ch = jax.lax.broadcasted_iota(jnp.int32, (CPAD, 1), 0)
    ch0 = (ch == 0).astype(jnp.float32)
    ch1 = (ch == 1).astype(jnp.float32)

    def gather(vals, c, gy, gx):
        return _gather_bilinear(vals, c, gy, gx, a_ref, riota)

    def warp_and_compose(hd, img):
        """full = hd o hd ; warped = full(img)."""
        full = hd + gather(hd, 2, by + hd[0:1], bx + hd[1:2])
        warped = gather(img, 1, by + full[0:1], bx + full[1:2])
        return warped, full

    pair = pairs_ref[0]                                      # (2, 2*HW): [mv|fx] , [fx|mv]
    mv = pair[0:1, 0:HW]
    fx = pair[0:1, HW:HW2]

    # ---- phi(mv, fx) and phi(fx, mv), lane-fused at width 2*HW ----
    x0 = (ch0 * jnp.broadcast_to(pair[0:1, :], (CPAD, HW2)) +
          ch1 * jnp.broadcast_to(pair[1:2, :], (CPAD, HW2)))            # (CPAD, 2*HW)
    h1 = _conv3x3(x0, HW2, w1p_ref, b1p_ref, relu, patch_ref, masks_ref)
    hdab = _conv3x3(h1, HW2, w2p_ref, b2p_ref, head, patch_ref, masks_ref)  # (2, 2*HW)
    h_phi = hdab[:, 0:HW]        # half displacement of phi(mv, fx)
    h_phi_b = hdab[:, HW:HW2]    # half displacement of phi(fx, mv)

    wpm, _ = warp_and_compose(h_phi, mv)                     # transformed_moving_phi
    d = wpm - fx
    sse_phi = jnp.sum(d * d, keepdims=True)                  # (1, 1)
    wpf, _ = warp_and_compose(h_phi_b, fx)                   # transformed_fixed_phi

    # ---- psi(transformed_moving_phi, transformed_fixed_phi) at width HW ----
    x1 = (ch0 * jnp.broadcast_to(wpm, (CPAD, HW)) +
          ch1 * jnp.broadcast_to(wpf, (CPAD, HW)))
    g1 = _conv3x3(x1, HW, w1s_ref, b1s_ref, relu, patch_ref, masks_ref)
    h_psi = _conv3x3(g1, HW, w2s_ref, b2s_ref, head, patch_ref, masks_ref)   # (2, HW)
    wps, _ = warp_and_compose(h_psi, wpm)
    d2 = wps - wpf
    sse_psi = jnp.sum(d2 * d2, keepdims=True)

    # ---- displacement_field = sqrt_phi o psi o sqrt_phi ; final warp of the moving image ----
    inner = h_phi + gather(h_psi, 2, by + h_phi[0:1], bx + h_phi[1:2])
    final = inner + gather(h_phi, 2, by + inner[0:1], bx + inner[1:2])
    tm = gather(mv, 1, by + final[0:1], bx + final[1:2])

    tm_ref[0] = tm
    disp_ref[0] = final
    sse_ref[0] = jnp.broadcast_to(sse_phi + sse_psi, (1, 128))


# ----------------------------------------------------------------------------
# Host-side wrapper: one pallas_call for the whole forward
# ----------------------------------------------------------------------------
def _fold_conv_weight(w):
    """(cout, cin, 3, 3) -> (cout, KPATCH) laid out as [tap, channel] with zero-padded channels."""
    cout, cin = w.shape[0], w.shape[1]
    wm = jnp.transpose(w, (0, 2, 3, 1)).reshape(cout, 9, cin)
    wm = jnp.pad(wm, ((0, 0), (0, 0), (0, CPAD - cin)))
    return wm.reshape(cout, KPATCH).astype(jnp.float32)


def two_step_consistent_fused(phi_params, psi_params, moving, fixed):
    """Fused forward of the TwoStepConsistent module.
    Returns (transformed_moving (N,C,H,W), displacement field (N,2,H,W), loss_phi + loss_psi)."""
    n = moving.shape[0]
    mov = moving.reshape(n, HW).astype(jnp.float32)
    fix = fixed.reshape(n, HW).astype(jnp.float32)
    # lane-fused phi inputs: channel 0 = [mv | fx], channel 1 = [fx | mv]
    pairs = jnp.stack([jnp.concatenate([mov, fix], axis=-1),
                       jnp.concatenate([fix, mov], axis=-1)], axis=1)   # (n, 2, 2*HW)

    w1p = _fold_conv_weight(phi_params["w1"])
    b1p = phi_params["b1"].reshape(HID, 1).astype(jnp.float32)
    w2p = _fold_conv_weight(phi_params["w2"])
    b2p = phi_params["b2"].reshape(2, 1).astype(jnp.float32)
    w1s = _fold_conv_weight(psi_params["w1"])
    b1s = psi_params["b1"].reshape(HID, 1).astype(jnp.float32)
    w2s = _fold_conv_weight(psi_params["w2"])
    b2s = psi_params["b2"].reshape(2, 1).astype(jnp.float32)

    tm, disp, sse = pl.pallas_call(
        _two_step_kernel,
        out_shape=(
            jax.ShapeDtypeStruct((n, C_IMG, HW), jnp.float32),
            jax.ShapeDtypeStruct((n, 2, HW), jnp.float32),
            jax.ShapeDtypeStruct((n, 1, 128), jnp.float32),
        ),
        grid=(n,),
        in_specs=[
            pl.BlockSpec((1, 2, HW2), lambda i: (i, 0, 0)),      # paired/fused images
            pl.BlockSpec((HID, KPATCH), lambda i: (0, 0)),       # phi conv1 weight
            pl.BlockSpec((HID, 1), lambda i: (0, 0)),            # phi conv1 bias
            pl.BlockSpec((2, KPATCH), lambda i: (0, 0)),         # phi conv2 weight
            pl.BlockSpec((2, 1), lambda i: (0, 0)),              # phi conv2 bias
            pl.BlockSpec((HID, KPATCH), lambda i: (0, 0)),       # psi conv1 weight
            pl.BlockSpec((HID, 1), lambda i: (0, 0)),            # psi conv1 bias
            pl.BlockSpec((2, KPATCH), lambda i: (0, 0)),         # psi conv2 weight
            pl.BlockSpec((2, 1), lambda i: (0, 0)),              # psi conv2 bias
        ],
        out_specs=(
            pl.BlockSpec((1, C_IMG, HW), lambda i: (i, 0, 0)),
            pl.BlockSpec((1, 2, HW), lambda i: (i, 0, 0)),
            pl.BlockSpec((1, 1, 128), lambda i: (i, 0, 0)),
        ),
        scratch_shapes=[
            pltpu.VMEM((KPATCH, HW2), jnp.float32),   # im2col patch (256- and 512-wide convs)
            pltpu.VMEM((2 * H, HW), jnp.float32),     # row-relayout staging for the gathers
            pltpu.VMEM((9, HW2), jnp.float32),        # 3x3 border-validity masks (built once)
        ],
        compiler_params=pltpu.CompilerParams(dimension_semantics=("parallel",)),
    )(pairs, w1p, b1p, w2p, b2p, w1s, b1s, w2s, b2s)

    transformed_moving = tm.reshape(n, C_IMG, H, W)
    displacement = disp.reshape(n, 2, H, W)
    loss = jnp.sum(sse[:, 0, 0]) / (n * C_IMG * HW)
    return transformed_moving, displacement, loss


_forward_jit = jax.jit(two_step_consistent_fused)


# ----------------------------------------------------------------------------
# Pure-JAX reference warp / compose (used by DisplacementField.__call__ and the sanity checks)
# ----------------------------------------------------------------------------
def warp_ref(img, disp):
    """Backward warp (border-clamped bilinear) of an NCHW image by a (N,2,H,W) pixel field."""
    n, c = img.shape[0], img.shape[1]
    imgf = img.reshape(n, c, HW).astype(jnp.float32)
    yy, xx = jnp.meshgrid(jnp.arange(H, dtype=jnp.float32),
                          jnp.arange(W, dtype=jnp.float32), indexing="ij")
    gy = jnp.clip(yy[None] + disp[:, 0], 0.0, H - 1.0).reshape(n, HW)
    gx = jnp.clip(xx[None] + disp[:, 1], 0.0, W - 1.0).reshape(n, HW)
    y0f = jnp.floor(gy)
    x0f = jnp.floor(gx)
    wy = (gy - y0f)[:, None, :]
    wx = (gx - x0f)[:, None, :]
    y0 = y0f.astype(jnp.int32)
    x0 = x0f.astype(jnp.int32)
    y1 = jnp.minimum(y0 + 1, H - 1)
    x1 = jnp.minimum(x0 + 1, W - 1)

    def tap(yi, xi):
        idx = jnp.broadcast_to((yi * W + xi)[:, None, :], (n, c, HW))
        return jnp.take_along_axis(imgf, idx, axis=2)

    out = (tap(y0, x0) * (1 - wy) * (1 - wx) + tap(y0, x1) * (1 - wy) * wx +
           tap(y1, x0) * wy * (1 - wx) + tap(y1, x1) * wy * wx)
    return out.reshape(n, c, H, W).astype(img.dtype)


def compose_ref(u, v):
    """Displacement field of T_u o T_v:  w(x) = v(x) + u(x + v(x))."""
    return v + warp_ref(u, v)


class DisplacementField:
    """Dense displacement field u (N, 2, H, W) representing T(x) = x + u(x).  Calling it on an
    image warps the image; calling it on another field composes the maps (PyTorch API parity)."""

    def __init__(self, disp):
        self.disp = disp

    def __call__(self, other):
        if isinstance(other, DisplacementField):
            return DisplacementField(compose_ref(self.disp, other.disp))
        return warp_ref(other, self.disp)


def two_step_consistent(phi_params, psi_params, moving, fixed):
    """Same return contract as the PyTorch module: (transformed_moving, DisplacementField, loss)."""
    tm, disp, loss = _forward_jit(phi_params, psi_params, moving, fixed)
    return tm, DisplacementField(disp), loss


def init_params(key):
    k1, k2 = jax.random.split(key)
    return {
        "w1": 0.1 * jax.random.normal(k1, (HID, 2 * C_IMG, 3, 3), jnp.float32),
        "b1": jnp.zeros((HID,), jnp.float32),
        "w2": 0.1 * jax.random.normal(k2, (2, HID, 3, 3), jnp.float32),
        "b2": jnp.zeros((2,), jnp.float32),
    }


if __name__ == "__main__":
    key = jax.random.PRNGKey(0)
    k_m, k_f, k_phi, k_psi = jax.random.split(key, 4)
    moving = jax.random.uniform(k_m, (N, C_IMG, H, W), dtype=jnp.float32)
    fixed = jax.random.uniform(k_f, (N, C_IMG, H, W), dtype=jnp.float32)
    phi_params = init_params(k_phi)
    psi_params = init_params(k_psi)

    # sanity 1: zero network -> zero field, identity warp, loss = 2 * MSE(moving, fixed)
    zero_p = {"w1": jnp.zeros((HID, 2 * C_IMG, 3, 3), jnp.float32),
              "b1": jnp.zeros((HID,), jnp.float32),
              "w2": jnp.zeros((2, HID, 3, 3), jnp.float32),
              "b2": jnp.zeros((2,), jnp.float32)}
    tm0, d0, l0 = jax.block_until_ready(_forward_jit(zero_p, zero_p, moving, fixed))
    assert jnp.allclose(tm0, moving, atol=1e-5)
    assert jnp.allclose(d0, 0.0, atol=1e-5)
    assert jnp.allclose(l0, 2.0 * jnp.mean((moving - fixed) ** 2), atol=1e-5)

    # sanity 2: constant half-displacements via the conv biases (weights = 0) turn the forward
    # into a chain of pure translations; verifies the separable in-kernel gather and the
    # composition algebra against the pure-JAX reference.
    hp = (0.35, -0.6)
    hs = (-0.45, 0.8)
    phi_c = dict(zero_p)
    psi_c = dict(zero_p)
    phi_c["b2"] = jnp.arctanh(jnp.array(hp, jnp.float32) / DISP_SCALE)
    psi_c["b2"] = jnp.arctanh(jnp.array(hs, jnp.float32) / DISP_SCALE)
    tm1, d1, l1 = jax.block_until_ready(_forward_jit(phi_c, psi_c, moving, fixed))

    def const_field(dy, dx):
        return jnp.stack([jnp.full((N, H, W), dy, jnp.float32),
                          jnp.full((N, H, W), dx, jnp.float32)], axis=1)

    exp_final = const_field(2 * hp[0] + hs[0], 2 * hp[1] + hs[1])   # sqrt_phi o psi o sqrt_phi
    assert jnp.allclose(d1, exp_final, atol=1e-3)
    assert jnp.allclose(tm1, warp_ref(moving, exp_final), atol=1e-3)
    wpm = warp_ref(moving, const_field(2 * hp[0], 2 * hp[1]))
    wpf = warp_ref(fixed, const_field(2 * hp[0], 2 * hp[1]))
    wps = warp_ref(wpm, const_field(2 * hs[0], 2 * hs[1]))
    exp_loss = jnp.mean((wpm - fixed) ** 2) + jnp.mean((wps - wpf) ** 2)
    assert jnp.allclose(l1, exp_loss, atol=1e-3)

    # main run: full forward with the random registration CNNs
    tm, field, loss = two_step_consistent(phi_params, psi_params, moving, fixed)
    jax.block_until_ready((tm, field.disp, loss))
    assert tm.shape == (N, C_IMG, H, W)
    assert field.disp.shape == (N, 2, H, W)
    assert bool(jnp.isfinite(loss))
    assert bool(jnp.all(jnp.isfinite(tm))) and bool(jnp.all(jnp.isfinite(field.disp)))
    print("KERNEL_OK")
</pallas_src>

<mosaic_0001>
module attributes {stable_mosaic.version = 11 : i64} {
  func.func @_two_step_kernel(%arg0: i32, %arg1: memref<1x2x512xf32, #tpu.memory_space<vmem>>, %arg2: memref<8x72xf32, #tpu.memory_space<vmem>>, %arg3: memref<8x1xf32, #tpu.memory_space<vmem>>, %arg4: memref<2x72xf32, #tpu.memory_space<vmem>>, %arg5: memref<2x1xf32, #tpu.memory_space<vmem>>, %arg6: memref<8x72xf32, #tpu.memory_space<vmem>>, %arg7: memref<8x1xf32, #tpu.memory_space<vmem>>, %arg8: memref<2x72xf32, #tpu.memory_space<vmem>>, %arg9: memref<2x1xf32, #tpu.memory_space<vmem>>, %arg10: memref<1x1x256xf32, #tpu.memory_space<vmem>>, %arg11: memref<1x2x256xf32, #tpu.memory_space<vmem>>, %arg12: memref<1x1x128xf32, #tpu.memory_space<vmem>>, %arg13: memref<72x512xf32, #tpu.memory_space<vmem>>, %arg14: memref<32x256xf32, #tpu.memory_space<vmem>>, %arg15: memref<9x512xf32, #tpu.memory_space<vmem>>) attributes {dimension_semantics = [#tpu.dimension_semantics<parallel>], iteration_bounds = array<i64: 2>, scalar_prefetch = 0 : i64, scratch_operands = 3 : i64, tpu.core_type = #tpu.core_type<tc>, window_params = [{transform_indices = @transform_0, window_bounds = array<i64: 1, 2, 512>}, {pipeline_mode = #tpu.pipeline_mode<synchronous>, transform_indices = @transform_1, window_bounds = array<i64: 8, 72>}, {pipeline_mode = #tpu.pipeline_mode<synchronous>, transform_indices = @transform_2, window_bounds = array<i64: 8, 1>}, {pipeline_mode = #tpu.pipeline_mode<synchronous>, transform_indices = @transform_3, window_bounds = array<i64: 2, 72>}, {pipeline_mode = #tpu.pipeline_mode<synchronous>, transform_indices = @transform_4, window_bounds = array<i64: 2, 1>}, {pipeline_mode = #tpu.pipeline_mode<synchronous>, transform_indices = @transform_5, window_bounds = array<i64: 8, 72>}, {pipeline_mode = #tpu.pipeline_mode<synchronous>, transform_indices = @transform_6, window_bounds = array<i64: 8, 1>}, {pipeline_mode = #tpu.pipeline_mode<synchronous>, transform_indices = @transform_7, window_bounds = array<i64: 2, 72>}, {pipeline_mode = #tpu.pipeline_mode<synchronous>, transform_indices = @transform_8, window_bounds = array<i64: 2, 1>}, {transform_indices = @transform_9, window_bounds = array<i64: 1, 1, 256>}, {transform_indices = @transform_10, window_bounds = array<i64: 1, 2, 256>}, {transform_indices = @transform_11, window_bounds = array<i64: 1, 1, 128>}]} {
    %0 = tpu.iota {dimensions = array<i32: 1>} : vector<1x512xi32>
    %c255_i32 = arith.constant 255 : i32
    %1 = vector.broadcast %c255_i32 : i32 to vector<1x512xi32>
    %2 = arith.andi %0, %1 : vector<1x512xi32>
    %c4_i32 = arith.constant 4 : i32
    %3 = vector.broadcast %c4_i32 : i32 to vector<1x512xi32>
    %4 = arith.shrsi %2, %3 : vector<1x512xi32>
    %c15_i32 = arith.constant 15 : i32
    %5 = vector.broadcast %c15_i32 : i32 to vector<1x512xi32>
    %6 = arith.andi %2, %5 : vector<1x512xi32>
    %c-1_i32 = arith.constant -1 : i32
    %7 = vector.broadcast %c-1_i32 : i32 to vector<1x512xi32>
    %8 = arith.addi %4, %7 : vector<1x512xi32>
    %c0_i32 = arith.constant 0 : i32
    %9 = vector.broadcast %c0_i32 : i32 to vector<1x512xi32>
    %10 = arith.cmpi sge, %8, %9 : vector<1x512xi32>
    %c-1_i32_0 = arith.constant -1 : i32
    %11 = vector.broadcast %c-1_i32_0 : i32 to vector<1x512xi32>
    %12 = arith.addi %4, %11 : vector<1x512xi32>
    %c16_i32 = arith.constant 16 : i32
    %13 = vector.broadcast %c16_i32 : i32 to vector<1x512xi32>
    %14 = arith.cmpi slt, %12, %13 : vector<1x512xi32>
    %15 = arith.andi %10, %14 : vector<1x512xi1>
    %c-1_i32_1 = arith.constant -1 : i32
    %16 = vector.broadcast %c-1_i32_1 : i32 to vector<1x512xi32>
    %17 = arith.addi %6, %16 : vector<1x512xi32>
    %c0_i32_2 = arith.constant 0 : i32
    %18 = vector.broadcast %c0_i32_2 : i32 to vector<1x512xi32>
    %19 = arith.cmpi sge, %17, %18 : vector<1x512xi32>
    %20 = arith.andi %15, %19 : vector<1x512xi1>
    %c-1_i32_3 = arith.constant -1 : i32
    %21 = vector.broadcast %c-1_i32_3 : i32 to vector<1x512xi32>
    %22 = arith.addi %6, %21 : vector<1x512xi32>
    %c16_i32_4 = arith.constant 16 : i32
    %23 = vector.broadcast %c16_i32_4 : i32 to vector<1x512xi32>
    %24 = arith.cmpi slt, %22, %23 : vector<1x512xi32>
    %25 = arith.andi %20, %24 : vector<1x512xi1>
    %26 = arith.extui %25 : vector<1x512xi1> to vector<1x512xi32>
    %27 = arith.sitofp %26 : vector<1x512xi32> to vector<1x512xf32>
    %c0 = arith.constant 0 : index
    %c0_5 = arith.constant 0 : index
    %28 = vector.load %arg15[%c0, %c0_5] : memref<9x512xf32, #tpu.memory_space<vmem>>, vector<1x512xf32>
    tpu.vector_store %arg15[%c0, %c0_5], %27 {strides = array<i32>} : memref<9x512xf32, #tpu.memory_space<vmem>>, vector<1x512xf32>,
    %c-1_i32_6 = arith.constant -1 : i32
    %29 = vector.broadcast %c-1_i32_6 : i32 to vector<1x512xi32>
    %30 = arith.addi %4, %29 : vector<1x512xi32>
    %c0_i32_7 = arith.constant 0 : i32
    %31 = vector.broadcast %c0_i32_7 : i32 to vector<1x512xi32>
    %32 = arith.cmpi sge, %30, %31 : vector<1x512xi32>
    %c-1_i32_8 = arith.constant -1 : i32
    %33 = vector.broadcast %c-1_i32_8 : i32 to vector<1x512xi32>
    %34 = arith.addi %4, %33 : vector<1x512xi32>
    %c16_i32_9 = arith.constant 16 : i32
    %35 = vector.broadcast %c16_i32_9 : i32 to vector<1x512xi32>
    %36 = arith.cmpi slt, %34, %35 : vector<1x512xi32>
    %37 = arith.andi %32, %36 : vector<1x512xi1>
    %c0_i32_10 = arith.constant 0 : i32
    %38 = vector.broadcast %c0_i32_10 : i32 to vector<1x512xi32>
    %39 = arith.addi %6, %38 : vector<1x512xi32>
    %c0_i32_11 = arith.constant 0 : i32
    %40 = vector.broadcast %c0_i32_11 : i32 to vector<1x512xi32>
    %41 = arith.cmpi sge, %39, %40 : vector<1x512xi32>
    %42 = arith.andi %37, %41 : vector<1x512xi1>
    %c0_i32_12 = arith.constant 0 : i32
    %43 = vector.broadcast %c0_i32_12 : i32 to vector<1x512xi32>
    %44 = arith.addi %6, %43 : vector<1x512xi32>
    %c16_i32_13 = arith.constant 16 : i32
    %45 = vector.broadcast %c16_i32_13 : i32 to vector<1x512xi32>
    %46 = arith.cmpi slt, %44, %45 : vector<1x512xi32>
    %47 = arith.andi %42, %46 : vector<1x512xi1>
    %48 = arith.extui %47 : vector<1x512xi1> to vector<1x512xi32>
    %49 = arith.sitofp %48 : vector<1x512xi32> to vector<1x512xf32>
    %c1 = arith.constant 1 : index
    %c0_14 = arith.constant 0 : index
    %50 = vector.load %arg15[%c1, %c0_14] : memref<9x512xf32, #tpu.memory_space<vmem>>, vector<1x512xf32>
    tpu.vector_store %arg15[%c1, %c0_14], %49 {strides = array<i32>} : memref<9x512xf32, #tpu.memory_space<vmem>>, vector<1x512xf32>,
    %c-1_i32_15 = arith.constant -1 : i32
    %51 = vector.broadcast %c-1_i32_15 : i32 to vector<1x512xi32>
    %52 = arith.addi %4, %51 : vector<1x512xi32>
    %c0_i32_16 = arith.constant 0 : i32
    %53 = vector.broadcast %c0_i32_16 : i32 to vector<1x512xi32>
    %54 = arith.cmpi sge, %52, %53 : vector<1x512xi32>
    %c-1_i32_17 = arith.constant -1 : i32
    %55 = vector.broadcast %c-1_i32_17 : i32 to vector<1x512xi32>
    %56 = arith.addi %4, %55 : vector<1x512xi32>
    %c16_i32_18 = arith.constant 16 : i32
    %57 = vector.broadcast %c16_i32_18 : i32 to vector<1x512xi32>
    %58 = arith.cmpi slt, %56, %57 : vector<1x512xi32>
    %59 = arith.andi %54, %58 : vector<1x512xi1>
    %c1_i32 = arith.constant 1 : i32
    %60 = vector.broadcast %c1_i32 : i32 to vector<1x512xi32>
    %61 = arith.addi %6, %60 : vector<1x512xi32>
    %c0_i32_19 = arith.constant 0 : i32
    %62 = vector.broadcast %c0_i32_19 : i32 to vector<1x512xi32>
    %63 = arith.cmpi sge, %61, %62 : vector<1x512xi32>
    %64 = arith.andi %59, %63 : vector<1x512xi1>
    %c1_i32_20 = arith.constant 1 : i32
    %65 = vector.broadcast %c1_i32_20 : i32 to vector<1x512xi32>
    %66 = arith.addi %6, %65 : vector<1x512xi32>
    %c16_i32_21 = arith.constant 16 : i32
    %67 = vector.broadcast %c16_i32_21 : i32 to vector<1x512xi32>
    %68 = arith.cmpi slt, %66, %67 : vector<1x512xi32>
    %69 = arith.andi %64, %68 : vector<1x512xi1>
    %70 = arith.extui %69 : vector<1x512xi1> to vector<1x512xi32>
    %71 = arith.sitofp %70 : vector<1x512xi32> to vector<1x512xf32>
    %c2 = arith.constant 2 : index
    %c0_22 = arith.constant 0 : index
    %72 = vector.load %arg15[%c2, %c0_22] : memref<9x512xf32, #tpu.memory_space<vmem>>, vector<1x512xf32>
    tpu.vector_store %arg15[%c2, %c0_22], %71 {strides = array<i32>} : memref<9x512xf32, #tpu.memory_space<vmem>>, vector<1x512xf32>,
    %c0_i32_23 = arith.constant 0 : i32
    %73 = vector.broadcast %c0_i32_23 : i32 to vector<1x512xi32>
    %74 = arith.addi %4, %73 : vector<1x512xi32>
    %c0_i32_24 = arith.constant 0 : i32
    %75 = vector.broadcast %c0_i32_24 : i32 to vector<1x512xi32>
    %76 = arith.cmpi sge, %74, %75 : vector<1x512xi32>
    %c0_i32_25 = arith.constant 0 : i32
    %77 = vector.broadcast %c0_i32_25 : i32 to vector<1x512xi32>
    %78 = arith.addi %4, %77 : vector<1x512xi32>
    %c16_i32_26 = arith.constant 16 : i32
    %79 = vector.broadcast %c16_i32_26 : i32 to vector<1x512xi32>
    %80 = arith.cmpi slt, %78, %79 : vector<1x512xi32>
    %81 = arith.andi %76, %80 : vector<1x512xi1>
    %c-1_i32_27 = arith.constant -1 : i32
    %82 = vector.broadcast %c-1_i32_27 : i32 to vector<1x512xi32>
    %83 = arith.addi %6, %82 : vector<1x512xi32>
    %c0_i32_28 = arith.constant 0 : i32
    %84 = vector.broadcast %c0_i32_28 : i32 to vector<1x512xi32>
    %85 = arith.cmpi sge, %83, %84 : vector<1x512xi32>
    %86 = arith.andi %81, %85 : vector<1x512xi1>
    %c-1_i32_29 = arith.constant -1 : i32
    %87 = vector.broadcast %c-1_i32_29 : i32 to vector<1x512xi32>
    %88 = arith.addi %6, %87 : vector<1x512xi32>
    %c16_i32_30 = arith.constant 16 : i32
    %89 = vector.broadcast %c16_i32_30 : i32 to vector<1x512xi32>
    %90 = arith.cmpi slt, %88, %89 : vector<1x512xi32>
    %91 = arith.andi %86, %90 : vector<1x512xi1>
    %92 = arith.extui %91 : vector<1x512xi1> to vector<1x512xi32>
    %93 = arith.sitofp %92 : vector<1x512xi32> to vector<1x512xf32>
    %c3 = arith.constant 3 : index
    %c0_31 = arith.constant 0 : index
    %94 = vector.load %arg15[%c3, %c0_31] : memref<9x512xf32, #tpu.memory_space<vmem>>, vector<1x512xf32>
    tpu.vector_store %arg15[%c3, %c0_31], %93 {strides = array<i32>} : memref<9x512xf32, #tpu.memory_space<vmem>>, vector<1x512xf32>,
    %c0_i32_32 = arith.constant 0 : i32
    %95 = vector.broadcast %c0_i32_32 : i32 to vector<1x512xi32>
    %96 = arith.addi %4, %95 : vector<1x512xi32>
    %c0_i32_33 = arith.constant 0 : i32
    %97 = vector.broadcast %c0_i32_33 : i32 to vector<1x512xi32>
    %98 = arith.cmpi sge, %96, %97 : vector<1x512xi32>
    %c0_i32_34 = arith.constant 0 : i32
    %99 = vector.broadcast %c0_i32_34 : i32 to vector<1x512xi32>
    %100 = arith.addi %4, %99 : vector<1x512xi32>
    %c16_i32_35 = arith.constant 16 : i32
    %101 = vector.broadcast %c16_i32_35 : i32 to vector<1x512xi32>
    %102 = arith.cmpi slt, %100, %101 : vector<1x512xi32>
    %103 = arith.andi %98, %102 : vector<1x512xi1>
    %c0_i32_36 = arith.constant 0 : i32
    %104 = vector.broadcast %c0_i32_36 : i32 to vector<1x512xi32>
    %105 = arith.addi %6, %104 : vector<1x512xi32>
    %c0_i32_37 = arith.constant 0 : i32
    %106 = vector.broadcast %c0_i32_37 : i32 to vector<1x512xi32>
    %107 = arith.cmpi sge, %105, %106 : vector<1x512xi32>
    %108 = arith.andi %103, %107 : vector<1x512xi1>
    %c0_i32_38 = arith.constant 0 : i32
    %109 = vector.broadcast %c0_i32_38 : i32 to vector<1x512xi32>
    %110 = arith.addi %6, %109 : vector<1x512xi32>
    %c16_i32_39 = arith.constant 16 : i32
    %111 = vector.broadcast %c16_i32_39 : i32 to vector<1x512xi32>
    %112 = arith.cmpi slt, %110, %111 : vector<1x512xi32>
    %113 = arith.andi %108, %112 : vector<1x512xi1>
    %114 = arith.extui %113 : vector<1x512xi1> to vector<1x512xi32>
    %115 = arith.sitofp %114 : vector<1x512xi32> to vector<1x512xf32>
    %c4 = arith.constant 4 : index
    %c0_40 = arith.constant 0 : index
    %116 = vector.load %arg15[%c4, %c0_40] : memref<9x512xf32, #tpu.memory_space<vmem>>, vector<1x512xf32>
    tpu.vector_store %arg15[%c4, %c0_40], %115 {strides = array<i32>} : memref<9x512xf32, #tpu.memory_space<vmem>>, vector<1x512xf32>,
    %c0_i32_41 = arith.constant 0 : i32
    %117 = vector.broadcast %c0_i32_41 : i32 to vector<1x512xi32>
    %118 = arith.addi %4, %117 : vector<1x512xi32>
    %c0_i32_42 = arith.constant 0 : i32
    %119 = vector.broadcast %c0_i32_42 : i32 to vector<1x512xi32>
    %120 = arith.cmpi sge, %118, %119 : vector<1x512xi32>
    %c0_i32_43 = arith.constant 0 : i32
    %121 = vector.broadcast %c0_i32_43 : i32 to vector<1x512xi32>
    %122 = arith.addi %4, %121 : vector<1x512xi32>
    %c16_i32_44 = arith.constant 16 : i32
    %123 = vector.broadcast %c16_i32_44 : i32 to vector<1x512xi32>
    %124 = arith.cmpi slt, %122, %123 : vector<1x512xi32>
    %125 = arith.andi %120, %124 : vector<1x512xi1>
    %c1_i32_45 = arith.constant 1 : i32
    %126 = vector.broadcast %c1_i32_45 : i32 to vector<1x512xi32>
    %127 = arith.addi %6, %126 : vector<1x512xi32>
    %c0_i32_46 = arith.constant 0 : i32
    %128 = vector.broadcast %c0_i32_46 : i32 to vector<1x512xi32>
    %129 = arith.cmpi sge, %127, %128 : vector<1x512xi32>
    %130 = arith.andi %125, %129 : vector<1x512xi1>
    %c1_i32_47 = arith.constant 1 : i32
    %131 = vector.broadcast %c1_i32_47 : i32 to vector<1x512xi32>
    %132 = arith.addi %6, %131 : vector<1x512xi32>
    %c16_i32_48 = arith.constant 16 : i32
    %133 = vector.broadcast %c16_i32_48 : i32 to vector<1x512xi32>
    %134 = arith.cmpi slt, %132, %133 : vector<1x512xi32>
    %135 = arith.andi %130, %134 : vector<1x512xi1>
    %136 = arith.extui %135 : vector<1x512xi1> to vector<1x512xi32>
    %137 = arith.sitofp %136 : vector<1x512xi32> to vector<1x512xf32>
    %c5 = arith.constant 5 : index
    %c0_49 = arith.constant 0 : index
    %138 = vector.load %arg15[%c5, %c0_49] : memref<9x512xf32, #tpu.memory_space<vmem>>, vector<1x512xf32>
    tpu.vector_store %arg15[%c5, %c0_49], %137 {strides = array<i32>} : memref<9x512xf32, #tpu.memory_space<vmem>>, vector<1x512xf32>,
    %c1_i32_50 = arith.constant 1 : i32
    %139 = vector.broadcast %c1_i32_50 : i32 to vector<1x512xi32>
    %140 = arith.addi %4, %139 : vector<1x512xi32>
    %c0_i32_51 = arith.constant 0 : i32
    %141 = vector.broadcast %c0_i32_51 : i32 to vector<1x512xi32>
    %142 = arith.cmpi sge, %140, %141 : vector<1x512xi32>
    %c1_i32_52 = arith.constant 1 : i32
    %143 = vector.broadcast %c1_i32_52 : i32 to vector<1x512xi32>
    %144 = arith.addi %4, %143 : vector<1x512xi32>
    %c16_i32_53 = arith.constant 16 : i32
    %145 = vector.broadcast %c16_i32_53 : i32 to vector<1x512xi32>
    %146 = arith.cmpi slt, %144, %145 : vector<1x512xi32>
    %147 = arith.andi %142, %146 : vector<1x512xi1>
    %c-1_i32_54 = arith.constant -1 : i32
    %148 = vector.broadcast %c-1_i32_54 : i32 to vector<1x512xi32>
    %149 = arith.addi %6, %148 : vector<1x512xi32>
    %c0_i32_55 = arith.constant 0 : i32
    %150 = vector.broadcast %c0_i32_55 : i32 to vector<1x512xi32>
    %151 = arith.cmpi sge, %149, %150 : vector<1x512xi32>
    %152 = arith.andi %147, %151 : vector<1x512xi1>
    %c-1_i32_56 = arith.constant -1 : i32
    %153 = vector.broadcast %c-1_i32_56 : i32 to vector<1x512xi32>
    %154 = arith.addi %6, %153 : vector<1x512xi32>
    %c16_i32_57 = arith.constant 16 : i32
    %155 = vector.broadcast %c16_i32_57 : i32 to vector<1x512xi32>
    %156 = arith.cmpi slt, %154, %155 : vector<1x512xi32>
    %157 = arith.andi %152, %156 : vector<1x512xi1>
    %158 = arith.extui %157 : vector<1x512xi1> to vector<1x512xi32>
    %159 = arith.sitofp %158 : vector<1x512xi32> to vector<1x512xf32>
    %c6 = arith.constant 6 : index
    %c0_58 = arith.constant 0 : index
    %160 = vector.load %arg15[%c6, %c0_58] : memref<9x512xf32, #tpu.memory_space<vmem>>, vector<1x512xf32>
    tpu.vector_store %arg15[%c6, %c0_58], %159 {strides = array<i32>} : memref<9x512xf32, #tpu.memory_space<vmem>>, vector<1x512xf32>,
    %c1_i32_59 = arith.constant 1 : i32
    %161 = vector.broadcast %c1_i32_59 : i32 to vector<1x512xi32>
    %162 = arith.addi %4, %161 : vector<1x512xi32>
    %c0_i32_60 = arith.constant 0 : i32
    %163 = vector.broadcast %c0_i32_60 : i32 to vector<1x512xi32>
    %164 = arith.cmpi sge, %162, %163 : vector<1x512xi32>
    %c1_i32_61 = arith.constant 1 : i32
    %165 = vector.broadcast %c1_i32_61 : i32 to vector<1x512xi32>
    %166 = arith.addi %4, %165 : vector<1x512xi32>
    %c16_i32_62 = arith.constant 16 : i32
    %167 = vector.broadcast %c16_i32_62 : i32 to vector<1x512xi32>
    %168 = arith.cmpi slt, %166, %167 : vector<1x512xi32>
    %169 = arith.andi %164, %168 : vector<1x512xi1>
    %c0_i32_63 = arith.constant 0 : i32
    %170 = vector.broadcast %c0_i32_63 : i32 to vector<1x512xi32>
    %171 = arith.addi %6, %170 : vector<1x512xi32>
    %c0_i32_64 = arith.constant 0 : i32
    %172 = vector.broadcast %c0_i32_64 : i32 to vector<1x512xi32>
    %173 = arith.cmpi sge, %171, %172 : vector<1x512xi32>
    %174 = arith.andi %169, %173 : vector<1x512xi1>
    %c0_i32_65 = arith.constant 0 : i32
    %175 = vector.broadcast %c0_i32_65 : i32 to vector<1x512xi32>
    %176 = arith.addi %6, %175 : vector<1x512xi32>
    %c16_i32_66 = arith.constant 16 : i32
    %177 = vector.broadcast %c16_i32_66 : i32 to vector<1x512xi32>
    %178 = arith.cmpi slt, %176, %177 : vector<1x512xi32>
    %179 = arith.andi %174, %178 : vector<1x512xi1>
    %180 = arith.extui %179 : vector<1x512xi1> to vector<1x512xi32>
    %181 = arith.sitofp %180 : vector<1x512xi32> to vector<1x512xf32>
    %c7 = arith.constant 7 : index
    %c0_67 = arith.constant 0 : index
    %182 = vector.load %arg15[%c7, %c0_67] : memref<9x512xf32, #tpu.memory_space<vmem>>, vector<1x512xf32>
    tpu.vector_store %arg15[%c7, %c0_67], %181 {strides = array<i32>} : memref<9x512xf32, #tpu.memory_space<vmem>>, vector<1x512xf32>,
    %c1_i32_68 = arith.constant 1 : i32
    %183 = vector.broadcast %c1_i32_68 : i32 to vector<1x512xi32>
    %184 = arith.addi %4, %183 : vector<1x512xi32>
    %c0_i32_69 = arith.constant 0 : i32
    %185 = vector.broadcast %c0_i32_69 : i32 to vector<1x512xi32>
    %186 = arith.cmpi sge, %184, %185 : vector<1x512xi32>
    %c1_i32_70 = arith.constant 1 : i32
    %187 = vector.broadcast %c1_i32_70 : i32 to vector<1x512xi32>
    %188 = arith.addi %4, %187 : vector<1x512xi32>
    %c16_i32_71 = arith.constant 16 : i32
    %189 = vector.broadcast %c16_i32_71 : i32 to vector<1x512xi32>
    %190 = arith.cmpi slt, %188, %189 : vector<1x512xi32>
    %191 = arith.andi %186, %190 : vector<1x512xi1>
    %c1_i32_72 = arith.constant 1 : i32
    %192 = vector.broadcast %c1_i32_72 : i32 to vector<1x512xi32>
    %193 = arith.addi %6, %192 : vector<1x512xi32>
    %c0_i32_73 = arith.constant 0 : i32
    %194 = vector.broadcast %c0_i32_73 : i32 to vector<1x512xi32>
    %195 = arith.cmpi sge, %193, %194 : vector<1x512xi32>
    %196 = arith.andi %191, %195 : vector<1x512xi1>
    %c1_i32_74 = arith.constant 1 : i32
    %197 = vector.broadcast %c1_i32_74 : i32 to vector<1x512xi32>
    %198 = arith.addi %6, %197 : vector<1x512xi32>
    %c16_i32_75 = arith.constant 16 : i32
    %199 = vector.broadcast %c16_i32_75 : i32 to vector<1x512xi32>
    %200 = arith.cmpi slt, %198, %199 : vector<1x512xi32>
    %201 = arith.andi %196, %200 : vector<1x512xi1>
    %202 = arith.extui %201 : vector<1x512xi1> to vector<1x512xi32>
    %203 = arith.sitofp %202 : vector<1x512xi32> to vector<1x512xf32>
    %c8 = arith.constant 8 : index
    %c0_76 = arith.constant 0 : index
    %204 = vector.load %arg15[%c8, %c0_76] : memref<9x512xf32, #tpu.memory_space<vmem>>, vector<1x512xf32>
    tpu.vector_store %arg15[%c8, %c0_76], %203 {strides = array<i32>} : memref<9x512xf32, #tpu.memory_space<vmem>>, vector<1x512xf32>,
    %205 = vector.extract_strided_slice %4 {offsets = [0, 0], sizes = [1, 256], strides = [1, 1]} : vector<1x512xi32> to vector<1x256xi32>
    %206 = arith.sitofp %205 : vector<1x256xi32> to vector<1x256xf32>
    %207 = vector.extract_strided_slice %6 {offsets = [0, 0], sizes = [1, 256], strides = [1, 1]} : vector<1x512xi32> to vector<1x256xi32>
    %208 = arith.sitofp %207 : vector<1x256xi32> to vector<1x256xf32>
    %209 = tpu.iota {dimensions = array<i32: 0>} : vector<16x256xi32>
    %210 = arith.sitofp %209 : vector<16x256xi32> to vector<16x256xf32>
    %211 = tpu.iota {dimensions = array<i32: 0>} : vector<8x1xi32>
    %c0_i32_77 = arith.constant 0 : i32
    %212 = vector.broadcast %c0_i32_77 : i32 to vector<8x1xi32>
    %213 = arith.cmpi eq, %211, %212 : vector<8x1xi32>
    %214 = arith.extui %213 : vector<8x1xi1> to vector<8x1xi32>
    %215 = arith.sitofp %214 : vector<8x1xi32> to vector<8x1xf32>
    %c1_i32_78 = arith.constant 1 : i32
    %216 = vector.broadcast %c1_i32_78 : i32 to vector<8x1xi32>
    %217 = arith.cmpi eq, %211, %216 : vector<8x1xi32>
    %218 = arith.extui %217 : vector<8x1xi1> to vector<8x1xi32>
    %219 = arith.sitofp %218 : vector<8x1xi32> to vector<8x1xf32>
    %c0_79 = arith.constant 0 : index
    %c0_80 = arith.constant 0 : index
    %c0_81 = arith.constant 0 : index
    %220 = vector.load %arg1[%c0_79, %c0_80, %c0_81] : memref<1x2x512xf32, #tpu.memory_space<vmem>>, vector<1x2x512xf32>
    %221 = vector.shape_cast %220 : vector<1x2x512xf32> to vector<2x512xf32>
    %222 = vector.extract_strided_slice %221 {offsets = [0, 0], sizes = [1, 256], strides = [1, 1]} : vector<2x512xf32> to vector<1x256xf32>
    %223 = vector.extract_strided_slice %221 {offsets = [0, 256], sizes = [1, 256], strides = [1, 1]} : vector<2x512xf32> to vector<1x256xf32>
    %224 = vector.extract_strided_slice %221 {offsets = [0, 0], sizes = [1, 512], strides = [1, 1]} : vector<2x512xf32> to vector<1x512xf32>
    %225 = vector.shape_cast %224 : vector<1x512xf32> to vector<1x512xf32>
    %226 = vector.broadcast %225 : vector<1x512xf32> to vector<8x512xf32>
    %227 = vector.broadcast %215 : vector<8x1xf32> to vector<8x512xf32>
    %228 = arith.mulf %227, %226 : vector<8x512xf32>
    %229 = vector.extract_strided_slice %221 {offsets = [1, 0], sizes = [1, 512], strides = [1, 1]} : vector<2x512xf32> to vector<1x512xf32>
    %230 = vector.shape_cast %229 : vector<1x512xf32> to vector<1x512xf32>
    %231 = vector.broadcast %230 : vector<1x512xf32> to vector<8x512xf32>
    %232 = vector.broadcast %219 : vector<8x1xf32> to vector<8x512xf32>
    %233 = arith.mulf %232, %231 : vector<8x512xf32>
    %234 = arith.addf %228, %233 : vector<8x512xf32>
    %c17_i32 = arith.constant 17 : i32
    %235 = tpu.dynamic_rotate %234 by %c17_i32 dim 1 : vector<8x512xf32>, i32 -> vector<8x512xf32>
    %c0_82 = arith.constant 0 : index
    %c0_83 = arith.constant 0 : index
    %236 = vector.load %arg15[%c0_82, %c0_83] : memref<9x512xf32, #tpu.memory_space<vmem>>, vector<1x512xf32>
    %237 = vector.broadcast %236 : vector<1x512xf32> to vector<8x512xf32>
    %238 = arith.mulf %235, %237 : vector<8x512xf32>
    %c0_84 = arith.constant 0 : index
    %c0_85 = arith.constant 0 : index
    %239 = vector.load %arg13[%c0_84, %c0_85] : memref<72x512xf32, #tpu.memory_space<vmem>>, vector<8x512xf32>
    tpu.vector_store %arg13[%c0_84, %c0_85], %238 {strides = array<i32>} : memref<72x512xf32, #tpu.memory_space<vmem>>, vector<8x512xf32>,
    %c16_i32_86 = arith.constant 16 : i32
    %240 = tpu.dynamic_rotate %234 by %c16_i32_86 dim 1 : vector<8x512xf32>, i32 -> vector<8x512xf32>
    %c1_87 = arith.constant 1 : index
    %c0_88 = arith.constant 0 : index
    %241 = vector.load %arg15[%c1_87, %c0_88] : memref<9x512xf32, #tpu.memory_space<vmem>>, vector<1x512xf32>
    %242 = vector.broadcast %241 : vector<1x512xf32> to vector<8x512xf32>
    %243 = arith.mulf %240, %242 : vector<8x512xf32>
    %c8_89 = arith.constant 8 : index
    %c0_90 = arith.constant 0 : index
    %244 = vector.load %arg13[%c8_89, %c0_90] : memref<72x512xf32, #tpu.memory_space<vmem>>, vector<8x512xf32>
    tpu.vector_store %arg13[%c8_89, %c0_90], %243 {strides = array<i32>} : memref<72x512xf32, #tpu.memory_space<vmem>>, vector<8x512xf32>,
    %c15_i32_91 = arith.constant 15 : i32
    %245 = tpu.dynamic_rotate %234 by %c15_i32_91 dim 1 : vector<8x512xf32>, i32 -> vector<8x512xf32>
    %c2_92 = arith.constant 2 : index
    %c0_93 = arith.constant 0 : index
    %246 = vector.load %arg15[%c2_92, %c0_93] : memref<9x512xf32, #tpu.memory_space<vmem>>, vector<1x512xf32>
    %247 = vector.broadcast %246 : vector<1x512xf32> to vector<8x512xf32>
    %248 = arith.mulf %245, %247 : vector<8x512xf32>
    %c16 = arith.constant 16 : index
    %c0_94 = arith.constant 0 : index
    %249 = vector.load %arg13[%c16, %c0_94] : memref<72x512xf32, #tpu.memory_space<vmem>>, vector<8x512xf32>
    tpu.vector_store %arg13[%c16, %c0_94], %248 {strides = array<i32>} : memref<72x512xf32, #tpu.memory_space<vmem>>, vector<8x512xf32>,
    %c1_i32_95 = arith.constant 1 : i32
    %250 = tpu.dynamic_rotate %234 by %c1_i32_95 dim 1 : vector<8x512xf32>, i32 -> vector<8x512xf32>
    %c3_96 = arith.constant 3 : index
    %c0_97 = arith.constant 0 : index
    %251 = vector.load %arg15[%c3_96, %c0_97] : memref<9x512xf32, #tpu.memory_space<vmem>>, vector<1x512xf32>
    %252 = vector.broadcast %251 : vector<1x512xf32> to vector<8x512xf32>
    %253 = arith.mulf %250, %252 : vector<8x512xf32>
    %c24 = arith.constant 24 : index
    %c0_98 = arith.constant 0 : index
    %254 = vector.load %arg13[%c24, %c0_98] : memref<72x512xf32, #tpu.memory_space<vmem>>, vector<8x512xf32>
    tpu.vector_store %arg13[%c24, %c0_98], %253 {strides = array<i32>} : memref<72x512xf32, #tpu.memory_space<vmem>>, vector<8x512xf32>,
    %c4_99 = arith.constant 4 : index
    %c0_100 = arith.constant 0 : index
    %255 = vector.load %arg15[%c4_99, %c0_100] : memref<9x512xf32, #tpu.memory_space<vmem>>, vector<1x512xf32>
    %256 = vector.broadcast %255 : vector<1x512xf32> to vector<8x512xf32>
    %257 = arith.mulf %234, %256 : vector<8x512xf32>
    %c32 = arith.constant 32 : index
    %c0_101 = arith.constant 0 : index
    %258 = vector.load %arg13[%c32, %c0_101] : memref<72x512xf32, #tpu.memory_space<vmem>>, vector<8x512xf32>
    tpu.vector_store %arg13[%c32, %c0_101], %257 {strides = array<i32>} : memref<72x512xf32, #tpu.memory_space<vmem>>, vector<8x512xf32>,
    %c511_i32 = arith.constant 511 : i32
    %259 = tpu.dynamic_rotate %234 by %c511_i32 dim 1 : vector<8x512xf32>, i32 -> vector<8x512xf32>
    %c5_102 = arith.constant 5 : index
    %c0_103 = arith.constant 0 : index
    %260 = vector.load %arg15[%c5_102, %c0_103] : memref<9x512xf32, #tpu.memory_space<vmem>>, vector<1x512xf32>
    %261 = vector.broadcast %260 : vector<1x512xf32> to vector<8x512xf32>
    %262 = arith.mulf %259, %261 : vector<8x512xf32>
    %c40 = arith.constant 40 : index
    %c0_104 = arith.constant 0 : index
    %263 = vector.load %arg13[%c40, %c0_104] : memref<72x512xf32, #tpu.memory_space<vmem>>, vector<8x512xf32>
    tpu.vector_store %arg13[%c40, %c0_104], %262 {strides = array<i32>} : memref<72x512xf32, #tpu.memory_space<vmem>>, vector<8x512xf32>,
    %c497_i32 = arith.constant 497 : i32
    %264 = tpu.dynamic_rotate %234 by %c497_i32 dim 1 : vector<8x512xf32>, i32 -> vector<8x512xf32>
    %c6_105 = arith.constant 6 : index
    %c0_106 = arith.constant 0 : index
    %265 = vector.load %arg15[%c6_105, %c0_106] : memref<9x512xf32, #tpu.memory_space<vmem>>, vector<1x512xf32>
    %266 = vector.broadcast %265 : vector<1x512xf32> to vector<8x512xf32>
    %267 = arith.mulf %264, %266 : vector<8x512xf32>
    %c48 = arith.constant 48 : index
    %c0_107 = arith.constant 0 : index
    %268 = vector.load %arg13[%c48, %c0_107] : memref<72x512xf32, #tpu.memory_space<vmem>>, vector<8x512xf32>
    tpu.vector_store %arg13[%c48, %c0_107], %267 {strides = array<i32>} : memref<72x512xf32, #tpu.memory_space<vmem>>, vector<8x512xf32>,
    %c496_i32 = arith.constant 496 : i32
    %269 = tpu.dynamic_rotate %234 by %c496_i32 dim 1 : vector<8x512xf32>, i32 -> vector<8x512xf32>
    %c7_108 = arith.constant 7 : index
    %c0_109 = arith.constant 0 : index
    %270 = vector.load %arg15[%c7_108, %c0_109] : memref<9x512xf32, #tpu.memory_space<vmem>>, vector<1x512xf32>
    %271 = vector.broadcast %270 : vector<1x512xf32> to vector<8x512xf32>
    %272 = arith.mulf %269, %271 : vector<8x512xf32>
    %c56 = arith.constant 56 : index
    %c0_110 = arith.constant 0 : index
    %273 = vector.load %arg13[%c56, %c0_110] : memref<72x512xf32, #tpu.memory_space<vmem>>, vector<8x512xf32>
    tpu.vector_store %arg13[%c56, %c0_110], %272 {strides = array<i32>} : memref<72x512xf32, #tpu.memory_space<vmem>>, vector<8x512xf32>,
    %c495_i32 = arith.constant 495 : i32
    %274 = tpu.dynamic_rotate %234 by %c495_i32 dim 1 : vector<8x512xf32>, i32 -> vector<8x512xf32>
    %c8_111 = arith.constant 8 : index
    %c0_112 = arith.constant 0 : index
    %275 = vector.load %arg15[%c8_111, %c0_112] : memref<9x512xf32, #tpu.memory_space<vmem>>, vector<1x512xf32>
    %276 = vector.broadcast %275 : vector<1x512xf32> to vector<8x512xf32>
    %277 = arith.mulf %274, %276 : vector<8x512xf32>
    %c64 = arith.constant 64 : index
    %c0_113 = arith.constant 0 : index
    %278 = vector.load %arg13[%c64, %c0_113] : memref<72x512xf32, #tpu.memory_space<vmem>>, vector<8x512xf32>
    tpu.vector_store %arg13[%c64, %c0_113], %277 {strides = array<i32>} : memref<72x512xf32, #tpu.memory_space<vmem>>, vector<8x512xf32>,
    %c0_114 = arith.constant 0 : index
    %c0_115 = arith.constant 0 : index
    %279 = vector.load %arg2[%c0_114, %c0_115] : memref<8x72xf32, #tpu.memory_space<vmem>>, vector<8x72xf32>
    %c0_116 = arith.constant 0 : index
    %c0_117 = arith.constant 0 : index
    %280 = vector.load %arg13[%c0_116, %c0_117] : memref<72x512xf32, #tpu.memory_space<vmem>>, vector<72x512xf32>
    %cst = arith.constant dense<0.000000e+00> : vector<8x512xf32>
    %281 = tpu.matmul %279, %280, %cst {dimension_numbers = #tpu.dot_dimension_numbers<[1], [0], [0], [1], [0, 0, 1, 1], [], []>} : vector<8x72xf32>, vector<72x512xf32>, vector<8x512xf32> -> vector<8x512xf32>
    %c0_118 = arith.constant 0 : index
    %c0_119 = arith.constant 0 : index
    %282 = vector.load %arg3[%c0_118, %c0_119] : memref<8x1xf32, #tpu.memory_space<vmem>>, vector<8x1xf32>
    %283 = vector.broadcast %282 : vector<8x1xf32> to vector<8x512xf32>
    %284 = arith.addf %281, %283 : vector<8x512xf32>
    %cst_120 = arith.constant 0.000000e+00 : f32
    %285 = vector.broadcast %cst_120 : f32 to vector<8x512xf32>
    %286 = arith.maximumf %284, %285 : vector<8x512xf32>
    %c17_i32_121 = arith.constant 17 : i32
    %287 = tpu.dynamic_rotate %286 by %c17_i32_121 dim 1 : vector<8x512xf32>, i32 -> vector<8x512xf32>
    %c0_122 = arith.constant 0 : index
    %c0_123 = arith.constant 0 : index
    %288 = vector.load %arg15[%c0_122, %c0_123] : memref<9x512xf32, #tpu.memory_space<vmem>>, vector<1x512xf32>
    %289 = vector.broadcast %288 : vector<1x512xf32> to vector<8x512xf32>
    %290 = arith.mulf %287, %289 : vector<8x512xf32>
    %c0_124 = arith.constant 0 : index
    %c0_125 = arith.constant 0 : index
    %291 = vector.load %arg13[%c0_124, %c0_125] : memref<72x512xf32, #tpu.memory_space<vmem>>, vector<8x512xf32>
    tpu.vector_store %arg13[%c0_124, %c0_125], %290 {strides = array<i32>} : memref<72x512xf32, #tpu.memory_space<vmem>>, vector<8x512xf32>,
    %c16_i32_126 = arith.constant 16 : i32
    %292 = tpu.dynamic_rotate %286 by %c16_i32_126 dim 1 : vector<8x512xf32>, i32 -> vector<8x512xf32>
    %c1_127 = arith.constant 1 : index
    %c0_128 = arith.constant 0 : index
    %293 = vector.load %arg15[%c1_127, %c0_128] : memref<9x512xf32, #tpu.memory_space<vmem>>, vector<1x512xf32>
    %294 = vector.broadcast %293 : vector<1x512xf32> to vector<8x512xf32>
    %295 = arith.mulf %292, %294 : vector<8x512xf32>
    %c8_129 = arith.constant 8 : index
    %c0_130 = arith.constant 0 : index
    %296 = vector.load %arg13[%c8_129, %c0_130] : memref<72x512xf32, #tpu.memory_space<vmem>>, vector<8x512xf32>
    tpu.vector_store %arg13[%c8_129, %c0_130], %295 {strides = array<i32>} : memref<72x512xf32, #tpu.memory_space<vmem>>, vector<8x512xf32>,
    %c15_i32_131 = arith.constant 15 : i32
    %297 = tpu.dynamic_rotate %286 by %c15_i32_131 dim 1 : vector<8x512xf32>, i32 -> vector<8x512xf32>
    %c2_132 = arith.constant 2 : index
    %c0_133 = arith.constant 0 : index
    %298 = vector.load %arg15[%c2_132, %c0_133] : memref<9x512xf32, #tpu.memory_space<vmem>>, vector<1x512xf32>
    %299 = vector.broadcast %298 : vector<1x512xf32> to vector<8x512xf32>
    %300 = arith.mulf %297, %299 : vector<8x512xf32>
    %c16_134 = arith.constant 16 : index
    %c0_135 = arith.constant 0 : index
    %301 = vector.load %arg13[%c16_134, %c0_135] : memref<72x512xf32, #tpu.memory_space<vmem>>, vector<8x512xf32>
    tpu.vector_store %arg13[%c16_134, %c0_135], %300 {strides = array<i32>} : memref<72x512xf32, #tpu.memory_space<vmem>>, vector<8x512xf32>,
    %c1_i32_136 = arith.constant 1 : i32
    %302 = tpu.dynamic_rotate %286 by %c1_i32_136 dim 1 : vector<8x512xf32>, i32 -> vector<8x512xf32>
    %c3_137 = arith.constant 3 : index
    %c0_138 = arith.constant 0 : index
    %303 = vector.load %arg15[%c3_137, %c0_138] : memref<9x512xf32, #tpu.memory_space<vmem>>, vector<1x512xf32>
    %304 = vector.broadcast %303 : vector<1x512xf32> to vector<8x512xf32>
    %305 = arith.mulf %302, %304 : vector<8x512xf32>
    %c24_139 = arith.constant 24 : index
    %c0_140 = arith.constant 0 : index
    %306 = vector.load %arg13[%c24_139, %c0_140] : memref<72x512xf32, #tpu.memory_space<vmem>>, vector<8x512xf32>
    tpu.vector_store %arg13[%c24_139, %c0_140], %305 {strides = array<i32>} : memref<72x512xf32, #tpu.memory_space<vmem>>, vector<8x512xf32>,
    %c4_141 = arith.constant 4 : index
    %c0_142 = arith.constant 0 : index
    %307 = vector.load %arg15[%c4_141, %c0_142] : memref<9x512xf32, #tpu.memory_space<vmem>>, vector<1x512xf32>
    %308 = vector.broadcast %307 : vector<1x512xf32> to vector<8x512xf32>
    %309 = arith.mulf %286, %308 : vector<8x512xf32>
    %c32_143 = arith.constant 32 : index
    %c0_144 = arith.constant 0 : index
    %310 = vector.load %arg13[%c32_143, %c0_144] : memref<72x512xf32, #tpu.memory_space<vmem>>, vector<8x512xf32>
    tpu.vector_store %arg13[%c32_143, %c0_144], %309 {strides = array<i32>} : memref<72x512xf32, #tpu.memory_space<vmem>>, vector<8x512xf32>,
    %c511_i32_145 = arith.constant 511 : i32
    %311 = tpu.dynamic_rotate %286 by %c511_i32_145 dim 1 : vector<8x512xf32>, i32 -> vector<8x512xf32>
    %c5_146 = arith.constant 5 : index
    %c0_147 = arith.constant 0 : index
    %312 = vector.load %arg15[%c5_146, %c0_147] : memref<9x512xf32, #tpu.memory_space<vmem>>, vector<1x512xf32>
    %313 = vector.broadcast %312 : vector<1x512xf32> to vector<8x512xf32>
    %314 = arith.mulf %311, %313 : vector<8x512xf32>
    %c40_148 = arith.constant 40 : index
    %c0_149 = arith.constant 0 : index
    %315 = vector.load %arg13[%c40_148, %c0_149] : memref<72x512xf32, #tpu.memory_space<vmem>>, vector<8x512xf32>
    tpu.vector_store %arg13[%c40_148, %c0_149], %314 {strides = array<i32>} : memref<72x512xf32, #tpu.memory_space<vmem>>, vector<8x512xf32>,
    %c497_i32_150 = arith.constant 497 : i32
    %316 = tpu.dynamic_rotate %286 by %c497_i32_150 dim 1 : vector<8x512xf32>, i32 -> vector<8x512xf32>
    %c6_151 = arith.constant 6 : index
    %c0_152 = arith.constant 0 : index
    %317 = vector.load %arg15[%c6_151, %c0_152] : memref<9x512xf32, #tpu.memory_space<vmem>>, vector<1x512xf32>
    %318 = vector.broadcast %317 : vector<1x512xf32> to vector<8x512xf32>
    %319 = arith.mulf %316, %318 : vector<8x512xf32>
    %c48_153 = arith.constant 48 : index
    %c0_154 = arith.constant 0 : index
    %320 = vector.load %arg13[%c48_153, %c0_154] : memref<72x512xf32, #tpu.memory_space<vmem>>, vector<8x512xf32>
    tpu.vector_store %arg13[%c48_153, %c0_154], %319 {strides = array<i32>} : memref<72x512xf32, #tpu.memory_space<vmem>>, vector<8x512xf32>,
    %c496_i32_155 = arith.constant 496 : i32
    %321 = tpu.dynamic_rotate %286 by %c496_i32_155 dim 1 : vector<8x512xf32>, i32 -> vector<8x512xf32>
    %c7_156 = arith.constant 7 : index
    %c0_157 = arith.constant 0 : index
    %322 = vector.load %arg15[%c7_156, %c0_157] : memref<9x512xf32, #tpu.memory_space<vmem>>, vector<1x512xf32>
    %323 = vector.broadcast %322 : vector<1x512xf32> to vector<8x512xf32>
    %324 = arith.mulf %321, %323 : vector<8x512xf32>
    %c56_158 = arith.constant 56 : index
    %c0_159 = arith.constant 0 : index
    %325 = vector.load %arg13[%c56_158, %c0_159] : memref<72x512xf32, #tpu.memory_space<vmem>>, vector<8x512xf32>
    tpu.vector_store %arg13[%c56_158, %c0_159], %324 {strides = array<i32>} : memref<72x512xf32, #tpu.memory_space<vmem>>, vector<8x512xf32>,
    %c495_i32_160 = arith.constant 495 : i32
    %326 = tpu.dynamic_rotate %286 by %c495_i32_160 dim 1 : vector<8x512xf32>, i32 -> vector<8x512xf32>
    %c8_161 = arith.constant 8 : index
    %c0_162 = arith.constant 0 : index
    %327 = vector.load %arg15[%c8_161, %c0_162] : memref<9x512xf32, #tpu.memory_space<vmem>>, vector<1x512xf32>
    %328 = vector.broadcast %327 : vector<1x512xf32> to vector<8x512xf32>
    %329 = arith.mulf %326, %328 : vector<8x512xf32>
    %c64_163 = arith.constant 64 : index
    %c0_164 = arith.constant 0 : index
    %330 = vector.load %arg13[%c64_163, %c0_164] : memref<72x512xf32, #tpu.memory_space<vmem>>, vector<8x512xf32>
    tpu.vector_store %arg13[%c64_163, %c0_164], %329 {strides = array<i32>} : memref<72x512xf32, #tpu.memory_space<vmem>>, vector<8x512xf32>,
    %c0_165 = arith.constant 0 : index
    %c0_166 = arith.constant 0 : index
    %331 = vector.load %arg4[%c0_165, %c0_166] : memref<2x72xf32, #tpu.memory_space<vmem>>, vector<2x72xf32>
    %c0_167 = arith.constant 0 : index
    %c0_168 = arith.constant 0 : index
    %332 = vector.load %arg13[%c0_167, %c0_168] : memref<72x512xf32, #tpu.memory_space<vmem>>, vector<72x512xf32>
    %cst_169 = arith.constant dense<0.000000e+00> : vector<2x512xf32>
    %333 = tpu.matmul %331, %332, %cst_169 {dimension_numbers = #tpu.dot_dimension_numbers<[1], [0], [0], [1], [0, 0, 1, 1], [], []>} : vector<2x72xf32>, vector<72x512xf32>, vector<2x512xf32> -> vector<2x512xf32>
    %c0_170 = arith.constant 0 : index
    %c0_171 = arith.constant 0 : index
    %334 = vector.load %arg5[%c0_170, %c0_171] : memref<2x1xf32, #tpu.memory_space<vmem>>, vector<2x1xf32>
    %335 = vector.broadcast %334 : vector<2x1xf32> to vector<2x512xf32>
    %336 = arith.addf %333, %335 : vector<2x512xf32>
    %337 = math.tanh %336 : vector<2x512xf32>
    %cst_172 = arith.constant 2.000000e+00 : f32
    %338 = vector.broadcast %cst_172 : f32 to vector<2x512xf32>
    %339 = arith.mulf %337, %338 : vector<2x512xf32>
    %340 = vector.extract_strided_slice %339 {offsets = [0, 0], sizes = [2, 256], strides = [1, 1]} : vector<2x512xf32> to vector<2x256xf32>
    %341 = vector.extract_strided_slice %339 {offsets = [0, 256], sizes = [2, 256], strides = [1, 1]} : vector<2x512xf32> to vector<2x256xf32>
    %342 = vector.extract_strided_slice %340 {offsets = [0, 0], sizes = [1, 256], strides = [1, 1]} : vector<2x256xf32> to vector<1x256xf32>
    %343 = arith.addf %206, %342 : vector<1x256xf32>
    %344 = vector.extract_strided_slice %340 {offsets = [1, 0], sizes = [1, 256], strides = [1, 1]} : vector<2x256xf32> to vector<1x256xf32>
    %345 = arith.addf %208, %344 : vector<1x256xf32>
    %cst_173 = arith.constant 0.000000e+00 : f32
    %cst_174 = arith.constant 1.500000e+01 : f32
    %346 = vector.broadcast %cst_173 : f32 to vector<1x256xf32>
    %347 = arith.maximumf %346, %343 : vector<1x256xf32>
    %348 = vector.broadcast %cst_174 : f32 to vector<1x256xf32>
    %349 = arith.minimumf %348, %347 : vector<1x256xf32>
    %cst_175 = arith.constant 0.000000e+00 : f32
    %cst_176 = arith.constant 1.500000e+01 : f32
    %350 = vector.broadcast %cst_175 : f32 to vector<1x256xf32>
    %351 = arith.maximumf %350, %345 : vector<1x256xf32>
    %352 = vector.broadcast %cst_176 : f32 to vector<1x256xf32>
    %353 = arith.minimumf %352, %351 : vector<1x256xf32>
    %354 = vector.broadcast %349 : vector<1x256xf32> to vector<16x256xf32>
    %355 = arith.subf %210, %354 : vector<16x256xf32>
    %356 = math.absf %355 : vector<16x256xf32>
    %cst_177 = arith.constant 1.000000e+00 : f32
    %357 = vector.broadcast %cst_177 : f32 to vector<16x256xf32>
    %358 = arith.subf %357, %356 : vector<16x256xf32>
    %cst_178 = arith.constant 0.000000e+00 : f32
    %359 = vector.broadcast %cst_178 : f32 to vector<16x256xf32>
    %360 = arith.maximumf %358, %359 : vector<16x256xf32>
    %361 = vector.broadcast %353 : vector<1x256xf32> to vector<16x256xf32>
    %362 = arith.subf %210, %361 : vector<16x256xf32>
    %363 = math.absf %362 : vector<16x256xf32>
    %cst_179 = arith.constant 1.000000e+00 : f32
    %364 = vector.broadcast %cst_179 : f32 to vector<16x256xf32>
    %365 = arith.subf %364, %363 : vector<16x256xf32>
    %cst_180 = arith.constant 0.000000e+00 : f32
    %366 = vector.broadcast %cst_180 : f32 to vector<16x256xf32>
    %367 = arith.maximumf %365, %366 : vector<16x256xf32>
    %368 = vector.extract_strided_slice %340 {offsets = [0, 0], sizes = [1, 256], strides = [1, 1]} : vector<2x256xf32> to vector<1x256xf32>
    %c0_181 = arith.constant 0 : index
    %c0_182 = arith.constant 0 : index
    %369 = vector.load %arg14[%c0_181, %c0_182] : memref<32x256xf32, #tpu.memory_space<vmem>>, vector<1x256xf32>
    tpu.vector_store %arg14[%c0_181, %c0_182], %368 {strides = array<i32>} : memref<32x256xf32, #tpu.memory_space<vmem>>, vector<1x256xf32>,
    %c240_i32 = arith.constant 240 : i32
    %370 = tpu.dynamic_rotate %368 by %c240_i32 dim 1 : vector<1x256xf32>, i32 -> vector<1x256xf32>
    %c1_183 = arith.constant 1 : index
    %c0_184 = arith.constant 0 : index
    %371 = vector.load %arg14[%c1_183, %c0_184] : memref<32x256xf32, #tpu.memory_space<vmem>>, vector<1x256xf32>
    tpu.vector_store %arg14[%c1_183, %c0_184], %370 {strides = array<i32>} : memref<32x256xf32, #tpu.memory_space<vmem>>, vector<1x256xf32>,
    %c224_i32 = arith.constant 224 : i32
    %372 = tpu.dynamic_rotate %368 by %c224_i32 dim 1 : vector<1x256xf32>, i32 -> vector<1x256xf32>
    %c2_185 = arith.constant 2 : index
    %c0_186 = arith.constant 0 : index
    %373 = vector.load %arg14[%c2_185, %c0_186] : memref<32x256xf32, #tpu.memory_space<vmem>>, vector<1x256xf32>
    tpu.vector_store %arg14[%c2_185, %c0_186], %372 {strides = array<i32>} : memref<32x256xf32, #tpu.memory_space<vmem>>, vector<1x256xf32>,
    %c208_i32 = arith.constant 208 : i32
    %374 = tpu.dynamic_rotate %368 by %c208_i32 dim 1 : vector<1x256xf32>, i32 -> vector<1x256xf32>
    %c3_187 = arith.constant 3 : index
    %c0_188 = arith.constant 0 : index
    %375 = vector.load %arg14[%c3_187, %c0_188] : memref<32x256xf32, #tpu.memory_space<vmem>>, vector<1x256xf32>
    tpu.vector_store %arg14[%c3_187, %c0_188], %374 {strides = array<i32>} : memref<32x256xf32, #tpu.memory_space<vmem>>, vector<1x256xf32>,
    %c192_i32 = arith.constant 192 : i32
    %376 = tpu.dynamic_rotate %368 by %c192_i32 dim 1 : vector<1x256xf32>, i32 -> vector<1x256xf32>
    %c4_189 = arith.constant 4 : index
    %c0_190 = arith.constant 0 : index
    %377 = vector.load %arg14[%c4_189, %c0_190] : memref<32x256xf32, #tpu.memory_space<vmem>>, vector<1x256xf32>
    tpu.vector_store %arg14[%c4_189, %c0_190], %376 {strides = array<i32>} : memref<32x256xf32, #tpu.memory_space<vmem>>, vector<1x256xf32>,
    %c176_i32 = arith.constant 176 : i32
    %378 = tpu.dynamic_rotate %368 by %c176_i32 dim 1 : vector<1x256xf32>, i32 -> vector<1x256xf32>
    %c5_191 = arith.constant 5 : index
    %c0_192 = arith.constant 0 : index
    %379 = vector.load %arg14[%c5_191, %c0_192] : memref<32x256xf32, #tpu.memory_space<vmem>>, vector<1x256xf32>
    tpu.vector_store %arg14[%c5_191, %c0_192], %378 {strides = array<i32>} : memref<32x256xf32, #tpu.memory_space<vmem>>, vector<1x256xf32>,
    %c160_i32 = arith.constant 160 : i32
    %380 = tpu.dynamic_rotate %368 by %c160_i32 dim 1 : vector<1x256xf32>, i32 -> vector<1x256xf32>
    %c6_193 = arith.constant 6 : index
    %c0_194 = arith.constant 0 : index
    %381 = vector.load %arg14[%c6_193, %c0_194] : memref<32x256xf32, #tpu.memory_space<vmem>>, vector<1x256xf32>
    tpu.vector_store %arg14[%c6_193, %c0_194], %380 {strides = array<i32>} : memref<32x256xf32, #tpu.memory_space<vmem>>, vector<1x256xf32>,
    %c144_i32 = arith.constant 144 : i32
    %382 = tpu.dynamic_rotate %368 by %c144_i32 dim 1 : vector<1x256xf32>, i32 -> vector<1x256xf32>
    %c7_195 = arith.constant 7 : index
    %c0_196 = arith.constant 0 : index
    %383 = vector.load %arg14[%c7_195, %c0_196] : memref<32x256xf32, #tpu.memory_space<vmem>>, vector<1x256xf32>
    tpu.vector_store %arg14[%c7_195, %c0_196], %382 {strides = array<i32>} : memref<32x256xf32, #tpu.memory_space<vmem>>, vector<1x256xf32>,
    %c128_i32 = arith.constant 128 : i32
    %384 = tpu.dynamic_rotate %368 by %c128_i32 dim 1 : vector<1x256xf32>, i32 -> vector<1x256xf32>
    %c8_197 = arith.constant 8 : index
    %c0_198 = arith.constant 0 : index
    %385 = vector.load %arg14[%c8_197, %c0_198] : memref<32x256xf32, #tpu.memory_space<vmem>>, vector<1x256xf32>
    tpu.vector_store %arg14[%c8_197, %c0_198], %384 {strides = array<i32>} : memref<32x256xf32, #tpu.memory_space<vmem>>, vector<1x256xf32>,
    %c112_i32 = arith.constant 112 : i32
    %386 = tpu.dynamic_rotate %368 by %c112_i32 dim 1 : vector<1x256xf32>, i32 -> vector<1x256xf32>
    %c9 = arith.constant 9 : index
    %c0_199 = arith.constant 0 : index
    %387 = vector.load %arg14[%c9, %c0_199] : memref<32x256xf32, #tpu.memory_space<vmem>>, vector<1x256xf32>
    tpu.vector_store %arg14[%c9, %c0_199], %386 {strides = array<i32>} : memref<32x256xf32, #tpu.memory_space<vmem>>, vector<1x256xf32>,
    %c96_i32 = arith.constant 96 : i32
    %388 = tpu.dynamic_rotate %368 by %c96_i32 dim 1 : vector<1x256xf32>, i32 -> vector<1x256xf32>
    %c10 = arith.constant 10 : index
    %c0_200 = arith.constant 0 : index
    %389 = vector.load %arg14[%c10, %c0_200] : memref<32x256xf32, #tpu.memory_space<vmem>>, vector<1x256xf32>
    tpu.vector_store %arg14[%c10, %c0_200], %388 {strides = array<i32>} : memref<32x256xf32, #tpu.memory_space<vmem>>, vector<1x256xf32>,
    %c80_i32 = arith.constant 80 : i32
    %390 = tpu.dynamic_rotate %368 by %c80_i32 dim 1 : vector<1x256xf32>, i32 -> vector<1x256xf32>
    %c11 = arith.constant 11 : index
    %c0_201 = arith.constant 0 : index
    %391 = vector.load %arg14[%c11, %c0_201] : memref<32x256xf32, #tpu.memory_space<vmem>>, vector<1x256xf32>
    tpu.vector_store %arg14[%c11, %c0_201], %390 {strides = array<i32>} : memref<32x256xf32, #tpu.memory_space<vmem>>, vector<1x256xf32>,
    %c64_i32 = arith.constant 64 : i32
    %392 = tpu.dynamic_rotate %368 by %c64_i32 dim 1 : vector<1x256xf32>, i32 -> vector<1x256xf32>
    %c12 = arith.constant 12 : index
    %c0_202 = arith.constant 0 : index
    %393 = vector.load %arg14[%c12, %c0_202] : memref<32x256xf32, #tpu.memory_space<vmem>>, vector<1x256xf32>
    tpu.vector_store %arg14[%c12, %c0_202], %392 {strides = array<i32>} : memref<32x256xf32, #tpu.memory_space<vmem>>, vector<1x256xf32>,
    %c48_i32 = arith.constant 48 : i32
    %394 = tpu.dynamic_rotate %368 by %c48_i32 dim 1 : vector<1x256xf32>, i32 -> vector<1x256xf32>
    %c13 = arith.constant 13 : index
    %c0_203 = arith.constant 0 : index
    %395 = vector.load %arg14[%c13, %c0_203] : memref<32x256xf32, #tpu.memory_space<vmem>>, vector<1x256xf32>
    tpu.vector_store %arg14[%c13, %c0_203], %394 {strides = array<i32>} : memref<32x256xf32, #tpu.memory_space<vmem>>, vector<1x256xf32>,
    %c32_i32 = arith.constant 32 : i32
    %396 = tpu.dynamic_rotate %368 by %c32_i32 dim 1 : vector<1x256xf32>, i32 -> vector<1x256xf32>
    %c14 = arith.constant 14 : index
    %c0_204 = arith.constant 0 : index
    %397 = vector.load %arg14[%c14, %c0_204] : memref<32x256xf32, #tpu.memory_space<vmem>>, vector<1x256xf32>
    tpu.vector_store %arg14[%c14, %c0_204], %396 {strides = array<i32>} : memref<32x256xf32, #tpu.memory_space<vmem>>, vector<1x256xf32>,
    %c16_i32_205 = arith.constant 16 : i32
    %398 = tpu.dynamic_rotate %368 by %c16_i32_205 dim 1 : vector<1x256xf32>, i32 -> vector<1x256xf32>
    %c15 = arith.constant 15 : index
    %c0_206 = arith.constant 0 : index
    %399 = vector.load %arg14[%c15, %c0_206] : memref<32x256xf32, #tpu.memory_space<vmem>>, vector<1x256xf32>
    tpu.vector_store %arg14[%c15, %c0_206], %398 {strides = array<i32>} : memref<32x256xf32, #tpu.memory_space<vmem>>, vector<1x256xf32>,
    %400 = vector.extract_strided_slice %340 {offsets = [1, 0], sizes = [1, 256], strides = [1, 1]} : vector<2x256xf32> to vector<1x256xf32>
    %c16_207 = arith.constant 16 : index
    %c0_208 = arith.constant 0 : index
    %401 = vector.load %arg14[%c16_207, %c0_208] : memref<32x256xf32, #tpu.memory_space<vmem>>, vector<1x256xf32>
    tpu.vector_store %arg14[%c16_207, %c0_208], %400 {strides = array<i32>} : memref<32x256xf32, #tpu.memory_space<vmem>>, vector<1x256xf32>,
    %c240_i32_209 = arith.constant 240 : i32
    %402 = tpu.dynamic_rotate %400 by %c240_i32_209 dim 1 : vector<1x256xf32>, i32 -> vector<1x256xf32>
    %c17 = arith.constant 17 : index
    %c0_210 = arith.constant 0 : index
    %403 = vector.load %arg14[%c17, %c0_210] : memref<32x256xf32, #tpu.memory_space<vmem>>, vector<1x256xf32>
    tpu.vector_store %arg14[%c17, %c0_210], %402 {strides = array<i32>} : memref<32x256xf32, #tpu.memory_space<vmem>>, vector<1x256xf32>,
    %c224_i32_211 = arith.constant 224 : i32
    %404 = tpu.dynamic_rotate %400 by %c224_i32_211 dim 1 : vector<1x256xf32>, i32 -> vector<1x256xf32>
    %c18 = arith.constant 18 : index
    %c0_212 = arith.constant 0 : index
    %405 = vector.load %arg14[%c18, %c0_212] : memref<32x256xf32, #tpu.memory_space<vmem>>, vector<1x256xf32>
    tpu.vector_store %arg14[%c18, %c0_212], %404 {strides = array<i32>} : memref<32x256xf32, #tpu.memory_space<vmem>>, vector<1x256xf32>,
    %c208_i32_213 = arith.constant 208 : i32
    %406 = tpu.dynamic_rotate %400 by %c208_i32_213 dim 1 : vector<1x256xf32>, i32 -> vector<1x256xf32>
    %c19 = arith.constant 19 : index
    %c0_214 = arith.constant 0 : index
    %407 = vector.load %arg14[%c19, %c0_214] : memref<32x256xf32, #tpu.memory_space<vmem>>, vector<1x256xf32>
    tpu.vector_store %arg14[%c19, %c0_214], %406 {strides = array<i32>} : memref<32x256xf32, #tpu.memory_space<vmem>>, vector<1x256xf32>,
    %c192_i32_215 = arith.constant 192 : i32
    %408 = tpu.dynamic_rotate %400 by %c192_i32_215 dim 1 : vector<1x256xf32>, i32 -> vector<1x256xf32>
    %c20 = arith.constant 20 : index
    %c0_216 = arith.constant 0 : index
    %409 = vector.load %arg14[%c20, %c0_216] : memref<32x256xf32, #tpu.memory_space<vmem>>, vector<1x256xf32>
    tpu.vector_store %arg14[%c20, %c0_216], %408 {strides = array<i32>} : memref<32x256xf32, #tpu.memory_space<vmem>>, vector<1x256xf32>,
    %c176_i32_217 = arith.constant 176 : i32
    %410 = tpu.dynamic_rotate %400 by %c176_i32_217 dim 1 : vector<1x256xf32>, i32 -> vector<1x256xf32>
    %c21 = arith.constant 21 : index
    %c0_218 = arith.constant 0 : index
    %411 = vector.load %arg14[%c21, %c0_218] : memref<32x256xf32, #tpu.memory_space<vmem>>, vector<1x256xf32>
    tpu.vector_store %arg14[%c21, %c0_218], %410 {strides = array<i32>} : memref<32x256xf32, #tpu.memory_space<vmem>>, vector<1x256xf32>,
    %c160_i32_219 = arith.constant 160 : i32
    %412 = tpu.dynamic_rotate %400 by %c160_i32_219 dim 1 : vector<1x256xf32>, i32 -> vector<1x256xf32>
    %c22 = arith.constant 22 : index
    %c0_220 = arith.constant 0 : index
    %413 = vector.load %arg14[%c22, %c0_220] : memref<32x256xf32, #tpu.memory_space<vmem>>, vector<1x256xf32>
    tpu.vector_store %arg14[%c22, %c0_220], %412 {strides = array<i32>} : memref<32x256xf32, #tpu.memory_space<vmem>>, vector<1x256xf32>,
    %c144_i32_221 = arith.constant 144 : i32
    %414 = tpu.dynamic_rotate %400 by %c144_i32_221 dim 1 : vector<1x256xf32>, i32 -> vector<1x256xf32>
    %c23 = arith.constant 23 : index
    %c0_222 = arith.constant 0 : index
    %415 = vector.load %arg14[%c23, %c0_222] : memref<32x256xf32, #tpu.memory_space<vmem>>, vector<1x256xf32>
    tpu.vector_store %arg14[%c23, %c0_222], %414 {strides = array<i32>} : memref<32x256xf32, #tpu.memory_space<vmem>>, vector<1x256xf32>,
    %c128_i32_223 = arith.constant 128 : i32
    %416 = tpu.dynamic_rotate %400 by %c128_i32_223 dim 1 : vector<1x256xf32>, i32 -> vector<1x256xf32>
    %c24_224 = arith.constant 24 : index
    %c0_225 = arith.constant 0 : index
    %417 = vector.load %arg14[%c24_224, %c0_225] : memref<32x256xf32, #tpu.memory_space<vmem>>, vector<1x256xf32>
    tpu.vector_store %arg14[%c24_224, %c0_225], %416 {strides = array<i32>} : memref<32x256xf32, #tpu.memory_space<vmem>>, vector<1x256xf32>,
    %c112_i32_226 = arith.constant 112 : i32
    %418 = tpu.dynamic_rotate %400 by %c112_i32_226 dim 1 : vector<1x256xf32>, i32 -> vector<1x256xf32>
    %c25 = arith.constant 25 : index
    %c0_227 = arith.constant 0 : index
    %419 = vector.load %arg14[%c25, %c0_227] : memref<32x256xf32, #tpu.memory_space<vmem>>, vector<1x256xf32>
    tpu.vector_store %arg14[%c25, %c0_227], %418 {strides = array<i32>} : memref<32x256xf32, #tpu.memory_space<vmem>>, vector<1x256xf32>,
    %c96_i32_228 = arith.constant 96 : i32
    %420 = tpu.dynamic_rotate %400 by %c96_i32_228 dim 1 : vector<1x256xf32>, i32 -> vector<1x256xf32>
    %c26 = arith.constant 26 : index
    %c0_229 = arith.constant 0 : index
    %421 = vector.load %arg14[%c26, %c0_229] : memref<32x256xf32, #tpu.memory_space<vmem>>, vector<1x256xf32>
    tpu.vector_store %arg14[%c26, %c0_229], %420 {strides = array<i32>} : memref<32x256xf32, #tpu.memory_space<vmem>>, vector<1x256xf32>,
    %c80_i32_230 = arith.constant 80 : i32
    %422 = tpu.dynamic_rotate %400 by %c80_i32_230 dim 1 : vector<1x256xf32>, i32 -> vector<1x256xf32>
    %c27 = arith.constant 27 : index
    %c0_231 = arith.constant 0 : index
    %423 = vector.load %arg14[%c27, %c0_231] : memref<32x256xf32, #tpu.memory_space<vmem>>, vector<1x256xf32>
    tpu.vector_store %arg14[%c27, %c0_231], %422 {strides = array<i32>} : memref<32x256xf32, #tpu.memory_space<vmem>>, vector<1x256xf32>,
    %c64_i32_232 = arith.constant 64 : i32
    %424 = tpu.dynamic_rotate %400 by %c64_i32_232 dim 1 : vector<1x256xf32>, i32 -> vector<1x256xf32>
    %c28 = arith.constant 28 : index
    %c0_233 = arith.constant 0 : index
    %425 = vector.load %arg14[%c28, %c0_233] : memref<32x256xf32, #tpu.memory_space<vmem>>, vector<1x256xf32>
    tpu.vector_store %arg14[%c28, %c0_233], %424 {strides = array<i32>} : memref<32x256xf32, #tpu.memory_space<vmem>>, vector<1x256xf32>,
    %c48_i32_234 = arith.constant 48 : i32
    %426 = tpu.dynamic_rotate %400 by %c48_i32_234 dim 1 : vector<1x256xf32>, i32 -> vector<1x256xf32>
    %c29 = arith.constant 29 : index
    %c0_235 = arith.constant 0 : index
    %427 = vector.load %arg14[%c29, %c0_235] : memref<32x256xf32, #tpu.memory_space<vmem>>, vector<1x256xf32>
    tpu.vector_store %arg14[%c29, %c0_235], %426 {strides = array<i32>} : memref<32x256xf32, #tpu.memory_space<vmem>>, vector<1x256xf32>,
    %c32_i32_236 = arith.constant 32 : i32
    %428 = tpu.dynamic_rotate %400 by %c32_i32_236 dim 1 : vector<1x256xf32>, i32 -> vector<1x256xf32>
    %c30 = arith.constant 30 : index
    %c0_237 = arith.constant 0 : index
    %429 = vector.load %arg14[%c30, %c0_237] : memref<32x256xf32, #tpu.memory_space<vmem>>, vector<1x256xf32>
    tpu.vector_store %arg14[%c30, %c0_237], %428 {strides = array<i32>} : memref<32x256xf32, #tpu.memory_space<vmem>>, vector<1x256xf32>,
    %c16_i32_238 = arith.constant 16 : i32
    %430 = tpu.dynamic_rotate %400 by %c16_i32_238 dim 1 : vector<1x256xf32>, i32 -> vector<1x256xf32>
    %c31 = arith.constant 31 : index
    %c0_239 = arith.constant 0 : index
    %431 = vector.load %arg14[%c31, %c0_239] : memref<32x256xf32, #tpu.memory_space<vmem>>, vector<1x256xf32>
    tpu.vector_store %arg14[%c31, %c0_239], %430 {strides = array<i32>} : memref<32x256xf32, #tpu.memory_space<vmem>>, vector<1x256xf32>,
    %c0_240 = arith.constant 0 : index
    %c0_241 = arith.constant 0 : index
    %432 = vector.load %arg14[%c0_240, %c0_241] : memref<32x256xf32, #tpu.memory_space<vmem>>, vector<32x16xf32>
    %cst_242 = arith.constant dense<0.000000e+00> : vector<32x256xf32>
    %433 = tpu.matmul %432, %367, %cst_242 {dimension_numbers = #tpu.dot_dimension_numbers<[1], [0], [0], [1], [0, 0, 1, 1], [], []>} : vector<32x16xf32>, vector<16x256xf32>, vector<32x256xf32> -> vector<32x256xf32>
    %434 = vector.extract_strided_slice %433 {offsets = [0, 0], sizes = [16, 256], strides = [1, 1]} : vector<32x256xf32> to vector<16x256xf32>
    %435 = arith.mulf %434, %360 : vector<16x256xf32>
    %cst_243 = arith.constant dense<0.000000e+00> : vector<256xf32>
    %436 = vector.multi_reduction <add>, %435, %cst_243 [0] : vector<16x256xf32> to vector<256xf32>
    %437 = vector.shape_cast %436 : vector<256xf32> to vector<1x256xf32>
    %438 = vector.extract_strided_slice %433 {offsets = [16, 0], sizes = [16, 256], strides = [1, 1]} : vector<32x256xf32> to vector<16x256xf32>
    %439 = arith.mulf %438, %360 : vector<16x256xf32>
    %cst_244 = arith.constant dense<0.000000e+00> : vector<256xf32>
    %440 = vector.multi_reduction <add>, %439, %cst_244 [0] : vector<16x256xf32> to vector<256xf32>
    %441 = vector.shape_cast %440 : vector<256xf32> to vector<1x256xf32>
    %442 = tpu.iota {dimensions = array<i32: 0>} : vector<2x1xi32>
    %c0_i32_245 = arith.constant 0 : i32
    %443 = vector.broadcast %c0_i32_245 : i32 to vector<2x1xi32>
    %444 = arith.cmpi eq, %442, %443 : vector<2x1xi32>
    %445 = arith.extui %444 : vector<2x1xi1> to vector<2x1xi32>
    %446 = arith.sitofp %445 : vector<2x1xi32> to vector<2x1xf32>
    %447 = vector.shape_cast %437 : vector<1x256xf32> to vector<1x256xf32>
    %448 = vector.broadcast %447 : vector<1x256xf32> to vector<2x256xf32>
    %449 = vector.broadcast %446 : vector<2x1xf32> to vector<2x256xf32>
    %450 = arith.mulf %449, %448 : vector<2x256xf32>
    %c1_i32_246 = arith.constant 1 : i32
    %451 = vector.broadcast %c1_i32_246 : i32 to vector<2x1xi32>
    %452 = arith.cmpi eq, %442, %451 : vector<2x1xi32>
    %453 = arith.extui %452 : vector<2x1xi1> to vector<2x1xi32>
    %454 = arith.sitofp %453 : vector<2x1xi32> to vector<2x1xf32>
    %455 = vector.shape_cast %441 : vector<1x256xf32> to vector<1x256xf32>
    %456 = vector.broadcast %455 : vector<1x256xf32> to vector<2x256xf32>
    %457 = vector.broadcast %454 : vector<2x1xf32> to vector<2x256xf32>
    %458 = arith.mulf %457, %456 : vector<2x256xf32>
    %459 = arith.addf %450, %458 : vector<2x256xf32>
    %460 = arith.addf %340, %459 : vector<2x256xf32>
    %461 = vector.extract_strided_slice %460 {offsets = [0, 0], sizes = [1, 256], strides = [1, 1]} : vector<2x256xf32> to vector<1x256xf32>
    %462 = arith.addf %206, %461 : vector<1x256xf32>
    %463 = vector.extract_strided_slice %460 {offsets = [1, 0], sizes = [1, 256], strides = [1, 1]} : vector<2x256xf32> to vector<1x256xf32>
    %464 = arith.addf %208, %463 : vector<1x256xf32>
    %cst_247 = arith.constant 0.000000e+00 : f32
    %cst_248 = arith.constant 1.500000e+01 : f32
    %465 = vector.broadcast %cst_247 : f32 to vector<1x256xf32>
    %466 = arith.maximumf %465, %462 : vector<1x256xf32>
    %467 = vector.broadcast %cst_248 : f32 to vector<1x256xf32>
    %468 = arith.minimumf %467, %466 : vector<1x256xf32>
    %cst_249 = arith.constant 0.000000e+00 : f32
    %cst_250 = arith.constant 1.500000e+01 : f32
    %469 = vector.broadcast %cst_249 : f32 to vector<1x256xf32>
    %470 = arith.maximumf %469, %464 : vector<1x256xf32>
    %471 = vector.broadcast %cst_250 : f32 to vector<1x256xf32>
    %472 = arith.minimumf %471, %470 : vector<1x256xf32>
    %473 = vector.broadcast %468 : vector<1x256xf32> to vector<16x256xf32>
    %474 = arith.subf %210, %473 : vector<16x256xf32>
    %475 = math.absf %474 : vector<16x256xf32>
    %cst_251 = arith.constant 1.000000e+00 : f32
    %476 = vector.broadcast %cst_251 : f32 to vector<16x256xf32>
    %477 = arith.subf %476, %475 : vector<16x256xf32>
    %cst_252 = arith.constant 0.000000e+00 : f32
    %478 = vector.broadcast %cst_252 : f32 to vector<16x256xf32>
    %479 = arith.maximumf %477, %478 : vector<16x256xf32>
    %480 = vector.broadcast %472 : vector<1x256xf32> to vector<16x256xf32>
    %481 = arith.subf %210, %480 : vector<16x256xf32>
    %482 = math.absf %481 : vector<16x256xf32>
    %cst_253 = arith.constant 1.000000e+00 : f32
    %483 = vector.broadcast %cst_253 : f32 to vector<16x256xf32>
    %484 = arith.subf %483, %482 : vector<16x256xf32>
    %cst_254 = arith.constant 0.000000e+00 : f32
    %485 = vector.broadcast %cst_254 : f32 to vector<16x256xf32>
    %486 = arith.maximumf %484, %485 : vector<16x256xf32>
    %c0_255 = arith.constant 0 : index
    %c0_256 = arith.constant 0 : index
    %487 = vector.load %arg14[%c0_255, %c0_256] : memref<32x256xf32, #tpu.memory_space<vmem>>, vector<1x256xf32>
    tpu.vector_store %arg14[%c0_255, %c0_256], %222 {strides = array<i32>} : memref<32x256xf32, #tpu.memory_space<vmem>>, vector<1x256xf32>,
    %c240_i32_257 = arith.constant 240 : i32
    %488 = tpu.dynamic_rotate %222 by %c240_i32_257 dim 1 : vector<1x256xf32>, i32 -> vector<1x256xf32>
    %c1_258 = arith.constant 1 : index
    %c0_259 = arith.constant 0 : index
    %489 = vector.load %arg14[%c1_258, %c0_259] : memref<32x256xf32, #tpu.memory_space<vmem>>, vector<1x256xf32>
    tpu.vector_store %arg14[%c1_258, %c0_259], %488 {strides = array<i32>} : memref<32x256xf32, #tpu.memory_space<vmem>>, vector<1x256xf32>,
    %c224_i32_260 = arith.constant 224 : i32
    %490 = tpu.dynamic_rotate %222 by %c224_i32_260 dim 1 : vector<1x256xf32>, i32 -> vector<1x256xf32>
    %c2_261 = arith.constant 2 : index
    %c0_262 = arith.constant 0 : index
    %491 = vector.load %arg14[%c2_261, %c0_262] : memref<32x256xf32, #tpu.memory_space<vmem>>, vector<1x256xf32>
    tpu.vector_store %arg14[%c2_261, %c0_262], %490 {strides = array<i32>} : memref<32x256xf32, #tpu.memory_space<vmem>>, vector<1x256xf32>,
    %c208_i32_263 = arith.constant 208 : i32
    %492 = tpu.dynamic_rotate %222 by %c208_i32_263 dim 1 : vector<1x256xf32>, i32 -> vector<1x256xf32>
    %c3_264 = arith.constant 3 : index
    %c0_265 = arith.constant 0 : index
    %493 = vector.load %arg14[%c3_264, %c0_265] : memref<32x256xf32, #tpu.memory_space<vmem>>, vector<1x256xf32>
    tpu.vector_store %arg14[%c3_264, %c0_265], %492 {strides = array<i32>} : memref<32x256xf32, #tpu.memory_space<vmem>>, vector<1x256xf32>,
    %c192_i32_266 = arith.constant 192 : i32
    %494 = tpu.dynamic_rotate %222 by %c192_i32_266 dim 1 : vector<1x256xf32>, i32 -> vector<1x256xf32>
    %c4_267 = arith.constant 4 : index
    %c0_268 = arith.constant 0 : index
    %495 = vector.load %arg14[%c4_267, %c0_268] : memref<32x256xf32, #tpu.memory_space<vmem>>, vector<1x256xf32>
    tpu.vector_store %arg14[%c4_267, %c0_268], %494 {strides = array<i32>} : memref<32x256xf32, #tpu.memory_space<vmem>>, vector<1x256xf32>,
    %c176_i32_269 = arith.constant 176 : i32
    %496 = tpu.dynamic_rotate %222 by %c176_i32_269 dim 1 : vector<1x256xf32>, i32 -> vector<1x256xf32>
    %c5_270 = arith.constant 5 : index
    %c0_271 = arith.constant 0 : index
    %497 = vector.load %arg14[%c5_270, %c0_271] : memref<32x256xf32, #tpu.memory_space<vmem>>, vector<1x256xf32>
    tpu.vector_store %arg14[%c5_270, %c0_271], %496 {strides = array<i32>} : memref<32x256xf32, #tpu.memory_space<vmem>>, vector<1x256xf32>,
    %c160_i32_272 = arith.constant 160 : i32
    %498 = tpu.dynamic_rotate %222 by %c160_i32_272 dim 1 : vector<1x256xf32>, i32 -> vector<1x256xf32>
    %c6_273 = arith.constant 6 : index
    %c0_274 = arith.constant 0 : index
    %499 = vector.load %arg14[%c6_273, %c0_274] : memref<32x256xf32, #tpu.memory_space<vmem>>, vector<1x256xf32>
    tpu.vector_store %arg14[%c6_273, %c0_274], %498 {strides = array<i32>} : memref<32x256xf32, #tpu.memory_space<vmem>>, vector<1x256xf32>,
    %c144_i32_275 = arith.constant 144 : i32
    %500 = tpu.dynamic_rotate %222 by %c144_i32_275 dim 1 : vector<1x256xf32>, i32 -> vector<1x256xf32>
    %c7_276 = arith.constant 7 : index
    %c0_277 = arith.constant 0 : index
    %501 = vector.load %arg14[%c7_276, %c0_277] : memref<32x256xf32, #tpu.memory_space<vmem>>, vector<1x256xf32>
    tpu.vector_store %arg14[%c7_276, %c0_277], %500 {strides = array<i32>} : memref<32x256xf32, #tpu.memory_space<vmem>>, vector<1x256xf32>,
    %c128_i32_278 = arith.constant 128 : i32
    %502 = tpu.dynamic_rotate %222 by %c128_i32_278 dim 1 : vector<1x256xf32>, i32 -> vector<1x256xf32>
    %c8_279 = arith.constant 8 : index
    %c0_280 = arith.constant 0 : index
    %503 = vector.load %arg14[%c8_279, %c0_280] : memref<32x256xf32, #tpu.memory_space<vmem>>, vector<1x256xf32>
    tpu.vector_store %arg14[%c8_279, %c0_280], %502 {strides = array<i32>} : memref<32x256xf32, #tpu.memory_space<vmem>>, vector<1x256xf32>,
    %c112_i32_281 = arith.constant 112 : i32
    %504 = tpu.dynamic_rotate %222 by %c112_i32_281 dim 1 : vector<1x256xf32>, i32 -> vector<1x256xf32>
    %c9_282 = arith.constant 9 : index
    %c0_283 = arith.constant 0 : index
    %505 = vector.load %arg14[%c9_282, %c0_283] : memref<32x256xf32, #tpu.memory_space<vmem>>, vector<1x256xf32>
    tpu.vector_store %arg14[%c9_282, %c0_283], %504 {strides = array<i32>} : memref<32x256xf32, #tpu.memory_space<vmem>>, vector<1x256xf32>,
    %c96_i32_284 = arith.constant 96 : i32
    %506 = tpu.dynamic_rotate %222 by %c96_i32_284 dim 1 : vector<1x256xf32>, i32 -> vector<1x256xf32>
    %c10_285 = arith.constant 10 : index
    %c0_286 = arith.constant 0 : index
    %507 = vector.load %arg14[%c10_285, %c0_286] : memref<32x256xf32, #tpu.memory_space<vmem>>, vector<1x256xf32>
    tpu.vector_store %arg14[%c10_285, %c0_286], %506 {strides = array<i32>} : memref<32x256xf32, #tpu.memory_space<vmem>>, vector<1x256xf32>,
    %c80_i32_287 = arith.constant 80 : i32
    %508 = tpu.dynamic_rotate %222 by %c80_i32_287 dim 1 : vector<1x256xf32>, i32 -> vector<1x256xf32>
    %c11_288 = arith.constant 11 : index
    %c0_289 = arith.constant 0 : index
    %509 = vector.load %arg14[%c11_288, %c0_289] : memref<32x256xf32, #tpu.memory_space<vmem>>, vector<1x256xf32>
    tpu.vector_store %arg14[%c11_288, %c0_289], %508 {strides = array<i32>} : memref<32x256xf32, #tpu.memory_space<vmem>>, vector<1x256xf32>,
    %c64_i32_290 = arith.constant 64 : i32
    %510 = tpu.dynamic_rotate %222 by %c64_i32_290 dim 1 : vector<1x256xf32>, i32 -> vector<1x256xf32>
    %c12_291 = arith.constant 12 : index
    %c0_292 = arith.constant 0 : index
    %511 = vector.load %arg14[%c12_291, %c0_292] : memref<32x256xf32, #tpu.memory_space<vmem>>, vector<1x256xf32>
    tpu.vector_store %arg14[%c12_291, %c0_292], %510 {strides = array<i32>} : memref<32x256xf32, #tpu.memory_space<vmem>>, vector<1x256xf32>,
    %c48_i32_293 = arith.constant 48 : i32
    %512 = tpu.dynamic_rotate %222 by %c48_i32_293 dim 1 : vector<1x256xf32>, i32 -> vector<1x256xf32>
    %c13_294 = arith.constant 13 : index
    %c0_295 = arith.constant 0 : index
    %513 = vector.load %arg14[%c13_294, %c0_295] : memref<32x256xf32, #tpu.memory_space<vmem>>, vector<1x256xf32>
    tpu.vector_store %arg14[%c13_294, %c0_295], %512 {strides = array<i32>} : memref<32x256xf32, #tpu.memory_space<vmem>>, vector<1x256xf32>,
    %c32_i32_296 = arith.constant 32 : i32
    %514 = tpu.dynamic_rotate %222 by %c32_i32_296 dim 1 : vector<1x256xf32>, i32 -> vector<1x256xf32>
    %c14_297 = arith.constant 14 : index
    %c0_298 = arith.constant 0 : index
    %515 = vector.load %arg14[%c14_297, %c0_298] : memref<32x256xf32, #tpu.memory_space<vmem>>, vector<1x256xf32>
    tpu.vector_store %arg14[%c14_297, %c0_298], %514 {strides = array<i32>} : memref<32x256xf32, #tpu.memory_space<vmem>>, vector<1x256xf32>,
    %c16_i32_299 = arith.constant 16 : i32
    %516 = tpu.dynamic_rotate %222 by %c16_i32_299 dim 1 : vector<1x256xf32>, i32 -> vector<1x256xf32>
    %c15_300 = arith.constant 15 : index
    %c0_301 = arith.constant 0 : index
    %517 = vector.load %arg14[%c15_300, %c0_301] : memref<32x256xf32, #tpu.memory_space<vmem>>, vector<1x256xf32>
    tpu.vector_store %arg14[%c15_300, %c0_301], %516 {strides = array<i32>} : memref<32x256xf32, #tpu.memory_space<vmem>>, vector<1x256xf32>,
    %c0_302 = arith.constant 0 : index
    %c0_303 = arith.constant 0 : index
    %518 = vector.load %arg14[%c0_302, %c0_303] : memref<32x256xf32, #tpu.memory_space<vmem>>, vector<16x16xf32>
    %cst_304 = arith.constant dense<0.000000e+00> : vector<16x256xf32>
    %519 = tpu.matmul %518, %486, %cst_304 {dimension_numbers = #tpu.dot_dimension_numbers<[1], [0], [0], [1], [0, 0, 1, 1], [], []>} : vector<16x16xf32>, vector<16x256xf32>, vector<16x256xf32> -> vector<16x256xf32>
    %520 = arith.mulf %519, %479 : vector<16x256xf32>
    %cst_305 = arith.constant dense<0.000000e+00> : vector<256xf32>
    %521 = vector.multi_reduction <add>, %520, %cst_305 [0] : vector<16x256xf32> to vector<256xf32>
    %522 = vector.shape_cast %521 : vector<256xf32> to vector<1x256xf32>
    %523 = arith.subf %522, %223 : vector<1x256xf32>
    %524 = arith.mulf %523, %523 : vector<1x256xf32>
    %525 = vector.shape_cast %524 : vector<1x256xf32> to vector<1x1x256xf32>
    %cst_306 = arith.constant dense<0.000000e+00> : vector<1xf32>
    %526 = vector.multi_reduction <add>, %525, %cst_306 [1, 2] : vector<1x1x256xf32> to vector<1xf32>
    %527 = vector.shape_cast %526 : vector<1xf32> to vector<1x1x1xf32>
    %528 = vector.extract %527[0, 0, 0] : f32 from vector<1x1x1xf32>
    %529 = vector.broadcast %528 : f32 to vector<1x1xf32>
    %530 = vector.extract_strided_slice %341 {offsets = [0, 0], sizes = [1, 256], strides = [1, 1]} : vector<2x256xf32> to vector<1x256xf32>
    %531 = arith.addf %206, %530 : vector<1x256xf32>
    %532 = vector.extract_strided_slice %341 {offsets = [1, 0], sizes = [1, 256], strides = [1, 1]} : vector<2x256xf32> to vector<1x256xf32>
    %533 = arith.addf %208, %532 : vector<1x256xf32>
    %cst_307 = arith.constant 0.000000e+00 : f32
    %cst_308 = arith.constant 1.500000e+01 : f32
    %534 = vector.broadcast %cst_307 : f32 to vector<1x256xf32>
    %535 = arith.maximumf %534, %531 : vector<1x256xf32>
    %536 = vector.broadcast %cst_308 : f32 to vector<1x256xf32>
    %537 = arith.minimumf %536, %535 : vector<1x256xf32>
    %cst_309 = arith.constant 0.000000e+00 : f32
    %cst_310 = arith.constant 1.500000e+01 : f32
    %538 = vector.broadcast %cst_309 : f32 to vector<1x256xf32>
    %539 = arith.maximumf %538, %533 : vector<1x256xf32>
    %540 = vector.broadcast %cst_310 : f32 to vector<1x256xf32>
    %541 = arith.minimumf %540, %539 : vector<1x256xf32>
    %542 = vector.broadcast %537 : vector<1x256xf32> to vector<16x256xf32>
    %543 = arith.subf %210, %542 : vector<16x256xf32>
    %544 = math.absf %543 : vector<16x256xf32>
    %cst_311 = arith.constant 1.000000e+00 : f32
    %545 = vector.broadcast %cst_311 : f32 to vector<16x256xf32>
    %546 = arith.subf %545, %544 : vector<16x256xf32>
    %cst_312 = arith.constant 0.000000e+00 : f32
    %547 = vector.broadcast %cst_312 : f32 to vector<16x256xf32>
    %548 = arith.maximumf %546, %547 : vector<16x256xf32>
    %549 = vector.broadcast %541 : vector<1x256xf32> to vector<16x256xf32>
    %550 = arith.subf %210, %549 : vector<16x256xf32>
    %551 = math.absf %550 : vector<16x256xf32>
    %cst_313 = arith.constant 1.000000e+00 : f32
    %552 = vector.broadcast %cst_313 : f32 to vector<16x256xf32>
    %553 = arith.subf %552, %551 : vector<16x256xf32>
    %cst_314 = arith.constant 0.000000e+00 : f32
    %554 = vector.broadcast %cst_314 : f32 to vector<16x256xf32>
    %555 = arith.maximumf %553, %554 : vector<16x256xf32>
    %556 = vector.extract_strided_slice %341 {offsets = [0, 0], sizes = [1, 256], strides = [1, 1]} : vector<2x256xf32> to vector<1x256xf32>
    %c0_315 = arith.constant 0 : index
    %c0_316 = arith.constant 0 : index
    %557 = vector.load %arg14[%c0_315, %c0_316] : memref<32x256xf32, #tpu.memory_space<vmem>>, vector<1x256xf32>
    tpu.vector_store %arg14[%c0_315, %c0_316], %556 {strides = array<i32>} : memref<32x256xf32, #tpu.memory_space<vmem>>, vector<1x256xf32>,
    %c240_i32_317 = arith.constant 240 : i32
    %558 = tpu.dynamic_rotate %556 by %c240_i32_317 dim 1 : vector<1x256xf32>, i32 -> vector<1x256xf32>
    %c1_318 = arith.constant 1 : index
    %c0_319 = arith.constant 0 : index
    %559 = vector.load %arg14[%c1_318, %c0_319] : memref<32x256xf32, #tpu.memory_space<vmem>>, vector<1x256xf32>
    tpu.vector_store %arg14[%c1_318, %c0_319], %558 {strides = array<i32>} : memref<32x256xf32, #tpu.memory_space<vmem>>, vector<1x256xf32>,
    %c224_i32_320 = arith.constant 224 : i32
    %560 = tpu.dynamic_rotate %556 by %c224_i32_320 dim 1 : vector<1x256xf32>, i32 -> vector<1x256xf32>
    %c2_321 = arith.constant 2 : index
    %c0_322 = arith.constant 0 : index
    %561 = vector.load %arg14[%c2_321, %c0_322] : memref<32x256xf32, #tpu.memory_space<vmem>>, vector<1x256xf32>
    tpu.vector_store %arg14[%c2_321, %c0_322], %560 {strides = array<i32>} : memref<32x256xf32, #tpu.memory_space<vmem>>, vector<1x256xf32>,
    %c208_i32_323 = arith.constant 208 : i32
    %562 = tpu.dynamic_rotate %556 by %c208_i32_323 dim 1 : vector<1x256xf32>, i32 -> vector<1x256xf32>
    %c3_324 = arith.constant 3 : index
    %c0_325 = arith.constant 0 : index
    %563 = vector.load %arg14[%c3_324, %c0_325] : memref<32x256xf32, #tpu.memory_space<vmem>>, vector<1x256xf32>
    tpu.vector_store %arg14[%c3_324, %c0_325], %562 {strides = array<i32>} : memref<32x256xf32, #tpu.memory_space<vmem>>, vector<1x256xf32>,
    %c192_i32_326 = arith.constant 192 : i32
    %564 = tpu.dynamic_rotate %556 by %c192_i32_326 dim 1 : vector<1x256xf32>, i32 -> vector<1x256xf32>
    %c4_327 = arith.constant 4 : index
    %c0_328 = arith.constant 0 : index
    %565 = vector.load %arg14[%c4_327, %c0_328] : memref<32x256xf32, #tpu.memory_space<vmem>>, vector<1x256xf32>
    tpu.vector_store %arg14[%c4_327, %c0_328], %564 {strides = array<i32>} : memref<32x256xf32, #tpu.memory_space<vmem>>, vector<1x256xf32>,
    %c176_i32_329 = arith.constant 176 : i32
    %566 = tpu.dynamic_rotate %556 by %c176_i32_329 dim 1 : vector<1x256xf32>, i32 -> vector<1x256xf32>
    %c5_330 = arith.constant 5 : index
    %c0_331 = arith.constant 0 : index
    %567 = vector.load %arg14[%c5_330, %c0_331] : memref<32x256xf32, #tpu.memory_space<vmem>>, vector<1x256xf32>
    tpu.vector_store %arg14[%c5_330, %c0_331], %566 {strides = array<i32>} : memref<32x256xf32, #tpu.memory_space<vmem>>, vector<1x256xf32>,
    %c160_i32_332 = arith.constant 160 : i32
    %568 = tpu.dynamic_rotate %556 by %c160_i32_332 dim 1 : vector<1x256xf32>, i32 -> vector<1x256xf32>
    %c6_333 = arith.constant 6 : index
    %c0_334 = arith.constant 0 : index
    %569 = vector.load %arg14[%c6_333, %c0_334] : memref<32x256xf32, #tpu.memory_space<vmem>>, vector<1x256xf32>
    tpu.vector_store %arg14[%c6_333, %c0_334], %568 {strides = array<i32>} : memref<32x256xf32, #tpu.memory_space<vmem>>, vector<1x256xf32>,
    %c144_i32_335 = arith.constant 144 : i32
    %570 = tpu.dynamic_rotate %556 by %c144_i32_335 dim 1 : vector<1x256xf32>, i32 -> vector<1x256xf32>
    %c7_336 = arith.constant 7 : index
    %c0_337 = arith.constant 0 : index
    %571 = vector.load %arg14[%c7_336, %c0_337] : memref<32x256xf32, #tpu.memory_space<vmem>>, vector<1x256xf32>
    tpu.vector_store %arg14[%c7_336, %c0_337], %570 {strides = array<i32>} : memref<32x256xf32, #tpu.memory_space<vmem>>, vector<1x256xf32>,
    %c128_i32_338 = arith.constant 128 : i32
    %572 = tpu.dynamic_rotate %556 by %c128_i32_338 dim 1 : vector<1x256xf32>, i32 -> vector<1x256xf32>
    %c8_339 = arith.constant 8 : index
    %c0_340 = arith.constant 0 : index
    %573 = vector.load %arg14[%c8_339, %c0_340] : memref<32x256xf32, #tpu.memory_space<vmem>>, vector<1x256xf32>
    tpu.vector_store %arg14[%c8_339, %c0_340], %572 {strides = array<i32>} : memref<32x256xf32, #tpu.memory_space<vmem>>, vector<1x256xf32>,
    %c112_i32_341 = arith.constant 112 : i32
    %574 = tpu.dynamic_rotate %556 by %c112_i32_341 dim 1 : vector<1x256xf32>, i32 -> vector<1x256xf32>
    %c9_342 = arith.constant 9 : index
    %c0_343 = arith.constant 0 : index
    %575 = vector.load %arg14[%c9_342, %c0_343] : memref<32x256xf32, #tpu.memory_space<vmem>>, vector<1x256xf32>
    tpu.vector_store %arg14[%c9_342, %c0_343], %574 {strides = array<i32>} : memref<32x256xf32, #tpu.memory_space<vmem>>, vector<1x256xf32>,
    %c96_i32_344 = arith.constant 96 : i32
    %576 = tpu.dynamic_rotate %556 by %c96_i32_344 dim 1 : vector<1x256xf32>, i32 -> vector<1x256xf32>
    %c10_345 = arith.constant 10 : index
    %c0_346 = arith.constant 0 : index
    %577 = vector.load %arg14[%c10_345, %c0_346] : memref<32x256xf32, #tpu.memory_space<vmem>>, vector<1x256xf32>
    tpu.vector_store %arg14[%c10_345, %c0_346], %576 {strides = array<i32>} : memref<32x256xf32, #tpu.memory_space<vmem>>, vector<1x256xf32>,
    %c80_i32_347 = arith.constant 80 : i32
    %578 = tpu.dynamic_rotate %556 by %c80_i32_347 dim 1 : vector<1x256xf32>, i32 -> vector<1x256xf32>
    %c11_348 = arith.constant 11 : index
    %c0_349 = arith.constant 0 : index
    %579 = vector.load %arg14[%c11_348, %c0_349] : memref<32x256xf32, #tpu.memory_space<vmem>>, vector<1x256xf32>
    tpu.vector_store %arg14[%c11_348, %c0_349], %578 {strides = array<i32>} : memref<32x256xf32, #tpu.memory_space<vmem>>, vector<1x256xf32>,
    %c64_i32_350 = arith.constant 64 : i32
    %580 = tpu.dynamic_rotate %556 by %c64_i32_350 dim 1 : vector<1x256xf32>, i32 -> vector<1x256xf32>
    %c12_351 = arith.constant 12 : index
    %c0_352 = arith.constant 0 : index
    %581 = vector.load %arg14[%c12_351, %c0_352] : memref<32x256xf32, #tpu.memory_space<vmem>>, vector<1x256xf32>
    tpu.vector_store %arg14[%c12_351, %c0_352], %580 {strides = array<i32>} : memref<32x256xf32, #tpu.memory_space<vmem>>, vector<1x256xf32>,
    %c48_i32_353 = arith.constant 48 : i32
    %582 = tpu.dynamic_rotate %556 by %c48_i32_353 dim 1 : vector<1x256xf32>, i32 -> vector<1x256xf32>
    %c13_354 = arith.constant 13 : index
    %c0_355 = arith.constant 0 : index
    %583 = vector.load %arg14[%c13_354, %c0_355] : memref<32x256xf32, #tpu.memory_space<vmem>>, vector<1x256xf32>
    tpu.vector_store %arg14[%c13_354, %c0_355], %582 {strides = array<i32>} : memref<32x256xf32, #tpu.memory_space<vmem>>, vector<1x256xf32>,
    %c32_i32_356 = arith.constant 32 : i32
    %584 = tpu.dynamic_rotate %556 by %c32_i32_356 dim 1 : vector<1x256xf32>, i32 -> vector<1x256xf32>
    %c14_357 = arith.constant 14 : index
    %c0_358 = arith.constant 0 : index
    %585 = vector.load %arg14[%c14_357, %c0_358] : memref<32x256xf32, #tpu.memory_space<vmem>>, vector<1x256xf32>
    tpu.vector_store %arg14[%c14_357, %c0_358], %584 {strides = array<i32>} : memref<32x256xf32, #tpu.memory_space<vmem>>, vector<1x256xf32>,
    %c16_i32_359 = arith.constant 16 : i32
    %586 = tpu.dynamic_rotate %556 by %c16_i32_359 dim 1 : vector<1x256xf32>, i32 -> vector<1x256xf32>
    %c15_360 = arith.constant 15 : index
    %c0_361 = arith.constant 0 : index
    %587 = vector.load %arg14[%c15_360, %c0_361] : memref<32x256xf32, #tpu.memory_space<vmem>>, vector<1x256xf32>
    tpu.vector_store %arg14[%c15_360, %c0_361], %586 {strides = array<i32>} : memref<32x256xf32, #tpu.memory_space<vmem>>, vector<1x256xf32>,
    %588 = vector.extract_strided_slice %341 {offsets = [1, 0], sizes = [1, 256], strides = [1, 1]} : vector<2x256xf32> to vector<1x256xf32>
    %c16_362 = arith.constant 16 : index
    %c0_363 = arith.constant 0 : index
    %589 = vector.load %arg14[%c16_362, %c0_363] : memref<32x256xf32, #tpu.memory_space<vmem>>, vector<1x256xf32>
    tpu.vector_store %arg14[%c16_362, %c0_363], %588 {strides = array<i32>} : memref<32x256xf32, #tpu.memory_space<vmem>>, vector<1x256xf32>,
    %c240_i32_364 = arith.constant 240 : i32
    %590 = tpu.dynamic_rotate %588 by %c240_i32_364 dim 1 : vector<1x256xf32>, i32 -> vector<1x256xf32>
    %c17_365 = arith.constant 17 : index
    %c0_366 = arith.constant 0 : index
    %591 = vector.load %arg14[%c17_365, %c0_366] : memref<32x256xf32, #tpu.memory_space<vmem>>, vector<1x256xf32>
    tpu.vector_store %arg14[%c17_365, %c0_366], %590 {strides = array<i32>} : memref<32x256xf32, #tpu.memory_space<vmem>>, vector<1x256xf32>,
    %c224_i32_367 = arith.constant 224 : i32
    %592 = tpu.dynamic_rotate %588 by %c224_i32_367 dim 1 : vector<1x256xf32>, i32 -> vector<1x256xf32>
    %c18_368 = arith.constant 18 : index
    %c0_369 = arith.constant 0 : index
    %593 = vector.load %arg14[%c18_368, %c0_369] : memref<32x256xf32, #tpu.memory_space<vmem>>, vector<1x256xf32>
    tpu.vector_store %arg14[%c18_368, %c0_369], %592 {strides = array<i32>} : memref<32x256xf32, #tpu.memory_space<vmem>>, vector<1x256xf32>,
    %c208_i32_370 = arith.constant 208 : i32
    %594 = tpu.dynamic_rotate %588 by %c208_i32_370 dim 1 : vector<1x256xf32>, i32 -> vector<1x256xf32>
    %c19_371 = arith.constant 19 : index
    %c0_372 = arith.constant 0 : index
    %595 = vector.load %arg14[%c19_371, %c0_372] : memref<32x256xf32, #tpu.memory_space<vmem>>, vector<1x256xf32>
    tpu.vector_store %arg14[%c19_371, %c0_372], %594 {strides = array<i32>} : memref<32x256xf32, #tpu.memory_space<vmem>>, vector<1x256xf32>,
    %c192_i32_373 = arith.constant 192 : i32
    %596 = tpu.dynamic_rotate %588 by %c192_i32_373 dim 1 : vector<1x256xf32>, i32 -> vector<1x256xf32>
    %c20_374 = arith.constant 20 : index
    %c0_375 = arith.constant 0 : index
    %597 = vector.load %arg14[%c20_374, %c0_375] : memref<32x256xf32, #tpu.memory_space<vmem>>, vector<1x256xf32>
    tpu.vector_store %arg14[%c20_374, %c0_375], %596 {strides = array<i32>} : memref<32x256xf32, #tpu.memory_space<vmem>>, vector<1x256xf32>,
    %c176_i32_376 = arith.constant 176 : i32
    %598 = tpu.dynamic_rotate %588 by %c176_i32_376 dim 1 : vector<1x256xf32>, i32 -> vector<1x256xf32>
    %c21_377 = arith.constant 21 : index
    %c0_378 = arith.constant 0 : index
    %599 = vector.load %arg14[%c21_377, %c0_378] : memref<32x256xf32, #tpu.memory_space<vmem>>, vector<1x256xf32>
    tpu.vector_store %arg14[%c21_377, %c0_378], %598 {strides = array<i32>} : memref<32x256xf32, #tpu.memory_space<vmem>>, vector<1x256xf32>,
    %c160_i32_379 = arith.constant 160 : i32
    %600 = tpu.dynamic_rotate %588 by %c160_i32_379 dim 1 : vector<1x256xf32>, i32 -> vector<1x256xf32>
    %c22_380 = arith.constant 22 : index
    %c0_381 = arith.constant 0 : index
    %601 = vector.load %arg14[%c22_380, %c0_381] : memref<32x256xf32, #tpu.memory_space<vmem>>, vector<1x256xf32>
    tpu.vector_store %arg14[%c22_380, %c0_381], %600 {strides = array<i32>} : memref<32x256xf32, #tpu.memory_space<vmem>>, vector<1x256xf32>,
    %c144_i32_382 = arith.constant 144 : i32
    %602 = tpu.dynamic_rotate %588 by %c144_i32_382 dim 1 : vector<1x256xf32>, i32 -> vector<1x256xf32>
    %c23_383 = arith.constant 23 : index
    %c0_384 = arith.constant 0 : index
    %603 = vector.load %arg14[%c23_383, %c0_384] : memref<32x256xf32, #tpu.memory_space<vmem>>, vector<1x256xf32>
    tpu.vector_store %arg14[%c23_383, %c0_384], %602 {strides = array<i32>} : memref<32x256xf32, #tpu.memory_space<vmem>>, vector<1x256xf32>,
    %c128_i32_385 = arith.constant 128 : i32
    %604 = tpu.dynamic_rotate %588 by %c128_i32_385 dim 1 : vector<1x256xf32>, i32 -> vector<1x256xf32>
    %c24_386 = arith.constant 24 : index
    %c0_387 = arith.constant 0 : index
    %605 = vector.load %arg14[%c24_386, %c0_387] : memref<32x256xf32, #tpu.memory_space<vmem>>, vector<1x256xf32>
    tpu.vector_store %arg14[%c24_386, %c0_387], %604 {strides = array<i32>} : memref<32x256xf32, #tpu.memory_space<vmem>>, vector<1x256xf32>,
    %c112_i32_388 = arith.constant 112 : i32
    %606 = tpu.dynamic_rotate %588 by %c112_i32_388 dim 1 : vector<1x256xf32>, i32 -> vector<1x256xf32>
    %c25_389 = arith.constant 25 : index
    %c0_390 = arith.constant 0 : index
    %607 = vector.load %arg14[%c25_389, %c0_390] : memref<32x256xf32, #tpu.memory_space<vmem>>, vector<1x256xf32>
    tpu.vector_store %arg14[%c25_389, %c0_390], %606 {strides = array<i32>} : memref<32x256xf32, #tpu.memory_space<vmem>>, vector<1x256xf32>,
    %c96_i32_391 = arith.constant 96 : i32
    %608 = tpu.dynamic_rotate %588 by %c96_i32_391 dim 1 : vector<1x256xf32>, i32 -> vector<1x256xf32>
    %c26_392 = arith.constant 26 : index
    %c0_393 = arith.constant 0 : index
    %609 = vector.load %arg14[%c26_392, %c0_393] : memref<32x256xf32, #tpu.memory_space<vmem>>, vector<1x256xf32>
    tpu.vector_store %arg14[%c26_392, %c0_393], %608 {strides = array<i32>} : memref<32x256xf32, #tpu.memory_space<vmem>>, vector<1x256xf32>,
    %c80_i32_394 = arith.constant 80 : i32
    %610 = tpu.dynamic_rotate %588 by %c80_i32_394 dim 1 : vector<1x256xf32>, i32 -> vector<1x256xf32>
    %c27_395 = arith.constant 27 : index
    %c0_396 = arith.constant 0 : index
    %611 = vector.load %arg14[%c27_395, %c0_396] : memref<32x256xf32, #tpu.memory_space<vmem>>, vector<1x256xf32>
    tpu.vector_store %arg14[%c27_395, %c0_396], %610 {strides = array<i32>} : memref<32x256xf32, #tpu.memory_space<vmem>>, vector<1x256xf32>,
    %c64_i32_397 = arith.constant 64 : i32
    %612 = tpu.dynamic_rotate %588 by %c64_i32_397 dim 1 : vector<1x256xf32>, i32 -> vector<1x256xf32>
    %c28_398 = arith.constant 28 : index
    %c0_399 = arith.constant 0 : index
    %613 = vector.load %arg14[%c28_398, %c0_399] : memref<32x256xf32, #tpu.memory_space<vmem>>, vector<1x256xf32>
    tpu.vector_store %arg14[%c28_398, %c0_399], %612 {strides = array<i32>} : memref<32x256xf32, #tpu.memory_space<vmem>>, vector<1x256xf32>,
    %c48_i32_400 = arith.constant 48 : i32
    %614 = tpu.dynamic_rotate %588 by %c48_i32_400 dim 1 : vector<1x256xf32>, i32 -> vector<1x256xf32>
    %c29_401 = arith.constant 29 : index
    %c0_402 = arith.constant 0 : index
    %615 = vector.load %arg14[%c29_401, %c0_402] : memref<32x256xf32, #tpu.memory_space<vmem>>, vector<1x256xf32>
    tpu.vector_store %arg14[%c29_401, %c0_402], %614 {strides = array<i32>} : memref<32x256xf32, #tpu.memory_space<vmem>>, vector<1x256xf32>,
    %c32_i32_403 = arith.constant 32 : i32
    %616 = tpu.dynamic_rotate %588 by %c32_i32_403 dim 1 : vector<1x256xf32>, i32 -> vector<1x256xf32>
    %c30_404 = arith.constant 30 : index
    %c0_405 = arith.constant 0 : index
    %617 = vector.load %arg14[%c30_404, %c0_405] : memref<32x256xf32, #tpu.memory_space<vmem>>, vector<1x256xf32>
    tpu.vector_store %arg14[%c30_404, %c0_405], %616 {strides = array<i32>} : memref<32x256xf32, #tpu.memory_space<vmem>>, vector<1x256xf32>,
    %c16_i32_406 = arith.constant 16 : i32
    %618 = tpu.dynamic_rotate %588 by %c16_i32_406 dim 1 : vector<1x256xf32>, i32 -> vector<1x256xf32>
    %c31_407 = arith.constant 31 : index
    %c0_408 = arith.constant 0 : index
    %619 = vector.load %arg14[%c31_407, %c0_408] : memref<32x256xf32, #tpu.memory_space<vmem>>, vector<1x256xf32>
    tpu.vector_store %arg14[%c31_407, %c0_408], %618 {strides = array<i32>} : memref<32x256xf32, #tpu.memory_space<vmem>>, vector<1x256xf32>,
    %c0_409 = arith.constant 0 : index
    %c0_410 = arith.constant 0 : index
    %620 = vector.load %arg14[%c0_409, %c0_410] : memref<32x256xf32, #tpu.memory_space<vmem>>, vector<32x16xf32>
    %cst_411 = arith.constant dense<0.000000e+00> : vector<32x256xf32>
    %621 = tpu.matmul %620, %555, %cst_411 {dimension_numbers = #tpu.dot_dimension_numbers<[1], [0], [0], [1], [0, 0, 1, 1], [], []>} : vector<32x16xf32>, vector<16x256xf32>, vector<32x256xf32> -> vector<32x256xf32>
    %622 = vector.extract_strided_slice %621 {offsets = [0, 0], sizes = [16, 256], strides = [1, 1]} : vector<32x256xf32> to vector<16x256xf32>
    %623 = arith.mulf %622, %548 : vector<16x256xf32>
    %cst_412 = arith.constant dense<0.000000e+00> : vector<256xf32>
    %624 = vector.multi_reduction <add>, %623, %cst_412 [0] : vector<16x256xf32> to vector<256xf32>
    %625 = vector.shape_cast %624 : vector<256xf32> to vector<1x256xf32>
    %626 = vector.extract_strided_slice %621 {offsets = [16, 0], sizes = [16, 256], strides = [1, 1]} : vector<32x256xf32> to vector<16x256xf32>
    %627 = arith.mulf %626, %548 : vector<16x256xf32>
    %cst_413 = arith.constant dense<0.000000e+00> : vector<256xf32>
    %628 = vector.multi_reduction <add>, %627, %cst_413 [0] : vector<16x256xf32> to vector<256xf32>
    %629 = vector.shape_cast %628 : vector<256xf32> to vector<1x256xf32>
    %630 = tpu.iota {dimensions = array<i32: 0>} : vector<2x1xi32>
    %c0_i32_414 = arith.constant 0 : i32
    %631 = vector.broadcast %c0_i32_414 : i32 to vector<2x1xi32>
    %632 = arith.cmpi eq, %630, %631 : vector<2x1xi32>
    %633 = arith.extui %632 : vector<2x1xi1> to vector<2x1xi32>
    %634 = arith.sitofp %633 : vector<2x1xi32> to vector<2x1xf32>
    %635 = vector.shape_cast %625 : vector<1x256xf32> to vector<1x256xf32>
    %636 = vector.broadcast %635 : vector<1x256xf32> to vector<2x256xf32>
    %637 = vector.broadcast %634 : vector<2x1xf32> to vector<2x256xf32>
    %638 = arith.mulf %637, %636 : vector<2x256xf32>
    %c1_i32_415 = arith.constant 1 : i32
    %639 = vector.broadcast %c1_i32_415 : i32 to vector<2x1xi32>
    %640 = arith.cmpi eq, %630, %639 : vector<2x1xi32>
    %641 = arith.extui %640 : vector<2x1xi1> to vector<2x1xi32>
    %642 = arith.sitofp %641 : vector<2x1xi32> to vector<2x1xf32>
    %643 = vector.shape_cast %629 : vector<1x256xf32> to vector<1x256xf32>
    %644 = vector.broadcast %643 : vector<1x256xf32> to vector<2x256xf32>
    %645 = vector.broadcast %642 : vector<2x1xf32> to vector<2x256xf32>
    %646 = arith.mulf %645, %644 : vector<2x256xf32>
    %647 = arith.addf %638, %646 : vector<2x256xf32>
    %648 = arith.addf %341, %647 : vector<2x256xf32>
    %649 = vector.extract_strided_slice %648 {offsets = [0, 0], sizes = [1, 256], strides = [1, 1]} : vector<2x256xf32> to vector<1x256xf32>
    %650 = arith.addf %206, %649 : vector<1x256xf32>
    %651 = vector.extract_strided_slice %648 {offsets = [1, 0], sizes = [1, 256], strides = [1, 1]} : vector<2x256xf32> to vector<1x256xf32>
    %652 = arith.addf %208, %651 : vector<1x256xf32>
    %cst_416 = arith.constant 0.000000e+00 : f32
    %cst_417 = arith.constant 1.500000e+01 : f32
    %653 = vector.broadcast %cst_416 : f32 to vector<1x256xf32>
    %654 = arith.maximumf %653, %650 : vector<1x256xf32>
    %655 = vector.broadcast %cst_417 : f32 to vector<1x256xf32>
    %656 = arith.minimumf %655, %654 : vector<1x256xf32>
    %cst_418 = arith.constant 0.000000e+00 : f32
    %cst_419 = arith.constant 1.500000e+01 : f32
    %657 = vector.broadcast %cst_418 : f32 to vector<1x256xf32>
    %658 = arith.maximumf %657, %652 : vector<1x256xf32>
    %659 = vector.broadcast %cst_419 : f32 to vector<1x256xf32>
    %660 = arith.minimumf %659, %658 : vector<1x256xf32>
    %661 = vector.broadcast %656 : vector<1x256xf32> to vector<16x256xf32>
    %662 = arith.subf %210, %661 : vector<16x256xf32>
    %663 = math.absf %662 : vector<16x256xf32>
    %cst_420 = arith.constant 1.000000e+00 : f32
    %664 = vector.broadcast %cst_420 : f32 to vector<16x256xf32>
    %665 = arith.subf %664, %663 : vector<16x256xf32>
    %cst_421 = arith.constant 0.000000e+00 : f32
    %666 = vector.broadcast %cst_421 : f32 to vector<16x256xf32>
    %667 = arith.maximumf %665, %666 : vector<16x256xf32>
    %668 = vector.broadcast %660 : vector<1x256xf32> to vector<16x256xf32>
    %669 = arith.subf %210, %668 : vector<16x256xf32>
    %670 = math.absf %669 : vector<16x256xf32>
    %cst_422 = arith.constant 1.000000e+00 : f32
    %671 = vector.broadcast %cst_422 : f32 to vector<16x256xf32>
    %672 = arith.subf %671, %670 : vector<16x256xf32>
    %cst_423 = arith.constant 0.000000e+00 : f32
    %673 = vector.broadcast %cst_423 : f32 to vector<16x256xf32>
    %674 = arith.maximumf %672, %673 : vector<16x256xf32>
    %c0_424 = arith.constant 0 : index
    %c0_425 = arith.constant 0 : index
    %675 = vector.load %arg14[%c0_424, %c0_425] : memref<32x256xf32, #tpu.memory_space<vmem>>, vector<1x256xf32>
    tpu.vector_store %arg14[%c0_424, %c0_425], %223 {strides = array<i32>} : memref<32x256xf32, #tpu.memory_space<vmem>>, vector<1x256xf32>,
    %c240_i32_426 = arith.constant 240 : i32
    %676 = tpu.dynamic_rotate %223 by %c240_i32_426 dim 1 : vector<1x256xf32>, i32 -> vector<1x256xf32>
    %c1_427 = arith.constant 1 : index
    %c0_428 = arith.constant 0 : index
    %677 = vector.load %arg14[%c1_427, %c0_428] : memref<32x256xf32, #tpu.memory_space<vmem>>, vector<1x256xf32>
    tpu.vector_store %arg14[%c1_427, %c0_428], %676 {strides = array<i32>} : memref<32x256xf32, #tpu.memory_space<vmem>>, vector<1x256xf32>,
    %c224_i32_429 = arith.constant 224 : i32
    %678 = tpu.dynamic_rotate %223 by %c224_i32_429 dim 1 : vector<1x256xf32>, i32 -> vector<1x256xf32>
    %c2_430 = arith.constant 2 : index
    %c0_431 = arith.constant 0 : index
    %679 = vector.load %arg14[%c2_430, %c0_431] : memref<32x256xf32, #tpu.memory_space<vmem>>, vector<1x256xf32>
    tpu.vector_store %arg14[%c2_430, %c0_431], %678 {strides = array<i32>} : memref<32x256xf32, #tpu.memory_space<vmem>>, vector<1x256xf32>,
    %c208_i32_432 = arith.constant 208 : i32
    %680 = tpu.dynamic_rotate %223 by %c208_i32_432 dim 1 : vector<1x256xf32>, i32 -> vector<1x256xf32>
    %c3_433 = arith.constant 3 : index
    %c0_434 = arith.constant 0 : index
    %681 = vector.load %arg14[%c3_433, %c0_434] : memref<32x256xf32, #tpu.memory_space<vmem>>, vector<1x256xf32>
    tpu.vector_store %arg14[%c3_433, %c0_434], %680 {strides = array<i32>} : memref<32x256xf32, #tpu.memory_space<vmem>>, vector<1x256xf32>,
    %c192_i32_435 = arith.constant 192 : i32
    %682 = tpu.dynamic_rotate %223 by %c192_i32_435 dim 1 : vector<1x256xf32>, i32 -> vector<1x256xf32>
    %c4_436 = arith.constant 4 : index
    %c0_437 = arith.constant 0 : index
    %683 = vector.load %arg14[%c4_436, %c0_437] : memref<32x256xf32, #tpu.memory_space<vmem>>, vector<1x256xf32>
    tpu.vector_store %arg14[%c4_436, %c0_437], %682 {strides = array<i32>} : memref<32x256xf32, #tpu.memory_space<vmem>>, vector<1x256xf32>,
    %c176_i32_438 = arith.constant 176 : i32
    %684 = tpu.dynamic_rotate %223 by %c176_i32_438 dim 1 : vector<1x256xf32>, i32 -> vector<1x256xf32>
    %c5_439 = arith.constant 5 : index
    %c0_440 = arith.constant 0 : index
    %685 = vector.load %arg14[%c5_439, %c0_440] : memref<32x256xf32, #tpu.memory_space<vmem>>, vector<1x256xf32>
    tpu.vector_store %arg14[%c5_439, %c0_440], %684 {strides = array<i32>} : memref<32x256xf32, #tpu.memory_space<vmem>>, vector<1x256xf32>,
    %c160_i32_441 = arith.constant 160 : i32
    %686 = tpu.dynamic_rotate %223 by %c160_i32_441 dim 1 : vector<1x256xf32>, i32 -> vector<1x256xf32>
    %c6_442 = arith.constant 6 : index
    %c0_443 = arith.constant 0 : index
    %687 = vector.load %arg14[%c6_442, %c0_443] : memref<32x256xf32, #tpu.memory_space<vmem>>, vector<1x256xf32>
    tpu.vector_store %arg14[%c6_442, %c0_443], %686 {strides = array<i32>} : memref<32x256xf32, #tpu.memory_space<vmem>>, vector<1x256xf32>,
    %c144_i32_444 = arith.constant 144 : i32
    %688 = tpu.dynamic_rotate %223 by %c144_i32_444 dim 1 : vector<1x256xf32>, i32 -> vector<1x256xf32>
    %c7_445 = arith.constant 7 : index
    %c0_446 = arith.constant 0 : index
    %689 = vector.load %arg14[%c7_445, %c0_446] : memref<32x256xf32, #tpu.memory_space<vmem>>, vector<1x256xf32>
    tpu.vector_store %arg14[%c7_445, %c0_446], %688 {strides = array<i32>} : memref<32x256xf32, #tpu.memory_space<vmem>>, vector<1x256xf32>,
    %c128_i32_447 = arith.constant 128 : i32
    %690 = tpu.dynamic_rotate %223 by %c128_i32_447 dim 1 : vector<1x256xf32>, i32 -> vector<1x256xf32>
    %c8_448 = arith.constant 8 : index
    %c0_449 = arith.constant 0 : index
    %691 = vector.load %arg14[%c8_448, %c0_449] : memref<32x256xf32, #tpu.memory_space<vmem>>, vector<1x256xf32>
    tpu.vector_store %arg14[%c8_448, %c0_449], %690 {strides = array<i32>} : memref<32x256xf32, #tpu.memory_space<vmem>>, vector<1x256xf32>,
    %c112_i32_450 = arith.constant 112 : i32
    %692 = tpu.dynamic_rotate %223 by %c112_i32_450 dim 1 : vector<1x256xf32>, i32 -> vector<1x256xf32>
    %c9_451 = arith.constant 9 : index
    %c0_452 = arith.constant 0 : index
    %693 = vector.load %arg14[%c9_451, %c0_452] : memref<32x256xf32, #tpu.memory_space<vmem>>, vector<1x256xf32>
    tpu.vector_store %arg14[%c9_451, %c0_452], %692 {strides = array<i32>} : memref<32x256xf32, #tpu.memory_space<vmem>>, vector<1x256xf32>,
    %c96_i32_453 = arith.constant 96 : i32
    %694 = tpu.dynamic_rotate %223 by %c96_i32_453 dim 1 : vector<1x256xf32>, i32 -> vector<1x256xf32>
    %c10_454 = arith.constant 10 : index
    %c0_455 = arith.constant 0 : index
    %695 = vector.load %arg14[%c10_454, %c0_455] : memref<32x256xf32, #tpu.memory_space<vmem>>, vector<1x256xf32>
    tpu.vector_store %arg14[%c10_454, %c0_455], %694 {strides = array<i32>} : memref<32x256xf32, #tpu.memory_space<vmem>>, vector<1x256xf32>,
    %c80_i32_456 = arith.constant 80 : i32
    %696 = tpu.dynamic_rotate %223 by %c80_i32_456 dim 1 : vector<1x256xf32>, i32 -> vector<1x256xf32>
    %c11_457 = arith.constant 11 : index
    %c0_458 = arith.constant 0 : index
    %697 = vector.load %arg14[%c11_457, %c0_458] : memref<32x256xf32, #tpu.memory_space<vmem>>, vector<1x256xf32>
    tpu.vector_store %arg14[%c11_457, %c0_458], %696 {strides = array<i32>} : memref<32x256xf32, #tpu.memory_space<vmem>>, vector<1x256xf32>,
    %c64_i32_459 = arith.constant 64 : i32
    %698 = tpu.dynamic_rotate %223 by %c64_i32_459 dim 1 : vector<1x256xf32>, i32 -> vector<1x256xf32>
    %c12_460 = arith.constant 12 : index
    %c0_461 = arith.constant 0 : index
    %699 = vector.load %arg14[%c12_460, %c0_461] : memref<32x256xf32, #tpu.memory_space<vmem>>, vector<1x256xf32>
    tpu.vector_store %arg14[%c12_460, %c0_461], %698 {strides = array<i32>} : memref<32x256xf32, #tpu.memory_space<vmem>>, vector<1x256xf32>,
    %c48_i32_462 = arith.constant 48 : i32
    %700 = tpu.dynamic_rotate %223 by %c48_i32_462 dim 1 : vector<1x256xf32>, i32 -> vector<1x256xf32>
    %c13_463 = arith.constant 13 : index
    %c0_464 = arith.constant 0 : index
    %701 = vector.load %arg14[%c13_463, %c0_464] : memref<32x256xf32, #tpu.memory_space<vmem>>, vector<1x256xf32>
    tpu.vector_store %arg14[%c13_463, %c0_464], %700 {strides = array<i32>} : memref<32x256xf32, #tpu.memory_space<vmem>>, vector<1x256xf32>,
    %c32_i32_465 = arith.constant 32 : i32
    %702 = tpu.dynamic_rotate %223 by %c32_i32_465 dim 1 : vector<1x256xf32>, i32 -> vector<1x256xf32>
    %c14_466 = arith.constant 14 : index
    %c0_467 = arith.constant 0 : index
    %703 = vector.load %arg14[%c14_466, %c0_467] : memref<32x256xf32, #tpu.memory_space<vmem>>, vector<1x256xf32>
    tpu.vector_store %arg14[%c14_466, %c0_467], %702 {strides = array<i32>} : memref<32x256xf32, #tpu.memory_space<vmem>>, vector<1x256xf32>,
    %c16_i32_468 = arith.constant 16 : i32
    %704 = tpu.dynamic_rotate %223 by %c16_i32_468 dim 1 : vector<1x256xf32>, i32 -> vector<1x256xf32>
    %c15_469 = arith.constant 15 : index
    %c0_470 = arith.constant 0 : index
    %705 = vector.load %arg14[%c15_469, %c0_470] : memref<32x256xf32, #tpu.memory_space<vmem>>, vector<1x256xf32>
    tpu.vector_store %arg14[%c15_469, %c0_470], %704 {strides = array<i32>} : memref<32x256xf32, #tpu.memory_space<vmem>>, vector<1x256xf32>,
    %c0_471 = arith.constant 0 : index
    %c0_472 = arith.constant 0 : index
    %706 = vector.load %arg14[%c0_471, %c0_472] : memref<32x256xf32, #tpu.memory_space<vmem>>, vector<16x16xf32>
    %cst_473 = arith.constant dense<0.000000e+00> : vector<16x256xf32>
    %707 = tpu.matmul %706, %674, %cst_473 {dimension_numbers = #tpu.dot_dimension_numbers<[1], [0], [0], [1], [0, 0, 1, 1], [], []>} : vector<16x16xf32>, vector<16x256xf32>, vector<16x256xf32> -> vector<16x256xf32>
    %708 = arith.mulf %707, %667 : vector<16x256xf32>
    %cst_474 = arith.constant dense<0.000000e+00> : vector<256xf32>
    %709 = vector.multi_reduction <add>, %708, %cst_474 [0] : vector<16x256xf32> to vector<256xf32>
    %710 = vector.shape_cast %709 : vector<256xf32> to vector<1x256xf32>
    %711 = vector.shape_cast %522 : vector<1x256xf32> to vector<1x256xf32>
    %712 = vector.broadcast %711 : vector<1x256xf32> to vector<8x256xf32>
    %713 = vector.broadcast %215 : vector<8x1xf32> to vector<8x256xf32>
    %714 = arith.mulf %713, %712 : vector<8x256xf32>
    %715 = vector.shape_cast %710 : vector<1x256xf32> to vector<1x256xf32>
    %716 = vector.broadcast %715 : vector<1x256xf32> to vector<8x256xf32>
    %717 = vector.broadcast %219 : vector<8x1xf32> to vector<8x256xf32>
    %718 = arith.mulf %717, %716 : vector<8x256xf32>
    %719 = arith.addf %714, %718 : vector<8x256xf32>
    %c17_i32_475 = arith.constant 17 : i32
    %720 = tpu.dynamic_rotate %719 by %c17_i32_475 dim 1 : vector<8x256xf32>, i32 -> vector<8x256xf32>
    %c0_476 = arith.constant 0 : index
    %c0_477 = arith.constant 0 : index
    %721 = vector.load %arg15[%c0_476, %c0_477] : memref<9x512xf32, #tpu.memory_space<vmem>>, vector<1x256xf32>
    %722 = vector.broadcast %721 : vector<1x256xf32> to vector<8x256xf32>
    %723 = arith.mulf %720, %722 : vector<8x256xf32>
    %c0_478 = arith.constant 0 : index
    %c0_479 = arith.constant 0 : index
    %724 = vector.load %arg13[%c0_478, %c0_479] : memref<72x512xf32, #tpu.memory_space<vmem>>, vector<8x256xf32>
    tpu.vector_store %arg13[%c0_478, %c0_479], %723 {strides = array<i32>} : memref<72x512xf32, #tpu.memory_space<vmem>>, vector<8x256xf32>,
    %c16_i32_480 = arith.constant 16 : i32
    %725 = tpu.dynamic_rotate %719 by %c16_i32_480 dim 1 : vector<8x256xf32>, i32 -> vector<8x256xf32>
    %c1_481 = arith.constant 1 : index
    %c0_482 = arith.constant 0 : index
    %726 = vector.load %arg15[%c1_481, %c0_482] : memref<9x512xf32, #tpu.memory_space<vmem>>, vector<1x256xf32>
    %727 = vector.broadcast %726 : vector<1x256xf32> to vector<8x256xf32>
    %728 = arith.mulf %725, %727 : vector<8x256xf32>
    %c8_483 = arith.constant 8 : index
    %c0_484 = arith.constant 0 : index
    %729 = vector.load %arg13[%c8_483, %c0_484] : memref<72x512xf32, #tpu.memory_space<vmem>>, vector<8x256xf32>
    tpu.vector_store %arg13[%c8_483, %c0_484], %728 {strides = array<i32>} : memref<72x512xf32, #tpu.memory_space<vmem>>, vector<8x256xf32>,
    %c15_i32_485 = arith.constant 15 : i32
    %730 = tpu.dynamic_rotate %719 by %c15_i32_485 dim 1 : vector<8x256xf32>, i32 -> vector<8x256xf32>
    %c2_486 = arith.constant 2 : index
    %c0_487 = arith.constant 0 : index
    %731 = vector.load %arg15[%c2_486, %c0_487] : memref<9x512xf32, #tpu.memory_space<vmem>>, vector<1x256xf32>
    %732 = vector.broadcast %731 : vector<1x256xf32> to vector<8x256xf32>
    %733 = arith.mulf %730, %732 : vector<8x256xf32>
    %c16_488 = arith.constant 16 : index
    %c0_489 = arith.constant 0 : index
    %734 = vector.load %arg13[%c16_488, %c0_489] : memref<72x512xf32, #tpu.memory_space<vmem>>, vector<8x256xf32>
    tpu.vector_store %arg13[%c16_488, %c0_489], %733 {strides = array<i32>} : memref<72x512xf32, #tpu.memory_space<vmem>>, vector<8x256xf32>,
    %c1_i32_490 = arith.constant 1 : i32
    %735 = tpu.dynamic_rotate %719 by %c1_i32_490 dim 1 : vector<8x256xf32>, i32 -> vector<8x256xf32>
    %c3_491 = arith.constant 3 : index
    %c0_492 = arith.constant 0 : index
    %736 = vector.load %arg15[%c3_491, %c0_492] : memref<9x512xf32, #tpu.memory_space<vmem>>, vector<1x256xf32>
    %737 = vector.broadcast %736 : vector<1x256xf32> to vector<8x256xf32>
    %738 = arith.mulf %735, %737 : vector<8x256xf32>
    %c24_493 = arith.constant 24 : index
    %c0_494 = arith.constant 0 : index
    %739 = vector.load %arg13[%c24_493, %c0_494] : memref<72x512xf32, #tpu.memory_space<vmem>>, vector<8x256xf32>
    tpu.vector_store %arg13[%c24_493, %c0_494], %738 {strides = array<i32>} : memref<72x512xf32, #tpu.memory_space<vmem>>, vector<8x256xf32>,
    %c4_495 = arith.constant 4 : index
    %c0_496 = arith.constant 0 : index
    %740 = vector.load %arg15[%c4_495, %c0_496] : memref<9x512xf32, #tpu.memory_space<vmem>>, vector<1x256xf32>
    %741 = vector.broadcast %740 : vector<1x256xf32> to vector<8x256xf32>
    %742 = arith.mulf %719, %741 : vector<8x256xf32>
    %c32_497 = arith.constant 32 : index
    %c0_498 = arith.constant 0 : index
    %743 = vector.load %arg13[%c32_497, %c0_498] : memref<72x512xf32, #tpu.memory_space<vmem>>, vector<8x256xf32>
    tpu.vector_store %arg13[%c32_497, %c0_498], %742 {strides = array<i32>} : memref<72x512xf32, #tpu.memory_space<vmem>>, vector<8x256xf32>,
    %c255_i32_499 = arith.constant 255 : i32
    %744 = tpu.dynamic_rotate %719 by %c255_i32_499 dim 1 : vector<8x256xf32>, i32 -> vector<8x256xf32>
    %c5_500 = arith.constant 5 : index
    %c0_501 = arith.constant 0 : index
    %745 = vector.load %arg15[%c5_500, %c0_501] : memref<9x512xf32, #tpu.memory_space<vmem>>, vector<1x256xf32>
    %746 = vector.broadcast %745 : vector<1x256xf32> to vector<8x256xf32>
    %747 = arith.mulf %744, %746 : vector<8x256xf32>
    %c40_502 = arith.constant 40 : index
    %c0_503 = arith.constant 0 : index
    %748 = vector.load %arg13[%c40_502, %c0_503] : memref<72x512xf32, #tpu.memory_space<vmem>>, vector<8x256xf32>
    tpu.vector_store %arg13[%c40_502, %c0_503], %747 {strides = array<i32>} : memref<72x512xf32, #tpu.memory_space<vmem>>, vector<8x256xf32>,
    %c241_i32 = arith.constant 241 : i32
    %749 = tpu.dynamic_rotate %719 by %c241_i32 dim 1 : vector<8x256xf32>, i32 -> vector<8x256xf32>
    %c6_504 = arith.constant 6 : index
    %c0_505 = arith.constant 0 : index
    %750 = vector.load %arg15[%c6_504, %c0_505] : memref<9x512xf32, #tpu.memory_space<vmem>>, vector<1x256xf32>
    %751 = vector.broadcast %750 : vector<1x256xf32> to vector<8x256xf32>
    %752 = arith.mulf %749, %751 : vector<8x256xf32>
    %c48_506 = arith.constant 48 : index
    %c0_507 = arith.constant 0 : index
    %753 = vector.load %arg13[%c48_506, %c0_507] : memref<72x512xf32, #tpu.memory_space<vmem>>, vector<8x256xf32>
    tpu.vector_store %arg13[%c48_506, %c0_507], %752 {strides = array<i32>} : memref<72x512xf32, #tpu.memory_space<vmem>>, vector<8x256xf32>,
    %c240_i32_508 = arith.constant 240 : i32
    %754 = tpu.dynamic_rotate %719 by %c240_i32_508 dim 1 : vector<8x256xf32>, i32 -> vector<8x256xf32>
    %c7_509 = arith.constant 7 : index
    %c0_510 = arith.constant 0 : index
    %755 = vector.load %arg15[%c7_509, %c0_510] : memref<9x512xf32, #tpu.memory_space<vmem>>, vector<1x256xf32>
    %756 = vector.broadcast %755 : vector<1x256xf32> to vector<8x256xf32>
    %757 = arith.mulf %754, %756 : vector<8x256xf32>
    %c56_511 = arith.constant 56 : index
    %c0_512 = arith.constant 0 : index
    %758 = vector.load %arg13[%c56_511, %c0_512] : memref<72x512xf32, #tpu.memory_space<vmem>>, vector<8x256xf32>
    tpu.vector_store %arg13[%c56_511, %c0_512], %757 {strides = array<i32>} : memref<72x512xf32, #tpu.memory_space<vmem>>, vector<8x256xf32>,
    %c239_i32 = arith.constant 239 : i32
    %759 = tpu.dynamic_rotate %719 by %c239_i32 dim 1 : vector<8x256xf32>, i32 -> vector<8x256xf32>
    %c8_513 = arith.constant 8 : index
    %c0_514 = arith.constant 0 : index
    %760 = vector.load %arg15[%c8_513, %c0_514] : memref<9x512xf32, #tpu.memory_space<vmem>>, vector<1x256xf32>
    %761 = vector.broadcast %760 : vector<1x256xf32> to vector<8x256xf32>
    %762 = arith.mulf %759, %761 : vector<8x256xf32>
    %c64_515 = arith.constant 64 : index
    %c0_516 = arith.constant 0 : index
    %763 = vector.load %arg13[%c64_515, %c0_516] : memref<72x512xf32, #tpu.memory_space<vmem>>, vector<8x256xf32>
    tpu.vector_store %arg13[%c64_515, %c0_516], %762 {strides = array<i32>} : memref<72x512xf32, #tpu.memory_space<vmem>>, vector<8x256xf32>,
    %c0_517 = arith.constant 0 : index
    %c0_518 = arith.constant 0 : index
    %764 = vector.load %arg6[%c0_517, %c0_518] : memref<8x72xf32, #tpu.memory_space<vmem>>, vector<8x72xf32>
    %c0_519 = arith.constant 0 : index
    %c0_520 = arith.constant 0 : index
    %765 = vector.load %arg13[%c0_519, %c0_520] : memref<72x512xf32, #tpu.memory_space<vmem>>, vector<72x256xf32>
    %cst_521 = arith.constant dense<0.000000e+00> : vector<8x256xf32>
    %766 = tpu.matmul %764, %765, %cst_521 {dimension_numbers = #tpu.dot_dimension_numbers<[1], [0], [0], [1], [0, 0, 1, 1], [], []>} : vector<8x72xf32>, vector<72x256xf32>, vector<8x256xf32> -> vector<8x256xf32>
    %c0_522 = arith.constant 0 : index
    %c0_523 = arith.constant 0 : index
    %767 = vector.load %arg7[%c0_522, %c0_523] : memref<8x1xf32, #tpu.memory_space<vmem>>, vector<8x1xf32>
    %768 = vector.broadcast %767 : vector<8x1xf32> to vector<8x256xf32>
    %769 = arith.addf %766, %768 : vector<8x256xf32>
    %cst_524 = arith.constant 0.000000e+00 : f32
    %770 = vector.broadcast %cst_524 : f32 to vector<8x256xf32>
    %771 = arith.maximumf %769, %770 : vector<8x256xf32>
    %c17_i32_525 = arith.constant 17 : i32
    %772 = tpu.dynamic_rotate %771 by %c17_i32_525 dim 1 : vector<8x256xf32>, i32 -> vector<8x256xf32>
    %c0_526 = arith.constant 0 : index
    %c0_527 = arith.constant 0 : index
    %773 = vector.load %arg15[%c0_526, %c0_527] : memref<9x512xf32, #tpu.memory_space<vmem>>, vector<1x256xf32>
    %774 = vector.broadcast %773 : vector<1x256xf32> to vector<8x256xf32>
    %775 = arith.mulf %772, %774 : vector<8x256xf32>
    %c0_528 = arith.constant 0 : index
    %c0_529 = arith.constant 0 : index
    %776 = vector.load %arg13[%c0_528, %c0_529] : memref<72x512xf32, #tpu.memory_space<vmem>>, vector<8x256xf32>
    tpu.vector_store %arg13[%c0_528, %c0_529], %775 {strides = array<i32>} : memref<72x512xf32, #tpu.memory_space<vmem>>, vector<8x256xf32>,
    %c16_i32_530 = arith.constant 16 : i32
    %777 = tpu.dynamic_rotate %771 by %c16_i32_530 dim 1 : vector<8x256xf32>, i32 -> vector<8x256xf32>
    %c1_531 = arith.constant 1 : index
    %c0_532 = arith.constant 0 : index
    %778 = vector.load %arg15[%c1_531, %c0_532] : memref<9x512xf32, #tpu.memory_space<vmem>>, vector<1x256xf32>
    %779 = vector.broadcast %778 : vector<1x256xf32> to vector<8x256xf32>
    %780 = arith.mulf %777, %779 : vector<8x256xf32>
    %c8_533 = arith.constant 8 : index
    %c0_534 = arith.constant 0 : index
    %781 = vector.load %arg13[%c8_533, %c0_534] : memref<72x512xf32, #tpu.memory_space<vmem>>, vector<8x256xf32>
    tpu.vector_store %arg13[%c8_533, %c0_534], %780 {strides = array<i32>} : memref<72x512xf32, #tpu.memory_space<vmem>>, vector<8x256xf32>,
    %c15_i32_535 = arith.constant 15 : i32
    %782 = tpu.dynamic_rotate %771 by %c15_i32_535 dim 1 : vector<8x256xf32>, i32 -> vector<8x256xf32>
    %c2_536 = arith.constant 2 : index
    %c0_537 = arith.constant 0 : index
    %783 = vector.load %arg15[%c2_536, %c0_537] : memref<9x512xf32, #tpu.memory_space<vmem>>, vector<1x256xf32>
    %784 = vector.broadcast %783 : vector<1x256xf32> to vector<8x256xf32>
    %785 = arith.mulf %782, %784 : vector<8x256xf32>
    %c16_538 = arith.constant 16 : index
    %c0_539 = arith.constant 0 : index
    %786 = vector.load %arg13[%c16_538, %c0_539] : memref<72x512xf32, #tpu.memory_space<vmem>>, vector<8x256xf32>
    tpu.vector_store %arg13[%c16_538, %c0_539], %785 {strides = array<i32>} : memref<72x512xf32, #tpu.memory_space<vmem>>, vector<8x256xf32>,
    %c1_i32_540 = arith.constant 1 : i32
    %787 = tpu.dynamic_rotate %771 by %c1_i32_540 dim 1 : vector<8x256xf32>, i32 -> vector<8x256xf32>
    %c3_541 = arith.constant 3 : index
    %c0_542 = arith.constant 0 : index
    %788 = vector.load %arg15[%c3_541, %c0_542] : memref<9x512xf32, #tpu.memory_space<vmem>>, vector<1x256xf32>
    %789 = vector.broadcast %788 : vector<1x256xf32> to vector<8x256xf32>
    %790 = arith.mulf %787, %789 : vector<8x256xf32>
    %c24_543 = arith.constant 24 : index
    %c0_544 = arith.constant 0 : index
    %791 = vector.load %arg13[%c24_543, %c0_544] : memref<72x512xf32, #tpu.memory_space<vmem>>, vector<8x256xf32>
    tpu.vector_store %arg13[%c24_543, %c0_544], %790 {strides = array<i32>} : memref<72x512xf32, #tpu.memory_space<vmem>>, vector<8x256xf32>,
    %c4_545 = arith.constant 4 : index
    %c0_546 = arith.constant 0 : index
    %792 = vector.load %arg15[%c4_545, %c0_546] : memref<9x512xf32, #tpu.memory_space<vmem>>, vector<1x256xf32>
    %793 = vector.broadcast %792 : vector<1x256xf32> to vector<8x256xf32>
    %794 = arith.mulf %771, %793 : vector<8x256xf32>
    %c32_547 = arith.constant 32 : index
    %c0_548 = arith.constant 0 : index
    %795 = vector.load %arg13[%c32_547, %c0_548] : memref<72x512xf32, #tpu.memory_space<vmem>>, vector<8x256xf32>
    tpu.vector_store %arg13[%c32_547, %c0_548], %794 {strides = array<i32>} : memref<72x512xf32, #tpu.memory_space<vmem>>, vector<8x256xf32>,
    %c255_i32_549 = arith.constant 255 : i32
    %796 = tpu.dynamic_rotate %771 by %c255_i32_549 dim 1 : vector<8x256xf32>, i32 -> vector<8x256xf32>
    %c5_550 = arith.constant 5 : index
    %c0_551 = arith.constant 0 : index
    %797 = vector.load %arg15[%c5_550, %c0_551] : memref<9x512xf32, #tpu.memory_space<vmem>>, vector<1x256xf32>
    %798 = vector.broadcast %797 : vector<1x256xf32> to vector<8x256xf32>
    %799 = arith.mulf %796, %798 : vector<8x256xf32>
    %c40_552 = arith.constant 40 : index
    %c0_553 = arith.constant 0 : index
    %800 = vector.load %arg13[%c40_552, %c0_553] : memref<72x512xf32, #tpu.memory_space<vmem>>, vector<8x256xf32>
    tpu.vector_store %arg13[%c40_552, %c0_553], %799 {strides = array<i32>} : memref<72x512xf32, #tpu.memory_space<vmem>>, vector<8x256xf32>,
    %c241_i32_554 = arith.constant 241 : i32
    %801 = tpu.dynamic_rotate %771 by %c241_i32_554 dim 1 : vector<8x256xf32>, i32 -> vector<8x256xf32>
    %c6_555 = arith.constant 6 : index
    %c0_556 = arith.constant 0 : index
    %802 = vector.load %arg15[%c6_555, %c0_556] : memref<9x512xf32, #tpu.memory_space<vmem>>, vector<1x256xf32>
    %803 = vector.broadcast %802 : vector<1x256xf32> to vector<8x256xf32>
    %804 = arith.mulf %801, %803 : vector<8x256xf32>
    %c48_557 = arith.constant 48 : index
    %c0_558 = arith.constant 0 : index
    %805 = vector.load %arg13[%c48_557, %c0_558] : memref<72x512xf32, #tpu.memory_space<vmem>>, vector<8x256xf32>
    tpu.vector_store %arg13[%c48_557, %c0_558], %804 {strides = array<i32>} : memref<72x512xf32, #tpu.memory_space<vmem>>, vector<8x256xf32>,
    %c240_i32_559 = arith.constant 240 : i32
    %806 = tpu.dynamic_rotate %771 by %c240_i32_559 dim 1 : vector<8x256xf32>, i32 -> vector<8x256xf32>
    %c7_560 = arith.constant 7 : index
    %c0_561 = arith.constant 0 : index
    %807 = vector.load %arg15[%c7_560, %c0_561] : memref<9x512xf32, #tpu.memory_space<vmem>>, vector<1x256xf32>
    %808 = vector.broadcast %807 : vector<1x256xf32> to vector<8x256xf32>
    %809 = arith.mulf %806, %808 : vector<8x256xf32>
    %c56_562 = arith.constant 56 : index
    %c0_563 = arith.constant 0 : index
    %810 = vector.load %arg13[%c56_562, %c0_563] : memref<72x512xf32, #tpu.memory_space<vmem>>, vector<8x256xf32>
    tpu.vector_store %arg13[%c56_562, %c0_563], %809 {strides = array<i32>} : memref<72x512xf32, #tpu.memory_space<vmem>>, vector<8x256xf32>,
    %c239_i32_564 = arith.constant 239 : i32
    %811 = tpu.dynamic_rotate %771 by %c239_i32_564 dim 1 : vector<8x256xf32>, i32 -> vector<8x256xf32>
    %c8_565 = arith.constant 8 : index
    %c0_566 = arith.constant 0 : index
    %812 = vector.load %arg15[%c8_565, %c0_566] : memref<9x512xf32, #tpu.memory_space<vmem>>, vector<1x256xf32>
    %813 = vector.broadcast %812 : vector<1x256xf32> to vector<8x256xf32>
    %814 = arith.mulf %811, %813 : vector<8x256xf32>
    %c64_567 = arith.constant 64 : index
    %c0_568 = arith.constant 0 : index
    %815 = vector.load %arg13[%c64_567, %c0_568] : memref<72x512xf32, #tpu.memory_space<vmem>>, vector<8x256xf32>
    tpu.vector_store %arg13[%c64_567, %c0_568], %814 {strides = array<i32>} : memref<72x512xf32, #tpu.memory_space<vmem>>, vector<8x256xf32>,
    %c0_569 = arith.constant 0 : index
    %c0_570 = arith.constant 0 : index
    %816 = vector.load %arg8[%c0_569, %c0_570] : memref<2x72xf32, #tpu.memory_space<vmem>>, vector<2x72xf32>
    %c0_571 = arith.constant 0 : index
    %c0_572 = arith.constant 0 : index
    %817 = vector.load %arg13[%c0_571, %c0_572] : memref<72x512xf32, #tpu.memory_space<vmem>>, vector<72x256xf32>
    %cst_573 = arith.constant dense<0.000000e+00> : vector<2x256xf32>
    %818 = tpu.matmul %816, %817, %cst_573 {dimension_numbers = #tpu.dot_dimension_numbers<[1], [0], [0], [1], [0, 0, 1, 1], [], []>} : vector<2x72xf32>, vector<72x256xf32>, vector<2x256xf32> -> vector<2x256xf32>
    %c0_574 = arith.constant 0 : index
    %c0_575 = arith.constant 0 : index
    %819 = vector.load %arg9[%c0_574, %c0_575] : memref<2x1xf32, #tpu.memory_space<vmem>>, vector<2x1xf32>
    %820 = vector.broadcast %819 : vector<2x1xf32> to vector<2x256xf32>
    %821 = arith.addf %818, %820 : vector<2x256xf32>
    %822 = math.tanh %821 : vector<2x256xf32>
    %cst_576 = arith.constant 2.000000e+00 : f32
    %823 = vector.broadcast %cst_576 : f32 to vector<2x256xf32>
    %824 = arith.mulf %822, %823 : vector<2x256xf32>
    %825 = vector.extract_strided_slice %824 {offsets = [0, 0], sizes = [1, 256], strides = [1, 1]} : vector<2x256xf32> to vector<1x256xf32>
    %826 = arith.addf %206, %825 : vector<1x256xf32>
    %827 = vector.extract_strided_slice %824 {offsets = [1, 0], sizes = [1, 256], strides = [1, 1]} : vector<2x256xf32> to vector<1x256xf32>
    %828 = arith.addf %208, %827 : vector<1x256xf32>
    %cst_577 = arith.constant 0.000000e+00 : f32
    %cst_578 = arith.constant 1.500000e+01 : f32
    %829 = vector.broadcast %cst_577 : f32 to vector<1x256xf32>
    %830 = arith.maximumf %829, %826 : vector<1x256xf32>
    %831 = vector.broadcast %cst_578 : f32 to vector<1x256xf32>
    %832 = arith.minimumf %831, %830 : vector<1x256xf32>
    %cst_579 = arith.constant 0.000000e+00 : f32
    %cst_580 = arith.constant 1.500000e+01 : f32
    %833 = vector.broadcast %cst_579 : f32 to vector<1x256xf32>
    %834 = arith.maximumf %833, %828 : vector<1x256xf32>
    %835 = vector.broadcast %cst_580 : f32 to vector<1x256xf32>
    %836 = arith.minimumf %835, %834 : vector<1x256xf32>
    %837 = vector.broadcast %832 : vector<1x256xf32> to vector<16x256xf32>
    %838 = arith.subf %210, %837 : vector<16x256xf32>
    %839 = math.absf %838 : vector<16x256xf32>
    %cst_581 = arith.constant 1.000000e+00 : f32
    %840 = vector.broadcast %cst_581 : f32 to vector<16x256xf32>
    %841 = arith.subf %840, %839 : vector<16x256xf32>
    %cst_582 = arith.constant 0.000000e+00 : f32
    %842 = vector.broadcast %cst_582 : f32 to vector<16x256xf32>
    %843 = arith.maximumf %841, %842 : vector<16x256xf32>
    %844 = vector.broadcast %836 : vector<1x256xf32> to vector<16x256xf32>
    %845 = arith.subf %210, %844 : vector<16x256xf32>
    %846 = math.absf %845 : vector<16x256xf32>
    %cst_583 = arith.constant 1.000000e+00 : f32
    %847 = vector.broadcast %cst_583 : f32 to vector<16x256xf32>
    %848 = arith.subf %847, %846 : vector<16x256xf32>
    %cst_584 = arith.constant 0.000000e+00 : f32
    %849 = vector.broadcast %cst_584 : f32 to vector<16x256xf32>
    %850 = arith.maximumf %848, %849 : vector<16x256xf32>
    %851 = vector.extract_strided_slice %824 {offsets = [0, 0], sizes = [1, 256], strides = [1, 1]} : vector<2x256xf32> to vector<1x256xf32>
    %c0_585 = arith.constant 0 : index
    %c0_586 = arith.constant 0 : index
    %852 = vector.load %arg14[%c0_585, %c0_586] : memref<32x256xf32, #tpu.memory_space<vmem>>, vector<1x256xf32>
    tpu.vector_store %arg14[%c0_585, %c0_586], %851 {strides = array<i32>} : memref<32x256xf32, #tpu.memory_space<vmem>>, vector<1x256xf32>,
    %c240_i32_587 = arith.constant 240 : i32
    %853 = tpu.dynamic_rotate %851 by %c240_i32_587 dim 1 : vector<1x256xf32>, i32 -> vector<1x256xf32>
    %c1_588 = arith.constant 1 : index
    %c0_589 = arith.constant 0 : index
    %854 = vector.load %arg14[%c1_588, %c0_589] : memref<32x256xf32, #tpu.memory_space<vmem>>, vector<1x256xf32>
    tpu.vector_store %arg14[%c1_588, %c0_589], %853 {strides = array<i32>} : memref<32x256xf32, #tpu.memory_space<vmem>>, vector<1x256xf32>,
    %c224_i32_590 = arith.constant 224 : i32
    %855 = tpu.dynamic_rotate %851 by %c224_i32_590 dim 1 : vector<1x256xf32>, i32 -> vector<1x256xf32>
    %c2_591 = arith.constant 2 : index
    %c0_592 = arith.constant 0 : index
    %856 = vector.load %arg14[%c2_591, %c0_592] : memref<32x256xf32, #tpu.memory_space<vmem>>, vector<1x256xf32>
    tpu.vector_store %arg14[%c2_591, %c0_592], %855 {strides = array<i32>} : memref<32x256xf32, #tpu.memory_space<vmem>>, vector<1x256xf32>,
    %c208_i32_593 = arith.constant 208 : i32
    %857 = tpu.dynamic_rotate %851 by %c208_i32_593 dim 1 : vector<1x256xf32>, i32 -> vector<1x256xf32>
    %c3_594 = arith.constant 3 : index
    %c0_595 = arith.constant 0 : index
    %858 = vector.load %arg14[%c3_594, %c0_595] : memref<32x256xf32, #tpu.memory_space<vmem>>, vector<1x256xf32>
    tpu.vector_store %arg14[%c3_594, %c0_595], %857 {strides = array<i32>} : memref<32x256xf32, #tpu.memory_space<vmem>>, vector<1x256xf32>,
    %c192_i32_596 = arith.constant 192 : i32
    %859 = tpu.dynamic_rotate %851 by %c192_i32_596 dim 1 : vector<1x256xf32>, i32 -> vector<1x256xf32>
    %c4_597 = arith.constant 4 : index
    %c0_598 = arith.constant 0 : index
    %860 = vector.load %arg14[%c4_597, %c0_598] : memref<32x256xf32, #tpu.memory_space<vmem>>, vector<1x256xf32>
    tpu.vector_store %arg14[%c4_597, %c0_598], %859 {strides = array<i32>} : memref<32x256xf32, #tpu.memory_space<vmem>>, vector<1x256xf32>,
    %c176_i32_599 = arith.constant 176 : i32
    %861 = tpu.dynamic_rotate %851 by %c176_i32_599 dim 1 : vector<1x256xf32>, i32 -> vector<1x256xf32>
    %c5_600 = arith.constant 5 : index
    %c0_601 = arith.constant 0 : index
    %862 = vector.load %arg14[%c5_600, %c0_601] : memref<32x256xf32, #tpu.memory_space<vmem>>, vector<1x256xf32>
    tpu.vector_store %arg14[%c5_600, %c0_601], %861 {strides = array<i32>} : memref<32x256xf32, #tpu.memory_space<vmem>>, vector<1x256xf32>,
    %c160_i32_602 = arith.constant 160 : i32
    %863 = tpu.dynamic_rotate %851 by %c160_i32_602 dim 1 : vector<1x256xf32>, i32 -> vector<1x256xf32>
    %c6_603 = arith.constant 6 : index
    %c0_604 = arith.constant 0 : index
    %864 = vector.load %arg14[%c6_603, %c0_604] : memref<32x256xf32, #tpu.memory_space<vmem>>, vector<1x256xf32>
    tpu.vector_store %arg14[%c6_603, %c0_604], %863 {strides = array<i32>} : memref<32x256xf32, #tpu.memory_space<vmem>>, vector<1x256xf32>,
    %c144_i32_605 = arith.constant 144 : i32
    %865 = tpu.dynamic_rotate %851 by %c144_i32_605 dim 1 : vector<1x256xf32>, i32 -> vector<1x256xf32>
    %c7_606 = arith.constant 7 : index
    %c0_607 = arith.constant 0 : index
    %866 = vector.load %arg14[%c7_606, %c0_607] : memref<32x256xf32, #tpu.memory_space<vmem>>, vector<1x256xf32>
    tpu.vector_store %arg14[%c7_606, %c0_607], %865 {strides = array<i32>} : memref<32x256xf32, #tpu.memory_space<vmem>>, vector<1x256xf32>,
    %c128_i32_608 = arith.constant 128 : i32
    %867 = tpu.dynamic_rotate %851 by %c128_i32_608 dim 1 : vector<1x256xf32>, i32 -> vector<1x256xf32>
    %c8_609 = arith.constant 8 : index
    %c0_610 = arith.constant 0 : index
    %868 = vector.load %arg14[%c8_609, %c0_610] : memref<32x256xf32, #tpu.memory_space<vmem>>, vector<1x256xf32>
    tpu.vector_store %arg14[%c8_609, %c0_610], %867 {strides = array<i32>} : memref<32x256xf32, #tpu.memory_space<vmem>>, vector<1x256xf32>,
    %c112_i32_611 = arith.constant 112 : i32
    %869 = tpu.dynamic_rotate %851 by %c112_i32_611 dim 1 : vector<1x256xf32>, i32 -> vector<1x256xf32>
    %c9_612 = arith.constant 9 : index
    %c0_613 = arith.constant 0 : index
    %870 = vector.load %arg14[%c9_612, %c0_613] : memref<32x256xf32, #tpu.memory_space<vmem>>, vector<1x256xf32>
    tpu.vector_store %arg14[%c9_612, %c0_613], %869 {strides = array<i32>} : memref<32x256xf32, #tpu.memory_space<vmem>>, vector<1x256xf32>,
    %c96_i32_614 = arith.constant 96 : i32
    %871 = tpu.dynamic_rotate %851 by %c96_i32_614 dim 1 : vector<1x256xf32>, i32 -> vector<1x256xf32>
    %c10_615 = arith.constant 10 : index
    %c0_616 = arith.constant 0 : index
    %872 = vector.load %arg14[%c10_615, %c0_616] : memref<32x256xf32, #tpu.memory_space<vmem>>, vector<1x256xf32>
    tpu.vector_store %arg14[%c10_615, %c0_616], %871 {strides = array<i32>} : memref<32x256xf32, #tpu.memory_space<vmem>>, vector<1x256xf32>,
    %c80_i32_617 = arith.constant 80 : i32
    %873 = tpu.dynamic_rotate %851 by %c80_i32_617 dim 1 : vector<1x256xf32>, i32 -> vector<1x256xf32>
    %c11_618 = arith.constant 11 : index
    %c0_619 = arith.constant 0 : index
    %874 = vector.load %arg14[%c11_618, %c0_619] : memref<32x256xf32, #tpu.memory_space<vmem>>, vector<1x256xf32>
    tpu.vector_store %arg14[%c11_618, %c0_619], %873 {strides = array<i32>} : memref<32x256xf32, #tpu.memory_space<vmem>>, vector<1x256xf32>,
    %c64_i32_620 = arith.constant 64 : i32
    %875 = tpu.dynamic_rotate %851 by %c64_i32_620 dim 1 : vector<1x256xf32>, i32 -> vector<1x256xf32>
    %c12_621 = arith.constant 12 : index
    %c0_622 = arith.constant 0 : index
    %876 = vector.load %arg14[%c12_621, %c0_622] : memref<32x256xf32, #tpu.memory_space<vmem>>, vector<1x256xf32>
    tpu.vector_store %arg14[%c12_621, %c0_622], %875 {strides = array<i32>} : memref<32x256xf32, #tpu.memory_space<vmem>>, vector<1x256xf32>,
    %c48_i32_623 = arith.constant 48 : i32
    %877 = tpu.dynamic_rotate %851 by %c48_i32_623 dim 1 : vector<1x256xf32>, i32 -> vector<1x256xf32>
    %c13_624 = arith.constant 13 : index
    %c0_625 = arith.constant 0 : index
    %878 = vector.load %arg14[%c13_624, %c0_625] : memref<32x256xf32, #tpu.memory_space<vmem>>, vector<1x256xf32>
    tpu.vector_store %arg14[%c13_624, %c0_625], %877 {strides = array<i32>} : memref<32x256xf32, #tpu.memory_space<vmem>>, vector<1x256xf32>,
    %c32_i32_626 = arith.constant 32 : i32
    %879 = tpu.dynamic_rotate %851 by %c32_i32_626 dim 1 : vector<1x256xf32>, i32 -> vector<1x256xf32>
    %c14_627 = arith.constant 14 : index
    %c0_628 = arith.constant 0 : index
    %880 = vector.load %arg14[%c14_627, %c0_628] : memref<32x256xf32, #tpu.memory_space<vmem>>, vector<1x256xf32>
    tpu.vector_store %arg14[%c14_627, %c0_628], %879 {strides = array<i32>} : memref<32x256xf32, #tpu.memory_space<vmem>>, vector<1x256xf32>,
    %c16_i32_629 = arith.constant 16 : i32
    %881 = tpu.dynamic_rotate %851 by %c16_i32_629 dim 1 : vector<1x256xf32>, i32 -> vector<1x256xf32>
    %c15_630 = arith.constant 15 : index
    %c0_631 = arith.constant 0 : index
    %882 = vector.load %arg14[%c15_630, %c0_631] : memref<32x256xf32, #tpu.memory_space<vmem>>, vector<1x256xf32>
    tpu.vector_store %arg14[%c15_630, %c0_631], %881 {strides = array<i32>} : memref<32x256xf32, #tpu.memory_space<vmem>>, vector<1x256xf32>,
    %883 = vector.extract_strided_slice %824 {offsets = [1, 0], sizes = [1, 256], strides = [1, 1]} : vector<2x256xf32> to vector<1x256xf32>
    %c16_632 = arith.constant 16 : index
    %c0_633 = arith.constant 0 : index
    %884 = vector.load %arg14[%c16_632, %c0_633] : memref<32x256xf32, #tpu.memory_space<vmem>>, vector<1x256xf32>
    tpu.vector_store %arg14[%c16_632, %c0_633], %883 {strides = array<i32>} : memref<32x256xf32, #tpu.memory_space<vmem>>, vector<1x256xf32>,
    %c240_i32_634 = arith.constant 240 : i32
    %885 = tpu.dynamic_rotate %883 by %c240_i32_634 dim 1 : vector<1x256xf32>, i32 -> vector<1x256xf32>
    %c17_635 = arith.constant 17 : index
    %c0_636 = arith.constant 0 : index
    %886 = vector.load %arg14[%c17_635, %c0_636] : memref<32x256xf32, #tpu.memory_space<vmem>>, vector<1x256xf32>
    tpu.vector_store %arg14[%c17_635, %c0_636], %885 {strides = array<i32>} : memref<32x256xf32, #tpu.memory_space<vmem>>, vector<1x256xf32>,
    %c224_i32_637 = arith.constant 224 : i32
    %887 = tpu.dynamic_rotate %883 by %c224_i32_637 dim 1 : vector<1x256xf32>, i32 -> vector<1x256xf32>
    %c18_638 = arith.constant 18 : index
    %c0_639 = arith.constant 0 : index
    %888 = vector.load %arg14[%c18_638, %c0_639] : memref<32x256xf32, #tpu.memory_space<vmem>>, vector<1x256xf32>
    tpu.vector_store %arg14[%c18_638, %c0_639], %887 {strides = array<i32>} : memref<32x256xf32, #tpu.memory_space<vmem>>, vector<1x256xf32>,
    %c208_i32_640 = arith.constant 208 : i32
    %889 = tpu.dynamic_rotate %883 by %c208_i32_640 dim 1 : vector<1x256xf32>, i32 -> vector<1x256xf32>
    %c19_641 = arith.constant 19 : index
    %c0_642 = arith.constant 0 : index
    %890 = vector.load %arg14[%c19_641, %c0_642] : memref<32x256xf32, #tpu.memory_space<vmem>>, vector<1x256xf32>
    tpu.vector_store %arg14[%c19_641, %c0_642], %889 {strides = array<i32>} : memref<32x256xf32, #tpu.memory_space<vmem>>, vector<1x256xf32>,
    %c192_i32_643 = arith.constant 192 : i32
    %891 = tpu.dynamic_rotate %883 by %c192_i32_643 dim 1 : vector<1x256xf32>, i32 -> vector<1x256xf32>
    %c20_644 = arith.constant 20 : index
    %c0_645 = arith.constant 0 : index
    %892 = vector.load %arg14[%c20_644, %c0_645] : memref<32x256xf32, #tpu.memory_space<vmem>>, vector<1x256xf32>
    tpu.vector_store %arg14[%c20_644, %c0_645], %891 {strides = array<i32>} : memref<32x256xf32, #tpu.memory_space<vmem>>, vector<1x256xf32>,
    %c176_i32_646 = arith.constant 176 : i32
    %893 = tpu.dynamic_rotate %883 by %c176_i32_646 dim 1 : vector<1x256xf32>, i32 -> vector<1x256xf32>
    %c21_647 = arith.constant 21 : index
    %c0_648 = arith.constant 0 : index
    %894 = vector.load %arg14[%c21_647, %c0_648] : memref<32x256xf32, #tpu.memory_space<vmem>>, vector<1x256xf32>
    tpu.vector_store %arg14[%c21_647, %c0_648], %893 {strides = array<i32>} : memref<32x256xf32, #tpu.memory_space<vmem>>, vector<1x256xf32>,
    %c160_i32_649 = arith.constant 160 : i32
    %895 = tpu.dynamic_rotate %883 by %c160_i32_649 dim 1 : vector<1x256xf32>, i32 -> vector<1x256xf32>
    %c22_650 = arith.constant 22 : index
    %c0_651 = arith.constant 0 : index
    %896 = vector.load %arg14[%c22_650, %c0_651] : memref<32x256xf32, #tpu.memory_space<vmem>>, vector<1x256xf32>
    tpu.vector_store %arg14[%c22_650, %c0_651], %895 {strides = array<i32>} : memref<32x256xf32, #tpu.memory_space<vmem>>, vector<1x256xf32>,
    %c144_i32_652 = arith.constant 144 : i32
    %897 = tpu.dynamic_rotate %883 by %c144_i32_652 dim 1 : vector<1x256xf32>, i32 -> vector<1x256xf32>
    %c23_653 = arith.constant 23 : index
    %c0_654 = arith.constant 0 : index
    %898 = vector.load %arg14[%c23_653, %c0_654] : memref<32x256xf32, #tpu.memory_space<vmem>>, vector<1x256xf32>
    tpu.vector_store %arg14[%c23_653, %c0_654], %897 {strides = array<i32>} : memref<32x256xf32, #tpu.memory_space<vmem>>, vector<1x256xf32>,
    %c128_i32_655 = arith.constant 128 : i32
    %899 = tpu.dynamic_rotate %883 by %c128_i32_655 dim 1 : vector<1x256xf32>, i32 -> vector<1x256xf32>
    %c24_656 = arith.constant 24 : index
    %c0_657 = arith.constant 0 : index
    %900 = vector.load %arg14[%c24_656, %c0_657] : memref<32x256xf32, #tpu.memory_space<vmem>>, vector<1x256xf32>
    tpu.vector_store %arg14[%c24_656, %c0_657], %899 {strides = array<i32>} : memref<32x256xf32, #tpu.memory_space<vmem>>, vector<1x256xf32>,
    %c112_i32_658 = arith.constant 112 : i32
    %901 = tpu.dynamic_rotate %883 by %c112_i32_658 dim 1 : vector<1x256xf32>, i32 -> vector<1x256xf32>
    %c25_659 = arith.constant 25 : index
    %c0_660 = arith.constant 0 : index
    %902 = vector.load %arg14[%c25_659, %c0_660] : memref<32x256xf32, #tpu.memory_space<vmem>>, vector<1x256xf32>
    tpu.vector_store %arg14[%c25_659, %c0_660], %901 {strides = array<i32>} : memref<32x256xf32, #tpu.memory_space<vmem>>, vector<1x256xf32>,
    %c96_i32_661 = arith.constant 96 : i32
    %903 = tpu.dynamic_rotate %883 by %c96_i32_661 dim 1 : vector<1x256xf32>, i32 -> vector<1x256xf32>
    %c26_662 = arith.constant 26 : index
    %c0_663 = arith.constant 0 : index
    %904 = vector.load %arg14[%c26_662, %c0_663] : memref<32x256xf32, #tpu.memory_space<vmem>>, vector<1x256xf32>
    tpu.vector_store %arg14[%c26_662, %c0_663], %903 {strides = array<i32>} : memref<32x256xf32, #tpu.memory_space<vmem>>, vector<1x256xf32>,
    %c80_i32_664 = arith.constant 80 : i32
    %905 = tpu.dynamic_rotate %883 by %c80_i32_664 dim 1 : vector<1x256xf32>, i32 -> vector<1x256xf32>
    %c27_665 = arith.constant 27 : index
    %c0_666 = arith.constant 0 : index
    %906 = vector.load %arg14[%c27_665, %c0_666] : memref<32x256xf32, #tpu.memory_space<vmem>>, vector<1x256xf32>
    tpu.vector_store %arg14[%c27_665, %c0_666], %905 {strides = array<i32>} : memref<32x256xf32, #tpu.memory_space<vmem>>, vector<1x256xf32>,
    %c64_i32_667 = arith.constant 64 : i32
    %907 = tpu.dynamic_rotate %883 by %c64_i32_667 dim 1 : vector<1x256xf32>, i32 -> vector<1x256xf32>
    %c28_668 = arith.constant 28 : index
    %c0_669 = arith.constant 0 : index
    %908 = vector.load %arg14[%c28_668, %c0_669] : memref<32x256xf32, #tpu.memory_space<vmem>>, vector<1x256xf32>
    tpu.vector_store %arg14[%c28_668, %c0_669], %907 {strides = array<i32>} : memref<32x256xf32, #tpu.memory_space<vmem>>, vector<1x256xf32>,
    %c48_i32_670 = arith.constant 48 : i32
    %909 = tpu.dynamic_rotate %883 by %c48_i32_670 dim 1 : vector<1x256xf32>, i32 -> vector<1x256xf32>
    %c29_671 = arith.constant 29 : index
    %c0_672 = arith.constant 0 : index
    %910 = vector.load %arg14[%c29_671, %c0_672] : memref<32x256xf32, #tpu.memory_space<vmem>>, vector<1x256xf32>
    tpu.vector_store %arg14[%c29_671, %c0_672], %909 {strides = array<i32>} : memref<32x256xf32, #tpu.memory_space<vmem>>, vector<1x256xf32>,
    %c32_i32_673 = arith.constant 32 : i32
    %911 = tpu.dynamic_rotate %883 by %c32_i32_673 dim 1 : vector<1x256xf32>, i32 -> vector<1x256xf32>
    %c30_674 = arith.constant 30 : index
    %c0_675 = arith.constant 0 : index
    %912 = vector.load %arg14[%c30_674, %c0_675] : memref<32x256xf32, #tpu.memory_space<vmem>>, vector<1x256xf32>
    tpu.vector_store %arg14[%c30_674, %c0_675], %911 {strides = array<i32>} : memref<32x256xf32, #tpu.memory_space<vmem>>, vector<1x256xf32>,
    %c16_i32_676 = arith.constant 16 : i32
    %913 = tpu.dynamic_rotate %883 by %c16_i32_676 dim 1 : vector<1x256xf32>, i32 -> vector<1x256xf32>
    %c31_677 = arith.constant 31 : index
    %c0_678 = arith.constant 0 : index
    %914 = vector.load %arg14[%c31_677, %c0_678] : memref<32x256xf32, #tpu.memory_space<vmem>>, vector<1x256xf32>
    tpu.vector_store %arg14[%c31_677, %c0_678], %913 {strides = array<i32>} : memref<32x256xf32, #tpu.memory_space<vmem>>, vector<1x256xf32>,
    %c0_679 = arith.constant 0 : index
    %c0_680 = arith.constant 0 : index
    %915 = vector.load %arg14[%c0_679, %c0_680] : memref<32x256xf32, #tpu.memory_space<vmem>>, vector<32x16xf32>
    %cst_681 = arith.constant dense<0.000000e+00> : vector<32x256xf32>
    %916 = tpu.matmul %915, %850, %cst_681 {dimension_numbers = #tpu.dot_dimension_numbers<[1], [0], [0], [1], [0, 0, 1, 1], [], []>} : vector<32x16xf32>, vector<16x256xf32>, vector<32x256xf32> -> vector<32x256xf32>
    %917 = vector.extract_strided_slice %916 {offsets = [0, 0], sizes = [16, 256], strides = [1, 1]} : vector<32x256xf32> to vector<16x256xf32>
    %918 = arith.mulf %917, %843 : vector<16x256xf32>
    %cst_682 = arith.constant dense<0.000000e+00> : vector<256xf32>
    %919 = vector.multi_reduction <add>, %918, %cst_682 [0] : vector<16x256xf32> to vector<256xf32>
    %920 = vector.shape_cast %919 : vector<256xf32> to vector<1x256xf32>
    %921 = vector.extract_strided_slice %916 {offsets = [16, 0], sizes = [16, 256], strides = [1, 1]} : vector<32x256xf32> to vector<16x256xf32>
    %922 = arith.mulf %921, %843 : vector<16x256xf32>
    %cst_683 = arith.constant dense<0.000000e+00> : vector<256xf32>
    %923 = vector.multi_reduction <add>, %922, %cst_683 [0] : vector<16x256xf32> to vector<256xf32>
    %924 = vector.shape_cast %923 : vector<256xf32> to vector<1x256xf32>
    %925 = tpu.iota {dimensions = array<i32: 0>} : vector<2x1xi32>
    %c0_i32_684 = arith.constant 0 : i32
    %926 = vector.broadcast %c0_i32_684 : i32 to vector<2x1xi32>
    %927 = arith.cmpi eq, %925, %926 : vector<2x1xi32>
    %928 = arith.extui %927 : vector<2x1xi1> to vector<2x1xi32>
    %929 = arith.sitofp %928 : vector<2x1xi32> to vector<2x1xf32>
    %930 = vector.shape_cast %920 : vector<1x256xf32> to vector<1x256xf32>
    %931 = vector.broadcast %930 : vector<1x256xf32> to vector<2x256xf32>
    %932 = vector.broadcast %929 : vector<2x1xf32> to vector<2x256xf32>
    %933 = arith.mulf %932, %931 : vector<2x256xf32>
    %c1_i32_685 = arith.constant 1 : i32
    %934 = vector.broadcast %c1_i32_685 : i32 to vector<2x1xi32>
    %935 = arith.cmpi eq, %925, %934 : vector<2x1xi32>
    %936 = arith.extui %935 : vector<2x1xi1> to vector<2x1xi32>
    %937 = arith.sitofp %936 : vector<2x1xi32> to vector<2x1xf32>
    %938 = vector.shape_cast %924 : vector<1x256xf32> to vector<1x256xf32>
    %939 = vector.broadcast %938 : vector<1x256xf32> to vector<2x256xf32>
    %940 = vector.broadcast %937 : vector<2x1xf32> to vector<2x256xf32>
    %941 = arith.mulf %940, %939 : vector<2x256xf32>
    %942 = arith.addf %933, %941 : vector<2x256xf32>
    %943 = arith.addf %824, %942 : vector<2x256xf32>
    %944 = vector.extract_strided_slice %943 {offsets = [0, 0], sizes = [1, 256], strides = [1, 1]} : vector<2x256xf32> to vector<1x256xf32>
    %945 = arith.addf %206, %944 : vector<1x256xf32>
    %946 = vector.extract_strided_slice %943 {offsets = [1, 0], sizes = [1, 256], strides = [1, 1]} : vector<2x256xf32> to vector<1x256xf32>
    %947 = arith.addf %208, %946 : vector<1x256xf32>
    %cst_686 = arith.constant 0.000000e+00 : f32
    %cst_687 = arith.constant 1.500000e+01 : f32
    %948 = vector.broadcast %cst_686 : f32 to vector<1x256xf32>
    %949 = arith.maximumf %948, %945 : vector<1x256xf32>
    %950 = vector.broadcast %cst_687 : f32 to vector<1x256xf32>
    %951 = arith.minimumf %950, %949 : vector<1x256xf32>
    %cst_688 = arith.constant 0.000000e+00 : f32
    %cst_689 = arith.constant 1.500000e+01 : f32
    %952 = vector.broadcast %cst_688 : f32 to vector<1x256xf32>
    %953 = arith.maximumf %952, %947 : vector<1x256xf32>
    %954 = vector.broadcast %cst_689 : f32 to vector<1x256xf32>
    %955 = arith.minimumf %954, %953 : vector<1x256xf32>
    %956 = vector.broadcast %951 : vector<1x256xf32> to vector<16x256xf32>
    %957 = arith.subf %210, %956 : vector<16x256xf32>
    %958 = math.absf %957 : vector<16x256xf32>
    %cst_690 = arith.constant 1.000000e+00 : f32
    %959 = vector.broadcast %cst_690 : f32 to vector<16x256xf32>
    %960 = arith.subf %959, %958 : vector<16x256xf32>
    %cst_691 = arith.constant 0.000000e+00 : f32
    %961 = vector.broadcast %cst_691 : f32 to vector<16x256xf32>
    %962 = arith.maximumf %960, %961 : vector<16x256xf32>
    %963 = vector.broadcast %955 : vector<1x256xf32> to vector<16x256xf32>
    %964 = arith.subf %210, %963 : vector<16x256xf32>
    %965 = math.absf %964 : vector<16x256xf32>
    %cst_692 = arith.constant 1.000000e+00 : f32
    %966 = vector.broadcast %cst_692 : f32 to vector<16x256xf32>
    %967 = arith.subf %966, %965 : vector<16x256xf32>
    %cst_693 = arith.constant 0.000000e+00 : f32
    %968 = vector.broadcast %cst_693 : f32 to vector<16x256xf32>
    %969 = arith.maximumf %967, %968 : vector<16x256xf32>
    %c0_694 = arith.constant 0 : index
    %c0_695 = arith.constant 0 : index
    %970 = vector.load %arg14[%c0_694, %c0_695] : memref<32x256xf32, #tpu.memory_space<vmem>>, vector<1x256xf32>
    tpu.vector_store %arg14[%c0_694, %c0_695], %522 {strides = array<i32>} : memref<32x256xf32, #tpu.memory_space<vmem>>, vector<1x256xf32>,
    %c240_i32_696 = arith.constant 240 : i32
    %971 = tpu.dynamic_rotate %522 by %c240_i32_696 dim 1 : vector<1x256xf32>, i32 -> vector<1x256xf32>
    %c1_697 = arith.constant 1 : index
    %c0_698 = arith.constant 0 : index
    %972 = vector.load %arg14[%c1_697, %c0_698] : memref<32x256xf32, #tpu.memory_space<vmem>>, vector<1x256xf32>
    tpu.vector_store %arg14[%c1_697, %c0_698], %971 {strides = array<i32>} : memref<32x256xf32, #tpu.memory_space<vmem>>, vector<1x256xf32>,
    %c224_i32_699 = arith.constant 224 : i32
    %973 = tpu.dynamic_rotate %522 by %c224_i32_699 dim 1 : vector<1x256xf32>, i32 -> vector<1x256xf32>
    %c2_700 = arith.constant 2 : index
    %c0_701 = arith.constant 0 : index
    %974 = vector.load %arg14[%c2_700, %c0_701] : memref<32x256xf32, #tpu.memory_space<vmem>>, vector<1x256xf32>
    tpu.vector_store %arg14[%c2_700, %c0_701], %973 {strides = array<i32>} : memref<32x256xf32, #tpu.memory_space<vmem>>, vector<1x256xf32>,
    %c208_i32_702 = arith.constant 208 : i32
    %975 = tpu.dynamic_rotate %522 by %c208_i32_702 dim 1 : vector<1x256xf32>, i32 -> vector<1x256xf32>
    %c3_703 = arith.constant 3 : index
    %c0_704 = arith.constant 0 : index
    %976 = vector.load %arg14[%c3_703, %c0_704] : memref<32x256xf32, #tpu.memory_space<vmem>>, vector<1x256xf32>
    tpu.vector_store %arg14[%c3_703, %c0_704], %975 {strides = array<i32>} : memref<32x256xf32, #tpu.memory_space<vmem>>, vector<1x256xf32>,
    %c192_i32_705 = arith.constant 192 : i32
    %977 = tpu.dynamic_rotate %522 by %c192_i32_705 dim 1 : vector<1x256xf32>, i32 -> vector<1x256xf32>
    %c4_706 = arith.constant 4 : index
    %c0_707 = arith.constant 0 : index
    %978 = vector.load %arg14[%c4_706, %c0_707] : memref<32x256xf32, #tpu.memory_space<vmem>>, vector<1x256xf32>
    tpu.vector_store %arg14[%c4_706, %c0_707], %977 {strides = array<i32>} : memref<32x256xf32, #tpu.memory_space<vmem>>, vector<1x256xf32>,
    %c176_i32_708 = arith.constant 176 : i32
    %979 = tpu.dynamic_rotate %522 by %c176_i32_708 dim 1 : vector<1x256xf32>, i32 -> vector<1x256xf32>
    %c5_709 = arith.constant 5 : index
    %c0_710 = arith.constant 0 : index
    %980 = vector.load %arg14[%c5_709, %c0_710] : memref<32x256xf32, #tpu.memory_space<vmem>>, vector<1x256xf32>
    tpu.vector_store %arg14[%c5_709, %c0_710], %979 {strides = array<i32>} : memref<32x256xf32, #tpu.memory_space<vmem>>, vector<1x256xf32>,
    %c160_i32_711 = arith.constant 160 : i32
    %981 = tpu.dynamic_rotate %522 by %c160_i32_711 dim 1 : vector<1x256xf32>, i32 -> vector<1x256xf32>
    %c6_712 = arith.constant 6 : index
    %c0_713 = arith.constant 0 : index
    %982 = vector.load %arg14[%c6_712, %c0_713] : memref<32x256xf32, #tpu.memory_space<vmem>>, vector<1x256xf32>
    tpu.vector_store %arg14[%c6_712, %c0_713], %981 {strides = array<i32>} : memref<32x256xf32, #tpu.memory_space<vmem>>, vector<1x256xf32>,
    %c144_i32_714 = arith.constant 144 : i32
    %983 = tpu.dynamic_rotate %522 by %c144_i32_714 dim 1 : vector<1x256xf32>, i32 -> vector<1x256xf32>
    %c7_715 = arith.constant 7 : index
    %c0_716 = arith.constant 0 : index
    %984 = vector.load %arg14[%c7_715, %c0_716] : memref<32x256xf32, #tpu.memory_space<vmem>>, vector<1x256xf32>
    tpu.vector_store %arg14[%c7_715, %c0_716], %983 {strides = array<i32>} : memref<32x256xf32, #tpu.memory_space<vmem>>, vector<1x256xf32>,
    %c128_i32_717 = arith.constant 128 : i32
    %985 = tpu.dynamic_rotate %522 by %c128_i32_717 dim 1 : vector<1x256xf32>, i32 -> vector<1x256xf32>
    %c8_718 = arith.constant 8 : index
    %c0_719 = arith.constant 0 : index
    %986 = vector.load %arg14[%c8_718, %c0_719] : memref<32x256xf32, #tpu.memory_space<vmem>>, vector<1x256xf32>
    tpu.vector_store %arg14[%c8_718, %c0_719], %985 {strides = array<i32>} : memref<32x256xf32, #tpu.memory_space<vmem>>, vector<1x256xf32>,
    %c112_i32_720 = arith.constant 112 : i32
    %987 = tpu.dynamic_rotate %522 by %c112_i32_720 dim 1 : vector<1x256xf32>, i32 -> vector<1x256xf32>
    %c9_721 = arith.constant 9 : index
    %c0_722 = arith.constant 0 : index
    %988 = vector.load %arg14[%c9_721, %c0_722] : memref<32x256xf32, #tpu.memory_space<vmem>>, vector<1x256xf32>
    tpu.vector_store %arg14[%c9_721, %c0_722], %987 {strides = array<i32>} : memref<32x256xf32, #tpu.memory_space<vmem>>, vector<1x256xf32>,
    %c96_i32_723 = arith.constant 96 : i32
    %989 = tpu.dynamic_rotate %522 by %c96_i32_723 dim 1 : vector<1x256xf32>, i32 -> vector<1x256xf32>
    %c10_724 = arith.constant 10 : index
    %c0_725 = arith.constant 0 : index
    %990 = vector.load %arg14[%c10_724, %c0_725] : memref<32x256xf32, #tpu.memory_space<vmem>>, vector<1x256xf32>
    tpu.vector_store %arg14[%c10_724, %c0_725], %989 {strides = array<i32>} : memref<32x256xf32, #tpu.memory_space<vmem>>, vector<1x256xf32>,
    %c80_i32_726 = arith.constant 80 : i32
    %991 = tpu.dynamic_rotate %522 by %c80_i32_726 dim 1 : vector<1x256xf32>, i32 -> vector<1x256xf32>
    %c11_727 = arith.constant 11 : index
    %c0_728 = arith.constant 0 : index
    %992 = vector.load %arg14[%c11_727, %c0_728] : memref<32x256xf32, #tpu.memory_space<vmem>>, vector<1x256xf32>
    tpu.vector_store %arg14[%c11_727, %c0_728], %991 {strides = array<i32>} : memref<32x256xf32, #tpu.memory_space<vmem>>, vector<1x256xf32>,
    %c64_i32_729 = arith.constant 64 : i32
    %993 = tpu.dynamic_rotate %522 by %c64_i32_729 dim 1 : vector<1x256xf32>, i32 -> vector<1x256xf32>
    %c12_730 = arith.constant 12 : index
    %c0_731 = arith.constant 0 : index
    %994 = vector.load %arg14[%c12_730, %c0_731] : memref<32x256xf32, #tpu.memory_space<vmem>>, vector<1x256xf32>
    tpu.vector_store %arg14[%c12_730, %c0_731], %993 {strides = array<i32>} : memref<32x256xf32, #tpu.memory_space<vmem>>, vector<1x256xf32>,
    %c48_i32_732 = arith.constant 48 : i32
    %995 = tpu.dynamic_rotate %522 by %c48_i32_732 dim 1 : vector<1x256xf32>, i32 -> vector<1x256xf32>
    %c13_733 = arith.constant 13 : index
    %c0_734 = arith.constant 0 : index
    %996 = vector.load %arg14[%c13_733, %c0_734] : memref<32x256xf32, #tpu.memory_space<vmem>>, vector<1x256xf32>
    tpu.vector_store %arg14[%c13_733, %c0_734], %995 {strides = array<i32>} : memref<32x256xf32, #tpu.memory_space<vmem>>, vector<1x256xf32>,
    %c32_i32_735 = arith.constant 32 : i32
    %997 = tpu.dynamic_rotate %522 by %c32_i32_735 dim 1 : vector<1x256xf32>, i32 -> vector<1x256xf32>
    %c14_736 = arith.constant 14 : index
    %c0_737 = arith.constant 0 : index
    %998 = vector.load %arg14[%c14_736, %c0_737] : memref<32x256xf32, #tpu.memory_space<vmem>>, vector<1x256xf32>
    tpu.vector_store %arg14[%c14_736, %c0_737], %997 {strides = array<i32>} : memref<32x256xf32, #tpu.memory_space<vmem>>, vector<1x256xf32>,
    %c16_i32_738 = arith.constant 16 : i32
    %999 = tpu.dynamic_rotate %522 by %c16_i32_738 dim 1 : vector<1x256xf32>, i32 -> vector<1x256xf32>
    %c15_739 = arith.constant 15 : index
    %c0_740 = arith.constant 0 : index
    %1000 = vector.load %arg14[%c15_739, %c0_740] : memref<32x256xf32, #tpu.memory_space<vmem>>, vector<1x256xf32>
    tpu.vector_store %arg14[%c15_739, %c0_740], %999 {strides = array<i32>} : memref<32x256xf32, #tpu.memory_space<vmem>>, vector<1x256xf32>,
    %c0_741 = arith.constant 0 : index
    %c0_742 = arith.constant 0 : index
    %1001 = vector.load %arg14[%c0_741, %c0_742] : memref<32x256xf32, #tpu.memory_space<vmem>>, vector<16x16xf32>
    %cst_743 = arith.constant dense<0.000000e+00> : vector<16x256xf32>
    %1002 = tpu.matmul %1001, %969, %cst_743 {dimension_numbers = #tpu.dot_dimension_numbers<[1], [0], [0], [1], [0, 0, 1, 1], [], []>} : vector<16x16xf32>, vector<16x256xf32>, vector<16x256xf32> -> vector<16x256xf32>
    %1003 = arith.mulf %1002, %962 : vector<16x256xf32>
    %cst_744 = arith.constant dense<0.000000e+00> : vector<256xf32>
    %1004 = vector.multi_reduction <add>, %1003, %cst_744 [0] : vector<16x256xf32> to vector<256xf32>
    %1005 = vector.shape_cast %1004 : vector<256xf32> to vector<1x256xf32>
    %1006 = arith.subf %1005, %710 : vector<1x256xf32>
    %1007 = arith.mulf %1006, %1006 : vector<1x256xf32>
    %1008 = vector.shape_cast %1007 : vector<1x256xf32> to vector<1x1x256xf32>
    %cst_745 = arith.constant dense<0.000000e+00> : vector<1xf32>
    %1009 = vector.multi_reduction <add>, %1008, %cst_745 [1, 2] : vector<1x1x256xf32> to vector<1xf32>
    %1010 = vector.shape_cast %1009 : vector<1xf32> to vector<1x1x1xf32>
    %1011 = vector.extract %1010[0, 0, 0] : f32 from vector<1x1x1xf32>
    %1012 = vector.broadcast %1011 : f32 to vector<1x1xf32>
    %1013 = vector.extract_strided_slice %340 {offsets = [0, 0], sizes = [1, 256], strides = [1, 1]} : vector<2x256xf32> to vector<1x256xf32>
    %1014 = arith.addf %206, %1013 : vector<1x256xf32>
    %1015 = vector.extract_strided_slice %340 {offsets = [1, 0], sizes = [1, 256], strides = [1, 1]} : vector<2x256xf32> to vector<1x256xf32>
    %1016 = arith.addf %208, %1015 : vector<1x256xf32>
    %cst_746 = arith.constant 0.000000e+00 : f32
    %cst_747 = arith.constant 1.500000e+01 : f32
    %1017 = vector.broadcast %cst_746 : f32 to vector<1x256xf32>
    %1018 = arith.maximumf %1017, %1014 : vector<1x256xf32>
    %1019 = vector.broadcast %cst_747 : f32 to vector<1x256xf32>
    %1020 = arith.minimumf %1019, %1018 : vector<1x256xf32>
    %cst_748 = arith.constant 0.000000e+00 : f32
    %cst_749 = arith.constant 1.500000e+01 : f32
    %1021 = vector.broadcast %cst_748 : f32 to vector<1x256xf32>
    %1022 = arith.maximumf %1021, %1016 : vector<1x256xf32>
    %1023 = vector.broadcast %cst_749 : f32 to vector<1x256xf32>
    %1024 = arith.minimumf %1023, %1022 : vector<1x256xf32>
    %1025 = vector.broadcast %1020 : vector<1x256xf32> to vector<16x256xf32>
    %1026 = arith.subf %210, %1025 : vector<16x256xf32>
    %1027 = math.absf %1026 : vector<16x256xf32>
    %cst_750 = arith.constant 1.000000e+00 : f32
    %1028 = vector.broadcast %cst_750 : f32 to vector<16x256xf32>
    %1029 = arith.subf %1028, %1027 : vector<16x256xf32>
    %cst_751 = arith.constant 0.000000e+00 : f32
    %1030 = vector.broadcast %cst_751 : f32 to vector<16x256xf32>
    %1031 = arith.maximumf %1029, %1030 : vector<16x256xf32>
    %1032 = vector.broadcast %1024 : vector<1x256xf32> to vector<16x256xf32>
    %1033 = arith.subf %210, %1032 : vector<16x256xf32>
    %1034 = math.absf %1033 : vector<16x256xf32>
    %cst_752 = arith.constant 1.000000e+00 : f32
    %1035 = vector.broadcast %cst_752 : f32 to vector<16x256xf32>
    %1036 = arith.subf %1035, %1034 : vector<16x256xf32>
    %cst_753 = arith.constant 0.000000e+00 : f32
    %1037 = vector.broadcast %cst_753 : f32 to vector<16x256xf32>
    %1038 = arith.maximumf %1036, %1037 : vector<16x256xf32>
    %1039 = vector.extract_strided_slice %824 {offsets = [0, 0], sizes = [1, 256], strides = [1, 1]} : vector<2x256xf32> to vector<1x256xf32>
    %c0_754 = arith.constant 0 : index
    %c0_755 = arith.constant 0 : index
    %1040 = vector.load %arg14[%c0_754, %c0_755] : memref<32x256xf32, #tpu.memory_space<vmem>>, vector<1x256xf32>
    tpu.vector_store %arg14[%c0_754, %c0_755], %1039 {strides = array<i32>} : memref<32x256xf32, #tpu.memory_space<vmem>>, vector<1x256xf32>,
    %c240_i32_756 = arith.constant 240 : i32
    %1041 = tpu.dynamic_rotate %1039 by %c240_i32_756 dim 1 : vector<1x256xf32>, i32 -> vector<1x256xf32>
    %c1_757 = arith.constant 1 : index
    %c0_758 = arith.constant 0 : index
    %1042 = vector.load %arg14[%c1_757, %c0_758] : memref<32x256xf32, #tpu.memory_space<vmem>>, vector<1x256xf32>
    tpu.vector_store %arg14[%c1_757, %c0_758], %1041 {strides = array<i32>} : memref<32x256xf32, #tpu.memory_space<vmem>>, vector<1x256xf32>,
    %c224_i32_759 = arith.constant 224 : i32
    %1043 = tpu.dynamic_rotate %1039 by %c224_i32_759 dim 1 : vector<1x256xf32>, i32 -> vector<1x256xf32>
    %c2_760 = arith.constant 2 : index
    %c0_761 = arith.constant 0 : index
    %1044 = vector.load %arg14[%c2_760, %c0_761] : memref<32x256xf32, #tpu.memory_space<vmem>>, vector<1x256xf32>
    tpu.vector_store %arg14[%c2_760, %c0_761], %1043 {strides = array<i32>} : memref<32x256xf32, #tpu.memory_space<vmem>>, vector<1x256xf32>,
    %c208_i32_762 = arith.constant 208 : i32
    %1045 = tpu.dynamic_rotate %1039 by %c208_i32_762 dim 1 : vector<1x256xf32>, i32 -> vector<1x256xf32>
    %c3_763 = arith.constant 3 : index
    %c0_764 = arith.constant 0 : index
    %1046 = vector.load %arg14[%c3_763, %c0_764] : memref<32x256xf32, #tpu.memory_space<vmem>>, vector<1x256xf32>
    tpu.vector_store %arg14[%c3_763, %c0_764], %1045 {strides = array<i32>} : memref<32x256xf32, #tpu.memory_space<vmem>>, vector<1x256xf32>,
    %c192_i32_765 = arith.constant 192 : i32
    %1047 = tpu.dynamic_rotate %1039 by %c192_i32_765 dim 1 : vector<1x256xf32>, i32 -> vector<1x256xf32>
    %c4_766 = arith.constant 4 : index
    %c0_767 = arith.constant 0 : index
    %1048 = vector.load %arg14[%c4_766, %c0_767] : memref<32x256xf32, #tpu.memory_space<vmem>>, vector<1x256xf32>
    tpu.vector_store %arg14[%c4_766, %c0_767], %1047 {strides = array<i32>} : memref<32x256xf32, #tpu.memory_space<vmem>>, vector<1x256xf32>,
    %c176_i32_768 = arith.constant 176 : i32
    %1049 = tpu.dynamic_rotate %1039 by %c176_i32_768 dim 1 : vector<1x256xf32>, i32 -> vector<1x256xf32>
    %c5_769 = arith.constant 5 : index
    %c0_770 = arith.constant 0 : index
    %1050 = vector.load %arg14[%c5_769, %c0_770] : memref<32x256xf32, #tpu.memory_space<vmem>>, vector<1x256xf32>
    tpu.vector_store %arg14[%c5_769, %c0_770], %1049 {strides = array<i32>} : memref<32x256xf32, #tpu.memory_space<vmem>>, vector<1x256xf32>,
    %c160_i32_771 = arith.constant 160 : i32
    %1051 = tpu.dynamic_rotate %1039 by %c160_i32_771 dim 1 : vector<1x256xf32>, i32 -> vector<1x256xf32>
    %c6_772 = arith.constant 6 : index
    %c0_773 = arith.constant 0 : index
    %1052 = vector.load %arg14[%c6_772, %c0_773] : memref<32x256xf32, #tpu.memory_space<vmem>>, vector<1x256xf32>
    tpu.vector_store %arg14[%c6_772, %c0_773], %1051 {strides = array<i32>} : memref<32x256xf32, #tpu.memory_space<vmem>>, vector<1x256xf32>,
    %c144_i32_774 = arith.constant 144 : i32
    %1053 = tpu.dynamic_rotate %1039 by %c144_i32_774 dim 1 : vector<1x256xf32>, i32 -> vector<1x256xf32>
    %c7_775 = arith.constant 7 : index
    %c0_776 = arith.constant 0 : index
    %1054 = vector.load %arg14[%c7_775, %c0_776] : memref<32x256xf32, #tpu.memory_space<vmem>>, vector<1x256xf32>
    tpu.vector_store %arg14[%c7_775, %c0_776], %1053 {strides = array<i32>} : memref<32x256xf32, #tpu.memory_space<vmem>>, vector<1x256xf32>,
    %c128_i32_777 = arith.constant 128 : i32
    %1055 = tpu.dynamic_rotate %1039 by %c128_i32_777 dim 1 : vector<1x256xf32>, i32 -> vector<1x256xf32>
    %c8_778 = arith.constant 8 : index
    %c0_779 = arith.constant 0 : index
    %1056 = vector.load %arg14[%c8_778, %c0_779] : memref<32x256xf32, #tpu.memory_space<vmem>>, vector<1x256xf32>
    tpu.vector_store %arg14[%c8_778, %c0_779], %1055 {strides = array<i32>} : memref<32x256xf32, #tpu.memory_space<vmem>>, vector<1x256xf32>,
    %c112_i32_780 = arith.constant 112 : i32
    %1057 = tpu.dynamic_rotate %1039 by %c112_i32_780 dim 1 : vector<1x256xf32>, i32 -> vector<1x256xf32>
    %c9_781 = arith.constant 9 : index
    %c0_782 = arith.constant 0 : index
    %1058 = vector.load %arg14[%c9_781, %c0_782] : memref<32x256xf32, #tpu.memory_space<vmem>>, vector<1x256xf32>
    tpu.vector_store %arg14[%c9_781, %c0_782], %1057 {strides = array<i32>} : memref<32x256xf32, #tpu.memory_space<vmem>>, vector<1x256xf32>,
    %c96_i32_783 = arith.constant 96 : i32
    %1059 = tpu.dynamic_rotate %1039 by %c96_i32_783 dim 1 : vector<1x256xf32>, i32 -> vector<1x256xf32>
    %c10_784 = arith.constant 10 : index
    %c0_785 = arith.constant 0 : index
    %1060 = vector.load %arg14[%c10_784, %c0_785] : memref<32x256xf32, #tpu.memory_space<vmem>>, vector<1x256xf32>
    tpu.vector_store %arg14[%c10_784, %c0_785], %1059 {strides = array<i32>} : memref<32x256xf32, #tpu.memory_space<vmem>>, vector<1x256xf32>,
    %c80_i32_786 = arith.constant 80 : i32
    %1061 = tpu.dynamic_rotate %1039 by %c80_i32_786 dim 1 : vector<1x256xf32>, i32 -> vector<1x256xf32>
    %c11_787 = arith.constant 11 : index
    %c0_788 = arith.constant 0 : index
    %1062 = vector.load %arg14[%c11_787, %c0_788] : memref<32x256xf32, #tpu.memory_space<vmem>>, vector<1x256xf32>
    tpu.vector_store %arg14[%c11_787, %c0_788], %1061 {strides = array<i32>} : memref<32x256xf32, #tpu.memory_space<vmem>>, vector<1x256xf32>,
    %c64_i32_789 = arith.constant 64 : i32
    %1063 = tpu.dynamic_rotate %1039 by %c64_i32_789 dim 1 : vector<1x256xf32>, i32 -> vector<1x256xf32>
    %c12_790 = arith.constant 12 : index
    %c0_791 = arith.constant 0 : index
    %1064 = vector.load %arg14[%c12_790, %c0_791] : memref<32x256xf32, #tpu.memory_space<vmem>>, vector<1x256xf32>
    tpu.vector_store %arg14[%c12_790, %c0_791], %1063 {strides = array<i32>} : memref<32x256xf32, #tpu.memory_space<vmem>>, vector<1x256xf32>,
    %c48_i32_792 = arith.constant 48 : i32
    %1065 = tpu.dynamic_rotate %1039 by %c48_i32_792 dim 1 : vector<1x256xf32>, i32 -> vector<1x256xf32>
    %c13_793 = arith.constant 13 : index
    %c0_794 = arith.constant 0 : index
    %1066 = vector.load %arg14[%c13_793, %c0_794] : memref<32x256xf32, #tpu.memory_space<vmem>>, vector<1x256xf32>
    tpu.vector_store %arg14[%c13_793, %c0_794], %1065 {strides = array<i32>} : memref<32x256xf32, #tpu.memory_space<vmem>>, vector<1x256xf32>,
    %c32_i32_795 = arith.constant 32 : i32
    %1067 = tpu.dynamic_rotate %1039 by %c32_i32_795 dim 1 : vector<1x256xf32>, i32 -> vector<1x256xf32>
    %c14_796 = arith.constant 14 : index
    %c0_797 = arith.constant 0 : index
    %1068 = vector.load %arg14[%c14_796, %c0_797] : memref<32x256xf32, #tpu.memory_space<vmem>>, vector<1x256xf32>
    tpu.vector_store %arg14[%c14_796, %c0_797], %1067 {strides = array<i32>} : memref<32x256xf32, #tpu.memory_space<vmem>>, vector<1x256xf32>,
    %c16_i32_798 = arith.constant 16 : i32
    %1069 = tpu.dynamic_rotate %1039 by %c16_i32_798 dim 1 : vector<1x256xf32>, i32 -> vector<1x256xf32>
    %c15_799 = arith.constant 15 : index
    %c0_800 = arith.constant 0 : index
    %1070 = vector.load %arg14[%c15_799, %c0_800] : memref<32x256xf32, #tpu.memory_space<vmem>>, vector<1x256xf32>
    tpu.vector_store %arg14[%c15_799, %c0_800], %1069 {strides = array<i32>} : memref<32x256xf32, #tpu.memory_space<vmem>>, vector<1x256xf32>,
    %1071 = vector.extract_strided_slice %824 {offsets = [1, 0], sizes = [1, 256], strides = [1, 1]} : vector<2x256xf32> to vector<1x256xf32>
    %c16_801 = arith.constant 16 : index
    %c0_802 = arith.constant 0 : index
    %1072 = vector.load %arg14[%c16_801, %c0_802] : memref<32x256xf32, #tpu.memory_space<vmem>>, vector<1x256xf32>
    tpu.vector_store %arg14[%c16_801, %c0_802], %1071 {strides = array<i32>} : memref<32x256xf32, #tpu.memory_space<vmem>>, vector<1x256xf32>,
    %c240_i32_803 = arith.constant 240 : i32
    %1073 = tpu.dynamic_rotate %1071 by %c240_i32_803 dim 1 : vector<1x256xf32>, i32 -> vector<1x256xf32>
    %c17_804 = arith.constant 17 : index
    %c0_805 = arith.constant 0 : index
    %1074 = vector.load %arg14[%c17_804, %c0_805] : memref<32x256xf32, #tpu.memory_space<vmem>>, vector<1x256xf32>
    tpu.vector_store %arg14[%c17_804, %c0_805], %1073 {strides = array<i32>} : memref<32x256xf32, #tpu.memory_space<vmem>>, vector<1x256xf32>,
    %c224_i32_806 = arith.constant 224 : i32
    %1075 = tpu.dynamic_rotate %1071 by %c224_i32_806 dim 1 : vector<1x256xf32>, i32 -> vector<1x256xf32>
    %c18_807 = arith.constant 18 : index
    %c0_808 = arith.constant 0 : index
    %1076 = vector.load %arg14[%c18_807, %c0_808] : memref<32x256xf32, #tpu.memory_space<vmem>>, vector<1x256xf32>
    tpu.vector_store %arg14[%c18_807, %c0_808], %1075 {strides = array<i32>} : memref<32x256xf32, #tpu.memory_space<vmem>>, vector<1x256xf32>,
    %c208_i32_809 = arith.constant 208 : i32
    %1077 = tpu.dynamic_rotate %1071 by %c208_i32_809 dim 1 : vector<1x256xf32>, i32 -> vector<1x256xf32>
    %c19_810 = arith.constant 19 : index
    %c0_811 = arith.constant 0 : index
    %1078 = vector.load %arg14[%c19_810, %c0_811] : memref<32x256xf32, #tpu.memory_space<vmem>>, vector<1x256xf32>
    tpu.vector_store %arg14[%c19_810, %c0_811], %1077 {strides = array<i32>} : memref<32x256xf32, #tpu.memory_space<vmem>>, vector<1x256xf32>,
    %c192_i32_812 = arith.constant 192 : i32
    %1079 = tpu.dynamic_rotate %1071 by %c192_i32_812 dim 1 : vector<1x256xf32>, i32 -> vector<1x256xf32>
    %c20_813 = arith.constant 20 : index
    %c0_814 = arith.constant 0 : index
    %1080 = vector.load %arg14[%c20_813, %c0_814] : memref<32x256xf32, #tpu.memory_space<vmem>>, vector<1x256xf32>
    tpu.vector_store %arg14[%c20_813, %c0_814], %1079 {strides = array<i32>} : memref<32x256xf32, #tpu.memory_space<vmem>>, vector<1x256xf32>,
    %c176_i32_815 = arith.constant 176 : i32
    %1081 = tpu.dynamic_rotate %1071 by %c176_i32_815 dim 1 : vector<1x256xf32>, i32 -> vector<1x256xf32>
    %c21_816 = arith.constant 21 : index
    %c0_817 = arith.constant 0 : index
    %1082 = vector.load %arg14[%c21_816, %c0_817] : memref<32x256xf32, #tpu.memory_space<vmem>>, vector<1x256xf32>
    tpu.vector_store %arg14[%c21_816, %c0_817], %1081 {strides = array<i32>} : memref<32x256xf32, #tpu.memory_space<vmem>>, vector<1x256xf32>,
    %c160_i32_818 = arith.constant 160 : i32
    %1083 = tpu.dynamic_rotate %1071 by %c160_i32_818 dim 1 : vector<1x256xf32>, i32 -> vector<1x256xf32>
    %c22_819 = arith.constant 22 : index
    %c0_820 = arith.constant 0 : index
    %1084 = vector.load %arg14[%c22_819, %c0_820] : memref<32x256xf32, #tpu.memory_space<vmem>>, vector<1x256xf32>
    tpu.vector_store %arg14[%c22_819, %c0_820], %1083 {strides = array<i32>} : memref<32x256xf32, #tpu.memory_space<vmem>>, vector<1x256xf32>,
    %c144_i32_821 = arith.constant 144 : i32
    %1085 = tpu.dynamic_rotate %1071 by %c144_i32_821 dim 1 : vector<1x256xf32>, i32 -> vector<1x256xf32>
    %c23_822 = arith.constant 23 : index
    %c0_823 = arith.constant 0 : index
    %1086 = vector.load %arg14[%c23_822, %c0_823] : memref<32x256xf32, #tpu.memory_space<vmem>>, vector<1x256xf32>
    tpu.vector_store %arg14[%c23_822, %c0_823], %1085 {strides = array<i32>} : memref<32x256xf32, #tpu.memory_space<vmem>>, vector<1x256xf32>,
    %c128_i32_824 = arith.constant 128 : i32
    %1087 = tpu.dynamic_rotate %1071 by %c128_i32_824 dim 1 : vector<1x256xf32>, i32 -> vector<1x256xf32>
    %c24_825 = arith.constant 24 : index
    %c0_826 = arith.constant 0 : index
    %1088 = vector.load %arg14[%c24_825, %c0_826] : memref<32x256xf32, #tpu.memory_space<vmem>>, vector<1x256xf32>
    tpu.vector_store %arg14[%c24_825, %c0_826], %1087 {strides = array<i32>} : memref<32x256xf32, #tpu.memory_space<vmem>>, vector<1x256xf32>,
    %c112_i32_827 = arith.constant 112 : i32
    %1089 = tpu.dynamic_rotate %1071 by %c112_i32_827 dim 1 : vector<1x256xf32>, i32 -> vector<1x256xf32>
    %c25_828 = arith.constant 25 : index
    %c0_829 = arith.constant 0 : index
    %1090 = vector.load %arg14[%c25_828, %c0_829] : memref<32x256xf32, #tpu.memory_space<vmem>>, vector<1x256xf32>
    tpu.vector_store %arg14[%c25_828, %c0_829], %1089 {strides = array<i32>} : memref<32x256xf32, #tpu.memory_space<vmem>>, vector<1x256xf32>,
    %c96_i32_830 = arith.constant 96 : i32
    %1091 = tpu.dynamic_rotate %1071 by %c96_i32_830 dim 1 : vector<1x256xf32>, i32 -> vector<1x256xf32>
    %c26_831 = arith.constant 26 : index
    %c0_832 = arith.constant 0 : index
    %1092 = vector.load %arg14[%c26_831, %c0_832] : memref<32x256xf32, #tpu.memory_space<vmem>>, vector<1x256xf32>
    tpu.vector_store %arg14[%c26_831, %c0_832], %1091 {strides = array<i32>} : memref<32x256xf32, #tpu.memory_space<vmem>>, vector<1x256xf32>,
    %c80_i32_833 = arith.constant 80 : i32
    %1093 = tpu.dynamic_rotate %1071 by %c80_i32_833 dim 1 : vector<1x256xf32>, i32 -> vector<1x256xf32>
    %c27_834 = arith.constant 27 : index
    %c0_835 = arith.constant 0 : index
    %1094 = vector.load %arg14[%c27_834, %c0_835] : memref<32x256xf32, #tpu.memory_space<vmem>>, vector<1x256xf32>
    tpu.vector_store %arg14[%c27_834, %c0_835], %1093 {strides = array<i32>} : memref<32x256xf32, #tpu.memory_space<vmem>>, vector<1x256xf32>,
    %c64_i32_836 = arith.constant 64 : i32
    %1095 = tpu.dynamic_rotate %1071 by %c64_i32_836 dim 1 : vector<1x256xf32>, i32 -> vector<1x256xf32>
    %c28_837 = arith.constant 28 : index
    %c0_838 = arith.constant 0 : index
    %1096 = vector.load %arg14[%c28_837, %c0_838] : memref<32x256xf32, #tpu.memory_space<vmem>>, vector<1x256xf32>
    tpu.vector_store %arg14[%c28_837, %c0_838], %1095 {strides = array<i32>} : memref<32x256xf32, #tpu.memory_space<vmem>>, vector<1x256xf32>,
    %c48_i32_839 = arith.constant 48 : i32
    %1097 = tpu.dynamic_rotate %1071 by %c48_i32_839 dim 1 : vector<1x256xf32>, i32 -> vector<1x256xf32>
    %c29_840 = arith.constant 29 : index
    %c0_841 = arith.constant 0 : index
    %1098 = vector.load %arg14[%c29_840, %c0_841] : memref<32x256xf32, #tpu.memory_space<vmem>>, vector<1x256xf32>
    tpu.vector_store %arg14[%c29_840, %c0_841], %1097 {strides = array<i32>} : memref<32x256xf32, #tpu.memory_space<vmem>>, vector<1x256xf32>,
    %c32_i32_842 = arith.constant 32 : i32
    %1099 = tpu.dynamic_rotate %1071 by %c32_i32_842 dim 1 : vector<1x256xf32>, i32 -> vector<1x256xf32>
    %c30_843 = arith.constant 30 : index
    %c0_844 = arith.constant 0 : index
    %1100 = vector.load %arg14[%c30_843, %c0_844] : memref<32x256xf32, #tpu.memory_space<vmem>>, vector<1x256xf32>
    tpu.vector_store %arg14[%c30_843, %c0_844], %1099 {strides = array<i32>} : memref<32x256xf32, #tpu.memory_space<vmem>>, vector<1x256xf32>,
    %c16_i32_845 = arith.constant 16 : i32
    %1101 = tpu.dynamic_rotate %1071 by %c16_i32_845 dim 1 : vector<1x256xf32>, i32 -> vector<1x256xf32>
    %c31_846 = arith.constant 31 : index
    %c0_847 = arith.constant 0 : index
    %1102 = vector.load %arg14[%c31_846, %c0_847] : memref<32x256xf32, #tpu.memory_space<vmem>>, vector<1x256xf32>
    tpu.vector_store %arg14[%c31_846, %c0_847], %1101 {strides = array<i32>} : memref<32x256xf32, #tpu.memory_space<vmem>>, vector<1x256xf32>,
    %c0_848 = arith.constant 0 : index
    %c0_849 = arith.constant 0 : index
    %1103 = vector.load %arg14[%c0_848, %c0_849] : memref<32x256xf32, #tpu.memory_space<vmem>>, vector<32x16xf32>
    %cst_850 = arith.constant dense<0.000000e+00> : vector<32x256xf32>
    %1104 = tpu.matmul %1103, %1038, %cst_850 {dimension_numbers = #tpu.dot_dimension_numbers<[1], [0], [0], [1], [0, 0, 1, 1], [], []>} : vector<32x16xf32>, vector<16x256xf32>, vector<32x256xf32> -> vector<32x256xf32>
    %1105 = vector.extract_strided_slice %1104 {offsets = [0, 0], sizes = [16, 256], strides = [1, 1]} : vector<32x256xf32> to vector<16x256xf32>
    %1106 = arith.mulf %1105, %1031 : vector<16x256xf32>
    %cst_851 = arith.constant dense<0.000000e+00> : vector<256xf32>
    %1107 = vector.multi_reduction <add>, %1106, %cst_851 [0] : vector<16x256xf32> to vector<256xf32>
    %1108 = vector.shape_cast %1107 : vector<256xf32> to vector<1x256xf32>
    %1109 = vector.extract_strided_slice %1104 {offsets = [16, 0], sizes = [16, 256], strides = [1, 1]} : vector<32x256xf32> to vector<16x256xf32>
    %1110 = arith.mulf %1109, %1031 : vector<16x256xf32>
    %cst_852 = arith.constant dense<0.000000e+00> : vector<256xf32>
    %1111 = vector.multi_reduction <add>, %1110, %cst_852 [0] : vector<16x256xf32> to vector<256xf32>
    %1112 = vector.shape_cast %1111 : vector<256xf32> to vector<1x256xf32>
    %1113 = tpu.iota {dimensions = array<i32: 0>} : vector<2x1xi32>
    %c0_i32_853 = arith.constant 0 : i32
    %1114 = vector.broadcast %c0_i32_853 : i32 to vector<2x1xi32>
    %1115 = arith.cmpi eq, %1113, %1114 : vector<2x1xi32>
    %1116 = arith.extui %1115 : vector<2x1xi1> to vector<2x1xi32>
    %1117 = arith.sitofp %1116 : vector<2x1xi32> to vector<2x1xf32>
    %1118 = vector.shape_cast %1108 : vector<1x256xf32> to vector<1x256xf32>
    %1119 = vector.broadcast %1118 : vector<1x256xf32> to vector<2x256xf32>
    %1120 = vector.broadcast %1117 : vector<2x1xf32> to vector<2x256xf32>
    %1121 = arith.mulf %1120, %1119 : vector<2x256xf32>
    %c1_i32_854 = arith.constant 1 : i32
    %1122 = vector.broadcast %c1_i32_854 : i32 to vector<2x1xi32>
    %1123 = arith.cmpi eq, %1113, %1122 : vector<2x1xi32>
    %1124 = arith.extui %1123 : vector<2x1xi1> to vector<2x1xi32>
    %1125 = arith.sitofp %1124 : vector<2x1xi32> to vector<2x1xf32>
    %1126 = vector.shape_cast %1112 : vector<1x256xf32> to vector<1x256xf32>
    %1127 = vector.broadcast %1126 : vector<1x256xf32> to vector<2x256xf32>
    %1128 = vector.broadcast %1125 : vector<2x1xf32> to vector<2x256xf32>
    %1129 = arith.mulf %1128, %1127 : vector<2x256xf32>
    %1130 = arith.addf %1121, %1129 : vector<2x256xf32>
    %1131 = arith.addf %340, %1130 : vector<2x256xf32>
    %1132 = vector.extract_strided_slice %1131 {offsets = [0, 0], sizes = [1, 256], strides = [1, 1]} : vector<2x256xf32> to vector<1x256xf32>
    %1133 = arith.addf %206, %1132 : vector<1x256xf32>
    %1134 = vector.extract_strided_slice %1131 {offsets = [1, 0], sizes = [1, 256], strides = [1, 1]} : vector<2x256xf32> to vector<1x256xf32>
    %1135 = arith.addf %208, %1134 : vector<1x256xf32>
    %cst_855 = arith.constant 0.000000e+00 : f32
    %cst_856 = arith.constant 1.500000e+01 : f32
    %1136 = vector.broadcast %cst_855 : f32 to vector<1x256xf32>
    %1137 = arith.maximumf %1136, %1133 : vector<1x256xf32>
    %1138 = vector.broadcast %cst_856 : f32 to vector<1x256xf32>
    %1139 = arith.minimumf %1138, %1137 : vector<1x256xf32>
    %cst_857 = arith.constant 0.000000e+00 : f32
    %cst_858 = arith.constant 1.500000e+01 : f32
    %1140 = vector.broadcast %cst_857 : f32 to vector<1x256xf32>
    %1141 = arith.maximumf %1140, %1135 : vector<1x256xf32>
    %1142 = vector.broadcast %cst_858 : f32 to vector<1x256xf32>
    %1143 = arith.minimumf %1142, %1141 : vector<1x256xf32>
    %1144 = vector.broadcast %1139 : vector<1x256xf32> to vector<16x256xf32>
    %1145 = arith.subf %210, %1144 : vector<16x256xf32>
    %1146 = math.absf %1145 : vector<16x256xf32>
    %cst_859 = arith.constant 1.000000e+00 : f32
    %1147 = vector.broadcast %cst_859 : f32 to vector<16x256xf32>
    %1148 = arith.subf %1147, %1146 : vector<16x256xf32>
    %cst_860 = arith.constant 0.000000e+00 : f32
    %1149 = vector.broadcast %cst_860 : f32 to vector<16x256xf32>
    %1150 = arith.maximumf %1148, %1149 : vector<16x256xf32>
    %1151 = vector.broadcast %1143 : vector<1x256xf32> to vector<16x256xf32>
    %1152 = arith.subf %210, %1151 : vector<16x256xf32>
    %1153 = math.absf %1152 : vector<16x256xf32>
    %cst_861 = arith.constant 1.000000e+00 : f32
    %1154 = vector.broadcast %cst_861 : f32 to vector<16x256xf32>
    %1155 = arith.subf %1154, %1153 : vector<16x256xf32>
    %cst_862 = arith.constant 0.000000e+00 : f32
    %1156 = vector.broadcast %cst_862 : f32 to vector<16x256xf32>
    %1157 = arith.maximumf %1155, %1156 : vector<16x256xf32>
    %1158 = vector.extract_strided_slice %340 {offsets = [0, 0], sizes = [1, 256], strides = [1, 1]} : vector<2x256xf32> to vector<1x256xf32>
    %c0_863 = arith.constant 0 : index
    %c0_864 = arith.constant 0 : index
    %1159 = vector.load %arg14[%c0_863, %c0_864] : memref<32x256xf32, #tpu.memory_space<vmem>>, vector<1x256xf32>
    tpu.vector_store %arg14[%c0_863, %c0_864], %1158 {strides = array<i32>} : memref<32x256xf32, #tpu.memory_space<vmem>>, vector<1x256xf32>,
    %c240_i32_865 = arith.constant 240 : i32
    %1160 = tpu.dynamic_rotate %1158 by %c240_i32_865 dim 1 : vector<1x256xf32>, i32 -> vector<1x256xf32>
    %c1_866 = arith.constant 1 : index
    %c0_867 = arith.constant 0 : index
    %1161 = vector.load %arg14[%c1_866, %c0_867] : memref<32x256xf32, #tpu.memory_space<vmem>>, vector<1x256xf32>
    tpu.vector_store %arg14[%c1_866, %c0_867], %1160 {strides = array<i32>} : memref<32x256xf32, #tpu.memory_space<vmem>>, vector<1x256xf32>,
    %c224_i32_868 = arith.constant 224 : i32
    %1162 = tpu.dynamic_rotate %1158 by %c224_i32_868 dim 1 : vector<1x256xf32>, i32 -> vector<1x256xf32>
    %c2_869 = arith.constant 2 : index
    %c0_870 = arith.constant 0 : index
    %1163 = vector.load %arg14[%c2_869, %c0_870] : memref<32x256xf32, #tpu.memory_space<vmem>>, vector<1x256xf32>
    tpu.vector_store %arg14[%c2_869, %c0_870], %1162 {strides = array<i32>} : memref<32x256xf32, #tpu.memory_space<vmem>>, vector<1x256xf32>,
    %c208_i32_871 = arith.constant 208 : i32
    %1164 = tpu.dynamic_rotate %1158 by %c208_i32_871 dim 1 : vector<1x256xf32>, i32 -> vector<1x256xf32>
    %c3_872 = arith.constant 3 : index
    %c0_873 = arith.constant 0 : index
    %1165 = vector.load %arg14[%c3_872, %c0_873] : memref<32x256xf32, #tpu.memory_space<vmem>>, vector<1x256xf32>
    tpu.vector_store %arg14[%c3_872, %c0_873], %1164 {strides = array<i32>} : memref<32x256xf32, #tpu.memory_space<vmem>>, vector<1x256xf32>,
    %c192_i32_874 = arith.constant 192 : i32
    %1166 = tpu.dynamic_rotate %1158 by %c192_i32_874 dim 1 : vector<1x256xf32>, i32 -> vector<1x256xf32>
    %c4_875 = arith.constant 4 : index
    %c0_876 = arith.constant 0 : index
    %1167 = vector.load %arg14[%c4_875, %c0_876] : memref<32x256xf32, #tpu.memory_space<vmem>>, vector<1x256xf32>
    tpu.vector_store %arg14[%c4_875, %c0_876], %1166 {strides = array<i32>} : memref<32x256xf32, #tpu.memory_space<vmem>>, vector<1x256xf32>,
    %c176_i32_877 = arith.constant 176 : i32
    %1168 = tpu.dynamic_rotate %1158 by %c176_i32_877 dim 1 : vector<1x256xf32>, i32 -> vector<1x256xf32>
    %c5_878 = arith.constant 5 : index
    %c0_879 = arith.constant 0 : index
    %1169 = vector.load %arg14[%c5_878, %c0_879] : memref<32x256xf32, #tpu.memory_space<vmem>>, vector<1x256xf32>
    tpu.vector_store %arg14[%c5_878, %c0_879], %1168 {strides = array<i32>} : memref<32x256xf32, #tpu.memory_space<vmem>>, vector<1x256xf32>,
    %c160_i32_880 = arith.constant 160 : i32
    %1170 = tpu.dynamic_rotate %1158 by %c160_i32_880 dim 1 : vector<1x256xf32>, i32 -> vector<1x256xf32>
    %c6_881 = arith.constant 6 : index
    %c0_882 = arith.constant 0 : index
    %1171 = vector.load %arg14[%c6_881, %c0_882] : memref<32x256xf32, #tpu.memory_space<vmem>>, vector<1x256xf32>
    tpu.vector_store %arg14[%c6_881, %c0_882], %1170 {strides = array<i32>} : memref<32x256xf32, #tpu.memory_space<vmem>>, vector<1x256xf32>,
    %c144_i32_883 = arith.constant 144 : i32
    %1172 = tpu.dynamic_rotate %1158 by %c144_i32_883 dim 1 : vector<1x256xf32>, i32 -> vector<1x256xf32>
    %c7_884 = arith.constant 7 : index
    %c0_885 = arith.constant 0 : index
    %1173 = vector.load %arg14[%c7_884, %c0_885] : memref<32x256xf32, #tpu.memory_space<vmem>>, vector<1x256xf32>
    tpu.vector_store %arg14[%c7_884, %c0_885], %1172 {strides = array<i32>} : memref<32x256xf32, #tpu.memory_space<vmem>>, vector<1x256xf32>,
    %c128_i32_886 = arith.constant 128 : i32
    %1174 = tpu.dynamic_rotate %1158 by %c128_i32_886 dim 1 : vector<1x256xf32>, i32 -> vector<1x256xf32>
    %c8_887 = arith.constant 8 : index
    %c0_888 = arith.constant 0 : index
    %1175 = vector.load %arg14[%c8_887, %c0_888] : memref<32x256xf32, #tpu.memory_space<vmem>>, vector<1x256xf32>
    tpu.vector_store %arg14[%c8_887, %c0_888], %1174 {strides = array<i32>} : memref<32x256xf32, #tpu.memory_space<vmem>>, vector<1x256xf32>,
    %c112_i32_889 = arith.constant 112 : i32
    %1176 = tpu.dynamic_rotate %1158 by %c112_i32_889 dim 1 : vector<1x256xf32>, i32 -> vector<1x256xf32>
    %c9_890 = arith.constant 9 : index
    %c0_891 = arith.constant 0 : index
    %1177 = vector.load %arg14[%c9_890, %c0_891] : memref<32x256xf32, #tpu.memory_space<vmem>>, vector<1x256xf32>
    tpu.vector_store %arg14[%c9_890, %c0_891], %1176 {strides = array<i32>} : memref<32x256xf32, #tpu.memory_space<vmem>>, vector<1x256xf32>,
    %c96_i32_892 = arith.constant 96 : i32
    %1178 = tpu.dynamic_rotate %1158 by %c96_i32_892 dim 1 : vector<1x256xf32>, i32 -> vector<1x256xf32>
    %c10_893 = arith.constant 10 : index
    %c0_894 = arith.constant 0 : index
    %1179 = vector.load %arg14[%c10_893, %c0_894] : memref<32x256xf32, #tpu.memory_space<vmem>>, vector<1x256xf32>
    tpu.vector_store %arg14[%c10_893, %c0_894], %1178 {strides = array<i32>} : memref<32x256xf32, #tpu.memory_space<vmem>>, vector<1x256xf32>,
    %c80_i32_895 = arith.constant 80 : i32
    %1180 = tpu.dynamic_rotate %1158 by %c80_i32_895 dim 1 : vector<1x256xf32>, i32 -> vector<1x256xf32>
    %c11_896 = arith.constant 11 : index
    %c0_897 = arith.constant 0 : index
    %1181 = vector.load %arg14[%c11_896, %c0_897] : memref<32x256xf32, #tpu.memory_space<vmem>>, vector<1x256xf32>
    tpu.vector_store %arg14[%c11_896, %c0_897], %1180 {strides = array<i32>} : memref<32x256xf32, #tpu.memory_space<vmem>>, vector<1x256xf32>,
    %c64_i32_898 = arith.constant 64 : i32
    %1182 = tpu.dynamic_rotate %1158 by %c64_i32_898 dim 1 : vector<1x256xf32>, i32 -> vector<1x256xf32>
    %c12_899 = arith.constant 12 : index
    %c0_900 = arith.constant 0 : index
    %1183 = vector.load %arg14[%c12_899, %c0_900] : memref<32x256xf32, #tpu.memory_space<vmem>>, vector<1x256xf32>
    tpu.vector_store %arg14[%c12_899, %c0_900], %1182 {strides = array<i32>} : memref<32x256xf32, #tpu.memory_space<vmem>>, vector<1x256xf32>,
    %c48_i32_901 = arith.constant 48 : i32
    %1184 = tpu.dynamic_rotate %1158 by %c48_i32_901 dim 1 : vector<1x256xf32>, i32 -> vector<1x256xf32>
    %c13_902 = arith.constant 13 : index
    %c0_903 = arith.constant 0 : index
    %1185 = vector.load %arg14[%c13_902, %c0_903] : memref<32x256xf32, #tpu.memory_space<vmem>>, vector<1x256xf32>
    tpu.vector_store %arg14[%c13_902, %c0_903], %1184 {strides = array<i32>} : memref<32x256xf32, #tpu.memory_space<vmem>>, vector<1x256xf32>,
    %c32_i32_904 = arith.constant 32 : i32
    %1186 = tpu.dynamic_rotate %1158 by %c32_i32_904 dim 1 : vector<1x256xf32>, i32 -> vector<1x256xf32>
    %c14_905 = arith.constant 14 : index
    %c0_906 = arith.constant 0 : index
    %1187 = vector.load %arg14[%c14_905, %c0_906] : memref<32x256xf32, #tpu.memory_space<vmem>>, vector<1x256xf32>
    tpu.vector_store %arg14[%c14_905, %c0_906], %1186 {strides = array<i32>} : memref<32x256xf32, #tpu.memory_space<vmem>>, vector<1x256xf32>,
    %c16_i32_907 = arith.constant 16 : i32
    %1188 = tpu.dynamic_rotate %1158 by %c16_i32_907 dim 1 : vector<1x256xf32>, i32 -> vector<1x256xf32>
    %c15_908 = arith.constant 15 : index
    %c0_909 = arith.constant 0 : index
    %1189 = vector.load %arg14[%c15_908, %c0_909] : memref<32x256xf32, #tpu.memory_space<vmem>>, vector<1x256xf32>
    tpu.vector_store %arg14[%c15_908, %c0_909], %1188 {strides = array<i32>} : memref<32x256xf32, #tpu.memory_space<vmem>>, vector<1x256xf32>,
    %1190 = vector.extract_strided_slice %340 {offsets = [1, 0], sizes = [1, 256], strides = [1, 1]} : vector<2x256xf32> to vector<1x256xf32>
    %c16_910 = arith.constant 16 : index
    %c0_911 = arith.constant 0 : index
    %1191 = vector.load %arg14[%c16_910, %c0_911] : memref<32x256xf32, #tpu.memory_space<vmem>>, vector<1x256xf32>
    tpu.vector_store %arg14[%c16_910, %c0_911], %1190 {strides = array<i32>} : memref<32x256xf32, #tpu.memory_space<vmem>>, vector<1x256xf32>,
    %c240_i32_912 = arith.constant 240 : i32
    %1192 = tpu.dynamic_rotate %1190 by %c240_i32_912 dim 1 : vector<1x256xf32>, i32 -> vector<1x256xf32>
    %c17_913 = arith.constant 17 : index
    %c0_914 = arith.constant 0 : index
    %1193 = vector.load %arg14[%c17_913, %c0_914] : memref<32x256xf32, #tpu.memory_space<vmem>>, vector<1x256xf32>
    tpu.vector_store %arg14[%c17_913, %c0_914], %1192 {strides = array<i32>} : memref<32x256xf32, #tpu.memory_space<vmem>>, vector<1x256xf32>,
    %c224_i32_915 = arith.constant 224 : i32
    %1194 = tpu.dynamic_rotate %1190 by %c224_i32_915 dim 1 : vector<1x256xf32>, i32 -> vector<1x256xf32>
    %c18_916 = arith.constant 18 : index
    %c0_917 = arith.constant 0 : index
    %1195 = vector.load %arg14[%c18_916, %c0_917] : memref<32x256xf32, #tpu.memory_space<vmem>>, vector<1x256xf32>
    tpu.vector_store %arg14[%c18_916, %c0_917], %1194 {strides = array<i32>} : memref<32x256xf32, #tpu.memory_space<vmem>>, vector<1x256xf32>,
    %c208_i32_918 = arith.constant 208 : i32
    %1196 = tpu.dynamic_rotate %1190 by %c208_i32_918 dim 1 : vector<1x256xf32>, i32 -> vector<1x256xf32>
    %c19_919 = arith.constant 19 : index
    %c0_920 = arith.constant 0 : index
    %1197 = vector.load %arg14[%c19_919, %c0_920] : memref<32x256xf32, #tpu.memory_space<vmem>>, vector<1x256xf32>
    tpu.vector_store %arg14[%c19_919, %c0_920], %1196 {strides = array<i32>} : memref<32x256xf32, #tpu.memory_space<vmem>>, vector<1x256xf32>,
    %c192_i32_921 = arith.constant 192 : i32
    %1198 = tpu.dynamic_rotate %1190 by %c192_i32_921 dim 1 : vector<1x256xf32>, i32 -> vector<1x256xf32>
    %c20_922 = arith.constant 20 : index
    %c0_923 = arith.constant 0 : index
    %1199 = vector.load %arg14[%c20_922, %c0_923] : memref<32x256xf32, #tpu.memory_space<vmem>>, vector<1x256xf32>
    tpu.vector_store %arg14[%c20_922, %c0_923], %1198 {strides = array<i32>} : memref<32x256xf32, #tpu.memory_space<vmem>>, vector<1x256xf32>,
    %c176_i32_924 = arith.constant 176 : i32
    %1200 = tpu.dynamic_rotate %1190 by %c176_i32_924 dim 1 : vector<1x256xf32>, i32 -> vector<1x256xf32>
    %c21_925 = arith.constant 21 : index
    %c0_926 = arith.constant 0 : index
    %1201 = vector.load %arg14[%c21_925, %c0_926] : memref<32x256xf32, #tpu.memory_space<vmem>>, vector<1x256xf32>
    tpu.vector_store %arg14[%c21_925, %c0_926], %1200 {strides = array<i32>} : memref<32x256xf32, #tpu.memory_space<vmem>>, vector<1x256xf32>,
    %c160_i32_927 = arith.constant 160 : i32
    %1202 = tpu.dynamic_rotate %1190 by %c160_i32_927 dim 1 : vector<1x256xf32>, i32 -> vector<1x256xf32>
    %c22_928 = arith.constant 22 : index
    %c0_929 = arith.constant 0 : index
    %1203 = vector.load %arg14[%c22_928, %c0_929] : memref<32x256xf32, #tpu.memory_space<vmem>>, vector<1x256xf32>
    tpu.vector_store %arg14[%c22_928, %c0_929], %1202 {strides = array<i32>} : memref<32x256xf32, #tpu.memory_space<vmem>>, vector<1x256xf32>,
    %c144_i32_930 = arith.constant 144 : i32
    %1204 = tpu.dynamic_rotate %1190 by %c144_i32_930 dim 1 : vector<1x256xf32>, i32 -> vector<1x256xf32>
    %c23_931 = arith.constant 23 : index
    %c0_932 = arith.constant 0 : index
    %1205 = vector.load %arg14[%c23_931, %c0_932] : memref<32x256xf32, #tpu.memory_space<vmem>>, vector<1x256xf32>
    tpu.vector_store %arg14[%c23_931, %c0_932], %1204 {strides = array<i32>} : memref<32x256xf32, #tpu.memory_space<vmem>>, vector<1x256xf32>,
    %c128_i32_933 = arith.constant 128 : i32
    %1206 = tpu.dynamic_rotate %1190 by %c128_i32_933 dim 1 : vector<1x256xf32>, i32 -> vector<1x256xf32>
    %c24_934 = arith.constant 24 : index
    %c0_935 = arith.constant 0 : index
    %1207 = vector.load %arg14[%c24_934, %c0_935] : memref<32x256xf32, #tpu.memory_space<vmem>>, vector<1x256xf32>
    tpu.vector_store %arg14[%c24_934, %c0_935], %1206 {strides = array<i32>} : memref<32x256xf32, #tpu.memory_space<vmem>>, vector<1x256xf32>,
    %c112_i32_936 = arith.constant 112 : i32
    %1208 = tpu.dynamic_rotate %1190 by %c112_i32_936 dim 1 : vector<1x256xf32>, i32 -> vector<1x256xf32>
    %c25_937 = arith.constant 25 : index
    %c0_938 = arith.constant 0 : index
    %1209 = vector.load %arg14[%c25_937, %c0_938] : memref<32x256xf32, #tpu.memory_space<vmem>>, vector<1x256xf32>
    tpu.vector_store %arg14[%c25_937, %c0_938], %1208 {strides = array<i32>} : memref<32x256xf32, #tpu.memory_space<vmem>>, vector<1x256xf32>,
    %c96_i32_939 = arith.constant 96 : i32
    %1210 = tpu.dynamic_rotate %1190 by %c96_i32_939 dim 1 : vector<1x256xf32>, i32 -> vector<1x256xf32>
    %c26_940 = arith.constant 26 : index
    %c0_941 = arith.constant 0 : index
    %1211 = vector.load %arg14[%c26_940, %c0_941] : memref<32x256xf32, #tpu.memory_space<vmem>>, vector<1x256xf32>
    tpu.vector_store %arg14[%c26_940, %c0_941], %1210 {strides = array<i32>} : memref<32x256xf32, #tpu.memory_space<vmem>>, vector<1x256xf32>,
    %c80_i32_942 = arith.constant 80 : i32
    %1212 = tpu.dynamic_rotate %1190 by %c80_i32_942 dim 1 : vector<1x256xf32>, i32 -> vector<1x256xf32>
    %c27_943 = arith.constant 27 : index
    %c0_944 = arith.constant 0 : index
    %1213 = vector.load %arg14[%c27_943, %c0_944] : memref<32x256xf32, #tpu.memory_space<vmem>>, vector<1x256xf32>
    tpu.vector_store %arg14[%c27_943, %c0_944], %1212 {strides = array<i32>} : memref<32x256xf32, #tpu.memory_space<vmem>>, vector<1x256xf32>,
    %c64_i32_945 = arith.constant 64 : i32
    %1214 = tpu.dynamic_rotate %1190 by %c64_i32_945 dim 1 : vector<1x256xf32>, i32 -> vector<1x256xf32>
    %c28_946 = arith.constant 28 : index
    %c0_947 = arith.constant 0 : index
    %1215 = vector.load %arg14[%c28_946, %c0_947] : memref<32x256xf32, #tpu.memory_space<vmem>>, vector<1x256xf32>
    tpu.vector_store %arg14[%c28_946, %c0_947], %1214 {strides = array<i32>} : memref<32x256xf32, #tpu.memory_space<vmem>>, vector<1x256xf32>,
    %c48_i32_948 = arith.constant 48 : i32
    %1216 = tpu.dynamic_rotate %1190 by %c48_i32_948 dim 1 : vector<1x256xf32>, i32 -> vector<1x256xf32>
    %c29_949 = arith.constant 29 : index
    %c0_950 = arith.constant 0 : index
    %1217 = vector.load %arg14[%c29_949, %c0_950] : memref<32x256xf32, #tpu.memory_space<vmem>>, vector<1x256xf32>
    tpu.vector_store %arg14[%c29_949, %c0_950], %1216 {strides = array<i32>} : memref<32x256xf32, #tpu.memory_space<vmem>>, vector<1x256xf32>,
    %c32_i32_951 = arith.constant 32 : i32
    %1218 = tpu.dynamic_rotate %1190 by %c32_i32_951 dim 1 : vector<1x256xf32>, i32 -> vector<1x256xf32>
    %c30_952 = arith.constant 30 : index
    %c0_953 = arith.constant 0 : index
    %1219 = vector.load %arg14[%c30_952, %c0_953] : memref<32x256xf32, #tpu.memory_space<vmem>>, vector<1x256xf32>
    tpu.vector_store %arg14[%c30_952, %c0_953], %1218 {strides = array<i32>} : memref<32x256xf32, #tpu.memory_space<vmem>>, vector<1x256xf32>,
    %c16_i32_954 = arith.constant 16 : i32
    %1220 = tpu.dynamic_rotate %1190 by %c16_i32_954 dim 1 : vector<1x256xf32>, i32 -> vector<1x256xf32>
    %c31_955 = arith.constant 31 : index
    %c0_956 = arith.constant 0 : index
    %1221 = vector.load %arg14[%c31_955, %c0_956] : memref<32x256xf32, #tpu.memory_space<vmem>>, vector<1x256xf32>
    tpu.vector_store %arg14[%c31_955, %c0_956], %1220 {strides = array<i32>} : memref<32x256xf32, #tpu.memory_space<vmem>>, vector<1x256xf32>,
    %c0_957 = arith.constant 0 : index
    %c0_958 = arith.constant 0 : index
    %1222 = vector.load %arg14[%c0_957, %c0_958] : memref<32x256xf32, #tpu.memory_space<vmem>>, vector<32x16xf32>
    %cst_959 = arith.constant dense<0.000000e+00> : vector<32x256xf32>
    %1223 = tpu.matmul %1222, %1157, %cst_959 {dimension_numbers = #tpu.dot_dimension_numbers<[1], [0], [0], [1], [0, 0, 1, 1], [], []>} : vector<32x16xf32>, vector<16x256xf32>, vector<32x256xf32> -> vector<32x256xf32>
    %1224 = vector.extract_strided_slice %1223 {offsets = [0, 0], sizes = [16, 256], strides = [1, 1]} : vector<32x256xf32> to vector<16x256xf32>
    %1225 = arith.mulf %1224, %1150 : vector<16x256xf32>
    %cst_960 = arith.constant dense<0.000000e+00> : vector<256xf32>
    %1226 = vector.multi_reduction <add>, %1225, %cst_960 [0] : vector<16x256xf32> to vector<256xf32>
    %1227 = vector.shape_cast %1226 : vector<256xf32> to vector<1x256xf32>
    %1228 = vector.extract_strided_slice %1223 {offsets = [16, 0], sizes = [16, 256], strides = [1, 1]} : vector<32x256xf32> to vector<16x256xf32>
    %1229 = arith.mulf %1228, %1150 : vector<16x256xf32>
    %cst_961 = arith.constant dense<0.000000e+00> : vector<256xf32>
    %1230 = vector.multi_reduction <add>, %1229, %cst_961 [0] : vector<16x256xf32> to vector<256xf32>
    %1231 = vector.shape_cast %1230 : vector<256xf32> to vector<1x256xf32>
    %1232 = tpu.iota {dimensions = array<i32: 0>} : vector<2x1xi32>
    %c0_i32_962 = arith.constant 0 : i32
    %1233 = vector.broadcast %c0_i32_962 : i32 to vector<2x1xi32>
    %1234 = arith.cmpi eq, %1232, %1233 : vector<2x1xi32>
    %1235 = arith.extui %1234 : vector<2x1xi1> to vector<2x1xi32>
    %1236 = arith.sitofp %1235 : vector<2x1xi32> to vector<2x1xf32>
    %1237 = vector.shape_cast %1227 : vector<1x256xf32> to vector<1x256xf32>
    %1238 = vector.broadcast %1237 : vector<1x256xf32> to vector<2x256xf32>
    %1239 = vector.broadcast %1236 : vector<2x1xf32> to vector<2x256xf32>
    %1240 = arith.mulf %1239, %1238 : vector<2x256xf32>
    %c1_i32_963 = arith.constant 1 : i32
    %1241 = vector.broadcast %c1_i32_963 : i32 to vector<2x1xi32>
    %1242 = arith.cmpi eq, %1232, %1241 : vector<2x1xi32>
    %1243 = arith.extui %1242 : vector<2x1xi1> to vector<2x1xi32>
    %1244 = arith.sitofp %1243 : vector<2x1xi32> to vector<2x1xf32>
    %1245 = vector.shape_cast %1231 : vector<1x256xf32> to vector<1x256xf32>
    %1246 = vector.broadcast %1245 : vector<1x256xf32> to vector<2x256xf32>
    %1247 = vector.broadcast %1244 : vector<2x1xf32> to vector<2x256xf32>
    %1248 = arith.mulf %1247, %1246 : vector<2x256xf32>
    %1249 = arith.addf %1240, %1248 : vector<2x256xf32>
    %1250 = arith.addf %1131, %1249 : vector<2x256xf32>
    %1251 = vector.extract_strided_slice %1250 {offsets = [0, 0], sizes = [1, 256], strides = [1, 1]} : vector<2x256xf32> to vector<1x256xf32>
    %1252 = arith.addf %206, %1251 : vector<1x256xf32>
    %1253 = vector.extract_strided_slice %1250 {offsets = [1, 0], sizes = [1, 256], strides = [1, 1]} : vector<2x256xf32> to vector<1x256xf32>
    %1254 = arith.addf %208, %1253 : vector<1x256xf32>
    %cst_964 = arith.constant 0.000000e+00 : f32
    %cst_965 = arith.constant 1.500000e+01 : f32
    %1255 = vector.broadcast %cst_964 : f32 to vector<1x256xf32>
    %1256 = arith.maximumf %1255, %1252 : vector<1x256xf32>
    %1257 = vector.broadcast %cst_965 : f32 to vector<1x256xf32>
    %1258 = arith.minimumf %1257, %1256 : vector<1x256xf32>
    %cst_966 = arith.constant 0.000000e+00 : f32
    %cst_967 = arith.constant 1.500000e+01 : f32
    %1259 = vector.broadcast %cst_966 : f32 to vector<1x256xf32>
    %1260 = arith.maximumf %1259, %1254 : vector<1x256xf32>
    %1261 = vector.broadcast %cst_967 : f32 to vector<1x256xf32>
    %1262 = arith.minimumf %1261, %1260 : vector<1x256xf32>
    %1263 = vector.broadcast %1258 : vector<1x256xf32> to vector<16x256xf32>
    %1264 = arith.subf %210, %1263 : vector<16x256xf32>
    %1265 = math.absf %1264 : vector<16x256xf32>
    %cst_968 = arith.constant 1.000000e+00 : f32
    %1266 = vector.broadcast %cst_968 : f32 to vector<16x256xf32>
    %1267 = arith.subf %1266, %1265 : vector<16x256xf32>
    %cst_969 = arith.constant 0.000000e+00 : f32
    %1268 = vector.broadcast %cst_969 : f32 to vector<16x256xf32>
    %1269 = arith.maximumf %1267, %1268 : vector<16x256xf32>
    %1270 = vector.broadcast %1262 : vector<1x256xf32> to vector<16x256xf32>
    %1271 = arith.subf %210, %1270 : vector<16x256xf32>
    %1272 = math.absf %1271 : vector<16x256xf32>
    %cst_970 = arith.constant 1.000000e+00 : f32
    %1273 = vector.broadcast %cst_970 : f32 to vector<16x256xf32>
    %1274 = arith.subf %1273, %1272 : vector<16x256xf32>
    %cst_971 = arith.constant 0.000000e+00 : f32
    %1275 = vector.broadcast %cst_971 : f32 to vector<16x256xf32>
    %1276 = arith.maximumf %1274, %1275 : vector<16x256xf32>
    %c0_972 = arith.constant 0 : index
    %c0_973 = arith.constant 0 : index
    %1277 = vector.load %arg14[%c0_972, %c0_973] : memref<32x256xf32, #tpu.memory_space<vmem>>, vector<1x256xf32>
    tpu.vector_store %arg14[%c0_972, %c0_973], %222 {strides = array<i32>} : memref<32x256xf32, #tpu.memory_space<vmem>>, vector<1x256xf32>,
    %c240_i32_974 = arith.constant 240 : i32
    %1278 = tpu.dynamic_rotate %222 by %c240_i32_974 dim 1 : vector<1x256xf32>, i32 -> vector<1x256xf32>
    %c1_975 = arith.constant 1 : index
    %c0_976 = arith.constant 0 : index
    %1279 = vector.load %arg14[%c1_975, %c0_976] : memref<32x256xf32, #tpu.memory_space<vmem>>, vector<1x256xf32>
    tpu.vector_store %arg14[%c1_975, %c0_976], %1278 {strides = array<i32>} : memref<32x256xf32, #tpu.memory_space<vmem>>, vector<1x256xf32>,
    %c224_i32_977 = arith.constant 224 : i32
    %1280 = tpu.dynamic_rotate %222 by %c224_i32_977 dim 1 : vector<1x256xf32>, i32 -> vector<1x256xf32>
    %c2_978 = arith.constant 2 : index
    %c0_979 = arith.constant 0 : index
    %1281 = vector.load %arg14[%c2_978, %c0_979] : memref<32x256xf32, #tpu.memory_space<vmem>>, vector<1x256xf32>
    tpu.vector_store %arg14[%c2_978, %c0_979], %1280 {strides = array<i32>} : memref<32x256xf32, #tpu.memory_space<vmem>>, vector<1x256xf32>,
    %c208_i32_980 = arith.constant 208 : i32
    %1282 = tpu.dynamic_rotate %222 by %c208_i32_980 dim 1 : vector<1x256xf32>, i32 -> vector<1x256xf32>
    %c3_981 = arith.constant 3 : index
    %c0_982 = arith.constant 0 : index
    %1283 = vector.load %arg14[%c3_981, %c0_982] : memref<32x256xf32, #tpu.memory_space<vmem>>, vector<1x256xf32>
    tpu.vector_store %arg14[%c3_981, %c0_982], %1282 {strides = array<i32>} : memref<32x256xf32, #tpu.memory_space<vmem>>, vector<1x256xf32>,
    %c192_i32_983 = arith.constant 192 : i32
    %1284 = tpu.dynamic_rotate %222 by %c192_i32_983 dim 1 : vector<1x256xf32>, i32 -> vector<1x256xf32>
    %c4_984 = arith.constant 4 : index
    %c0_985 = arith.constant 0 : index
    %1285 = vector.load %arg14[%c4_984, %c0_985] : memref<32x256xf32, #tpu.memory_space<vmem>>, vector<1x256xf32>
    tpu.vector_store %arg14[%c4_984, %c0_985], %1284 {strides = array<i32>} : memref<32x256xf32, #tpu.memory_space<vmem>>, vector<1x256xf32>,
    %c176_i32_986 = arith.constant 176 : i32
    %1286 = tpu.dynamic_rotate %222 by %c176_i32_986 dim 1 : vector<1x256xf32>, i32 -> vector<1x256xf32>
    %c5_987 = arith.constant 5 : index
    %c0_988 = arith.constant 0 : index
    %1287 = vector.load %arg14[%c5_987, %c0_988] : memref<32x256xf32, #tpu.memory_space<vmem>>, vector<1x256xf32>
    tpu.vector_store %arg14[%c5_987, %c0_988], %1286 {strides = array<i32>} : memref<32x256xf32, #tpu.memory_space<vmem>>, vector<1x256xf32>,
    %c160_i32_989 = arith.constant 160 : i32
    %1288 = tpu.dynamic_rotate %222 by %c160_i32_989 dim 1 : vector<1x256xf32>, i32 -> vector<1x256xf32>
    %c6_990 = arith.constant 6 : index
    %c0_991 = arith.constant 0 : index
    %1289 = vector.load %arg14[%c6_990, %c0_991] : memref<32x256xf32, #tpu.memory_space<vmem>>, vector<1x256xf32>
    tpu.vector_store %arg14[%c6_990, %c0_991], %1288 {strides = array<i32>} : memref<32x256xf32, #tpu.memory_space<vmem>>, vector<1x256xf32>,
    %c144_i32_992 = arith.constant 144 : i32
    %1290 = tpu.dynamic_rotate %222 by %c144_i32_992 dim 1 : vector<1x256xf32>, i32 -> vector<1x256xf32>
    %c7_993 = arith.constant 7 : index
    %c0_994 = arith.constant 0 : index
    %1291 = vector.load %arg14[%c7_993, %c0_994] : memref<32x256xf32, #tpu.memory_space<vmem>>, vector<1x256xf32>
    tpu.vector_store %arg14[%c7_993, %c0_994], %1290 {strides = array<i32>} : memref<32x256xf32, #tpu.memory_space<vmem>>, vector<1x256xf32>,
    %c128_i32_995 = arith.constant 128 : i32
    %1292 = tpu.dynamic_rotate %222 by %c128_i32_995 dim 1 : vector<1x256xf32>, i32 -> vector<1x256xf32>
    %c8_996 = arith.constant 8 : index
    %c0_997 = arith.constant 0 : index
    %1293 = vector.load %arg14[%c8_996, %c0_997] : memref<32x256xf32, #tpu.memory_space<vmem>>, vector<1x256xf32>
    tpu.vector_store %arg14[%c8_996, %c0_997], %1292 {strides = array<i32>} : memref<32x256xf32, #tpu.memory_space<vmem>>, vector<1x256xf32>,
    %c112_i32_998 = arith.constant 112 : i32
    %1294 = tpu.dynamic_rotate %222 by %c112_i32_998 dim 1 : vector<1x256xf32>, i32 -> vector<1x256xf32>
    %c9_999 = arith.constant 9 : index
    %c0_1000 = arith.constant 0 : index
    %1295 = vector.load %arg14[%c9_999, %c0_1000] : memref<32x256xf32, #tpu.memory_space<vmem>>, vector<1x256xf32>
    tpu.vector_store %arg14[%c9_999, %c0_1000], %1294 {strides = array<i32>} : memref<32x256xf32, #tpu.memory_space<vmem>>, vector<1x256xf32>,
    %c96_i32_1001 = arith.constant 96 : i32
    %1296 = tpu.dynamic_rotate %222 by %c96_i32_1001 dim 1 : vector<1x256xf32>, i32 -> vector<1x256xf32>
    %c10_1002 = arith.constant 10 : index
    %c0_1003 = arith.constant 0 : index
    %1297 = vector.load %arg14[%c10_1002, %c0_1003] : memref<32x256xf32, #tpu.memory_space<vmem>>, vector<1x256xf32>
    tpu.vector_store %arg14[%c10_1002, %c0_1003], %1296 {strides = array<i32>} : memref<32x256xf32, #tpu.memory_space<vmem>>, vector<1x256xf32>,
    %c80_i32_1004 = arith.constant 80 : i32
    %1298 = tpu.dynamic_rotate %222 by %c80_i32_1004 dim 1 : vector<1x256xf32>, i32 -> vector<1x256xf32>
    %c11_1005 = arith.constant 11 : index
    %c0_1006 = arith.constant 0 : index
    %1299 = vector.load %arg14[%c11_1005, %c0_1006] : memref<32x256xf32, #tpu.memory_space<vmem>>, vector<1x256xf32>
    tpu.vector_store %arg14[%c11_1005, %c0_1006], %1298 {strides = array<i32>} : memref<32x256xf32, #tpu.memory_space<vmem>>, vector<1x256xf32>,
    %c64_i32_1007 = arith.constant 64 : i32
    %1300 = tpu.dynamic_rotate %222 by %c64_i32_1007 dim 1 : vector<1x256xf32>, i32 -> vector<1x256xf32>
    %c12_1008 = arith.constant 12 : index
    %c0_1009 = arith.constant 0 : index
    %1301 = vector.load %arg14[%c12_1008, %c0_1009] : memref<32x256xf32, #tpu.memory_space<vmem>>, vector<1x256xf32>
    tpu.vector_store %arg14[%c12_1008, %c0_1009], %1300 {strides = array<i32>} : memref<32x256xf32, #tpu.memory_space<vmem>>, vector<1x256xf32>,
    %c48_i32_1010 = arith.constant 48 : i32
    %1302 = tpu.dynamic_rotate %222 by %c48_i32_1010 dim 1 : vector<1x256xf32>, i32 -> vector<1x256xf32>
    %c13_1011 = arith.constant 13 : index
    %c0_1012 = arith.constant 0 : index
    %1303 = vector.load %arg14[%c13_1011, %c0_1012] : memref<32x256xf32, #tpu.memory_space<vmem>>, vector<1x256xf32>
    tpu.vector_store %arg14[%c13_1011, %c0_1012], %1302 {strides = array<i32>} : memref<32x256xf32, #tpu.memory_space<vmem>>, vector<1x256xf32>,
    %c32_i32_1013 = arith.constant 32 : i32
    %1304 = tpu.dynamic_rotate %222 by %c32_i32_1013 dim 1 : vector<1x256xf32>, i32 -> vector<1x256xf32>
    %c14_1014 = arith.constant 14 : index
    %c0_1015 = arith.constant 0 : index
    %1305 = vector.load %arg14[%c14_1014, %c0_1015] : memref<32x256xf32, #tpu.memory_space<vmem>>, vector<1x256xf32>
    tpu.vector_store %arg14[%c14_1014, %c0_1015], %1304 {strides = array<i32>} : memref<32x256xf32, #tpu.memory_space<vmem>>, vector<1x256xf32>,
    %c16_i32_1016 = arith.constant 16 : i32
    %1306 = tpu.dynamic_rotate %222 by %c16_i32_1016 dim 1 : vector<1x256xf32>, i32 -> vector<1x256xf32>
    %c15_1017 = arith.constant 15 : index
    %c0_1018 = arith.constant 0 : index
    %1307 = vector.load %arg14[%c15_1017, %c0_1018] : memref<32x256xf32, #tpu.memory_space<vmem>>, vector<1x256xf32>
    tpu.vector_store %arg14[%c15_1017, %c0_1018], %1306 {strides = array<i32>} : memref<32x256xf32, #tpu.memory_space<vmem>>, vector<1x256xf32>,
    %c0_1019 = arith.constant 0 : index
    %c0_1020 = arith.constant 0 : index
    %1308 = vector.load %arg14[%c0_1019, %c0_1020] : memref<32x256xf32, #tpu.memory_space<vmem>>, vector<16x16xf32>
    %cst_1021 = arith.constant dense<0.000000e+00> : vector<16x256xf32>
    %1309 = tpu.matmul %1308, %1276, %cst_1021 {dimension_numbers = #tpu.dot_dimension_numbers<[1], [0], [0], [1], [0, 0, 1, 1], [], []>} : vector<16x16xf32>, vector<16x256xf32>, vector<16x256xf32> -> vector<16x256xf32>
    %1310 = arith.mulf %1309, %1269 : vector<16x256xf32>
    %cst_1022 = arith.constant dense<0.000000e+00> : vector<256xf32>
    %1311 = vector.multi_reduction <add>, %1310, %cst_1022 [0] : vector<16x256xf32> to vector<256xf32>
    %1312 = vector.shape_cast %1311 : vector<256xf32> to vector<1x256xf32>
    %c0_1023 = arith.constant 0 : index
    %c0_1024 = arith.constant 0 : index
    %c0_1025 = arith.constant 0 : index
    %1313 = vector.load %arg10[%c0_1023, %c0_1024, %c0_1025] : memref<1x1x256xf32, #tpu.memory_space<vmem>>, vector<1x1x256xf32>
    %1314 = vector.shape_cast %1313 : vector<1x1x256xf32> to vector<1x256xf32>
    %1315 = vector.shape_cast %1312 : vector<1x256xf32> to vector<1x1x256xf32>
    tpu.vector_store %arg10[%c0_1023, %c0_1024, %c0_1025], %1315 {strides = array<i32>} : memref<1x1x256xf32, #tpu.memory_space<vmem>>, vector<1x1x256xf32>,
    %c0_1026 = arith.constant 0 : index
    %c0_1027 = arith.constant 0 : index
    %c0_1028 = arith.constant 0 : index
    %1316 = vector.load %arg11[%c0_1026, %c0_1027, %c0_1028] : memref<1x2x256xf32, #tpu.memory_space<vmem>>, vector<1x2x256xf32>
    %1317 = vector.shape_cast %1316 : vector<1x2x256xf32> to vector<2x256xf32>
    %1318 = vector.shape_cast %1250 : vector<2x256xf32> to vector<1x2x256xf32>
    tpu.vector_store %arg11[%c0_1026, %c0_1027, %c0_1028], %1318 {strides = array<i32>} : memref<1x2x256xf32, #tpu.memory_space<vmem>>, vector<1x2x256xf32>,
    %1319 = arith.addf %529, %1012 : vector<1x1xf32>
    %1320 = vector.shape_cast %1319 : vector<1x1xf32> to vector<1x1xf32>
    %1321 = vector.broadcast %1320 : vector<1x1xf32> to vector<1x128xf32>
    %c0_1029 = arith.constant 0 : index
    %c0_1030 = arith.constant 0 : index
    %c0_1031 = arith.constant 0 : index
    %1322 = vector.load %arg12[%c0_1029, %c0_1030, %c0_1031] : memref<1x1x128xf32, #tpu.memory_space<vmem>>, vector<1x1x128xf32>
    %1323 = vector.shape_cast %1322 : vector<1x1x128xf32> to vector<1x128xf32>
    %1324 = vector.shape_cast %1321 : vector<1x128xf32> to vector<1x1x128xf32>
    tpu.vector_store %arg12[%c0_1029, %c0_1030, %c0_1031], %1324 {strides = array<i32>} : memref<1x1x128xf32, #tpu.memory_space<vmem>>, vector<1x1x128xf32>,
    return
  }
  func.func @transform_0(%arg0: i32) -> (i32, i32, i32) {
    %c0_i32 = arith.constant 0 : i32
    %c0_i32_0 = arith.constant 0 : i32
    %c0_i32_1 = arith.constant 0 : i32
    return %arg0, %c0_i32, %c0_i32_0 : i32, i32, i32
  }
  func.func @transform_1(%arg0: i32) -> (i32, i32) {
    %c0_i32 = arith.constant 0 : i32
    %c0_i32_0 = arith.constant 0 : i32
    %c0_i32_1 = arith.constant 0 : i32
    return %c0_i32, %c0_i32_0 : i32, i32
  }
  func.func @transform_2(%arg0: i32) -> (i32, i32) {
    %c0_i32 = arith.constant 0 : i32
    %c0_i32_0 = arith.constant 0 : i32
    %c0_i32_1 = arith.constant 0 : i32
    return %c0_i32, %c0_i32_0 : i32, i32
  }
  func.func @transform_3(%arg0: i32) -> (i32, i32) {
    %c0_i32 = arith.constant 0 : i32
    %c0_i32_0 = arith.constant 0 : i32
    %c0_i32_1 = arith.constant 0 : i32
    return %c0_i32, %c0_i32_0 : i32, i32
  }
  func.func @transform_4(%arg0: i32) -> (i32, i32) {
    %c0_i32 = arith.constant 0 : i32
    %c0_i32_0 = arith.constant 0 : i32
    %c0_i32_1 = arith.constant 0 : i32
    return %c0_i32, %c0_i32_0 : i32, i32
  }
  func.func @transform_5(%arg0: i32) -> (i32, i32) {
    %c0_i32 = arith.constant 0 : i32
    %c0_i32_0 = arith.constant 0 : i32
    %c0_i32_1 = arith.constant 0 : i32
    return %c0_i32, %c0_i32_0 : i32, i32
  }
  func.func @transform_6(%arg0: i32) -> (i32, i32) {
    %c0_i32 = arith.constant 0 : i32
    %c0_i32_0 = arith.constant 0 : i32
    %c0_i32_1 = arith.constant 0 : i32
    return %c0_i32, %c0_i32_0 : i32, i32
  }
  func.func @transform_7(%arg0: i32) -> (i32, i32) {
    %c0_i32 = arith.constant 0 : i32
    %c0_i32_0 = arith.constant 0 : i32
    %c0_i32_1 = arith.constant 0 : i32
    return %c0_i32, %c0_i32_0 : i32, i32
  }
  func.func @transform_8(%arg0: i32) -> (i32, i32) {
    %c0_i32 = arith.constant 0 : i32
    %c0_i32_0 = arith.constant 0 : i32
    %c0_i32_1 = arith.constant 0 : i32
    return %c0_i32, %c0_i32_0 : i32, i32
  }
  func.func @transform_9(%arg0: i32) -> (i32, i32, i32) {
    %c0_i32 = arith.constant 0 : i32
    %c0_i32_0 = arith.constant 0 : i32
    %c0_i32_1 = arith.constant 0 : i32
    return %arg0, %c0_i32, %c0_i32_0 : i32, i32, i32
  }
  func.func @transform_10(%arg0: i32) -> (i32, i32, i32) {
    %c0_i32 = arith.constant 0 : i32
    %c0_i32_0 = arith.constant 0 : i32
    %c0_i32_1 = arith.constant 0 : i32
    return %arg0, %c0_i32, %c0_i32_0 : i32, i32, i32
  }
  func.func @transform_11(%arg0: i32) -> (i32, i32, i32) {
    %c0_i32 = arith.constant 0 : i32
    %c0_i32_0 = arith.constant 0 : i32
    %c0_i32_1 = arith.constant 0 : i32
    return %arg0, %c0_i32, %c0_i32_0 : i32, i32, i32
  }
}

</mosaic_0001>

<bundles_post_ra>
// kernel: two_step_consistent_fused.1
= control target key start
LH: loop header
LB: loop body
LE: loop exit
PB: predicated region body
PF: predicated region fallthrough
CT: control target
= control target key end

     0   :  { %s8065_s17 = smov 0   ;;  %s11270_s0 = inlined_call_operand.vmem [shape: f32[2,2,512], index: 0, kind: input, shape index: {}]   ;;  %s11271_s1 = inlined_call_operand.vmem [shape: f32[8,72], index: 1, kind: input, shape index: {}]   ;;  %s11272_s2 = inlined_call_operand.vmem [shape: f32[8,1], index: 2, kind: input, shape index: {}]   ;;  %s11273_s3 = inlined_call_operand.vmem [shape: f32[2,72], index: 3, kind: input, shape index: {}]   ;;  %s11274_s4 = inlined_call_operand.vmem [shape: f32[2,1], index: 4, kind: input, shape index: {}]   ;;  %s11275_s5 = inlined_call_operand.vmem [shape: f32[8,72], index: 5, kind: input, shape index: {}]   ;;  %s11276_s6 = inlined_call_operand.vmem [shape: f32[8,1], index: 6, kind: input, shape index: {}]   ;;  %s11277_s7 = inlined_call_operand.vmem [shape: f32[2,72], index: 7, kind: input, shape index: {}]   ;;  %s11278_s8 = inlined_call_operand.vmem [shape: f32[2,1], index: 8, kind: input, shape index: {}]   ;;  %s11279_s9 = inlined_call_operand.vmem [shape: f32[2,1,256], index: 9, kind: output, shape index: {0}]   ;;  %s11280_s10 = inlined_call_operand.vmem [shape: f32[2,2,256], index: 10, kind: output, shape index: {1}]   ;;  %s11281_s11 = inlined_call_operand.vmem [shape: f32[2,1,128], index: 11, kind: output, shape index: {2}]  }
   0x1 LB: > { %s7846_s18 = sadd.s32 4294967295, %s7987_s17   ;;  %p7850_p0 = scmp.ge.s32.totalorder %s7987_s17, 1  ;;  %s7987_s17 = sphi %s8065_s17, %s22_s17  }
   0x2   : > { %p342_p1 = scmp.lt.s32.totalorder %s7987_s17, 3 }
   0x4   : > { %p343_p2 = pnand %p7850_p0, %p342_p1 }
   0x6   : > { %346 = sbr.rel (%p343_p2) target bundleno = 3540 (0xdd4), region = 56 }
   0xb   : > { %p389_p3 = scmp.lt.s32.totalorder %s7846_s18, 1  ;;  %v406_v0 = vlaneseq  ;;  %v11296_v1 = vmov 0.0   ;;  %s7990_s23 = smov 111   ;;  %v7991_v51 = vmov 1966171168  }
   0xc   : > { %1520 = vmatprep.mubr.f32.mxu0 %v11296_v1  ;;  %1591 = vmatprep.mubr.f32.mxu1 %v11296_v1  ;;  %v474_v52 = vunpack.c.l.s4 %v7991_v51  ;;  %s7992_s24 = smov 112   ;;  %s7993_s25 = smov 113  }
   0xd   : > { %s11557_s18 = smov (!%p389_p3, %s7846_s18), 1  ;;  %v8078_v2 = vshrl.u32 %v406_v0, 7  ;;  %v8122_v19 = vand.u32 127, %v406_v0  ;;  %s7994_s26 = smov 127  }
   0xe   : > { %s7931_s19 = sshll.u32 %s11557_s18, 3  ;;  %s7995_s27 = smov 1  }
   0xf   : > { %vm943_vm0 = vcmp.eq.s32.totalorder %v8078_v2, 0  ;;  %s8085_s22 = scalar_lea.vmem %s11270_s0, %s7931_s19  ;;  %v8088_v3 = vsub.s32 0, %v8078_v2  ;;  %vm946_vm1 = vcmp.eq.s32.totalorder %v8078_v2, 1  ;;  %v8093_v5 = vsub.s32 2, %v8078_v2  ;;  %s7996_s28 = smov 15  }
  0x10   : > { %v949_v4 = vld [vmem:[%s8085_s22] sm:$0xff]  ;;  %v961_v6 = vsub.s32 4, %v8078_v2  ;;  %v965_v7 = vsub.s32 6, %v8078_v2  ;;  %v8098_v8 = vsel %vm943_vm0, 1.0, %v11296_v1  ;;  %v8101_v9 = vsub.s32 1, %v8078_v2  ;;  %s7997_s29 = smov 16  }
  0x11   : > { %11372 = vst [vmem:[#allocation5_spill] sm:$0xff] %v8088_v3  ;;  %11373 = vst [vmem:[#allocation6_spill] sm:$0xff] %v8098_v8  ;;  %v8104_v10 = vsub.s32 3, %v8078_v2  ;;  %v8107_v11 = vrot.slane %v949_v4, %v8088_v3  ;;  %v8110_v12 = vrot.slane %v949_v4, %v8093_v5  ;;  %v1001_v15 = vsub.s32 5, %v8078_v2  ;;  %s7998_s30 = smov 17   ;;  %s8000_s12 = smov 96  }
  0x12   : > { %11374 = vst [vmem:[#allocation7_spill] sm:$0xff] %v8101_v9  ;;  %v8112_v13 = vrot.slane %v949_v4, %v961_v6  ;;  %v8114_v14 = vrot.slane %v949_v4, %v965_v7  ;;  %v994_v18 = vrot.slane %v949_v4, %v8101_v9  ;;  %v8127_v20 = vsel %vm946_vm1, 1.0, %v11296_v1  ;;  %s8001_s13 = smov 80   ;;  %s8002_s14 = smov 64  }
  0x13   : > { %v998_v16 = vrot.slane %v949_v4, %v8104_v10  ;;  %v974_v17 = vrot.slane %v8107_v11, %v8088_v3  ;;  %11375 = vst [vmem:[#allocation8_spill] sm:$0xff] %v8127_v20  ;;  %v978_v21 = vrot.slane %v8110_v12, %v8088_v3  ;;  %v1002_v23 = vrot.slane %v949_v4, %v1001_v15  ;;  %s8003_s15 = smov 48   ;;  %s8004_s16 = smov 32  }
  0x14   : > { %v982_v22 = vrot.slane %v8112_v13, %v8088_v3  ;;  %v1014_v26 = vrot.slane %v994_v18, %v8101_v9  ;;  %v1005_v27 = vsub.s32 7, %v8078_v2  ;;  %v986_v31 = vrot.slane %v8114_v14, %v8088_v3 }
  0x15   : > { %v1018_v24 = vrot.slane %v998_v16, %v8101_v9  ;;  %v987_v25 = vmul.f32 %v8098_v8, %v974_v17  ;;  %v988_v28 = vmul.f32 %v8098_v8, %v978_v21  ;;  %v1022_v30 = vrot.slane %v1002_v23, %v8101_v9 }
  0x16   : > { %v989_v29 = vmul.f32 %v8098_v8, %v982_v22  ;;  %v1027_v33 = vmul.f32 %v8127_v20, %v1014_v26  ;;  %v1006_v34 = vrot.slane %v949_v4, %v1005_v27  ;;  %v408_v35 = vadd.s32 128, %v8122_v19 }
  0x17   : > { %v1028_v32 = vmul.f32 %v8127_v20, %v1018_v24  ;;  %v1029_v36 = vmul.f32 %v8127_v20, %v1022_v30  ;;  %v409_v37 = vadd.s32 256, %v8122_v19  ;;  %v410_v38 = vadd.s32 384, %v8122_v19 }
  0x18   : > { %v411_v39 = vand.u32 255, %v8122_v19  ;;  %v8151_v41 = vadd.f32 %v1027_v33, %v987_v25  ;;  %v1026_v42 = vrot.slane %v1006_v34, %v8101_v9  ;;  %v412_v43 = vand.u32 255, %v408_v35 }
  0x19   : > { %v8149_v40 = vadd.f32 %v1028_v32, %v988_v28  ;;  %v413_v44 = vand.u32 255, %v409_v37  ;;  %v414_v45 = vand.u32 255, %v410_v38  ;;  %v8160_v47 = vadd.f32 %v1029_v36, %v989_v29 }
  0x1a   : > { %v8154_v46 = vshra.s32 %v411_v39, 4  ;;  %1366 = vrot.lane.b32.xlu1 %v8151_v41, %s7990_s23  ;;  %v990_v48 = vmul.f32 %v8098_v8, %v986_v31  ;;  %v1030_v49 = vmul.f32 %v8127_v20, %v1026_v42  ;;  %v8164_v50 = vshra.s32 %v412_v43, 4 }
  0x1b   : > { %1368 = vrot.lane.b32.xlu0 %v8149_v40, %s7990_s23  ;;  %v8166_v53 = vshra.s32 %v413_v44, 4  ;;  %v8168_v54 = vshra.s32 %v414_v45, 4  ;;  %v8170_v55 = vand.u32 15, %v412_v43  ;;  %v421_v56 = vand.u32 15, %v413_v44 }
  0x1c   : > { %v422_v57 = vand.u32 15, %v414_v45  ;;  %v774_v58 = vadd.s32 1, %v8154_v46  ;;  %v775_v59 = vadd.s32 1, %v8164_v50  ;;  %v8179_v61 = vadd.f32 %v1030_v49, %v990_v48 }
  0x1d   : > { %v776_v60 = vadd.s32 1, %v8166_v53  ;;  %v8181_v62 = vand.u32 15, %v411_v39  ;;  %v777_v63 = vadd.s32 1, %v8168_v54  ;;  %v475_v4 = vunpack.c.0.s8 %v474_v52 }
  0x1e   : > { %1325 = vrot.lane.b32.xlu1 %v8149_v40, %s7992_s24  ;;  %v8185_v6 = vadd.s32 1, %v8170_v55  ;;  %v8187_v7 = vadd.s32 1, %v421_v56  ;;  %v8189_v15 = vadd.s32 1, %v422_v57  ;;  %vm778_vm2 = vcmp.ge.s32.totalorder %v774_v58, 0 }
  0x1f   : > { %1370 = vrot.lane.b32.xlu0 %v8160_v47, %s7990_s23  ;;  %vm779_vm3 = vcmp.ge.s32.totalorder %v775_v59, 0  ;;  %vm780_vm4 = vcmp.ge.s32.totalorder %v776_v60, 0  ;;  %vm782_vm5 = vcmp.lt.s32.totalorder %v774_v58, 16  ;;  %vm783_vm6 = vcmp.lt.s32.totalorder %v775_v59, 16 }
  0x20   : > { %vm784_vm7 = vcmp.lt.s32.totalorder %v776_v60, 16  ;;  %v8196_v16 = vadd.s32 1, %v8181_v62  ;;  %vm781_vm8 = vcmp.ge.s32.totalorder %v777_v63, 0  ;;  %vm785_vm9 = vcmp.lt.s32.totalorder %v777_v63, 16  ;;  %vm8198_vm10 = vmand %vm778_vm2, %vm782_vm5 }
  0x21   : > { %vm11285_vm11 = vcmp.ge.s32.totalorder %v8185_v6, 0  ;;  %vm8203_vm12 = vmand %vm779_vm3, %vm783_vm6  ;;  %v7884_v21 = vsel %vm8198_vm10, 1.0, %v11296_v1  ;;  %vm11284_vm13 = vcmp.ge.s32.totalorder %v8187_v7, 0  ;;  %v8219_v24 = vsub.s32 %v475_v4, %v8078_v2 }
  0x22   : > { %1372 = vrot.lane.b32.xlu1 %v8179_v61, %s7990_s23  ;;  %vm8211_vm14 = vmand %vm780_vm4, %vm784_vm7  ;;  %v7885_v23 = vsel %vm8203_vm12, 1.0, %v11296_v1  ;;  %vm11282_vm15 = vcmp.ge.s32.totalorder %v8189_v15, 0  ;;  %vm11283_vm1 = vcmp.lt.s32.totalorder %v8196_v16, 16  ;;  %v8246_v30 = vadd.s32 4294967295, %v8181_v62 }
  0x23   : > { %1327 = vrot.lane.b32.xlu0 %v8160_v47, %s7992_s24  ;;  %vm8222_vm0 = vmand %vm781_vm8, %vm785_vm9  ;;  %v7886_v26 = vsel %vm8211_vm14, 1.0, %v11296_v1  ;;  %v858_v27 = vcombine.low %v7884_v21, %v7885_v23  ;;  %vm11293_vm3 = vcmp.lt.s32.totalorder %v8185_v6, 16  ;;  %v8259_v34 = vadd.s32 4294967295, %v8170_v55 }
  0x24   : > { %vm8238_vm2 = vmand %vm8203_vm12, %vm11285_vm11  ;;  %v7887_v29 = vsel %vm8222_vm0, 1.0, %v11296_v1  ;;  %vm11292_vm5 = vcmp.lt.s32.totalorder %v8187_v7, 16  ;;  %v8270_v36 = vadd.s32 4294967295, %v421_v56  ;;  %vm11287_vm7 = vcmp.lt.s32.totalorder %v8189_v15, 16 }
  0x25   : > { %vm8253_vm4 = vmand %vm8211_vm14, %vm11284_vm13  ;;  %v859_v32 = vcombine.low %v7886_v26, %v7887_v29  ;;  %v866_v33 = vrot.slane %v858_v27, %v8219_v24  ;;  %v8278_v38 = vadd.s32 4294967295, %v422_v57  ;;  %vm11288_vm13 = vcmp.ge.s32.totalorder %v8259_v34, 0 }
  0x26   : > { %1282 = vrot.lane.b32.xlu1 %v8149_v40, %s7993_s25  ;;  %vm8266_vm6 = vmand %vm8222_vm0, %vm11282_vm15  ;;  %vm11286_vm15 = vcmp.ge.s32.totalorder %v8246_v30, 0  ;;  %v11392_v52 = vmov 0  ;;  %v425_v22 = vadd.s32 4294967295, %v8166_v53 }
  0x27   : > { %1323 = vrot.lane.b32.xlu0 %v8151_v41, %s7992_s24  ;;  %vm890_vm8 = vmand %vm8198_vm10, %vm11283_vm1  ;;  %v873_v37 = vrot.slane %v859_v32, %v8219_v24 }
  0x28   : > { %vm891_vm9 = vmand %vm8238_vm2, %vm11293_vm3  ;;  %v7888_v39 = vsel %vm890_vm8, 1.0, %v11296_v1  ;;  %vm11291_vm2 = vcmp.ge.s32.totalorder %v8270_v36, 0 }
  0x29   : > { %vm892_vm1 = vmand %vm8253_vm4, %vm11292_vm5  ;;  %v7889_v42 = vsel %vm891_vm9, 1.0, %v11296_v1  ;;  %v874_v43 = vcombine.low %v866_v33, %v873_v37  ;;  %vm11290_vm4 = vcmp.ge.s32.totalorder %v8278_v38, 0 }
  0x2a   : > { %1329 = vrot.lane.b32.xlu1 %v8179_v61, %s7992_s24  ;;  %vm893_vm11 = vmand %vm8266_vm6, %vm11287_vm7  ;;  %v7890_v44 = vsel %vm892_vm1, 1.0, %v11296_v1  ;;  %v906_v45 = vcombine.low %v7888_v39, %v7889_v42  ;;  %vm453_vm6 = vcmp.lt.s32.totalorder %v8270_v36, 16 }
  0x2b   : > { %1284 = vrot.lane.b32.xlu0 %v8160_v47, %s7993_s25  ;;  %v7891_v48 = vsel %vm893_vm11, 1.0, %v11296_v1  ;;  %v881_v49 = vrot.slane %v874_v43, %v8219_v24  ;;  %vm8309_vm8 = vmand %vm8198_vm10, %vm11286_vm15  ;;  %vm8318_vm11 = vcmp.lt.s32.totalorder %v406_v0, 512  ;;  %vm11289_vm10 = vcmp.lt.s32.totalorder %v8259_v34, 16 }
  0x2c   : > { %v11393_v52 = vsel %vm8318_vm11, 4294967295, %v11392_v52  ;;  %v907_v56 = vcombine.low %v7890_v44, %v7891_v48  ;;  %v914_v57 = vrot.slane %v906_v45, %v8219_v24  ;;  %vm791_vm1 = vmand %vm8203_vm12, %vm11288_vm13  ;;  %vm454_vm15 = vcmp.lt.s32.totalorder %v8278_v38, 16 }
  0x2d   : > { %884 = vst.msk [vmem:[#allocation4 + $0x7] ss:$8 sm:$0xf] %vm8318_vm11, %v881_v49  ;;  %vm792_vm9 = vmand %vm8211_vm14, %vm11291_vm2  ;;  %v7880_v59 = vsel %vm8309_vm8, 1.0, %v11296_v1  ;;  %vm618_vm13 = vcmp.ge.s32.totalorder %v8154_v46, 0  ;;  %vm622_vm14 = vcmp.lt.s32.totalorder %v8154_v46, 16 }
  0x2e   : > { %1239 = vrot.lane.b32.xlu1 %v8149_v40, %s7994_s26  ;;  %v921_v58 = vrot.slane %v907_v56, %v8219_v24  ;;  %vm793_vm7 = vmand %vm8222_vm0, %vm11290_vm4  ;;  %vm619_vm8 = vcmp.ge.s32.totalorder %v8164_v50, 0  ;;  %vm620_vm4 = vcmp.ge.s32.totalorder %v8166_v53, 0  ;;  %vm624_vm2 = vcmp.lt.s32.totalorder %v8166_v53, 16 }
  0x2f   : > { %1280 = vrot.lane.b32.xlu0 %v8151_v41, %s7993_s25  ;;  %vm795_vm12 = vmand %vm791_vm1, %vm11289_vm10  ;;  %vm623_vm1 = vcmp.lt.s32.totalorder %v8164_v50, 16 }
  0x30   : > { %v922_v60 = vcombine.low %v914_v57, %v921_v58  ;;  %vm796_vm0 = vmand %vm792_vm9, %vm453_vm6  ;;  %v7881_v63 = vsel %vm795_vm12, 1.0, %v11296_v1  ;;  %vm621_vm9 = vcmp.ge.s32.totalorder %v8168_v54, 0  ;;  %vm625_vm12 = vcmp.lt.s32.totalorder %v8168_v54, 16 }
  0x31   : > { %vm797_vm10 = vmand %vm793_vm7, %vm454_vm15  ;;  %v7882_v4 = vsel %vm796_vm0, 1.0, %v11296_v1  ;;  %v810_v17 = vcombine.low %v7880_v59, %v7881_v63 }
  0x32   : > { %1286 = vrot.lane.b32.xlu1 %v8179_v61, %s7993_s25  ;;  %v929_v18 = vrot.slane %v922_v60, %v8219_v24  ;;  %v7883_v21 = vsel %vm797_vm10, 1.0, %v11296_v1  ;;  %vm8370_vm7 = vmand %vm618_vm13, %vm622_vm14  ;;  %vm11402_vm14 = vcmp.ge.s32.totalorder %v8185_v6, 0 }
  0x33   : > { %1241 = vrot.lane.b32.xlu0 %v8160_v47, %s7994_s26  ;;  %v811_v23 = vcombine.low %v7882_v4, %v7883_v21  ;;  %v818_v25 = vrot.slane %v810_v17, %v8219_v24  ;;  %vm8375_vm0 = vmand %vm619_vm8, %vm623_vm1  ;;  %v7872_v27 = vsel %vm8370_vm7, 1.0, %v11296_v1  ;;  %vm11406_vm1 = vcmp.ge.s32.totalorder %v8189_v15, 0 }
  0x34   : > { %932 = vst.msk [vmem:[#allocation4 + $0x20] ss:$8 sm:$0xf] %vm8318_vm11, %v929_v18  ;;  %vm8388_vm13 = vmand %vm620_vm4, %vm624_vm2  ;;  %v7873_v29 = vsel %vm8375_vm0, 1.0, %v11296_v1  ;;  %vm11405_vm2 = vcmp.ge.s32.totalorder %v8187_v7, 0  ;;  %v423_v4 = vadd.s32 4294967295, %v8154_v46 }
  0x35   : > { %v825_v31 = vrot.slane %v811_v23, %v8219_v24  ;;  %vm8396_vm10 = vmand %vm621_vm9, %vm625_vm12  ;;  %v7874_v35 = vsel %vm8388_vm13, 1.0, %v11296_v1  ;;  %v698_v39 = vcombine.low %v7872_v27, %v7873_v29  ;;  %vm11407_vm12 = vcmp.lt.s32.totalorder %v8196_v16, 16 }
  0x36   : > { %1243 = vrot.lane.b32.xlu1 %v8179_v61, %s7994_s26  ;;  %vm8404_vm8 = vmand %vm8375_vm0, %vm11402_vm14  ;;  %v7875_v37 = vsel %vm8396_vm10, 1.0, %v11296_v1  ;;  %v424_v18 = vadd.s32 4294967295, %v8164_v50  ;;  %v426_v23 = vadd.s32 4294967295, %v8168_v54 }
  0x37   : > { %1237 = vrot.lane.b32.xlu0 %v8151_v41, %s7994_s26  ;;  %v826_v42 = vcombine.low %v818_v25, %v825_v31  ;;  %vm728_vm4 = vmand %vm8388_vm13, %vm11405_vm2  ;;  %v699_v43 = vcombine.low %v7874_v35, %v7875_v37  ;;  %v706_v44 = vrot.slane %v698_v39, %v8219_v24 }
  0x38   : > { %vm729_vm9 = vmand %vm8396_vm10, %vm11406_vm1 }
  0x39   : > { %v833_v45 = vrot.slane %v826_v42, %v8219_v24  ;;  %vm730_vm14 = vmand %vm8370_vm7, %vm11407_vm12  ;;  %v713_v48 = vrot.slane %v699_v43, %v8219_v24 }
  0x3a   : > { %1166 = vrot.lane.b32.xlu1 %v8149_v40, %s7995_s27  ;;  %vm731_vm2 = vmand %vm8404_vm8, %vm11293_vm3  ;;  %v7876_v49 = vsel %vm730_vm14, 1.0, %v11296_v1  ;;  %vm11408_vm8 = vcmp.lt.s32.totalorder %v8189_v15, 16  ;;  %vm432_vm3 = vcmp.lt.s32.totalorder %v424_v18, 16 }
  0x3b   : > { %1164 = vrot.lane.b32.xlu0 %v8151_v41, %s7995_s27  ;;  %836 = vst.msk [vmem:[#allocation4 + $0x6] ss:$8 sm:$0xf] %vm8318_vm11, %v833_v45  ;;  %vm732_vm1 = vmand %vm728_vm4, %vm11292_vm5  ;;  %v7877_v51 = vsel %vm731_vm2, 1.0, %v11296_v1  ;;  %v714_v56 = vcombine.low %v706_v44, %v713_v48  ;;  %vm11409_vm4 = vcmp.ge.s32.totalorder %v8246_v30, 0  ;;  %vm428_vm5 = vcmp.ge.s32.totalorder %v424_v18, 0 }
  0x3c   : > { %vm733_vm12 = vmand %vm729_vm9, %vm11408_vm8  ;;  %v7878_v57 = vsel %vm732_vm1, 1.0, %v11296_v1  ;;  %v746_v59 = vcombine.low %v7876_v49, %v7877_v51  ;;  %vm11412_vm9 = vcmp.ge.s32.totalorder %v8259_v34, 0 }
  0x3d   : > { %v7879_v58 = vsel %vm733_vm12, 1.0, %v11296_v1  ;;  %v721_v60 = vrot.slane %v714_v56, %v8219_v24  ;;  %vm8456_vm14 = vmand %vm8370_vm7, %vm11409_vm4  ;;  %vm11413_vm7 = vcmp.ge.s32.totalorder %v8270_v36, 0  ;;  %vm11415_vm12 = vcmp.lt.s32.totalorder %v8259_v34, 16 }
  0x3e   : > { %1121 = vrot.lane.b32.xlu1 %v8151_v41, %s7996_s28  ;;  %v747_v17 = vcombine.low %v7878_v57, %v7879_v58  ;;  %vm631_vm2 = vmand %vm8375_vm0, %vm11412_vm9  ;;  %v754_v21 = vrot.slane %v746_v59, %v8219_v24  ;;  %vm11414_vm0 = vcmp.ge.s32.totalorder %v8278_v38, 0  ;;  %v7868_v53 = vsel %vm8456_vm14, 1.0, %v11296_v1 }
  0x3f   : > { %1170 = vrot.lane.b32.xlu0 %v8179_v61, %s7995_s27  ;;  %724 = vst.msk [vmem:[#allocation4 + $0x4] ss:$8 sm:$0xf] %vm8318_vm11, %v721_v60  ;;  %vm632_vm1 = vmand %vm8388_vm13, %vm11413_vm7  ;;  %vm427_vm4 = vcmp.ge.s32.totalorder %v423_v4, 0  ;;  %vm431_vm9 = vcmp.lt.s32.totalorder %v423_v4, 16  ;;  %vm430_vm11 = vcmp.ge.s32.totalorder %v426_v23, 0 }
  0x40   : > { %v761_v25 = vrot.slane %v747_v17, %v8219_v24  ;;  %vm633_vm8 = vmand %vm8396_vm10, %vm11414_vm0  ;;  %vm429_vm0 = vcmp.ge.s32.totalorder %v425_v22, 0  ;;  %v7999_v17 = vmov 0  }
  0x41   : > { %vm635_vm13 = vmand %vm631_vm2, %vm11415_vm12  ;;  %vm433_vm2 = vcmp.lt.s32.totalorder %v425_v22, 16  ;;  %vm434_vm12 = vcmp.lt.s32.totalorder %v426_v23, 16  ;;  %7965 = vset.pattern.permute.xlu0 %v7999_v17  ;;  %7966 = vset.pattern.permute.xlu1 %v7999_v17 }
  0x42   : > { %1168 = vrot.lane.b32.xlu1 %v8160_v47, %s7995_s27  ;;  %v762_v54 = vcombine.low %v754_v21, %v761_v25  ;;  %vm636_vm7 = vmand %vm632_vm1, %vm453_vm6  ;;  %v7869_v26 = vsel %vm635_vm13, 1.0, %v11296_v1 }
  0x43   : > { %1123 = vrot.lane.b32.xlu0 %v8149_v40, %s7996_s28  ;;  %vm637_vm10 = vmand %vm633_vm8, %vm454_vm15  ;;  %v7870_v28 = vsel %vm636_vm7, 1.0, %v11296_v1  ;;  %v650_v31 = vcombine.low %v7868_v53, %v7869_v26  ;;  %vm11420_vm8 = vnez %v11393_v52  ;;  %vm11427_vm7 = vcmp.ge.s32.totalorder %v8189_v15, 0 }
  0x44   : > { %v769_v27 = vrot.slane %v762_v54, %v8219_v24  ;;  %v7871_v29 = vsel %vm637_vm10, 1.0, %v11296_v1  ;;  %vm8503_vm14 = vmand %vm427_vm4, %vm431_vm9 }
  0x45   : > { %v651_v33 = vcombine.low %v7870_v28, %v7871_v29  ;;  %vm8509_vm1 = vmand %vm428_vm5, %vm432_vm3  ;;  %v7860_v37 = vsel %vm8503_vm14, 1.0, %v11296_v1  ;;  %v658_v39 = vrot.slane %v650_v31, %v8219_v24  ;;  %vm11425_vm5 = vcmp.ge.s32.totalorder %v8185_v6, 0 }
  0x46   : > { %1078 = vrot.lane.b32.xlu1 %v8151_v41, %s7997_s29  ;;  %772 = vst.msk [vmem:[#allocation4 + $0x5] ss:$8 sm:$0xf] %vm11420_vm8, %v769_v27  ;;  %vm8521_vm13 = vmand %vm429_vm0, %vm433_vm2  ;;  %v7861_v43 = vsel %vm8509_vm1, 1.0, %v11296_v1  ;;  %vm11430_vm0 = vcmp.lt.s32.totalorder %v8196_v16, 16 }
  0x47   : > { %1127 = vrot.lane.b32.xlu0 %v8179_v61, %s7996_s28  ;;  %v665_v44 = vrot.slane %v651_v33, %v8219_v24  ;;  %vm8531_vm3 = vmand %vm430_vm11, %vm434_vm12  ;;  %v7862_v48 = vsel %vm8521_vm13, 1.0, %v11296_v1  ;;  %v530_v51 = vcombine.low %v7860_v37, %v7861_v43  ;;  %vm11426_vm11 = vcmp.ge.s32.totalorder %v8187_v7, 0 }
  0x48   : > { %vm567_vm4 = vmand %vm8509_vm1, %vm11425_vm5  ;;  %v7863_v49 = vsel %vm8531_vm3, 1.0, %v11296_v1  ;;  %vm11431_vm12 = vcmp.lt.s32.totalorder %v8185_v6, 16 }
  0x49   : > { %v666_v56 = vcombine.low %v658_v39, %v665_v44  ;;  %vm568_vm9 = vmand %vm8521_vm13, %vm11426_vm11  ;;  %v531_v58 = vcombine.low %v7862_v48, %v7863_v49  ;;  %v538_v60 = vrot.slane %v530_v51, %v8219_v24  ;;  %vm11432_vm11 = vcmp.lt.s32.totalorder %v8187_v7, 16  ;;  %v1379_v39 = vld [vmem:[#allocation4 + $0x20] ss:$8 sm:$0xf] }
  0x4a   : > { %1125 = vrot.lane.b32.xlu1 %v8160_v47, %s7996_s28  ;;  %vm8557_vm10 = vmand %vm8531_vm3, %vm11427_vm7  ;;  %v1388_v42 = vrot.slane %v1379_v39, %v8101_v9  ;;  %v1384_v43 = vrot.slane %v1379_v39, %v8088_v3  ;;  %v1336_v44 = vld [vmem:[#allocation4 + $0x7] ss:$8 sm:$0xf]  ;;  %v1396_v57 = vrot.slane %v1379_v39, %v8104_v10 }
  0x4b   : > { %1080 = vrot.lane.b32.xlu0 %v8149_v40, %s7997_s29  ;;  %v673_v59 = vrot.slane %v666_v56, %v8219_v24  ;;  %vm574_vm2 = vmand %vm8503_vm14, %vm11430_vm0  ;;  %v545_v4 = vrot.slane %v531_v58, %v8219_v24  ;;  %vm11433_vm0 = vcmp.lt.s32.totalorder %v8189_v15, 16  ;;  %v1345_v56 = vrot.slane %v1336_v44, %v8101_v9 }
  0x4c   : > { %vm575_vm5 = vmand %vm567_vm4, %vm11431_vm12  ;;  %v7864_v63 = vsel %vm574_vm2, 1.0, %v11296_v1  ;;  %vm11434_vm2 = vcmp.ge.s32.totalorder %v8246_v30, 0  ;;  %v1392_v58 = vrot.slane %v1379_v39, %v8093_v5 }
  0x4d   : > { %676 = vst.msk [vmem:[#allocation4 + $0x3] ss:$8 sm:$0xf] %vm11420_vm8, %v673_v59  ;;  %vm576_vm7 = vmand %vm568_vm9, %vm11432_vm11  ;;  %v7865_v16 = vsel %vm575_vm5, 1.0, %v11296_v1  ;;  %v546_v22 = vcombine.low %v538_v60, %v545_v4  ;;  %vm11436_vm5 = vcmp.ge.s32.totalorder %v8270_v36, 0  ;;  %vm11437_vm11 = vcmp.ge.s32.totalorder %v8278_v38, 0 }
  0x4e   : > { %1035 = vrot.lane.b32.xlu1 %v8151_v41, %s7998_s30  ;;  %vm577_vm4 = vmand %vm8557_vm10, %vm11433_vm0  ;;  %v7866_v6 = vsel %vm576_vm7, 1.0, %v11296_v1  ;;  %v590_v21 = vcombine.low %v7864_v63, %v7865_v16  ;;  %vm11435_vm10 = vcmp.ge.s32.totalorder %v8259_v34, 0 }
  0x4f   : > { %1084 = vrot.lane.b32.xlu0 %v8179_v61, %s7997_s29  ;;  %v7867_v18 = vsel %vm577_vm4, 1.0, %v11296_v1  ;;  %vm447_vm9 = vmand %vm8503_vm14, %vm11434_vm2  ;;  %v553_v23 = vrot.slane %v546_v22, %v8219_v24  ;;  %v1341_v22 = vrot.slane %v1336_v44, %v8088_v3  ;;  %vm1245_vm4 = vcmp.lt.s32.totalorder %v8122_v19, 127 }
  0x50   : > { %v591_v7 = vcombine.low %v7866_v6, %v7867_v18  ;;  %vm448_vm12 = vmand %vm8509_vm1, %vm11435_vm10  ;;  %v598_v15 = vrot.slane %v590_v21, %v8219_v24  ;;  %vm11438_vm1 = vcmp.lt.s32.totalorder %v8259_v34, 16  ;;  %v7856_v25 = vsel %vm447_vm9, 1.0, %v11296_v1  ;;  %v1446_v34 = vld [vmem:[%s11272_s2] sm:$0xff] }
  0x51   : > { %vm449_vm14 = vmand %vm8521_vm13, %vm11436_vm5  ;;  %556 = vst.msk [vmem:[#allocation4 + $0x1] ss:$8 sm:$0xf] %vm11420_vm8, %v553_v23  ;;  %vm1172_vm2 = vcmp.lt.s32.totalorder %v8122_v19, 1  ;;  %vm1129_vm9 = vcmp.lt.s32.totalorder %v8122_v19, 15  ;;  %vm1086_vm10 = vcmp.lt.s32.totalorder %v8122_v19, 16 }
  0x52   : > { %1082 = vrot.lane.b32.xlu1 %v8160_v47, %s7997_s29  ;;  %v605_v30 = vrot.slane %v591_v7, %v8219_v24  ;;  %vm450_vm7 = vmand %vm8531_vm3, %vm11437_vm11  ;;  %v1293_v7 = vld [vmem:[#allocation4 + $0x6] ss:$8 sm:$0xf]  ;;  %vm1452_vm5 = vcmask 588800   ;;  %vm2277_vm11 = vcmp.lt.s32.totalorder %v8122_v19, 96 }
  0x53   : > { %1037 = vrot.lane.b32.xlu0 %v8149_v40, %s7998_s30  ;;  %vm456_vm0 = vmand %vm448_vm12, %vm11438_vm1  ;;  %vm1043_vm12 = vcmp.lt.s32.totalorder %v8122_v19, 17  ;;  %vm2333_vm1 = vcmp.lt.s32.totalorder %v8122_v19, 64 }
  0x54   : > { %v606_v53 = vcombine.low %v598_v15, %v605_v30  ;;  %vm457_vm13 = vmand %vm449_vm14, %vm453_vm6  ;;  %v7857_v54 = vsel %vm456_vm0, 1.0, %v11296_v1  ;;  %vm1331_vm6 = vcmp.lt.s32.totalorder %v8122_v19, 112  ;;  %vm9118_vm14 = vcmp.lt.s32.totalorder %v406_v0, 256 }
  0x55   : > { %vm458_vm3 = vmand %vm450_vm7, %vm454_vm15  ;;  %v7858_v27 = vsel %vm457_vm13, 1.0, %v11296_v1  ;;  %v471_v29 = vcombine.low %v7856_v25, %v7857_v54  ;;  %vm1374_vm15 = vcmp.lt.s32.totalorder %v8122_v19, 111  ;;  %v1353_v54 = vrot.slane %v1336_v44, %v8104_v10 }
  0x56   : > { %1039 = vrot.lane.b32.xlu1 %v8160_v47, %s7998_s30  ;;  %v613_v26 = vrot.slane %v606_v53, %v8219_v24  ;;  %v7859_v28 = vsel %vm458_vm3, 1.0, %v11296_v1  ;;  %v1302_v53 = vrot.slane %v1293_v7, %v8101_v9  ;;  %vm2305_vm7 = vcmp.lt.s32.totalorder %v8122_v19, 80 }
  0x57   : > { %1041 = vrot.lane.b32.xlu0 %v8179_v61, %s7998_s30  ;;  %v472_v31 = vcombine.low %v7858_v27, %v7859_v28  ;;  %v479_v36 = vrot.slane %v471_v29, %v8219_v24  ;;  %vm2361_vm0 = vcmp.lt.s32.totalorder %v8122_v19, 48  ;;  %vm2389_vm13 = vcmp.lt.s32.totalorder %v8122_v19, 32 }
  0x58   : > { %616 = vst.msk [vmem:[#allocation4 + $0x2] ss:$8 sm:$0xf] %vm11420_vm8, %v613_v26  ;;  %vm2953_vm3 = vcmask 130048  }
  0x59   : > { %v486_v38 = vrot.slane %v472_v31, %v8219_v24 }
  0x5b   : > { %1449 = vperm.xlu0 %7965, %v1446_v34   ;;  %v487_v32 = vcombine.low %v479_v36, %v486_v38  ;;  %v1349_v34 = vrot.slane %v1336_v44, %v8093_v5 }
  0x5d   : > { %v494_v33 = vrot.slane %v487_v32, %v8219_v24 }
  0x5f   : > { %500 = vst.msk [vmem:[#allocation4] ss:$8 sm:$0xf] %vm11420_vm8, %v494_v33  ;;  %vm1288_vm8 = vcmp.lt.s32.totalorder %v8122_v19, 113  ;;  %v1298_v33 = vrot.slane %v1293_v7, %v8088_v3 }
  0x8c   : > { %v1367_v37 = vpop.permute.xlu1 %1366 }
  0x8d   : > { %v1369_v35 = vpop.permute.xlu0 %1368 }
  0x8e   : > { %v1377_v49 = vsel %vm1374_vm15, %v1367_v37, %v1369_v35 }
  0x8f   : > { %v1401_v59 = vmul.f32 %v1384_v43, %v1377_v49  ;;  %v1207_v43 = vld [vmem:[#allocation4 + $0x4] ss:$8 sm:$0xf]  ;;  %v1306_v49 = vrot.slane %v1293_v7, %v8093_v5 }
  0x90   : > { %v1326_v48 = vpop.permute.xlu1 %1325 }
  0x91   : > { %v1371_v45 = vpop.permute.xlu0 %1370 }
  0x92   : > { %v1376_v51 = vsel %vm1374_vm15, %v1369_v35, %v1371_v45  ;;  %v1250_v35 = vld [vmem:[#allocation4 + $0x5] ss:$8 sm:$0xf] }
  0x93   : > { %v1402_v52 = vmul.f32 %v1388_v42, %v1376_v51 }
  0x94   : > { %v1373_v63 = vpop.permute.xlu1 %1372 }
  0x95   : > { %1470 = vmatprep.subr.mxu0 %v1402_v52  ;;  %v1328_v60 = vpop.permute.xlu0 %1327  ;;  %v1378_v16 = vsel %vm1374_vm15, %v1373_v63, %v1367_v37  ;;  %v1375_v17 = vsel %vm1374_vm15, %v1371_v45, %v1373_v63  ;;  %v1259_v45 = vrot.slane %v1250_v35, %v8101_v9 }
  0x96   : > { %v1333_v4 = vsel %vm1331_vm6, %v1326_v48, %v1328_v60  ;;  %1471 = vmatpush1.msra.mxu0 %v1401_v59  ;;  %v1404_v18 = vmul.f32 %v1396_v57, %v1378_v16  ;;  %v1403_v21 = vmul.f32 %v1392_v58, %v1375_v17  ;;  %v1216_v57 = vrot.slane %v1207_v43, %v8101_v9 }
  0x97   : > { %v1359_v6 = vmul.f32 %v1345_v56, %v1333_v4  ;;  %v1255_v56 = vrot.slane %v1250_v35, %v8088_v3  ;;  %v1212_v58 = vrot.slane %v1207_v43, %v8088_v3  ;;  %v1224_v59 = vrot.slane %v1207_v43, %v8104_v10 }
  0x98   : > { %1541 = vmatprep.subr.mxu1 %v1404_v18  ;;  %v1283_v23 = vpop.permute.xlu1 %1282  ;;  %v1267_v16 = vrot.slane %v1250_v35, %v8104_v10 }
  0x99   : > { %v1324_v15 = vpop.permute.xlu0 %1323  ;;  %1472 = vmatprep.subr.mxu0 %v1359_v6  ;;  %1542 = vmatpush1.msra.mxu1 %v1403_v21  ;;  %v1263_v21 = vrot.slane %v1250_v35, %v8093_v5 }
  0x9a   : > { %v1334_v30 = vsel %vm1331_vm6, %v1324_v15, %v1326_v48  ;;  %v1310_v48 = vrot.slane %v1293_v7, %v8104_v10  ;;  %v1220_v7 = vrot.slane %v1207_v43, %v8093_v5 }
  0x9b   : > { %v1358_v25 = vmul.f32 %v1341_v22, %v1334_v30  ;;  %v1177_v22 = vld [vmem:[#allocation4 + $0x3] ss:$8 sm:$0xf]  ;;  %v1230_v30 = vmul.f32 %v1216_v57, %v8149_v40 }
  0x9c   : > { %v1330_v27 = vpop.permute.xlu1 %1329  ;;  %v1231_v40 = vmul.f32 %v1220_v7, %v8160_v47 }
  0x9d   : > { %v1285_v26 = vpop.permute.xlu0 %1284  ;;  %1473 = vmatpush1.msra.mxu0 %v1358_v25  ;;  %v1332_v29 = vsel %vm1331_vm6, %v1328_v60, %v1330_v27  ;;  %v1335_v31 = vsel %vm1331_vm6, %v1330_v27, %v1324_v15  ;;  %v1229_v25 = vmul.f32 %v1212_v58, %v8151_v41 }
  0x9e   : > { %v1290_v28 = vsel %vm1288_vm8, %v1283_v23, %v1285_v26  ;;  %v1361_v38 = vmul.f32 %v1353_v54, %v1335_v31  ;;  %v1360_v32 = vmul.f32 %v1349_v34, %v1332_v29  ;;  %v1186_v31 = vrot.slane %v1177_v22, %v8101_v9 }
  0x9f   : > { %v1316_v36 = vmul.f32 %v1302_v53, %v1290_v28 }
  0xa0   : > { %1543 = vmatprep.subr.mxu1 %v1361_v38  ;;  %v1240_v39 = vpop.permute.xlu1 %1239 }
  0xa1   : > { %v1281_v37 = vpop.permute.xlu0 %1280  ;;  %1474 = vmatprep.subr.mxu0 %v1316_v36  ;;  %1544 = vmatpush1.msra.mxu1 %v1360_v32 }
  0xa2   : > { %v1291_v42 = vsel %vm1288_vm8, %v1281_v37, %v1283_v23 }
  0xa3   : > { %v1315_v44 = vmul.f32 %v1298_v33, %v1291_v42  ;;  %v1134_v33 = vld [vmem:[#allocation4 + $0x2] ss:$8 sm:$0xf]  ;;  %v1194_v42 = vrot.slane %v1177_v22, %v8104_v10 }
  0xa4   : > { %v1287_v52 = vpop.permute.xlu1 %1286  ;;  %v1143_v43 = vrot.slane %v1134_v33, %v8101_v9 }
  0xa5   : > { %v1242_v51 = vpop.permute.xlu0 %1241  ;;  %1475 = vmatpush1.msra.mxu0 %v1315_v44  ;;  %v1289_v63 = vsel %vm1288_vm8, %v1285_v26, %v1287_v52  ;;  %v1292_v4 = vsel %vm1288_vm8, %v1287_v52, %v1281_v37  ;;  %v1232_v26 = vmul.f32 %v1224_v59, %v8179_v61  ;;  %v1182_v61 = vrot.slane %v1177_v22, %v8088_v3 }
  0xa6   : > { %v1247_v60 = vsel %vm1245_vm4, %v1240_v39, %v1242_v51  ;;  %v1318_v6 = vmul.f32 %v1310_v48, %v1292_v4  ;;  %v1317_v18 = vmul.f32 %v1306_v49, %v1289_v63  ;;  %v1190_v44 = vrot.slane %v1177_v22, %v8093_v5 }
  0xa7   : > { %v1273_v17 = vmul.f32 %v1259_v45, %v1247_v60  ;;  %v1139_v59 = vrot.slane %v1134_v33, %v8088_v3  ;;  %v1091_v60 = vld [vmem:[#allocation4 + $0x1] ss:$8 sm:$0xf] }
  0xa8   : > { %1545 = vmatprep.subr.mxu1 %v1318_v6  ;;  %v1244_v23 = vpop.permute.xlu1 %1243  ;;  %v1151_v6 = vrot.slane %v1134_v33, %v8104_v10 }
  0xa9   : > { %v1238_v15 = vpop.permute.xlu0 %1237  ;;  %1476 = vmatprep.subr.mxu0 %v1273_v17  ;;  %v1246_v54 = vsel %vm1245_vm4, %v1242_v51, %v1244_v23  ;;  %1546 = vmatpush1.msra.mxu1 %v1317_v18  ;;  %v1100_v18 = vrot.slane %v1091_v60, %v8101_v9 }
  0xaa   : > { %v1248_v53 = vsel %vm1245_vm4, %v1238_v15, %v1240_v39  ;;  %v1249_v34 = vsel %vm1245_vm4, %v1244_v23, %v1238_v15  ;;  %v1274_v29 = vmul.f32 %v1263_v21, %v1246_v54  ;;  %v1147_v21 = vrot.slane %v1134_v33, %v8093_v5 }
  0xab   : > { %v1272_v27 = vmul.f32 %v1255_v56, %v1248_v53  ;;  %v1275_v28 = vmul.f32 %v1267_v16, %v1249_v34  ;;  %v1096_v34 = vrot.slane %v1091_v60, %v8088_v3 }
  0xac   : > { %v1167_v36 = vpop.permute.xlu1 %1166 }
  0xad   : > { %v1165_v41 = vpop.permute.xlu0 %1164  ;;  %1477 = vmatpush1.msra.mxu0 %v1272_v27  ;;  %1547 = vmatprep.subr.mxu1 %v1275_v28 }
  0xae   : > { %v1175_v38 = vsel %vm1172_vm2, %v1165_v41, %v1167_v36  ;;  %1548 = vmatpush1.msra.mxu1 %v1274_v29  ;;  %1478 = vmatprep.subr.mxu0 %v1230_v30 }
  0xaf   : > { %1479 = vmatpush1.msra.mxu0 %v1229_v25  ;;  %v1200_v32 = vmul.f32 %v1186_v31, %v1175_v38  ;;  %1549 = vmatprep.subr.mxu1 %v1232_v26  ;;  %v1048_v26 = vld [vmem:[#allocation4] ss:$8 sm:$0xf] }
  0xb0   : > { %1550 = vmatpush1.msra.mxu1 %v1231_v40  ;;  %v1122_v37 = vpop.permute.xlu1 %1121  ;;  %v1108_v40 = vrot.slane %v1091_v60, %v8104_v10 }
  0xb1   : > { %v1171_v35 = vpop.permute.xlu0 %1170  ;;  %1480 = vmatprep.subr.mxu0 %v1200_v32 }
  0xb2   : > { %v1176_v47 = vsel %vm1172_vm2, %v1171_v35, %v1165_v41  ;;  %v1057_v41 = vrot.slane %v1048_v26, %v8101_v9 }
  0xb3   : > { %v1199_v39 = vmul.f32 %v1182_v61, %v1176_v47  ;;  %v1053_v61 = vrot.slane %v1048_v26, %v8088_v3  ;;  %v1065_v47 = vrot.slane %v1048_v26, %v8104_v10 }
  0xb4   : > { %v1169_v48 = vpop.permute.xlu1 %1168 }
  0xb5   : > { %v1124_v45 = vpop.permute.xlu0 %1123  ;;  %1481 = vmatpush1.msra.mxu0 %v1199_v39  ;;  %v1173_v51 = vsel %vm1172_vm2, %v1169_v48, %v1171_v35  ;;  %v1174_v52 = vsel %vm1172_vm2, %v1167_v36, %v1169_v48  ;;  %v1104_v36 = vrot.slane %v1091_v60, %v8093_v5 }
  0xb6   : > { %v1132_v49 = vsel %vm1129_vm9, %v1122_v37, %v1124_v45  ;;  %v1202_v56 = vmul.f32 %v1194_v42, %v1173_v51  ;;  %v1201_v58 = vmul.f32 %v1190_v44, %v1174_v52  ;;  %v1061_v44 = vrot.slane %v1048_v26, %v8093_v5 }
  0xb7   : > { %v1157_v57 = vmul.f32 %v1143_v43, %v1132_v49 }
  0xb8   : > { %1551 = vmatprep.subr.mxu1 %v1202_v56  ;;  %v1079_v4 = vpop.permute.xlu1 %1078 }
  0xb9   : > { %v1128_v63 = vpop.permute.xlu0 %1127  ;;  %1482 = vmatprep.subr.mxu0 %v1157_v57  ;;  %1552 = vmatpush1.msra.mxu1 %v1201_v58  ;;  %v1409_v58 = vld [vmem:[%s11271_s1] sm:$0xff] }
  0xba   : > { %v1133_v16 = vsel %vm1129_vm9, %v1128_v63, %v1122_v37 }
  0xbb   : > { %v1156_v17 = vmul.f32 %v1139_v59, %v1133_v16 }
  0xbc   : > { %v1126_v7 = vpop.permute.xlu1 %1125 }
  0xbd   : > { %v1081_v22 = vpop.permute.xlu0 %1080  ;;  %1483 = vmatpush1.msra.mxu0 %v1156_v17  ;;  %v1130_v23 = vsel %vm1129_vm9, %v1126_v7, %v1128_v63  ;;  %v1131_v30 = vsel %vm1129_vm9, %v1124_v45, %v1126_v7 }
  0xbe   : > { %v1089_v15 = vsel %vm1086_vm10, %v1079_v4, %v1081_v22  ;;  %v1159_v25 = vmul.f32 %v1151_v6, %v1130_v23  ;;  %v1158_v54 = vmul.f32 %v1147_v21, %v1131_v30 }
  0xbf   : > { %v1114_v53 = vmul.f32 %v1100_v18, %v1089_v15 }
  0xc0   : > { %1553 = vmatprep.subr.mxu1 %v1159_v25  ;;  %v1036_v28 = vpop.permute.xlu1 %1035  ;;  %v2005_v25 = vld [vmem:[%s11274_s4] sm:$0x3] }
  0xc1   : > { %v1085_v27 = vpop.permute.xlu0 %1084  ;;  %1484 = vmatprep.subr.mxu0 %v1114_v53  ;;  %1554 = vmatpush1.msra.mxu1 %v1158_v54 }
  0xc2   : > { %v1090_v29 = vsel %vm1086_vm10, %v1085_v27, %v1079_v4 }
  0xc3   : > { %v1113_v31 = vmul.f32 %v1096_v34, %v1090_v29 }
  0xc4   : > { %v1083_v32 = vpop.permute.xlu1 %1082 }
  0xc5   : > { %v1038_v38 = vpop.permute.xlu0 %1037  ;;  %1485 = vmatpush1.msra.mxu0 %v1113_v31  ;;  %v1087_v35 = vsel %vm1086_vm10, %v1083_v32, %v1085_v27  ;;  %v1088_v37 = vsel %vm1086_vm10, %v1081_v22, %v1083_v32 }
  0xc6   : > { %v1046_v33 = vsel %vm1043_vm12, %v1036_v28, %v1038_v38  ;;  %v1116_v39 = vmul.f32 %v1108_v40, %v1087_v35  ;;  %v1115_v43 = vmul.f32 %v1104_v36, %v1088_v37  ;;  %v8858_v37 = vld [vmem:[#allocation4 + $0x7] ss:$8 sm:$0xf] }
  0xc7   : > { %v1071_v42 = vmul.f32 %v1057_v41, %v1046_v33 }
  0xc8   : > { %1555 = vmatprep.subr.mxu1 %v1116_v39  ;;  %v1040_v48 = vpop.permute.xlu1 %1039  ;;  %v8860_v39 = vld [vmem:[#allocation4 + $0x6] ss:$8 sm:$0xf] }
  0xc9   : > { %v1042_v45 = vpop.permute.xlu0 %1041  ;;  %1486 = vmatprep.subr.mxu0 %v1071_v42  ;;  %v1045_v52 = vsel %vm1043_vm12, %v1038_v38, %v1040_v48  ;;  %1556 = vmatpush1.msra.mxu1 %v1115_v43  ;;  %v8850_v38 = vld [vmem:[#allocation4 + $0x20] ss:$8 sm:$0xf] }
  0xca   : > { %v1047_v49 = vsel %vm1043_vm12, %v1042_v45, %v1036_v28  ;;  %v1044_v51 = vsel %vm1043_vm12, %v1040_v48, %v1042_v45  ;;  %v1072_v59 = vmul.f32 %v1061_v44, %v1045_v52  ;;  %v1947_v33 = vrot.slane %v8850_v38, %v8101_v9 }
  0xcb   : > { %v1070_v56 = vmul.f32 %v1053_v61, %v1047_v49  ;;  %v1073_v57 = vmul.f32 %v1065_v47, %v1044_v51  ;;  %v1943_v61 = vrot.slane %v8850_v38, %v8088_v3  ;;  %v1901_v48 = vrot.slane %v8858_v37, %v8088_v3  ;;  %v8870_v49 = vld [vmem:[#allocation4 + $0x5] ss:$8 sm:$0xf] }
  0xcc   : > { %v1905_v51 = vrot.slane %v8858_v37, %v8101_v9 }
  0xcd   : > { %1487 = vmatpush1.msra.mxu0 %v1070_v56  ;;  %1557 = vmatprep.subr.mxu1 %v1073_v57  ;;  %v1859_v56 = vrot.slane %v8860_v39, %v8088_v3 }
  0xce   : > { %7894 = vmatmul.mubr.msk.f32.vlgmr.msra.gmra.mxu0 %vm1452_vm5, %v1409_v58  ;;  %1558 = vmatpush1.msra.mxu1 %v1072_v59 }
  0xcf   : > { %7895 = vmatmul.mubr.msk.f32.vlgmr.msra.gmra.mxu1 %vm1452_vm5, %v1409_v58  ;;  %2078 = vmatprep.mubr.f32.mxu0 %v11296_v1  ;;  %v1863_v58 = vrot.slane %v8860_v39, %v8101_v9 }
  0xd0   : > { %2149 = vmatprep.mubr.f32.mxu1 %v11296_v1 }
  0xd6   : > { %v1450_v60 = vpop.permute.xlu0 %1449 }
 0x18e   : > { %v1522_v63 = vpop.f32.mrf.mxu0 }
 0x18f   : > { %v1523_v4 = vadd.f32 %v1522_v63, %v1450_v60  ;;  %v1593_v16 = vpop.f32.mrf.mxu1 }
 0x190   : > { %v1594_v17 = vadd.f32 %v1593_v16, %v1450_v60  ;;  %v1524_v21 = vpop.f32.mrf.mxu0  ;;  %v8891_v16 = vld [vmem:[#allocation4 + $0x4] ss:$8 sm:$0xf] }
 0x191   : > { %v8755_v6 = vmax.f32 %v1523_v4, 0.0  ;;  %v1525_v22 = vadd.f32 %v1524_v21, %v1450_v60  ;;  %v1595_v7 = vpop.f32.mrf.mxu1  ;;  %v1817_v4 = vrot.slane %v8870_v49, %v8088_v3 }
 0x192   : > { %v8757_v18 = vmax.f32 %v1594_v17, 0.0  ;;  %v1596_v23 = vadd.f32 %v1595_v7, %v1450_v60  ;;  %v1821_v7 = vrot.slane %v8870_v49, %v8101_v9 }
 0x193   : > { %1926 = vrot.lane.b32.xlu0 %v8755_v6, %s7990_s23  ;;  %v8783_v15 = vmax.f32 %v1525_v22, 0.0 }
 0x194   : > { %1930 = vrot.lane.b32.xlu1 %v8757_v18, %s7990_s23  ;;  %v8789_v30 = vmax.f32 %v1596_v23, 0.0 }
 0x197   : > { %1888 = vrot.lane.b32.xlu0 %v8757_v18, %s7992_s24 }
 0x198   : > { %1884 = vrot.lane.b32.xlu1 %v8755_v6, %s7992_s24 }
 0x19b   : > { %1842 = vrot.lane.b32.xlu0 %v8755_v6, %s7993_s25 }
 0x19c   : > { %1846 = vrot.lane.b32.xlu1 %v8757_v18, %s7993_s25 }
 0x19f   : > { %1804 = vrot.lane.b32.xlu0 %v8757_v18, %s7994_s26 }
 0x1a0   : > { %1800 = vrot.lane.b32.xlu1 %v8755_v6, %s7994_s26 }
 0x1a3   : > { %1728 = vrot.lane.b32.xlu0 %v8755_v6, %s7995_s27 }
 0x1a4   : > { %1686 = vrot.lane.b32.xlu1 %v8755_v6, %s7996_s28 }
 0x1a7   : > { %1644 = vrot.lane.b32.xlu0 %v8755_v6, %s7997_s29 }
 0x1a8   : > { %1602 = vrot.lane.b32.xlu1 %v8755_v6, %s7998_s30 }
 0x1ab   : > { %1844 = vrot.lane.b32.xlu0 %v8783_v15, %s7993_s25 }
 0x1ac   : > { %1928 = vrot.lane.b32.xlu1 %v8783_v15, %s7990_s23 }
 0x1af   : > { %1734 = vrot.lane.b32.xlu0 %v8789_v30, %s7995_s27 }
 0x1b0   : > { %1886 = vrot.lane.b32.xlu1 %v8783_v15, %s7992_s24 }
 0x1b3   : > { %1688 = vrot.lane.b32.xlu0 %v8783_v15, %s7996_s28 }
 0x1b4   : > { %1802 = vrot.lane.b32.xlu1 %v8783_v15, %s7994_s26 }
 0x1b7   : > { %1650 = vrot.lane.b32.xlu0 %v8789_v30, %s7997_s29 }
 0x1b8   : > { %1730 = vrot.lane.b32.xlu1 %v8783_v15, %s7995_s27 }
 0x1bb   : > { %1604 = vrot.lane.b32.xlu0 %v8783_v15, %s7998_s30 }
 0x1bc   : > { %1692 = vrot.lane.b32.xlu1 %v8789_v30, %s7996_s28 }
 0x1bf   : > { %2008 = vperm.xlu0 %7965, %v2005_v25   ;;  %v8900_v25 = vld [vmem:[#allocation4 + $0x3] ss:$8 sm:$0xf] }
 0x1c0   : > { %1646 = vrot.lane.b32.xlu1 %v8783_v15, %s7997_s29 }
 0x1c3   : > { %1690 = vrot.lane.b32.xlu0 %v8757_v18, %s7996_s28 }
 0x1c4   : > { %1608 = vrot.lane.b32.xlu1 %v8789_v30, %s7998_s30 }
 0x1c7   : > { %1606 = vrot.lane.b32.xlu0 %v8757_v18, %s7998_s30 }
 0x1c8   : > { %1732 = vrot.lane.b32.xlu1 %v8757_v18, %s7995_s27 }
 0x1cb   : > { %1890 = vrot.lane.b32.xlu0 %v8789_v30, %s7992_s24 }
 0x1cc   : > { %1648 = vrot.lane.b32.xlu1 %v8757_v18, %s7997_s29 }
 0x1cf   : > { %1806 = vrot.lane.b32.xlu0 %v8789_v30, %s7994_s26 }
 0x1d0   : > { %1932 = vrot.lane.b32.xlu1 %v8789_v30, %s7990_s23 }
 0x1d4   : > { %1848 = vrot.lane.b32.xlu1 %v8789_v30, %s7993_s25 }
 0x205   : > { %v8830_v53 = vpop.permute.xlu0 %1926 }
 0x206   : > { %v8832_v54 = vpop.permute.xlu1 %1930 }
 0x209   : > { %v8834_v34 = vpop.permute.xlu0 %1888 }
 0x20a   : > { %v8836_v26 = vpop.permute.xlu1 %1884 }
 0x20d   : > { %v8838_v27 = vpop.permute.xlu0 %1842 }
 0x20e   : > { %v8840_v28 = vpop.permute.xlu1 %1846 }
 0x211   : > { %v8842_v29 = vpop.permute.xlu0 %1804 }
 0x212   : > { %v8844_v31 = vpop.permute.xlu1 %1800 }
 0x215   : > { %v1729_v40 = vpop.permute.xlu0 %1728 }
 0x216   : > { %v8846_v41 = vpop.permute.xlu1 %1686 }
 0x219   : > { %v8848_v36 = vpop.permute.xlu0 %1644 }
 0x21a   : > { %v8852_v32 = vpop.permute.xlu1 %1602 }
 0x21d   : > { %v1845_v35 = vpop.permute.xlu0 %1844 }
 0x21e   : > { %v1929_v47 = vpop.permute.xlu1 %1928  ;;  %v1851_v59 = vsel %vm1288_vm8, %v1845_v35, %v8840_v28  ;;  %v1852_v17 = vsel %vm1288_vm8, %v8838_v27, %v1845_v35 }
 0x21f   : > { %v1935_v42 = vsel %vm1374_vm15, %v1929_v47, %v8832_v54  ;;  %v1936_v43 = vsel %vm1374_vm15, %v8830_v53, %v1929_v47  ;;  %v1779_v47 = vrot.slane %v8891_v16, %v8101_v9 }
 0x220   : > { %v1960_v44 = vmul.f32 %v1943_v61, %v1936_v43  ;;  %v1961_v45 = vmul.f32 %v1947_v33, %v1935_v42  ;;  %v1877_v33 = vmul.f32 %v1863_v58, %v1851_v59  ;;  %v1876_v42 = vmul.f32 %v1859_v56, %v1852_v17 }
 0x221   : > { %v8874_v52 = vpop.permute.xlu0 %1734  ;;  %v1749_v56 = vrot.slane %v8900_v25, %v8101_v9 }
 0x222   : > { %2028 = vmatprep.subr.mxu0 %v1961_v45  ;;  %v1887_v57 = vpop.permute.xlu1 %1886  ;;  %v8912_v45 = vld [vmem:[#allocation4 + $0x2] ss:$8 sm:$0xf]  ;;  %v1739_v58 = vsel %vm1172_vm2, %v8874_v52, %v1729_v40 }
 0x223   : > { %v1893_v60 = vsel %vm1331_vm6, %v1887_v57, %v8834_v34  ;;  %v1894_v63 = vsel %vm1331_vm6, %v8836_v26, %v1887_v57  ;;  %2029 = vmatpush1.msra.mxu0 %v1960_v44  ;;  %v1775_v44 = vrot.slane %v8891_v16, %v8088_v3  ;;  %v1745_v57 = vrot.slane %v8900_v25, %v8088_v3 }
 0x224   : > { %v1918_v21 = vmul.f32 %v1901_v48, %v1894_v63  ;;  %v1919_v22 = vmul.f32 %v1905_v51, %v1893_v60  ;;  %v1793_v63 = vmul.f32 %v1779_v47, %v8783_v15 }
 0x225   : > { %v8898_v23 = vpop.permute.xlu0 %1688 }
 0x226   : > { %v1803_v61 = vpop.permute.xlu1 %1802  ;;  %2030 = vmatprep.subr.mxu0 %v1919_v22  ;;  %v1696_v17 = vsel %vm1129_vm9, %v8846_v41, %v8898_v23  ;;  %v1792_v22 = vmul.f32 %v1775_v44, %v8755_v6  ;;  %v8946_v6 = vld [vmem:[#allocation4] ss:$8 sm:$0xf] }
 0x227   : > { %v1809_v35 = vsel %vm1245_vm4, %v1803_v61, %v8842_v29  ;;  %v1810_v43 = vsel %vm1245_vm4, %v8844_v31, %v1803_v61  ;;  %2031 = vmatpush1.msra.mxu0 %v1918_v21  ;;  %v1762_v61 = vmul.f32 %v1745_v57, %v1739_v58 }
 0x228   : > { %v1834_v48 = vmul.f32 %v1817_v4, %v1810_v43  ;;  %2032 = vmatprep.subr.mxu0 %v1877_v33  ;;  %v1835_v51 = vmul.f32 %v1821_v7, %v1809_v35  ;;  %v1707_v4 = vrot.slane %v8912_v45, %v8101_v9  ;;  %v1703_v7 = vrot.slane %v8912_v45, %v8088_v3  ;;  %v8938_v33 = vld [vmem:[#allocation4 + $0x1] ss:$8 sm:$0xf] }
 0x229   : > { %2033 = vmatpush1.msra.mxu0 %v1876_v42  ;;  %v8921_v59 = vpop.permute.xlu0 %1650  ;;  %v1665_v44 = vrot.slane %v8938_v33, %v8101_v9 }
 0x22a   : > { %v8923_v60 = vpop.permute.xlu1 %1730  ;;  %2034 = vmatprep.subr.mxu0 %v1835_v51  ;;  %v1721_v42 = vmul.f32 %v1707_v4, %v1696_v17  ;;  %v1655_v51 = vsel %vm1086_vm10, %v8921_v59, %v8848_v36 }
 0x22b   : > { %v1738_v21 = vsel %vm1172_vm2, %v1729_v40, %v8923_v60  ;;  %2035 = vmatpush1.msra.mxu0 %v1834_v48  ;;  %v1661_v48 = vrot.slane %v8938_v33, %v8088_v3 }
 0x22c   : > { %2036 = vmatprep.subr.mxu0 %v1793_v63  ;;  %v1763_v15 = vmul.f32 %v1749_v56, %v1738_v21  ;;  %v1619_v63 = vrot.slane %v8946_v6, %v8088_v3 }
 0x22d   : > { %2037 = vmatpush1.msra.mxu0 %v1792_v22  ;;  %v8948_v35 = vpop.permute.xlu0 %1604  ;;  %v1678_v17 = vmul.f32 %v1661_v48, %v1655_v51 }
 0x22e   : > { %v8940_v47 = vpop.permute.xlu1 %1692  ;;  %2038 = vmatprep.subr.mxu0 %v1763_v15  ;;  %v1612_v57 = vsel %vm1043_vm12, %v8852_v32, %v8948_v35 }
 0x22f   : > { %v1697_v40 = vsel %vm1129_vm9, %v8940_v47, %v8846_v41  ;;  %2039 = vmatpush1.msra.mxu0 %v1762_v61  ;;  %v1623_v41 = vrot.slane %v8946_v6, %v8101_v9 }
 0x230   : > { %v1720_v43 = vmul.f32 %v1703_v7, %v1697_v40  ;;  %2040 = vmatprep.subr.mxu0 %v1721_v42 }
 0x231   : > { %v1637_v22 = vmul.f32 %v1623_v41, %v1612_v57 }
 0x232   : > { %v8958_v56 = vpop.permute.xlu1 %1646  ;;  %2041 = vmatpush1.msra.mxu0 %v1720_v43 }
 0x233   : > { %v1654_v58 = vsel %vm1086_vm10, %v8848_v36, %v8958_v56  ;;  %v8981_v36 = vld [vmem:[%s11273_s3] sm:$0x3] }
 0x234   : > { %v1679_v4 = vmul.f32 %v1665_v44, %v1654_v58  ;;  %v1955_v44 = vrot.slane %v8850_v38, %v8104_v10 }
 0x236   : > { %v8972_v21 = vpop.permute.xlu1 %1608  ;;  %2042 = vmatprep.subr.mxu0 %v1679_v4  ;;  %v1909_v4 = vrot.slane %v8858_v37, %v8093_v5 }
 0x237   : > { %v1613_v7 = vsel %vm1043_vm12, %v8972_v21, %v8852_v32  ;;  %2043 = vmatpush1.msra.mxu0 %v1678_v17  ;;  %v1951_v32 = vrot.slane %v8850_v38, %v8093_v5  ;;  %v1913_v17 = vrot.slane %v8858_v37, %v8104_v10  ;;  %v1867_v38 = vrot.slane %v8860_v39, %v8093_v5 }
 0x238   : > { %v1636_v15 = vmul.f32 %v1619_v63, %v1613_v7  ;;  %2044 = vmatprep.subr.mxu0 %v1637_v22 }
 0x23a   : > { %v1733_v61 = vpop.permute.xlu1 %1732  ;;  %v8983_v42 = vpop.permute.xlu0 %2008  ;;  %2045 = vmatpush1.msra.mxu0 %v1636_v15 }
 0x23b   : > { %7896 = vmatmul.mubr.msk.f32.vlgmr.msra.gmra.mxu0 %vm1452_vm5, %v8981_v36 }
 0x23c   : > { %3030 = vmatprep.mubr.f32.mxu0 %v11296_v1 }
 0x23e   : > { %v1649_v40 = vpop.permute.xlu1 %1648  ;;  %v1691_v43 = vpop.permute.xlu0 %1690 }
 0x242   : > { %v1933_v48 = vpop.permute.xlu1 %1932  ;;  %v1607_v51 = vpop.permute.xlu0 %1606 }
 0x243   : > { %v1934_v41 = vsel %vm1374_vm15, %v8832_v54, %v1933_v48  ;;  %v1937_v57 = vsel %vm1374_vm15, %v1933_v48, %v8830_v53  ;;  %v1871_v54 = vrot.slane %v8860_v39, %v8104_v10 }
 0x244   : > { %v1962_v58 = vmul.f32 %v1951_v32, %v1934_v41  ;;  %v1963_v63 = vmul.f32 %v1955_v44, %v1937_v57  ;;  %v1825_v32 = vrot.slane %v8870_v49, %v8093_v5  ;;  %v1787_v57 = vrot.slane %v8891_v16, %v8104_v10 }
 0x246   : > { %v1849_v22 = vpop.permute.xlu1 %1848  ;;  %2099 = vmatprep.subr.mxu1 %v1963_v63  ;;  %v1891_v7 = vpop.permute.xlu0 %1890  ;;  %v1783_v63 = vrot.slane %v8891_v16, %v8093_v5  ;;  %v1795_v16 = vmul.f32 %v1787_v57, %v8789_v30  ;;  %v1673_v30 = vrot.slane %v8938_v33, %v8104_v10 }
 0x247   : > { %v1853_v53 = vsel %vm1288_vm8, %v1849_v22, %v8838_v27  ;;  %v1892_v15 = vsel %vm1331_vm6, %v8834_v34, %v1891_v7  ;;  %v1895_v37 = vsel %vm1331_vm6, %v1891_v7, %v8836_v26  ;;  %2100 = vmatpush1.msra.mxu1 %v1962_v58  ;;  %v1850_v39 = vsel %vm1288_vm8, %v8840_v28, %v1849_v22 }
 0x248   : > { %v1920_v44 = vmul.f32 %v1909_v4, %v1892_v15  ;;  %v1921_v48 = vmul.f32 %v1913_v17, %v1895_v37  ;;  %v1829_v27 = vrot.slane %v8870_v49, %v8104_v10  ;;  %v1879_v34 = vmul.f32 %v1871_v54, %v1853_v53 }
 0x249   : > { %v1878_v26 = vmul.f32 %v1867_v38, %v1850_v39  ;;  %v1757_v17 = vrot.slane %v8900_v25, %v8104_v10  ;;  %v1753_v38 = vrot.slane %v8900_v25, %v8093_v5  ;;  %v1715_v22 = vrot.slane %v8912_v45, %v8104_v10 }
 0x24a   : > { %2101 = vmatprep.subr.mxu1 %v1921_v48  ;;  %v1807_v41 = vpop.permute.xlu0 %1806  ;;  %v1711_v7 = vrot.slane %v8912_v45, %v8093_v5  ;;  %v1694_v25 = vsel %vm1129_vm9, %v1691_v43, %v8940_v47  ;;  %v1669_v45 = vrot.slane %v8938_v33, %v8093_v5  ;;  %v1652_v47 = vsel %vm1086_vm10, %v1649_v40, %v8921_v59 }
 0x24b   : > { %v1808_v58 = vsel %vm1245_vm4, %v8842_v29, %v1807_v41  ;;  %v1811_v28 = vsel %vm1245_vm4, %v1807_v41, %v8844_v31  ;;  %2102 = vmatpush1.msra.mxu1 %v1920_v44  ;;  %v1736_v29 = vsel %vm1172_vm2, %v1733_v61, %v8874_v52  ;;  %v1737_v31 = vsel %vm1172_vm2, %v8923_v60, %v1733_v61 }
 0x24c   : > { %v1836_v49 = vmul.f32 %v1825_v32, %v1808_v58  ;;  %2103 = vmatprep.subr.mxu1 %v1879_v34  ;;  %v1837_v4 = vmul.f32 %v1829_v27, %v1811_v28  ;;  %v1794_v52 = vmul.f32 %v1783_v63, %v8757_v18  ;;  %v1695_v60 = vsel %vm1129_vm9, %v8898_v23, %v1691_v43 }
 0x24d   : > { %2104 = vmatpush1.msra.mxu1 %v1878_v26  ;;  %v1765_v61 = vmul.f32 %v1757_v17, %v1736_v29  ;;  %v1764_v54 = vmul.f32 %v1753_v38, %v1737_v31  ;;  %v1653_v18 = vsel %vm1086_vm10, %v8958_v56, %v1649_v40  ;;  %v1723_v23 = vmul.f32 %v1715_v22, %v1694_v25 }
 0x24e   : > { %2105 = vmatprep.subr.mxu1 %v1837_v4  ;;  %v1631_v43 = vrot.slane %v8946_v6, %v8104_v10  ;;  %v1722_v53 = vmul.f32 %v1711_v7, %v1695_v60  ;;  %v1627_v15 = vrot.slane %v8946_v6, %v8093_v5  ;;  %v1610_v33 = vsel %vm1043_vm12, %v1607_v51, %v8972_v21 }
 0x24f   : > { %2106 = vmatpush1.msra.mxu1 %v1836_v49  ;;  %v1611_v59 = vsel %vm1043_vm12, %v8948_v35, %v1607_v51  ;;  %v1681_v56 = vmul.f32 %v1673_v30, %v1652_v47  ;;  %v1680_v40 = vmul.f32 %v1669_v45, %v1653_v18  ;;  %v9080_v51 = vcvt.s32.f32 %v8181_v62 }
 0x250   : > { %2107 = vmatprep.subr.mxu1 %v1795_v16  ;;  %v1639_v37 = vmul.f32 %v1631_v43, %v1610_v33  ;;  %v1638_v10 = vmul.f32 %v1627_v15, %v1611_v59  ;;  %v9085_v44 = vcvt.s32.f32 %v8170_v55  ;;  %v940_v41 = vadd.s32 8, %v8078_v2 }
 0x251   : > { %2108 = vmatpush1.msra.mxu1 %v1794_v52  ;;  %11439 = vst [vmem:[#allocation9_spill] sm:$0xff] %v9080_v51  ;;  %v9113_v17 = vcvt.s32.f32 %v8078_v2 }
 0x252   : > { %2109 = vmatprep.subr.mxu1 %v1765_v61  ;;  %11441 = vst [vmem:[#allocation11_spill] sm:$0xff] %v9085_v44  ;;  %v9115_v38 = vcvt.s32.f32 %v940_v41 }
 0x253   : > { %2110 = vmatpush1.msra.mxu1 %v1764_v54  ;;  %11443 = vst [vmem:[#allocation13_spill] sm:$0xff] %v9113_v17 }
 0x254   : > { %2111 = vmatprep.subr.mxu1 %v1723_v23  ;;  %11444 = vst [vmem:[#allocation14_spill] sm:$0xff] %v9115_v38 }
 0x255   : > { %2112 = vmatpush1.msra.mxu1 %v1722_v53 }
 0x256   : > { %2113 = vmatprep.subr.mxu1 %v1681_v56 }
 0x257   : > { %2114 = vmatpush1.msra.mxu1 %v1680_v40 }
 0x258   : > { %2115 = vmatprep.subr.mxu1 %v1639_v37 }
 0x259   : > { %2116 = vmatpush1.msra.mxu1 %v1638_v10 }
 0x25a   : > { %7897 = vmatmul.mubr.msk.f32.vlgmr.msra.gmra.mxu1 %vm1452_vm5, %v8981_v36 }
 0x25b   : > { %3048 = vmatprep.mubr.f32.mxu1 %v11296_v1 }
 0x2fb   : > { %v2080_v5 = vpop.f32.mrf.mxu0 }
 0x2fc   : > { %v2081_v6 = vadd.f32 %v2080_v5, %v8983_v42 }
 0x2fd   : > { %v2082_v21 = vpop.f32.mrf.mxu0 }
 0x2fe   : > { %7967 = vtanh.f32 %v2081_v6  ;;  %v2083_v35 = vadd.f32 %v2082_v21, %v8983_v42 }
 0x300   : > { %7969 = vtanh.f32 %v2083_v35 }
 0x30b   : > { %v7968_v32 = vpop.eup %7967 }
 0x30c   : > { %v9082_v39 = vmul.f32 2.0, %v7968_v32 }
 0x30d   : > { %v7970_v36 = vpop.eup %7969 }
 0x30e   : > { %11440 = vst [vmem:[#allocation10_spill] sm:$0xff] %v9082_v39  ;;  %v9087_v48 = vmul.f32 2.0, %v7970_v36  ;;  %2246 = vrot.lane.b32.xlu1 %v9082_v39, %s7992_s24  ;;  %v2166_v27 = vadd.f32 %v9082_v39, %v9080_v51  ;;  %v9103_v26 = vrot.slane %v9082_v39, 1 }
 0x310   : > { %11442 = vst [vmem:[#allocation12_spill] sm:$0xff] %v9087_v48  ;;  %v2226_v62 = vcombine.low %v9082_v39, %v9087_v48  ;;  %v2440_v34 = vcombine.low %v9087_v48, %v9082_v39  ;;  %2248 = vrot.lane.b32.xlu0 %v9087_v48, %s7992_s24  ;;  %v2167_v55 = vadd.f32 %v9087_v48, %v9085_v44  ;;  %v2172_v57 = vmax.f32 %v2166_v27, 0.0 }
 0x311   : > { %v9106_v58 = vrot.slane %v9087_v48, 1 }
 0x312   : > { %v2233_v28 = vrot.slane %v2226_v62, %v8219_v24  ;;  %v2447_v63 = vrot.slane %v2440_v34, %v8219_v24  ;;  %2273 = vrot.lane.b32.xlu1 %v9082_v39, %s8000_s12  ;;  %v2173_v49 = vmax.f32 %v2167_v55, 0.0  ;;  %v2174_v4 = vmin.f32 %v2172_v57, 15.0 }
 0x313   : > { %v2797_v31 = vcombine.low %v9106_v58, %v9103_v26 }
 0x314   : > { %v9125_v16 = vrot.slane %v2233_v28, %v8219_v24  ;;  %v9128_v22 = vrot.slane %v2447_v63, %v8219_v24  ;;  %v2592_v7 = vcombine.high %v2233_v28, %v2233_v28  ;;  %2275 = vrot.lane.b32.xlu0 %v9087_v48, %s8000_s12  ;;  %v2175_v2 = vmin.f32 %v2173_v49, 15.0 }
 0x315   : > { %v2203_v25 = vrot.slane %v2174_v4, %v8101_v9  ;;  %v2804_v0 = vrot.slane %v2797_v31, %v8219_v24 }
 0x316   : > { %11447 = vst [vmem:[#allocation15_spill] sm:$0xff] %v9125_v16  ;;  %11448 = vst [vmem:[#allocation16_spill] sm:$0xff] %v9128_v22  ;;  %v9141_v52 = vrot.slane %v2592_v7, %v8219_v24  ;;  %2301 = vrot.lane.b32.xlu1 %v9082_v39, %s8001_s13  ;;  %v2207_v60 = vrot.slane %v2175_v2, %v8101_v9 }
 0x317   : > { %2244 = vst.msk [vmem:[#allocation3] ss:$8 sm:$0x3] %vm9118_vm14, %v9125_v16  ;;  %2457 = vst.msk [vmem:[#allocation3 + $0x10] ss:$8 sm:$0x3] %vm9118_vm14, %v9128_v22  ;;  %v2210_v61 = vsub.f32 %v9115_v38, %v2203_v25  ;;  %v2208_v30 = vsub.f32 %v9113_v17, %v2203_v25  ;;  %v9149_v54 = vrot.slane %v2804_v0, %v8219_v24 }
 0x318   : > { %2602 = vst.msk [vmem:[#allocation3 + $0x20] ss:$8 sm:$0x3] %vm9118_vm14, %v9141_v52  ;;  %2303 = vrot.lane.b32.xlu0 %v9087_v48, %s8001_s13  ;;  %v2211_v45 = vsub.f32 %v9115_v38, %v2207_v60  ;;  %v2209_v47 = vsub.f32 %v9113_v17, %v2207_v60 }
 0x319   : > { %v2214_v18 = vand.u32 2147483647, %v2210_v61  ;;  %2814 = vst.msk [vmem:[#allocation3 + $0x30] ss:$8 sm:$0x3] %vm9118_vm14, %v9149_v54 }
 0x31a   : > { %2329 = vrot.lane.b32.xlu1 %v9082_v39, %s8002_s14  ;;  %v2215_v23 = vand.u32 2147483647, %v2211_v45  ;;  %v2213_v43 = vand.u32 2147483647, %v2209_v47  ;;  %v2212_v53 = vand.u32 2147483647, %v2208_v30  ;;  %v2151_v6 = vpop.f32.mrf.mxu1 }
 0x31b   : > { %v2218_v15 = vsub.f32 1.0, %v2214_v18  ;;  %v2152_v21 = vadd.f32 %v2151_v6, %v8983_v42 }
 0x31c   : > { %2331 = vrot.lane.b32.xlu0 %v9087_v48, %s8002_s14  ;;  %v2219_v33 = vsub.f32 1.0, %v2215_v23  ;;  %v2217_v59 = vsub.f32 1.0, %v2213_v43  ;;  %v2216_v40 = vsub.f32 1.0, %v2212_v53  ;;  %v2153_v35 = vpop.f32.mrf.mxu1 }
 0x31d   : > { %v9169_v37 = vmax.f32 %v2218_v15, 0.0  ;;  %v2154_v32 = vadd.f32 %v2153_v35, %v8983_v42  ;;  %7971 = vtanh.f32 %v2152_v21 }
 0x31e   : > { %2357 = vrot.lane.b32.xlu1 %v9082_v39, %s8003_s15  ;;  %v9167_v56 = vmax.f32 %v2219_v33, 0.0  ;;  %v9176_v10 = vmax.f32 %v2217_v59, 0.0  ;;  %v9181_v5 = vmax.f32 %v2216_v40, 0.0 }
 0x31f   : > { %11450 = vst [vmem:[#allocation18_spill] sm:$0xff] %v9169_v37  ;;  %7973 = vtanh.f32 %v2154_v32 }
 0x320   : > { %11449 = vst [vmem:[#allocation17_spill] sm:$0xff] %v9167_v56  ;;  %2359 = vrot.lane.b32.xlu0 %v9087_v48, %s8003_s15  ;;  %2994 = vmatprep.subr.mxu0 %v9167_v56  ;;  %11451 = vst [vmem:[#allocation19_spill] sm:$0xff] %v9176_v10 }
 0x321   : > { %7933 = vmatprep.subr.mxu1 %v9167_v56  ;;  %2995 = vmatpush1.msra.mxu0 %v9169_v37  ;;  %11452 = vst [vmem:[#allocation20_spill] sm:$0xff] %v9181_v5 }
 0x322   : > { %7935 = vmatpush1.msra.mxu1 %v9169_v37  ;;  %2385 = vrot.lane.b32.xlu1 %v9082_v39, %s8004_s16 }
 0x323   : > { %2996 = vmatprep.subr.mxu0 %v9176_v10  ;;  %7934 = vmatprep.subr.mxu1 %v9176_v10 }
 0x324   : > { %2997 = vmatpush1.msra.mxu0 %v9181_v5  ;;  %7936 = vmatpush1.msra.mxu1 %v9181_v5 }
 0x325   : > { %2387 = vrot.lane.b32.xlu0 %v9087_v48, %s8004_s16 }
 0x326   : > { %2413 = vrot.lane.b32.xlu1 %v9082_v39, %s7997_s29 }
 0x329   : > { %2415 = vrot.lane.b32.xlu0 %v9087_v48, %s7997_s29 }
 0x32a   : > { %2608 = vrot.lane.b32.xlu1 %v9103_v26, %s7992_s24  ;;  %v7972_v42 = vpop.eup %7971 }
 0x32b   : > { %v9249_v27 = vmul.f32 2.0, %v7972_v42 }
 0x32c   : > { %v7974_v36 = vpop.eup %7973 }
 0x32d   : > { %2610 = vrot.lane.b32.xlu0 %v9106_v58, %s7992_s24  ;;  %v9255_v41 = vmul.f32 2.0, %v7974_v36  ;;  %v9282_v62 = vrot.slane %v9249_v27, 1 }
 0x32e   : > { %2635 = vrot.lane.b32.xlu1 %v9103_v26, %s8000_s12 }
 0x32f   : > { %v9289_v34 = vrot.slane %v9255_v41, 1 }
 0x331   : > { %2637 = vrot.lane.b32.xlu0 %v9106_v58, %s8000_s12 }
 0x332   : > { %2662 = vrot.lane.b32.xlu1 %v9103_v26, %s8001_s13 }
 0x335   : > { %2664 = vrot.lane.b32.xlu0 %v9106_v58, %s8001_s13 }
 0x336   : > { %2689 = vrot.lane.b32.xlu1 %v9103_v26, %s8002_s14 }
 0x339   : > { %2691 = vrot.lane.b32.xlu0 %v9106_v58, %s8002_s14 }
 0x33a   : > { %2716 = vrot.lane.b32.xlu1 %v9103_v26, %s8003_s15 }
 0x33d   : > { %2718 = vrot.lane.b32.xlu0 %v9106_v58, %s8003_s15 }
 0x33e   : > { %2743 = vrot.lane.b32.xlu1 %v9103_v26, %s8004_s16 }
 0x341   : > { %2745 = vrot.lane.b32.xlu0 %v9106_v58, %s8004_s16 }
 0x342   : > { %2770 = vrot.lane.b32.xlu1 %v9103_v26, %s7997_s29 }
 0x345   : > { %2772 = vrot.lane.b32.xlu0 %v9106_v58, %s7997_s29 }
 0x346   : > { %3169 = vrot.lane.b32.xlu1 %v8107_v11, %s7992_s24 }
 0x349   : > { %3171 = vrot.lane.b32.xlu0 %v8110_v12, %s7992_s24 }
 0x34a   : > { %3195 = vrot.lane.b32.xlu1 %v8107_v11, %s8000_s12 }
 0x34d   : > { %3197 = vrot.lane.b32.xlu0 %v8110_v12, %s8000_s12 }
 0x34e   : > { %3221 = vrot.lane.b32.xlu1 %v8107_v11, %s8001_s13 }
 0x351   : > { %3223 = vrot.lane.b32.xlu0 %v8110_v12, %s8001_s13 }
 0x352   : > { %3247 = vrot.lane.b32.xlu1 %v8107_v11, %s8002_s14 }
 0x355   : > { %3249 = vrot.lane.b32.xlu0 %v8110_v12, %s8002_s14 }
 0x356   : > { %3273 = vrot.lane.b32.xlu1 %v8107_v11, %s8003_s15 }
 0x359   : > { %3275 = vrot.lane.b32.xlu0 %v8110_v12, %s8003_s15 }
 0x35a   : > { %3299 = vrot.lane.b32.xlu1 %v8107_v11, %s8004_s16 }
 0x35d   : > { %3301 = vrot.lane.b32.xlu0 %v8110_v12, %s8004_s16 }
 0x35e   : > { %3325 = vrot.lane.b32.xlu1 %v8107_v11, %s7997_s29 }
 0x361   : > { %3327 = vrot.lane.b32.xlu0 %v8110_v12, %s7997_s29 }
 0x362   : > { %3696 = vrot.lane.b32.xlu1 %v9249_v27, %s7992_s24 }
 0x365   : > { %3698 = vrot.lane.b32.xlu0 %v9255_v41, %s7992_s24 }
 0x366   : > { %3722 = vrot.lane.b32.xlu1 %v9249_v27, %s8000_s12 }
 0x369   : > { %3724 = vrot.lane.b32.xlu0 %v9255_v41, %s8000_s12 }
 0x36a   : > { %3748 = vrot.lane.b32.xlu1 %v9249_v27, %s8001_s13 }
 0x36d   : > { %3750 = vrot.lane.b32.xlu0 %v9255_v41, %s8001_s13 }
 0x36e   : > { %3774 = vrot.lane.b32.xlu1 %v9249_v27, %s8002_s14 }
 0x371   : > { %3776 = vrot.lane.b32.xlu0 %v9255_v41, %s8002_s14 }
 0x372   : > { %3800 = vrot.lane.b32.xlu1 %v9249_v27, %s8003_s15 }
 0x375   : > { %3802 = vrot.lane.b32.xlu0 %v9255_v41, %s8003_s15 }
 0x376   : > { %3826 = vrot.lane.b32.xlu1 %v9249_v27, %s8004_s16 }
 0x379   : > { %3828 = vrot.lane.b32.xlu0 %v9255_v41, %s8004_s16 }
 0x37a   : > { %3852 = vrot.lane.b32.xlu1 %v9249_v27, %s7997_s29 }
 0x37d   : > { %3854 = vrot.lane.b32.xlu0 %v9255_v41, %s7997_s29 }
 0x37e   : > { %4037 = vrot.lane.b32.xlu1 %v9282_v62, %s7992_s24 }
 0x380   : > { %v2247_v55 = vpop.permute.xlu1 %2246 }
 0x381   : > { %4039 = vrot.lane.b32.xlu0 %v9289_v34, %s7992_s24 }
 0x382   : > { %v2249_v57 = vpop.permute.xlu0 %2248  ;;  %4063 = vrot.lane.b32.xlu1 %v9282_v62, %s8000_s12 }
 0x383   : > { %v2250_v26 = vsel %vm1331_vm6, %v2247_v55, %v2249_v57  ;;  %v2251_v58 = vsel %vm1331_vm6, %v2249_v57, %v2247_v55 }
 0x384   : > { %v2254_v28 = vcombine.low %v2250_v26, %v2251_v58  ;;  %v2459_v63 = vcombine.low %v2251_v58, %v2250_v26  ;;  %v2274_v49 = vpop.permute.xlu1 %2273 }
 0x385   : > { %4065 = vrot.lane.b32.xlu0 %v9289_v34, %s8000_s12 }
 0x386   : > { %v2261_v4 = vrot.slane %v2254_v28, %v8219_v24  ;;  %v2466_v31 = vrot.slane %v2459_v63, %v8219_v24  ;;  %v2276_v7 = vpop.permute.xlu0 %2275  ;;  %4089 = vrot.lane.b32.xlu1 %v9282_v62, %s8001_s13 }
 0x387   : > { %v2278_v2 = vsel %vm2277_vm11, %v2274_v49, %v2276_v7  ;;  %v2279_v25 = vsel %vm2277_vm11, %v2276_v7, %v2274_v49 }
 0x388   : > { %v9312_v0 = vrot.slane %v2261_v4, %v8219_v24  ;;  %v9315_v60 = vrot.slane %v2466_v31, %v8219_v24  ;;  %v2282_v61 = vcombine.low %v2278_v2, %v2279_v25  ;;  %v2478_v30 = vcombine.low %v2279_v25, %v2278_v2  ;;  %v2302_v45 = vpop.permute.xlu1 %2301 }
 0x389   : > { %4091 = vrot.lane.b32.xlu0 %v9289_v34, %s8001_s13 }
 0x38a   : > { %11453 = vst [vmem:[#allocation21_spill] sm:$0xff] %v9312_v0  ;;  %11454 = vst [vmem:[#allocation22_spill] sm:$0xff] %v9315_v60  ;;  %v2289_v47 = vrot.slane %v2282_v61, %v8219_v24  ;;  %v2485_v18 = vrot.slane %v2478_v30, %v8219_v24  ;;  %v2304_v23 = vpop.permute.xlu0 %2303  ;;  %4115 = vrot.lane.b32.xlu1 %v9282_v62, %s8002_s14 }
 0x38b   : > { %2271 = vst.msk [vmem:[#allocation3 + $0x1] ss:$8 sm:$0x3] %vm9118_vm14, %v9312_v0  ;;  %2476 = vst.msk [vmem:[#allocation3 + $0x11] ss:$8 sm:$0x3] %vm9118_vm14, %v9315_v60  ;;  %v2306_v43 = vsel %vm2305_vm7, %v2302_v45, %v2304_v23  ;;  %v2307_v53 = vsel %vm2305_vm7, %v2304_v23, %v2302_v45 }
 0x38c   : > { %v9335_v15 = vrot.slane %v2289_v47, %v8219_v24  ;;  %v9338_v33 = vrot.slane %v2485_v18, %v8219_v24  ;;  %v2310_v59 = vcombine.low %v2306_v43, %v2307_v53  ;;  %v2497_v40 = vcombine.low %v2307_v53, %v2306_v43  ;;  %v2330_v6 = vpop.permute.xlu1 %2329 }
 0x38d   : > { %4117 = vrot.lane.b32.xlu0 %v9289_v34, %s8002_s14 }
 0x38e   : > { %11455 = vst [vmem:[#allocation23_spill] sm:$0xff] %v9335_v15  ;;  %11456 = vst [vmem:[#allocation24_spill] sm:$0xff] %v9338_v33  ;;  %v2317_v21 = vrot.slane %v2310_v59, %v8219_v24  ;;  %v2504_v35 = vrot.slane %v2497_v40, %v8219_v24  ;;  %v2332_v32 = vpop.permute.xlu0 %2331  ;;  %4141 = vrot.lane.b32.xlu1 %v9282_v62, %s8003_s15 }
 0x38f   : > { %2299 = vst.msk [vmem:[#allocation3 + $0x2] ss:$8 sm:$0x3] %vm9118_vm14, %v9335_v15  ;;  %2495 = vst.msk [vmem:[#allocation3 + $0x12] ss:$8 sm:$0x3] %vm9118_vm14, %v9338_v33  ;;  %v2334_v42 = vsel %vm2333_vm1, %v2330_v6, %v2332_v32  ;;  %v2335_v36 = vsel %vm2333_vm1, %v2332_v32, %v2330_v6 }
 0x390   : > { %v9358_v55 = vrot.slane %v2317_v21, %v8219_v24  ;;  %v9361_v57 = vrot.slane %v2504_v35, %v8219_v24  ;;  %v2338_v26 = vcombine.low %v2334_v42, %v2335_v36  ;;  %v2516_v58 = vcombine.low %v2335_v36, %v2334_v42  ;;  %v2358_v28 = vpop.permute.xlu1 %2357 }
 0x391   : > { %4143 = vrot.lane.b32.xlu0 %v9289_v34, %s8003_s15 }
 0x392   : > { %11457 = vst [vmem:[#allocation25_spill] sm:$0xff] %v9358_v55  ;;  %11458 = vst [vmem:[#allocation26_spill] sm:$0xff] %v9361_v57  ;;  %v2345_v63 = vrot.slane %v2338_v26, %v8219_v24  ;;  %v2523_v49 = vrot.slane %v2516_v58, %v8219_v24  ;;  %v2360_v4 = vpop.permute.xlu0 %2359  ;;  %4167 = vrot.lane.b32.xlu1 %v9282_v62, %s8004_s16 }
 0x393   : > { %2327 = vst.msk [vmem:[#allocation3 + $0x3] ss:$8 sm:$0x3] %vm9118_vm14, %v9358_v55  ;;  %2514 = vst.msk [vmem:[#allocation3 + $0x13] ss:$8 sm:$0x3] %vm9118_vm14, %v9361_v57  ;;  %v2362_v31 = vsel %vm2361_vm0, %v2358_v28, %v2360_v4  ;;  %v2363_v7 = vsel %vm2361_vm0, %v2360_v4, %v2358_v28 }
 0x394   : > { %v9380_v2 = vrot.slane %v2345_v63, %v8219_v24  ;;  %v9383_v25 = vrot.slane %v2523_v49, %v8219_v24  ;;  %v2366_v61 = vcombine.low %v2362_v31, %v2363_v7  ;;  %v2535_v30 = vcombine.low %v2363_v7, %v2362_v31  ;;  %v2386_v45 = vpop.permute.xlu1 %2385 }
 0x395   : > { %4169 = vrot.lane.b32.xlu0 %v9289_v34, %s8004_s16  ;;  %v3351_v7 = vcombine.low %v8110_v12, %v8107_v11 }
 0x396   : > { %11459 = vst [vmem:[#allocation27_spill] sm:$0xff] %v9380_v2  ;;  %11460 = vst [vmem:[#allocation28_spill] sm:$0xff] %v9383_v25  ;;  %v2373_v47 = vrot.slane %v2366_v61, %v8219_v24  ;;  %v2542_v18 = vrot.slane %v2535_v30, %v8219_v24  ;;  %4193 = vrot.lane.b32.xlu1 %v9282_v62, %s7997_s29 }
 0x397   : > { %2355 = vst.msk [vmem:[#allocation3 + $0x4] ss:$8 sm:$0x3] %vm9118_vm14, %v9380_v2  ;;  %2533 = vst.msk [vmem:[#allocation3 + $0x14] ss:$8 sm:$0x3] %vm9118_vm14, %v9383_v25  ;;  %v2388_v23 = vpop.permute.xlu0 %2387 }
 0x398   : > { %v9399_v43 = vrot.slane %v2373_v47, %v8219_v24  ;;  %v9402_v53 = vrot.slane %v2542_v18, %v8219_v24  ;;  %v2390_v59 = vsel %vm2389_vm13, %v2386_v45, %v2388_v23  ;;  %v2391_v40 = vsel %vm2389_vm13, %v2388_v23, %v2386_v45  ;;  %v2414_v6 = vpop.permute.xlu1 %2413 }
 0x399   : > { %v2394_v21 = vcombine.low %v2390_v59, %v2391_v40  ;;  %v2554_v35 = vcombine.low %v2391_v40, %v2390_v59  ;;  %4195 = vrot.lane.b32.xlu0 %v9289_v34, %s7997_s29 }
 0x39a   : > { %11461 = vst [vmem:[#allocation29_spill] sm:$0xff] %v9399_v43  ;;  %11462 = vst [vmem:[#allocation30_spill] sm:$0xff] %v9402_v53  ;;  %4576 = vrot.lane.b32.xlu1 %v8112_v13, %s7992_s24 }
 0x39b   : > { %2383 = vst.msk [vmem:[#allocation3 + $0x5] ss:$8 sm:$0x3] %vm9118_vm14, %v9399_v43  ;;  %2552 = vst.msk [vmem:[#allocation3 + $0x15] ss:$8 sm:$0x3] %vm9118_vm14, %v9402_v53  ;;  %v2401_v32 = vrot.slane %v2394_v21, %v8219_v24  ;;  %v2561_v42 = vrot.slane %v2554_v35, %v8219_v24  ;;  %v2416_v36 = vpop.permute.xlu0 %2415 }
 0x39c   : > { %v2417_v26 = vsel %vm1086_vm10, %v2414_v6, %v2416_v36  ;;  %v2418_v58 = vsel %vm1086_vm10, %v2416_v36, %v2414_v6  ;;  %v2609_v28 = vpop.permute.xlu1 %2608  ;;  %v3358_v6 = vrot.slane %v3351_v7, %v8219_v24  ;;  %v9482_v7 = vld.sshfl [vmem:[%s8085_s22] sm:$0xff pattern:$0x75316420]  ;;  %s7853_s22 = sshll.u32 %s11557_s18, 1 }
 0x39d   : > { %v9425_v63 = vrot.slane %v2401_v32, %v8219_v24  ;;  %v9428_v49 = vrot.slane %v2561_v42, %v8219_v24  ;;  %v2421_v4 = vcombine.low %v2417_v26, %v2418_v58  ;;  %v2573_v31 = vcombine.low %v2418_v58, %v2417_v26  ;;  %4578 = vrot.lane.b32.xlu0 %v8114_v14, %s7992_s24  ;;  %s397_s21 = scalar_lea.vmem %s11279_s9, %s7853_s22 }
 0x39e   : > { %4602 = vrot.lane.b32.xlu1 %v8112_v13, %s8000_s12  ;;  %11467 = vst [vmem:[#allocation35_spill] sm:$0xff] %v9482_v7 }
 0x39f   : > { %11463 = vst [vmem:[#allocation31_spill] sm:$0xff] %v9425_v63  ;;  %11464 = vst [vmem:[#allocation32_spill] sm:$0xff] %v9428_v49  ;;  %v2428_v61 = vrot.slane %v2421_v4, %v8219_v24  ;;  %v2580_v30 = vrot.slane %v2573_v31, %v8219_v24  ;;  %v2611_v45 = vpop.permute.xlu0 %2610 }
 0x3a0   : > { %2411 = vst.msk [vmem:[#allocation3 + $0x6] ss:$8 sm:$0x3] %vm9118_vm14, %v9425_v63  ;;  %2571 = vst.msk [vmem:[#allocation3 + $0x16] ss:$8 sm:$0x3] %vm9118_vm14, %v9428_v49  ;;  %v2612_v47 = vsel %vm1331_vm6, %v2609_v28, %v2611_v45  ;;  %v2613_v18 = vsel %vm1331_vm6, %v2611_v45, %v2609_v28  ;;  %v2636_v11 = vpop.permute.xlu1 %2635 }
 0x3a1   : > { %v9449_v12 = vrot.slane %v2428_v61, %v8219_v24  ;;  %v9452_v23 = vrot.slane %v2580_v30, %v8219_v24  ;;  %v2616_v59 = vcombine.low %v2612_v47, %v2613_v18  ;;  %v2816_v40 = vcombine.low %v2613_v18, %v2612_v47  ;;  %4604 = vrot.lane.b32.xlu0 %v8114_v14, %s8000_s12 }
 0x3a2   : > { %4628 = vrot.lane.b32.xlu1 %v8112_v13, %s8001_s13  ;;  %v9485_v61 = vrot.slane %v3358_v6, %v8219_v24 }
 0x3a3   : > { %11465 = vst [vmem:[#allocation33_spill] sm:$0xff] %v9449_v12  ;;  %11466 = vst [vmem:[#allocation34_spill] sm:$0xff] %v9452_v23  ;;  %v2623_v21 = vrot.slane %v2616_v59, %v8219_v24  ;;  %v2823_v35 = vrot.slane %v2816_v40, %v8219_v24  ;;  %v2638_v32 = vpop.permute.xlu0 %2637 }
 0x3a4   : > { %2438 = vst.msk [vmem:[#allocation3 + $0x7] ss:$8 sm:$0x3] %vm9118_vm14, %v9449_v12  ;;  %2590 = vst.msk [vmem:[#allocation3 + $0x17] ss:$8 sm:$0x3] %vm9118_vm14, %v9452_v23  ;;  %v2639_v42 = vsel %vm2277_vm11, %v2636_v11, %v2638_v32  ;;  %v2640_v36 = vsel %vm2277_vm11, %v2638_v32, %v2636_v11  ;;  %v2663_v26 = vpop.permute.xlu1 %2662 }
 0x3a5   : > { %v9472_v58 = vrot.slane %v2623_v21, %v8219_v24  ;;  %v9475_v28 = vrot.slane %v2823_v35, %v8219_v24  ;;  %v2643_v4 = vcombine.low %v2639_v42, %v2640_v36  ;;  %v2835_v31 = vcombine.low %v2640_v36, %v2639_v42  ;;  %4630 = vrot.lane.b32.xlu0 %v8114_v14, %s8001_s13 }
 0x3a6   : > { %4654 = vrot.lane.b32.xlu1 %v8112_v13, %s8002_s14  ;;  %11468 = vst [vmem:[#allocation36_spill] sm:$0xff] %v9485_v61 }
 0x3a7   : > { %2633 = vst.msk [vmem:[#allocation3 + $0x21] ss:$8 sm:$0x3] %vm9118_vm14, %v9472_v58  ;;  %2833 = vst.msk [vmem:[#allocation3 + $0x31] ss:$8 sm:$0x3] %vm9118_vm14, %v9475_v28  ;;  %v2650_v30 = vrot.slane %v2643_v4, %v8219_v24  ;;  %v2842_v45 = vrot.slane %v2835_v31, %v8219_v24  ;;  %v2665_v47 = vpop.permute.xlu0 %2664 }
 0x3a8   : > { %v2666_v18 = vsel %vm2305_vm7, %v2663_v26, %v2665_v47  ;;  %v2667_v11 = vsel %vm2305_vm7, %v2665_v47, %v2663_v26  ;;  %v2690_v59 = vpop.permute.xlu1 %2689 }
 0x3a9   : > { %v9500_v40 = vrot.slane %v2650_v30, %v8219_v24  ;;  %v9503_v6 = vrot.slane %v2842_v45, %v8219_v24  ;;  %v2670_v21 = vcombine.low %v2666_v18, %v2667_v11  ;;  %v2854_v35 = vcombine.low %v2667_v11, %v2666_v18  ;;  %4656 = vrot.lane.b32.xlu0 %v8114_v14, %s8002_s14 }
 0x3aa   : > { %4680 = vrot.lane.b32.xlu1 %v8112_v13, %s8003_s15 }
 0x3ab   : > { %v2949_v32 = vld [vmem:[#allocation3] sm:$0xff]  ;;  %v2950_v42 = vld [vmem:[#allocation3 + $0x10] sm:$0xff]  ;;  %2660 = vst.msk [vmem:[#allocation3 + $0x22] ss:$8 sm:$0x3] %vm9118_vm14, %v9500_v40  ;;  %v2677_v36 = vrot.slane %v2670_v21, %v8219_v24  ;;  %v2861_v26 = vrot.slane %v2854_v35, %v8219_v24  ;;  %v2692_v4 = vpop.permute.xlu0 %2691 }
 0x3ac   : > { %3167 = vst.msk [vmem:[#allocation3] ss:$8 sm:$0x3] %vm9118_vm14, %v9482_v7  ;;  %3367 = vst.msk [vmem:[#allocation3 + $0x10] ss:$8 sm:$0x3] %vm9118_vm14, %v9485_v61  ;;  %7898 = vmatmul.mubr.msk.f32.vlgmr.msra.gmra.mxu0 %vm2953_vm3, %v2949_v32  ;;  %v2693_v31 = vsel %vm2333_vm1, %v2690_v59, %v2692_v4  ;;  %v2694_v30 = vsel %vm2333_vm1, %v2692_v4, %v2690_v59  ;;  %v2717_v45 = vpop.permute.xlu1 %2716 }
 0x3ad   : > { %2852 = vst.msk [vmem:[#allocation3 + $0x32] ss:$8 sm:$0x3] %vm9118_vm14, %v9503_v6  ;;  %3036 = vmatprep.mubr.f32.mxu0 %v11296_v1  ;;  %v9530_v47 = vrot.slane %v2677_v36, %v8219_v24  ;;  %v9533_v18 = vrot.slane %v2861_v26, %v8219_v24  ;;  %v2697_v11 = vcombine.low %v2693_v31, %v2694_v30 }
 0x3ae   : > { %v2873_v21 = vcombine.low %v2694_v30, %v2693_v31  ;;  %4682 = vrot.lane.b32.xlu0 %v8114_v14, %s8003_s15  ;;  %4706 = vrot.lane.b32.xlu1 %v8112_v13, %s8004_s16 }
 0x3af   : > { %2687 = vst.msk [vmem:[#allocation3 + $0x23] ss:$8 sm:$0x3] %vm9118_vm14, %v9530_v47  ;;  %2871 = vst.msk [vmem:[#allocation3 + $0x33] ss:$8 sm:$0x3] %vm9118_vm14, %v9533_v18  ;;  %v2704_v59 = vrot.slane %v2697_v11, %v8219_v24  ;;  %v2719_v32 = vpop.permute.xlu0 %2718 }
 0x3b0   : > { %v2880_v35 = vrot.slane %v2873_v21, %v8219_v24  ;;  %7899 = vmatmul.mubr.msk.f32.gmra.mxu0 %vm2953_vm3, %v2950_v42  ;;  %v2720_v36 = vsel %vm2361_vm0, %v2717_v45, %v2719_v32  ;;  %v2721_v26 = vsel %vm2361_vm0, %v2719_v32, %v2717_v45  ;;  %v2744_v4 = vpop.permute.xlu1 %2743 }
 0x3b1   : > { %3042 = vmatprep.mubr.f32.mxu0 %v11296_v1  ;;  %v9554_v31 = vrot.slane %v2704_v59, %v8219_v24  ;;  %v2724_v11 = vcombine.low %v2720_v36, %v2721_v26  ;;  %v2892_v21 = vcombine.low %v2721_v26, %v2720_v36 }
 0x3b2   : > { %v9557_v30 = vrot.slane %v2880_v35, %v8219_v24  ;;  %4708 = vrot.lane.b32.xlu0 %v8114_v14, %s8004_s16  ;;  %4732 = vrot.lane.b32.xlu1 %v8112_v13, %s7997_s29 }
 0x3b3   : > { %2714 = vst.msk [vmem:[#allocation3 + $0x24] ss:$8 sm:$0x3] %vm9118_vm14, %v9554_v31  ;;  %v2731_v42 = vrot.slane %v2724_v11, %v8219_v24  ;;  %v2899_v45 = vrot.slane %v2892_v21, %v8219_v24  ;;  %v2746_v59 = vpop.permute.xlu0 %2745 }
 0x3b4   : > { %11469 = vst [vmem:[#allocation37_spill] sm:$0xff] %v9557_v30  ;;  %2890 = vst.msk [vmem:[#allocation3 + $0x34] ss:$8 sm:$0x3] %vm9118_vm14, %v9557_v30  ;;  %v2747_v35 = vsel %vm2389_vm13, %v2744_v4, %v2746_v59  ;;  %v2748_v32 = vsel %vm2389_vm13, %v2746_v59, %v2744_v4  ;;  %v2771_v36 = vpop.permute.xlu1 %2770 }
 0x3b5   : > { %v9576_v26 = vrot.slane %v2731_v42, %v8219_v24  ;;  %v9579_v1 = vrot.slane %v2899_v45, %v8219_v24  ;;  %v2751_v5 = vcombine.low %v2747_v35, %v2748_v32  ;;  %v2911_v10 = vcombine.low %v2748_v32, %v2747_v35 }
 0x3b6   : > { %4734 = vrot.lane.b32.xlu0 %v8114_v14, %s7997_s29  ;;  %v3678_v42 = vcombine.low %v9249_v27, %v9255_v41 }
 0x3b7   : > { %11470 = vst [vmem:[#allocation38_spill] sm:$0xff] %v9579_v1  ;;  %2741 = vst.msk [vmem:[#allocation3 + $0x25] ss:$8 sm:$0x3] %vm9118_vm14, %v9576_v26  ;;  %v2758_v4 = vrot.slane %v2751_v5, %v8219_v24  ;;  %v2918_v11 = vrot.slane %v2911_v10, %v8219_v24  ;;  %v2773_v21 = vpop.permute.xlu0 %2772 }
 0x3b8   : > { %2909 = vst.msk [vmem:[#allocation3 + $0x35] ss:$8 sm:$0x3] %vm9118_vm14, %v9579_v1  ;;  %v2774_v45 = vsel %vm1086_vm10, %v2771_v36, %v2773_v21  ;;  %v2775_v59 = vsel %vm1086_vm10, %v2773_v21, %v2771_v36  ;;  %v3170_v35 = vpop.permute.xlu1 %3169 }
 0x3b9   : > { %v9598_v32 = vrot.slane %v2758_v4, %v8219_v24  ;;  %v9601_v37 = vrot.slane %v2918_v11, %v8219_v24  ;;  %v2778_v5 = vcombine.low %v2774_v45, %v2775_v59  ;;  %v2930_v56 = vcombine.low %v2775_v59, %v2774_v45 }
 0x3ba   : > { %v9612_v4 = vrot.slane %v3678_v42, %v8219_v24  ;;  %v4219_v11 = vcombine.low %v9289_v34, %v9282_v62 }
 0x3bb   : > { %11471 = vst [vmem:[#allocation39_spill] sm:$0xff] %v9601_v37  ;;  %2768 = vst.msk [vmem:[#allocation3 + $0x26] ss:$8 sm:$0x3] %vm9118_vm14, %v9598_v32  ;;  %v2785_v10 = vrot.slane %v2778_v5, %v8219_v24  ;;  %v2937_v36 = vrot.slane %v2930_v56, %v8219_v24  ;;  %v3172_v21 = vpop.permute.xlu0 %3171 }
 0x3bc   : > { %2928 = vst.msk [vmem:[#allocation3 + $0x36] ss:$8 sm:$0x3] %vm9118_vm14, %v9601_v37  ;;  %v3173_v45 = vsel %vm1331_vm6, %v3170_v35, %v3172_v21  ;;  %v3174_v59 = vsel %vm1331_vm6, %v3172_v21, %v3170_v35  ;;  %v3196_v61 = vpop.permute.xlu1 %3195  ;;  %v4022_v35 = vcombine.high %v9612_v4, %v9612_v4 }
 0x3bd   : > { %v9621_v23 = vrot.slane %v2785_v10, %v8219_v24  ;;  %v9624_v5 = vrot.slane %v2937_v36, %v8219_v24  ;;  %v3177_v56 = vcombine.low %v3173_v45, %v3174_v59  ;;  %v3369_v49 = vcombine.low %v3174_v59, %v3173_v45 }
 0x3be   : > { %v4226_v10 = vrot.slane %v4219_v11, %v8219_v24 }
 0x3bf   : > { %11472 = vst [vmem:[#allocation40_spill] sm:$0xff] %v9624_v5  ;;  %2795 = vst.msk [vmem:[#allocation3 + $0x27] ss:$8 sm:$0x3] %vm9118_vm14, %v9621_v23  ;;  %v3184_v62 = vrot.slane %v3177_v56, %v8219_v24  ;;  %v3376_v34 = vrot.slane %v3369_v49, %v8219_v24  ;;  %v3198_v42 = vpop.permute.xlu0 %3197 }
 0x3c0   : > { %2947 = vst.msk [vmem:[#allocation3 + $0x37] ss:$8 sm:$0x3] %vm9118_vm14, %v9624_v5  ;;  %v3199_v36 = vsel %vm2277_vm11, %v3196_v61, %v3198_v42  ;;  %v3200_v21 = vsel %vm2277_vm11, %v3198_v42, %v3196_v61  ;;  %v3222_v45 = vpop.permute.xlu1 %3221 }
 0x3c1   : > { %v9642_v59 = vrot.slane %v3184_v62, %v8219_v24  ;;  %v9645_v56 = vrot.slane %v3376_v34, %v8219_v24  ;;  %v3203_v49 = vcombine.low %v3199_v36, %v3200_v21  ;;  %v3387_v53 = vcombine.low %v3200_v21, %v3199_v36 }
 0x3c2   : > { %v4029_v62 = vrot.slane %v4022_v35, %v8219_v24  ;;  %v4233_v34 = vrot.slane %v4226_v10, %v8219_v24 }
 0x3c3   : > { %11473 = vst [vmem:[#allocation41_spill] sm:$0xff] %v9642_v59  ;;  %11474 = vst [vmem:[#allocation42_spill] sm:$0xff] %v9645_v56  ;;  %v3210_v11 = vrot.slane %v3203_v49, %v8219_v24  ;;  %v3394_v61 = vrot.slane %v3387_v53, %v8219_v24  ;;  %v3224_v42 = vpop.permute.xlu0 %3223 }
 0x3c4   : > { %3193 = vst.msk [vmem:[#allocation3 + $0x1] ss:$8 sm:$0x3] %vm9118_vm14, %v9642_v59  ;;  %3385 = vst.msk [vmem:[#allocation3 + $0x11] ss:$8 sm:$0x3] %vm9118_vm14, %v9645_v56  ;;  %v3225_v36 = vsel %vm2305_vm7, %v3222_v45, %v3224_v42  ;;  %v3226_v21 = vsel %vm2305_vm7, %v3224_v42, %v3222_v45  ;;  %v3248_v59 = vpop.permute.xlu1 %3247 }
 0x3c5   : > { %v9662_v25 = vrot.slane %v3210_v11, %v8219_v24  ;;  %v9665_v56 = vrot.slane %v3394_v61, %v8219_v24  ;;  %v3229_v49 = vcombine.low %v3225_v36, %v3226_v21  ;;  %v3405_v53 = vcombine.low %v3226_v21, %v3225_v36 }
 0x3c6   : > { %v2951_v57 = vld [vmem:[#allocation3 + $0x20] sm:$0xff] }
 0x3c7   : > { %11475 = vst [vmem:[#allocation43_spill] sm:$0xff] %v9662_v25  ;;  %11476 = vst [vmem:[#allocation44_spill] sm:$0xff] %v9665_v56  ;;  %v2952_v33 = vld [vmem:[#allocation3 + $0x30] sm:$0xff]  ;;  %v3236_v35 = vrot.slane %v3229_v49, %v8219_v24  ;;  %v3412_v10 = vrot.slane %v3405_v53, %v8219_v24  ;;  %v3250_v45 = vpop.permute.xlu0 %3249  ;;  %7900 = vmatmul.mubr.msk.f32.gmra.mxu0 %vm2953_vm3, %v2951_v57 }
 0x3c8   : > { %4031 = vst.msk [vmem:[#allocation3 + $0x20] ss:$8 sm:$0x3] %vm9118_vm14, %v4029_v62  ;;  %4235 = vst.msk [vmem:[#allocation3 + $0x30] ss:$8 sm:$0x3] %vm9118_vm14, %v4233_v34  ;;  %7901 = vmatmul.mubr.msk.f32.vlgmr.msra.gmra.mxu1 %vm2953_vm3, %v2952_v33  ;;  %v3251_v11 = vsel %vm2333_vm1, %v3248_v59, %v3250_v45  ;;  %v3252_v61 = vsel %vm2333_vm1, %v3250_v45, %v3248_v59  ;;  %v3274_v42 = vpop.permute.xlu1 %3273 }
 0x3c9   : > { %3219 = vst.msk [vmem:[#allocation3 + $0x2] ss:$8 sm:$0x3] %vm9118_vm14, %v9662_v25  ;;  %3403 = vst.msk [vmem:[#allocation3 + $0x12] ss:$8 sm:$0x3] %vm9118_vm14, %v9665_v56  ;;  %v9688_v34 = vrot.slane %v3236_v35, %v8219_v24  ;;  %v9691_v36 = vrot.slane %v3412_v10, %v8219_v24  ;;  %v3255_v57 = vcombine.low %v3251_v11, %v3252_v61 }
 0x3ca   : > { %v11477_v62 = vmov 0.0   ;;  %v3423_v21 = vcombine.low %v3252_v61, %v3251_v11 }
 0x3cb   : > { %3567 = vmatprep.mubr.f32.mxu1 %v11477_v62  ;;  %4974 = vmatprep.mubr.f32.mxu0 %v11477_v62  ;;  %11478 = vst [vmem:[#allocation45_spill] sm:$0xff] %v9688_v34  ;;  %11479 = vst [vmem:[#allocation46_spill] sm:$0xff] %v9691_v36  ;;  %v3262_v33 = vrot.slane %v3255_v57, %v8219_v24  ;;  %v3276_v49 = vpop.permute.xlu0 %3275 }
 0x3cc   : > { %3245 = vst.msk [vmem:[#allocation3 + $0x3] ss:$8 sm:$0x3] %vm9118_vm14, %v9688_v34  ;;  %3421 = vst.msk [vmem:[#allocation3 + $0x13] ss:$8 sm:$0x3] %vm9118_vm14, %v9691_v36  ;;  %v3430_v59 = vrot.slane %v3423_v21, %v8219_v24  ;;  %v3277_v53 = vsel %vm2361_vm0, %v3274_v42, %v3276_v49  ;;  %v3278_v35 = vsel %vm2361_vm0, %v3276_v49, %v3274_v42  ;;  %v3300_v10 = vpop.permute.xlu1 %3299 }
 0x3cd   : > { %v9706_v45 = vrot.slane %v3262_v33, %v8219_v24  ;;  %v3281_v61 = vcombine.low %v3277_v53, %v3278_v35  ;;  %v3441_v36 = vcombine.low %v3278_v35, %v3277_v53 }
 0x3ce   : > { %v9709_v11 = vrot.slane %v3430_v59, %v8219_v24 }
 0x3cf   : > { %11480 = vst [vmem:[#allocation47_spill] sm:$0xff] %v9706_v45  ;;  %3271 = vst.msk [vmem:[#allocation3 + $0x4] ss:$8 sm:$0x3] %vm9118_vm14, %v9706_v45  ;;  %v3288_v57 = vrot.slane %v3281_v61, %v8219_v24  ;;  %v3448_v42 = vrot.slane %v3441_v36, %v8219_v24  ;;  %v3302_v21 = vpop.permute.xlu0 %3301 }
 0x3d0   : > { %11481 = vst [vmem:[#allocation48_spill] sm:$0xff] %v9709_v11  ;;  %3439 = vst.msk [vmem:[#allocation3 + $0x14] ss:$8 sm:$0x3] %vm9118_vm14, %v9709_v11  ;;  %v3303_v33 = vsel %vm2389_vm13, %v3300_v10, %v3302_v21  ;;  %v3304_v59 = vsel %vm2389_vm13, %v3302_v21, %v3300_v10  ;;  %v3326_v49 = vpop.permute.xlu1 %3325 }
 0x3d1   : > { %v9724_v53 = vrot.slane %v3288_v57, %v8219_v24  ;;  %v9727_v35 = vrot.slane %v3448_v42, %v8219_v24  ;;  %v3307_v56 = vcombine.low %v3303_v33, %v3304_v59  ;;  %v3459_v11 = vcombine.low %v3304_v59, %v3303_v33 }
 0x3d3   : > { %11482 = vst [vmem:[#allocation49_spill] sm:$0xff] %v9724_v53  ;;  %11483 = vst [vmem:[#allocation50_spill] sm:$0xff] %v9727_v35  ;;  %v3314_v36 = vrot.slane %v3307_v56, %v8219_v24  ;;  %v3466_v10 = vrot.slane %v3459_v11, %v8219_v24  ;;  %v3328_v61 = vpop.permute.xlu0 %3327  ;;  %v3878_v56 = vcombine.low %v9255_v41, %v9249_v27 }
 0x3d4   : > { %3297 = vst.msk [vmem:[#allocation3 + $0x5] ss:$8 sm:$0x3] %vm9118_vm14, %v9724_v53  ;;  %3457 = vst.msk [vmem:[#allocation3 + $0x15] ss:$8 sm:$0x3] %vm9118_vm14, %v9727_v35  ;;  %v3329_v57 = vsel %vm1086_vm10, %v3326_v49, %v3328_v61  ;;  %v3330_v42 = vsel %vm1086_vm10, %v3328_v61, %v3326_v49  ;;  %v3697_v21 = vpop.permute.xlu1 %3696 }
 0x3d5   : > { %v9742_v33 = vrot.slane %v3314_v36, %v8219_v24  ;;  %v9745_v59 = vrot.slane %v3466_v10, %v8219_v24  ;;  %v3333_v53 = vcombine.low %v3329_v57, %v3330_v42  ;;  %v3477_v35 = vcombine.low %v3330_v42, %v3329_v57 }
 0x3d7   : > { %11484 = vst [vmem:[#allocation51_spill] sm:$0xff] %v9742_v33  ;;  %11485 = vst [vmem:[#allocation52_spill] sm:$0xff] %v9745_v59  ;;  %v3340_v11 = vrot.slane %v3333_v53, %v8219_v24  ;;  %v3484_v49 = vrot.slane %v3477_v35, %v8219_v24  ;;  %v3699_v36 = vpop.permute.xlu0 %3698  ;;  %v3885_v53 = vrot.slane %v3878_v56, %v8219_v24 }
 0x3d8   : > { %3323 = vst.msk [vmem:[#allocation3 + $0x6] ss:$8 sm:$0x3] %vm9118_vm14, %v9742_v33  ;;  %3475 = vst.msk [vmem:[#allocation3 + $0x16] ss:$8 sm:$0x3] %vm9118_vm14, %v9745_v59  ;;  %v3700_v10 = vsel %vm1331_vm6, %v3697_v21, %v3699_v36  ;;  %v3701_v61 = vsel %vm1331_vm6, %v3699_v36, %v3697_v21  ;;  %v3723_v57 = vpop.permute.xlu1 %3722 }
 0x3d9   : > { %v9762_v42 = vrot.slane %v3340_v11, %v8219_v24  ;;  %v9765_v33 = vrot.slane %v3484_v49, %v8219_v24  ;;  %v3704_v45 = vcombine.low %v3700_v10, %v3701_v61  ;;  %v3896_v59 = vcombine.low %v3701_v61, %v3700_v10 }
 0x3da   : > { %v3892_v34 = vrot.slane %v3885_v53, %v8219_v24 }
 0x3db   : > { %11486 = vst [vmem:[#allocation53_spill] sm:$0xff] %v9762_v42  ;;  %11487 = vst [vmem:[#allocation54_spill] sm:$0xff] %v9765_v33  ;;  %v3725_v35 = vpop.permute.xlu0 %3724  ;;  %v3711_v21 = vrot.slane %v3704_v45, %v8219_v24  ;;  %v3903_v11 = vrot.slane %v3896_v59, %v8219_v24 }
 0x3dc   : > { %3349 = vst.msk [vmem:[#allocation3 + $0x7] ss:$8 sm:$0x3] %vm9118_vm14, %v9762_v42  ;;  %3493 = vst.msk [vmem:[#allocation3 + $0x17] ss:$8 sm:$0x3] %vm9118_vm14, %v9765_v33  ;;  %v3726_v49 = vsel %vm2277_vm11, %v3723_v57, %v3725_v35  ;;  %v3727_v36 = vsel %vm2277_vm11, %v3725_v35, %v3723_v57  ;;  %v3749_v56 = vpop.permute.xlu1 %3748  ;;  %v3692_v42 = vrot.slane %v9612_v4, %v8219_v24 }
 0x3dd   : > { %v3730_v10 = vcombine.low %v3726_v49, %v3727_v36  ;;  %v3914_v61 = vcombine.low %v3727_v36, %v3726_v49  ;;  %v3718_v59 = vrot.slane %v3711_v21, %v8219_v24  ;;  %v3910_v60 = vrot.slane %v3903_v11, %v8219_v24 }
 0x3df   : > { %v3737_v33 = vrot.slane %v3730_v10, %v8219_v24  ;;  %v3921_v45 = vrot.slane %v3914_v61, %v8219_v24  ;;  %v3751_v25 = vpop.permute.xlu0 %3750 }
 0x3e0   : > { %v3752_v57 = vsel %vm2305_vm7, %v3749_v56, %v3751_v25  ;;  %v3753_v35 = vsel %vm2305_vm7, %v3751_v25, %v3749_v56  ;;  %v3775_v49 = vpop.permute.xlu1 %3774 }
 0x3e1   : > { %v3744_v4 = vrot.slane %v3737_v33, %v8219_v24  ;;  %v3928_v53 = vrot.slane %v3921_v45, %v8219_v24  ;;  %v3756_v36 = vcombine.low %v3752_v57, %v3753_v35  ;;  %v3932_v10 = vcombine.low %v3753_v35, %v3752_v57 }
 0x3e3   : > { %v9793_v22 = vld [vmem:[#allocation3] sm:$0xff]  ;;  %v9795_v61 = vld [vmem:[#allocation3 + $0x10] sm:$0xff]  ;;  %v3763_v25 = vrot.slane %v3756_v36, %v8219_v24  ;;  %v3939_v33 = vrot.slane %v3932_v10, %v8219_v24 }
 0x3e4   : > { %3694 = vst.msk [vmem:[#allocation3] ss:$8 sm:$0x3] %vm9118_vm14, %v3692_v42  ;;  %3894 = vst.msk [vmem:[#allocation3 + $0x10] ss:$8 sm:$0x3] %vm9118_vm14, %v3892_v34  ;;  %v3777_v42 = vpop.permute.xlu0 %3776  ;;  %v3801_v11 = vpop.permute.xlu1 %3800 }
 0x3e5   : > { %3720 = vst.msk [vmem:[#allocation3 + $0x1] ss:$8 sm:$0x3] %vm9118_vm14, %v3718_v59  ;;  %3912 = vst.msk [vmem:[#allocation3 + $0x11] ss:$8 sm:$0x3] %vm9118_vm14, %v3910_v60  ;;  %v3778_v34 = vsel %vm2333_vm1, %v3775_v49, %v3777_v42  ;;  %v3779_v21 = vsel %vm2333_vm1, %v3777_v42, %v3775_v49  ;;  %v3770_v60 = vrot.slane %v3763_v25, %v8219_v24 }
 0x3e6   : > { %3746 = vst.msk [vmem:[#allocation3 + $0x2] ss:$8 sm:$0x3] %vm9118_vm14, %v3744_v4  ;;  %3930 = vst.msk [vmem:[#allocation3 + $0x12] ss:$8 sm:$0x3] %vm9118_vm14, %v3928_v53  ;;  %v3946_v56 = vrot.slane %v3939_v33, %v8219_v24  ;;  %v3782_v45 = vcombine.low %v3778_v34, %v3779_v21  ;;  %v3950_v59 = vcombine.low %v3779_v21, %v3778_v34 }
 0x3e7   : > { %3772 = vst.msk [vmem:[#allocation3 + $0x3] ss:$8 sm:$0x3] %vm9118_vm14, %v3770_v60 }
 0x3e8   : > { %3948 = vst.msk [vmem:[#allocation3 + $0x13] ss:$8 sm:$0x3] %vm9118_vm14, %v3946_v56  ;;  %v3789_v57 = vrot.slane %v3782_v45, %v8219_v24  ;;  %v3957_v35 = vrot.slane %v3950_v59, %v8219_v24  ;;  %v3803_v4 = vpop.permute.xlu0 %3802  ;;  %v3827_v36 = vpop.permute.xlu1 %3826 }
 0x3e9   : > { %v3804_v49 = vsel %vm2361_vm0, %v3801_v11, %v3803_v4  ;;  %v3805_v53 = vsel %vm2361_vm0, %v3803_v4, %v3801_v11 }
 0x3ea   : > { %v3796_v10 = vrot.slane %v3789_v57, %v8219_v24  ;;  %v3964_v25 = vrot.slane %v3957_v35, %v8219_v24  ;;  %v3808_v33 = vcombine.low %v3804_v49, %v3805_v53  ;;  %v3968_v42 = vcombine.low %v3805_v53, %v3804_v49 }
 0x3ec   : > { %3798 = vst.msk [vmem:[#allocation3 + $0x4] ss:$8 sm:$0x3] %vm9118_vm14, %v3796_v10  ;;  %3966 = vst.msk [vmem:[#allocation3 + $0x14] ss:$8 sm:$0x3] %vm9118_vm14, %v3964_v25  ;;  %v3815_v34 = vrot.slane %v3808_v33, %v8219_v24  ;;  %v3975_v21 = vrot.slane %v3968_v42, %v8219_v24  ;;  %v3829_v60 = vpop.permute.xlu0 %3828  ;;  %v3853_v45 = vpop.permute.xlu1 %3852 }
 0x3ed   : > { %v3830_v11 = vsel %vm2389_vm13, %v3827_v36, %v3829_v60  ;;  %v3831_v56 = vsel %vm2389_vm13, %v3829_v60, %v3827_v36 }
 0x3ee   : > { %v3822_v59 = vrot.slane %v3815_v34, %v8219_v24  ;;  %v3982_v57 = vrot.slane %v3975_v21, %v8219_v24  ;;  %v3834_v35 = vcombine.low %v3830_v11, %v3831_v56  ;;  %v3986_v4 = vcombine.low %v3831_v56, %v3830_v11 }
 0x3ef   : > { %v4758_v11 = vcombine.low %v8114_v14, %v8112_v13 }
 0x3f0   : > { %3824 = vst.msk [vmem:[#allocation3 + $0x5] ss:$8 sm:$0x3] %vm9118_vm14, %v3822_v59  ;;  %3984 = vst.msk [vmem:[#allocation3 + $0x15] ss:$8 sm:$0x3] %vm9118_vm14, %v3982_v57  ;;  %v3841_v49 = vrot.slane %v3834_v35, %v8219_v24  ;;  %v3993_v53 = vrot.slane %v3986_v4, %v8219_v24  ;;  %v3855_v10 = vpop.permute.xlu0 %3854  ;;  %v4038_v33 = vpop.permute.xlu1 %4037 }
 0x3f1   : > { %v3856_v36 = vsel %vm1086_vm10, %v3853_v45, %v3855_v10  ;;  %v3857_v25 = vsel %vm1086_vm10, %v3855_v10, %v3853_v45 }
 0x3f2   : > { %v3848_v42 = vrot.slane %v3841_v49, %v8219_v24  ;;  %v4000_v34 = vrot.slane %v3993_v53, %v8219_v24  ;;  %v3860_v21 = vcombine.low %v3856_v36, %v3857_v25  ;;  %v4004_v60 = vcombine.low %v3857_v25, %v3856_v36 }
 0x3f3   : > { %v4765_v25 = vrot.slane %v4758_v11, %v8219_v24 }
 0x3f4   : > { %3850 = vst.msk [vmem:[#allocation3 + $0x6] ss:$8 sm:$0x3] %vm9118_vm14, %v3848_v42  ;;  %4002 = vst.msk [vmem:[#allocation3 + $0x16] ss:$8 sm:$0x3] %vm9118_vm14, %v4000_v34  ;;  %v3867_v56 = vrot.slane %v3860_v21, %v8219_v24  ;;  %v4011_v45 = vrot.slane %v4004_v60, %v8219_v24  ;;  %v4040_v59 = vpop.permute.xlu0 %4039  ;;  %v4064_v4 = vpop.permute.xlu1 %4063 }
 0x3f5   : > { %v4041_v57 = vsel %vm1331_vm6, %v4038_v33, %v4040_v59  ;;  %v4042_v35 = vsel %vm1331_vm6, %v4040_v59, %v4038_v33 }
 0x3f6   : > { %v3874_v49 = vrot.slane %v3867_v56, %v8219_v24  ;;  %v4018_v53 = vrot.slane %v4011_v45, %v8219_v24  ;;  %v4045_v10 = vcombine.low %v4041_v57, %v4042_v35  ;;  %v4237_v36 = vcombine.low %v4042_v35, %v4041_v57 }
 0x3f7   : > { %v4572_v35 = vrot.slane %v9482_v7, 2 }
 0x3f8   : > { %3876 = vst.msk [vmem:[#allocation3 + $0x7] ss:$8 sm:$0x3] %vm9118_vm14, %v3874_v49  ;;  %4020 = vst.msk [vmem:[#allocation3 + $0x17] ss:$8 sm:$0x3] %vm9118_vm14, %v4018_v53  ;;  %v4052_v42 = vrot.slane %v4045_v10, %v8219_v24  ;;  %v4244_v34 = vrot.slane %v4237_v36, %v8219_v24  ;;  %v4066_v33 = vpop.permute.xlu0 %4065  ;;  %v4090_v56 = vpop.permute.xlu1 %4089  ;;  %v4772_v49 = vrot.slane %v4765_v25, %v8219_v24 }
 0x3f9   : > { %v4067_v21 = vsel %vm2277_vm11, %v4064_v4, %v4066_v33  ;;  %v4068_v60 = vsel %vm2277_vm11, %v4066_v33, %v4064_v4 }
 0x3fa   : > { %v4059_v11 = vrot.slane %v4052_v42, %v8219_v24  ;;  %v4251_v45 = vrot.slane %v4244_v34, %v8219_v24  ;;  %v4071_v59 = vcombine.low %v4067_v21, %v4068_v60  ;;  %v4255_v57 = vcombine.low %v4068_v60, %v4067_v21 }
 0x3fc   : > { %4061 = vst.msk [vmem:[#allocation3 + $0x21] ss:$8 sm:$0x3] %vm9118_vm14, %v4059_v11  ;;  %4253 = vst.msk [vmem:[#allocation3 + $0x31] ss:$8 sm:$0x3] %vm9118_vm14, %v4251_v45  ;;  %v4078_v53 = vrot.slane %v4071_v59, %v8219_v24  ;;  %v4262_v4 = vrot.slane %v4255_v57, %v8219_v24  ;;  %v4092_v10 = vpop.permute.xlu0 %4091  ;;  %v4116_v34 = vpop.permute.xlu1 %4115 }
 0x3fd   : > { %v4093_v36 = vsel %vm2305_vm7, %v4090_v56, %v4092_v10  ;;  %v4094_v42 = vsel %vm2305_vm7, %v4092_v10, %v4090_v56 }
 0x3fe   : > { %v4085_v25 = vrot.slane %v4078_v53, %v8219_v24  ;;  %v4269_v33 = vrot.slane %v4262_v4, %v8219_v24  ;;  %v4097_v21 = vcombine.low %v4093_v36, %v4094_v42  ;;  %v4273_v60 = vcombine.low %v4094_v42, %v4093_v36 }
 0x3ff   : > { %v9894_v11 = vld [vmem:[#allocation3] sm:$0xff]  ;;  %v9896_v45 = vld [vmem:[#allocation3 + $0x10] sm:$0xff] }
 0x400   : > { %4574 = vst.msk [vmem:[#allocation3] ss:$8 sm:$0x3] %vm9118_vm14, %v4572_v35  ;;  %4774 = vst.msk [vmem:[#allocation3 + $0x10] ss:$8 sm:$0x3] %vm9118_vm14, %v4772_v49  ;;  %v4104_v56 = vrot.slane %v4097_v21, %v8219_v24  ;;  %v4280_v59 = vrot.slane %v4273_v60, %v8219_v24  ;;  %v4118_v57 = vpop.permute.xlu0 %4117  ;;  %v4142_v4 = vpop.permute.xlu1 %4141 }
 0x401   : > { %4087 = vst.msk [vmem:[#allocation3 + $0x22] ss:$8 sm:$0x3] %vm9118_vm14, %v4085_v25  ;;  %4271 = vst.msk [vmem:[#allocation3 + $0x32] ss:$8 sm:$0x3] %vm9118_vm14, %v4269_v33  ;;  %v4119_v53 = vsel %vm2333_vm1, %v4116_v34, %v4118_v57  ;;  %v4120_v35 = vsel %vm2333_vm1, %v4118_v57, %v4116_v34 }
 0x402   : > { %v4111_v49 = vrot.slane %v4104_v56, %v8219_v24  ;;  %v4287_v10 = vrot.slane %v4280_v59, %v8219_v24  ;;  %v4123_v36 = vcombine.low %v4119_v53, %v4120_v35  ;;  %v4291_v42 = vcombine.low %v4120_v35, %v4119_v53 }
 0x404   : > { %4113 = vst.msk [vmem:[#allocation3 + $0x23] ss:$8 sm:$0x3] %vm9118_vm14, %v4111_v49  ;;  %4289 = vst.msk [vmem:[#allocation3 + $0x33] ss:$8 sm:$0x3] %vm9118_vm14, %v4287_v10  ;;  %v4130_v25 = vrot.slane %v4123_v36, %v8219_v24  ;;  %v4298_v33 = vrot.slane %v4291_v42, %v8219_v24  ;;  %v4144_v21 = vpop.permute.xlu0 %4143  ;;  %v4168_v35 = vpop.permute.xlu1 %4167 }
 0x405   : > { %v4145_v34 = vsel %vm2361_vm0, %v4142_v4, %v4144_v21  ;;  %v4146_v60 = vsel %vm2361_vm0, %v4144_v21, %v4142_v4 }
 0x406   : > { %v4137_v56 = vrot.slane %v4130_v25, %v8219_v24  ;;  %v4305_v59 = vrot.slane %v4298_v33, %v8219_v24  ;;  %v4149_v57 = vcombine.low %v4145_v34, %v4146_v60  ;;  %v4309_v53 = vcombine.low %v4146_v60, %v4145_v34 }
 0x408   : > { %4139 = vst.msk [vmem:[#allocation3 + $0x24] ss:$8 sm:$0x3] %vm9118_vm14, %v4137_v56  ;;  %4307 = vst.msk [vmem:[#allocation3 + $0x34] ss:$8 sm:$0x3] %vm9118_vm14, %v4305_v59  ;;  %v4156_v49 = vrot.slane %v4149_v57, %v8219_v24  ;;  %v4316_v10 = vrot.slane %v4309_v53, %v8219_v24  ;;  %v4170_v36 = vpop.permute.xlu0 %4169  ;;  %v4194_v59 = vpop.permute.xlu1 %4193 }
 0x409   : > { %v4171_v4 = vsel %vm2389_vm13, %v4168_v35, %v4170_v36  ;;  %v4172_v42 = vsel %vm2389_vm13, %v4170_v36, %v4168_v35 }
 0x40a   : > { %v4163_v25 = vrot.slane %v4156_v49, %v8219_v24  ;;  %v4323_v33 = vrot.slane %v4316_v10, %v8219_v24  ;;  %v4175_v21 = vcombine.low %v4171_v4, %v4172_v42  ;;  %v4327_v34 = vcombine.low %v4172_v42, %v4171_v4 }
 0x40c   : > { %4165 = vst.msk [vmem:[#allocation3 + $0x25] ss:$8 sm:$0x3] %vm9118_vm14, %v4163_v25  ;;  %4325 = vst.msk [vmem:[#allocation3 + $0x35] ss:$8 sm:$0x3] %vm9118_vm14, %v4323_v33  ;;  %v4182_v60 = vrot.slane %v4175_v21, %v8219_v24  ;;  %v4334_v56 = vrot.slane %v4327_v34, %v8219_v24  ;;  %v4196_v57 = vpop.permute.xlu0 %4195  ;;  %v9963_v34 = vcvt.s32.f32 %v8154_v46 }
 0x40d   : > { %v4197_v53 = vsel %vm1086_vm10, %v4194_v59, %v4196_v57  ;;  %v4198_v35 = vsel %vm1086_vm10, %v4196_v57, %v4194_v59 }
 0x40e   : > { %v4189_v49 = vrot.slane %v4182_v60, %v8219_v24  ;;  %v4341_v10 = vrot.slane %v4334_v56, %v8219_v24  ;;  %v4201_v36 = vcombine.low %v4197_v53, %v4198_v35  ;;  %v4345_v4 = vcombine.low %v4198_v35, %v4197_v53 }
 0x40f   : > { %v9966_v60 = vcvt.s32.f32 %v8164_v50  ;;  %v2164_v56 = vadd.f32 %v9082_v39, %v9963_v34 }
 0x410   : > { %4191 = vst.msk [vmem:[#allocation3 + $0x26] ss:$8 sm:$0x3] %vm9118_vm14, %v4189_v49  ;;  %4343 = vst.msk [vmem:[#allocation3 + $0x36] ss:$8 sm:$0x3] %vm9118_vm14, %v4341_v10  ;;  %v4208_v42 = vrot.slane %v4201_v36, %v8219_v24  ;;  %v4352_v25 = vrot.slane %v4345_v4, %v8219_v24 }
 0x411   : > { %11488 = vst [vmem:[#allocation55_spill] sm:$0xff] %v9966_v60  ;;  %v2165_v59 = vadd.f32 %v9087_v48, %v9966_v60  ;;  %v2168_v57 = vmax.f32 %v2164_v56, 0.0 }
 0x412   : > { %v4215_v33 = vrot.slane %v4208_v42, %v8219_v24  ;;  %v4359_v21 = vrot.slane %v4352_v25, %v8219_v24 }
 0x413   : > { %v2169_v53 = vmax.f32 %v2165_v59, 0.0  ;;  %v2170_v35 = vmin.f32 %v2168_v57, 15.0 }
 0x414   : > { %4217 = vst.msk [vmem:[#allocation3 + $0x27] ss:$8 sm:$0x3] %vm9118_vm14, %v4215_v33  ;;  %4361 = vst.msk [vmem:[#allocation3 + $0x37] ss:$8 sm:$0x3] %vm9118_vm14, %v4359_v21 }
 0x415   : > { %v2171_v49 = vmin.f32 %v2169_v53, 15.0  ;;  %v2179_v10 = vrot.slane %v2170_v35, %v8088_v3 }
 0x417   : > { %v2183_v36 = vrot.slane %v2171_v49, %v8088_v3  ;;  %v2186_v46 = vsub.f32 %v9115_v38, %v2179_v10  ;;  %v2184_v50 = vsub.f32 %v9113_v17, %v2179_v10 }
 0x419   : > { %v2187_v42 = vsub.f32 %v9115_v38, %v2183_v36  ;;  %v2185_v25 = vsub.f32 %v9113_v17, %v2183_v36  ;;  %v2190_v33 = vand.u32 2147483647, %v2186_v46  ;;  %v2188_v7 = vand.u32 2147483647, %v2184_v50 }
 0x41b   : > { %v2191_v56 = vand.u32 2147483647, %v2187_v42  ;;  %v2189_v59 = vand.u32 2147483647, %v2185_v25  ;;  %v2194_v57 = vsub.f32 1.0, %v2190_v33  ;;  %v2192_v12 = vsub.f32 1.0, %v2188_v7 }
 0x41d   : > { %v2195_v35 = vsub.f32 1.0, %v2191_v56  ;;  %v2193_v63 = vsub.f32 1.0, %v2189_v59  ;;  %v9978_v49 = vmax.f32 %v2194_v57, 0.0  ;;  %v9980_v2 = vmax.f32 %v2192_v12, 0.0 }
 0x41f   : > { %11489 = vst [vmem:[#allocation56_spill] sm:$0xff] %v9978_v49  ;;  %11490 = vst [vmem:[#allocation57_spill] sm:$0xff] %v9980_v2  ;;  %v9983_v55 = vmax.f32 %v2195_v35, 0.0  ;;  %v9986_v46 = vmax.f32 %v2193_v63, 0.0 }
 0x421   : > { %11491 = vst [vmem:[#allocation58_spill] sm:$0xff] %v9983_v55  ;;  %11492 = vst [vmem:[#allocation59_spill] sm:$0xff] %v9986_v46 }
 0x46c   : > { %v3032_v4 = vpop.f32.mrf.mxu0 }
 0x46d   : > { %v3055_v36 = vmul.f32 %v3032_v4, %v9980_v2 }
 0x46e   : > { %v3034_v21 = vpop.f32.mrf.mxu0 }
 0x46f   : > { %v3056_v42 = vmul.f32 %v3034_v21, %v9986_v46 }
 0x470   : > { %v3038_v53 = vpop.f32.mrf.mxu0 }
 0x471   : > { %v3057_v10 = vmul.f32 %v3038_v53, %v9978_v49 }
 0x472   : > { %v3040_v43 = vpop.f32.mrf.mxu0 }
 0x473   : > { %v3058_v50 = vmul.f32 %v3040_v43, %v9983_v55  ;;  %v3059_v7 = vadd.f32 %v3057_v10, %v3055_v36 }
 0x475   : > { %v3066_v25 = vadd.f32 %v3058_v50, %v3056_v42  ;;  %v3060_v33 = vrot.slane %v3059_v7, 4 }
 0x477   : > { %v3067_v56 = vrot.slane %v3066_v25, 4  ;;  %v3061_v59 = vadd.f32 %v3060_v33, %v3059_v7 }
 0x479   : > { %v3068_v57 = vadd.f32 %v3067_v56, %v3066_v25  ;;  %v3062_v0 = vrot.slane %v3061_v59, 2 }
 0x47b   : > { %v3069_v16 = vrot.slane %v3068_v57, 2  ;;  %v3063_v10 = vadd.f32 %v3062_v0, %v3061_v59  ;;  %v3619_v0 = vadd.f32 %v9255_v41, %v9085_v44 }
 0x47d   : > { %v3070_v42 = vadd.f32 %v3069_v16, %v3068_v57  ;;  %v3064_v33 = vrot.slane %v3063_v10, 1  ;;  %v3618_v16 = vadd.f32 %v9249_v27, %v9080_v51 }
 0x487   : > { %v3044_v12 = vpop.f32.mrf.mxu0 }
 0x488   : > { %v3050_v15 = vpop.f32.mrf.mxu1  ;;  %v3073_v53 = vmul.f32 %v3044_v12, %v9980_v2  ;;  %v3071_v12 = vrot.slane %v3070_v42, 1 }
 0x489   : > { %v3075_v35 = vmul.f32 %v3050_v15, %v9978_v49  ;;  %v3046_v4 = vpop.f32.mrf.mxu0  ;;  %v3065_v49 = vadd.f32 %v3064_v33, %v3063_v10  ;;  %v3624_v10 = vmax.f32 %v3618_v16, 0.0 }
 0x48a   : > { %v3052_v63 = vpop.f32.mrf.mxu1  ;;  %v3074_v43 = vmul.f32 %v3046_v4, %v9986_v46 }
 0x48b   : > { %v3077_v5 = vadd.f32 %v3075_v35, %v3073_v53  ;;  %v3076_v21 = vmul.f32 %v3052_v63, %v9983_v55  ;;  %v3072_v53 = vadd.f32 %v3071_v12, %v3070_v42  ;;  %v3626_v42 = vmin.f32 %v3624_v10, 15.0 }
 0x48d   : > { %v3078_v36 = vrot.slane %v3077_v5, 4  ;;  %v3084_v50 = vadd.f32 %v3076_v21, %v3074_v43  ;;  %v3092_v63 = vmul.f32 %v8098_v8, %v3072_v53  ;;  %v3655_v12 = vrot.slane %v3626_v42, %v8101_v9 }
 0x48f   : > { %v3079_v7 = vadd.f32 %v3078_v36, %v3077_v5  ;;  %v3085_v25 = vrot.slane %v3084_v50, 4  ;;  %v3091_v5 = vmul.f32 %v8098_v8, %v3065_v49 }
 0x491   : > { %v3080_v56 = vrot.slane %v3079_v7, 2  ;;  %v3086_v37 = vadd.f32 %v3085_v25, %v3084_v50 }
 0x493   : > { %v3081_v2 = vadd.f32 %v3080_v56, %v3079_v7  ;;  %v3087_v15 = vrot.slane %v3086_v37, 2 }
 0x495   : > { %v3082_v1 = vrot.slane %v3081_v2, 1  ;;  %v3088_v30 = vadd.f32 %v3087_v15, %v3086_v37  ;;  %v3625_v37 = vmax.f32 %v3619_v0, 0.0 }
 0x497   : > { %v3083_v35 = vadd.f32 %v3082_v1, %v3081_v2  ;;  %v3089_v4 = vrot.slane %v3088_v30, 1  ;;  %v3627_v50 = vmin.f32 %v3625_v37, 15.0  ;;  %v3660_v37 = vsub.f32 %v9113_v17, %v3655_v12 }
 0x499   : > { %v3093_v59 = vmul.f32 %v8127_v20, %v3083_v35  ;;  %v3090_v57 = vadd.f32 %v3089_v4, %v3088_v30  ;;  %v3659_v56 = vrot.slane %v3627_v50, %v8101_v9 }
 0x49b   : > { %v3095_v43 = vadd.f32 %v3093_v59, %v3091_v5  ;;  %v3094_v21 = vmul.f32 %v8127_v20, %v3090_v57  ;;  %v3663_v16 = vsub.f32 %v9115_v38, %v3659_v56  ;;  %v3662_v5 = vsub.f32 %v9115_v38, %v3655_v12 }
 0x49d   : > { %v10003_v1 = vadd.f32 %v3095_v43, %v9082_v39  ;;  %v3096_v2 = vadd.f32 %v3094_v21, %v3092_v63  ;;  %v3661_v43 = vsub.f32 %v9113_v17, %v3659_v56  ;;  %v3666_v42 = vand.u32 2147483647, %v3662_v5 }
 0x49f   : > { %v10006_v36 = vadd.f32 %v3096_v2, %v9087_v48  ;;  %v3101_v49 = vadd.f32 %v10003_v1, %v9080_v51  ;;  %v3670_v39 = vsub.f32 1.0, %v3666_v42 }
 0x4a1   : > { %v3102_v30 = vadd.f32 %v10006_v36, %v9085_v44  ;;  %v3107_v7 = vmax.f32 %v3101_v49, 0.0  ;;  %v3667_v49 = vand.u32 2147483647, %v3663_v16  ;;  %v3674_v16 = vmax.f32 %v3670_v39, 0.0  ;;  %v4365_v39 = vld [vmem:[#allocation3 + $0x20] sm:$0xff] }
 0x4a3   : > { %v3108_v25 = vmax.f32 %v3102_v30, 0.0  ;;  %v3109_v33 = vmin.f32 %v3107_v7, 15.0  ;;  %v3671_v48 = vsub.f32 1.0, %v3667_v49 }
 0x4a5   : > { %v3110_v15 = vmin.f32 %v3108_v25, 15.0  ;;  %v3138_v53 = vrot.slane %v3109_v33, %v8101_v9  ;;  %v3665_v25 = vand.u32 2147483647, %v3661_v43 }
 0x4a7   : > { %v3142_v35 = vrot.slane %v3110_v15, %v8101_v9  ;;  %v3145_v4 = vsub.f32 %v9115_v38, %v3138_v53  ;;  %v3143_v0 = vsub.f32 %v9113_v17, %v3138_v53  ;;  %v3664_v15 = vand.u32 2147483647, %v3660_v37 }
 0x4a8   : > { %v3669_v56 = vsub.f32 1.0, %v3665_v25 }
 0x4a9   : > { %v3146_v59 = vsub.f32 %v9115_v38, %v3142_v35  ;;  %v3149_v57 = vand.u32 2147483647, %v3145_v4  ;;  %v3144_v63 = vsub.f32 %v9113_v17, %v3142_v35  ;;  %v3147_v21 = vand.u32 2147483647, %v3143_v0 }
 0x4aa   : > { %v3668_v12 = vsub.f32 1.0, %v3664_v15  ;;  %v3673_v5 = vmax.f32 %v3669_v56, 0.0 }
 0x4ab   : > { %v3150_v10 = vand.u32 2147483647, %v3146_v59  ;;  %v3148_v2 = vand.u32 2147483647, %v3144_v63  ;;  %v3153_v50 = vsub.f32 1.0, %v3149_v57  ;;  %v3151_v33 = vsub.f32 1.0, %v3147_v21 }
 0x4ac   : > { %v3675_v59 = vmax.f32 %v3671_v48, 0.0  ;;  %v3672_v57 = vmax.f32 %v3668_v12, 0.0  ;;  %v4366_v48 = vld [vmem:[#allocation3 + $0x30] sm:$0xff] }
 0x4ad   : > { %v3154_v30 = vsub.f32 1.0, %v3150_v10  ;;  %v3152_v7 = vsub.f32 1.0, %v3148_v2  ;;  %v3157_v4 = vmax.f32 %v3153_v50, 0.0  ;;  %v3155_v0 = vmax.f32 %v3151_v33, 0.0 }
 0x4af   : > { %v3158_v53 = vmax.f32 %v3154_v30, 0.0  ;;  %v3156_v35 = vmax.f32 %v3152_v7, 0.0 }
 0x4b1   : > { %3531 = vmatprep.subr.mxu1 %v3158_v53 }
 0x4b2   : > { %3532 = vmatpush1.msra.mxu1 %v3157_v4 }
 0x4b3   : > { %3533 = vmatprep.subr.mxu1 %v3156_v35 }
 0x4b4   : > { %3534 = vmatpush1.msra.mxu1 %v3155_v0 }
 0x4b5   : > { %7902 = vmatmul.mubr.msk.f32.vlgmr.msra.gmra.mxu1 %vm2953_vm3, %v9793_v22  ;;  %4407 = vmatprep.subr.mxu1 %v3675_v59  ;;  %v4579_v22 = vpop.permute.xlu0 %4578 }
 0x4b6   : > { %4408 = vmatpush1.msra.mxu1 %v3674_v16  ;;  %3573 = vmatprep.mubr.f32.mxu1 %v11477_v62 }
 0x4b7   : > { %4409 = vmatprep.subr.mxu1 %v3673_v5 }
 0x4b8   : > { %4410 = vmatpush1.msra.mxu1 %v3672_v57 }
 0x4b9   : > { %7903 = vmatmul.mubr.msk.f32.gmra.mxu1 %vm2953_vm3, %v9795_v61  ;;  %v4577_v61 = vpop.permute.xlu1 %4576  ;;  %v4605_v49 = vpop.permute.xlu0 %4604 }
 0x4ba   : > { %4443 = vmatprep.mubr.f32.mxu1 %v11477_v62 }
 0x4bd   : > { %7904 = vmatmul.mubr.msk.f32.vlgmr.msra.gmra.mxu1 %vm2953_vm3, %v9894_v11  ;;  %v4580_v11 = vsel %vm1331_vm6, %v4577_v61, %v4579_v22  ;;  %v4603_v50 = vpop.permute.xlu1 %4602  ;;  %v4631_v42 = vpop.permute.xlu0 %4630 }
 0x4be   : > { %4449 = vmatprep.mubr.f32.mxu1 %v11477_v62  ;;  %v4606_v7 = vsel %vm2277_vm11, %v4603_v50, %v4605_v49  ;;  %v4607_v25 = vsel %vm2277_vm11, %v4605_v49, %v4603_v50 }
 0x4bf   : > { %v4610_v53 = vcombine.low %v4606_v7, %v4607_v25  ;;  %v4794_v4 = vcombine.low %v4607_v25, %v4606_v7 }
 0x4c1   : > { %7905 = vmatmul.mubr.msk.f32.gmra.mxu1 %vm2953_vm3, %v9896_v45  ;;  %v4581_v45 = vsel %vm1331_vm6, %v4579_v22, %v4577_v61  ;;  %v4629_v30 = vpop.permute.xlu1 %4628  ;;  %v4657_v33 = vpop.permute.xlu0 %4656  ;;  %v4617_v35 = vrot.slane %v4610_v53, %v8219_v24  ;;  %v4801_v56 = vrot.slane %v4794_v4, %v8219_v24 }
 0x4c2   : > { %4455 = vmatprep.mubr.f32.mxu1 %v11477_v62  ;;  %v4584_v63 = vcombine.low %v4580_v11, %v4581_v45  ;;  %v4776_v43 = vcombine.low %v4581_v45, %v4580_v11  ;;  %v4632_v5 = vsel %vm2305_vm7, %v4629_v30, %v4631_v42  ;;  %v4633_v57 = vsel %vm2305_vm7, %v4631_v42, %v4629_v30 }
 0x4c3   : > { %v4624_v59 = vrot.slane %v4617_v35, %v8219_v24  ;;  %v4808_v16 = vrot.slane %v4801_v56, %v8219_v24  ;;  %v4636_v22 = vcombine.low %v4632_v5, %v4633_v57  ;;  %v4812_v61 = vcombine.low %v4633_v57, %v4632_v5 }
 0x4c4   : > { %v4591_v21 = vrot.slane %v4584_v63, %v8219_v24  ;;  %v4783_v37 = vrot.slane %v4776_v43, %v8219_v24 }
 0x4c5   : > { %7906 = vmatmul.mubr.msk.f32.gmra.mxu1 %vm2953_vm3, %v4365_v39  ;;  %v4655_v15 = vpop.permute.xlu1 %4654  ;;  %v4683_v0 = vpop.permute.xlu0 %4682  ;;  %4626 = vst.msk [vmem:[#allocation3 + $0x2] ss:$8 sm:$0x3] %vm9118_vm14, %v4624_v59  ;;  %4810 = vst.msk [vmem:[#allocation3 + $0x12] ss:$8 sm:$0x3] %vm9118_vm14, %v4808_v16  ;;  %v4643_v63 = vrot.slane %v4636_v22, %v8219_v24  ;;  %v4819_v43 = vrot.slane %v4812_v61, %v8219_v24 }
 0x4c6   : > { %4461 = vmatprep.mubr.f32.mxu1 %v11477_v62  ;;  %v4598_v10 = vrot.slane %v4591_v21, %v8219_v24  ;;  %v4790_v2 = vrot.slane %v4783_v37, %v8219_v24  ;;  %v4658_v11 = vsel %vm2333_vm1, %v4655_v15, %v4657_v33  ;;  %v4659_v45 = vsel %vm2333_vm1, %v4657_v33, %v4655_v15 }
 0x4c7   : > { %v4662_v21 = vcombine.low %v4658_v11, %v4659_v45  ;;  %v4830_v37 = vcombine.low %v4659_v45, %v4658_v11  ;;  %v4650_v49 = vrot.slane %v4643_v63, %v8219_v24  ;;  %v4826_v50 = vrot.slane %v4819_v43, %v8219_v24 }
 0x4c8   : > { %4600 = vst.msk [vmem:[#allocation3 + $0x1] ss:$8 sm:$0x3] %vm9118_vm14, %v4598_v10  ;;  %4792 = vst.msk [vmem:[#allocation3 + $0x11] ss:$8 sm:$0x3] %vm9118_vm14, %v4790_v2 }
 0x4c9   : > { %7907 = vmatmul.mubr.msk.f32.gmra.mxu1 %vm2953_vm3, %v4366_v48  ;;  %v4681_v12 = vpop.permute.xlu1 %4680  ;;  %v4709_v39 = vpop.permute.xlu0 %4708  ;;  %v4669_v42 = vrot.slane %v4662_v21, %v8219_v24  ;;  %v4837_v30 = vrot.slane %v4830_v37, %v8219_v24  ;;  %4652 = vst.msk [vmem:[#allocation3 + $0x3] ss:$8 sm:$0x3] %vm9118_vm14, %v4650_v49  ;;  %4828 = vst.msk [vmem:[#allocation3 + $0x13] ss:$8 sm:$0x3] %vm9118_vm14, %v4826_v50  ;;  %v3099_v49 = vadd.f32 %v10003_v1, %v9963_v34 }
 0x4ca   : > { %5295 = vmatprep.mubr.f32.mxu1 %v11477_v62  ;;  %v4684_v10 = vsel %vm2361_vm0, %v4681_v12, %v4683_v0  ;;  %v4685_v2 = vsel %vm2361_vm0, %v4683_v0, %v4681_v12  ;;  %v3100_v50 = vadd.f32 %v10006_v36, %v9966_v60 }
 0x4cb   : > { %v4688_v33 = vcombine.low %v4684_v10, %v4685_v2  ;;  %v4848_v15 = vcombine.low %v4685_v2, %v4684_v10  ;;  %v4676_v35 = vrot.slane %v4669_v42, %v8219_v24  ;;  %v4844_v56 = vrot.slane %v4837_v30, %v8219_v24 }
 0x4cc   : > { %v3103_v42 = vmax.f32 %v3099_v49, 0.0  ;;  %v3104_v30 = vmax.f32 %v3100_v50, 0.0 }
 0x4cd   : > { %v4707_v48 = vpop.permute.xlu1 %4706  ;;  %v4735_v7 = vpop.permute.xlu0 %4734  ;;  %v4695_v59 = vrot.slane %v4688_v33, %v8219_v24  ;;  %v4855_v16 = vrot.slane %v4848_v15, %v8219_v24  ;;  %4678 = vst.msk [vmem:[#allocation3 + $0x4] ss:$8 sm:$0x3] %vm9118_vm14, %v4676_v35  ;;  %4846 = vst.msk [vmem:[#allocation3 + $0x14] ss:$8 sm:$0x3] %vm9118_vm14, %v4844_v56  ;;  %v3616_v15 = vadd.f32 %v9249_v27, %v9963_v34 }
 0x4ce   : > { %v4710_v53 = vsel %vm2389_vm13, %v4707_v48, %v4709_v39  ;;  %v4711_v4 = vsel %vm2389_vm13, %v4709_v39, %v4707_v48 }
 0x4cf   : > { %v4714_v0 = vcombine.low %v4710_v53, %v4711_v4  ;;  %v4866_v12 = vcombine.low %v4711_v4, %v4710_v53  ;;  %v4702_v11 = vrot.slane %v4695_v59, %v8219_v24  ;;  %v4862_v45 = vrot.slane %v4855_v16, %v8219_v24 }
 0x4d0   : > { %v3617_v53 = vadd.f32 %v9255_v41, %v9966_v60  ;;  %v3620_v1 = vmax.f32 %v3616_v15, 0.0 }
 0x4d1   : > { %v4733_v25 = vpop.permute.xlu1 %4732  ;;  %v4721_v39 = vrot.slane %v4714_v0, %v8219_v24  ;;  %v4873_v48 = vrot.slane %v4866_v12, %v8219_v24  ;;  %4704 = vst.msk [vmem:[#allocation3 + $0x5] ss:$8 sm:$0x3] %vm9118_vm14, %v4702_v11  ;;  %4864 = vst.msk [vmem:[#allocation3 + $0x15] ss:$8 sm:$0x3] %vm9118_vm14, %v4862_v45 }
 0x4d2   : > { %v4736_v5 = vsel %vm1086_vm10, %v4733_v25, %v4735_v7  ;;  %v4737_v57 = vsel %vm1086_vm10, %v4735_v7, %v4733_v25  ;;  %v3105_v7 = vmin.f32 %v3103_v42, 15.0  ;;  %v3106_v25 = vmin.f32 %v3104_v30, 15.0 }
 0x4d3   : > { %v4740_v22 = vcombine.low %v4736_v5, %v4737_v57  ;;  %v4884_v61 = vcombine.low %v4737_v57, %v4736_v5  ;;  %v4728_v63 = vrot.slane %v4721_v39, %v8219_v24  ;;  %v4880_v43 = vrot.slane %v4873_v48, %v8219_v24 }
 0x4d4   : > { %v3114_v33 = vrot.slane %v3105_v7, %v8088_v3  ;;  %v3118_v4 = vrot.slane %v3106_v25, %v8088_v3  ;;  %v3621_v56 = vmax.f32 %v3617_v53, 0.0  ;;  %v3622_v59 = vmin.f32 %v3620_v1, 15.0 }
 0x4d5   : > { %v4747_v21 = vrot.slane %v4740_v22, %v8219_v24  ;;  %v4891_v37 = vrot.slane %v4884_v61, %v8219_v24  ;;  %4730 = vst.msk [vmem:[#allocation3 + $0x6] ss:$8 sm:$0x3] %vm9118_vm14, %v4728_v63  ;;  %4882 = vst.msk [vmem:[#allocation3 + $0x16] ss:$8 sm:$0x3] %vm9118_vm14, %v4880_v43 }
 0x4d6   : > { %v3119_v35 = vsub.f32 %v9113_v17, %v3114_v33  ;;  %v3120_v36 = vsub.f32 %v9113_v17, %v3118_v4  ;;  %v3121_v12 = vsub.f32 %v9115_v38, %v3114_v33  ;;  %v3623_v16 = vmin.f32 %v3621_v56, 15.0 }
 0x4d7   : > { %v4754_v10 = vrot.slane %v4747_v21, %v8219_v24  ;;  %v4898_v2 = vrot.slane %v4891_v37, %v8219_v24  ;;  %v3122_v57 = vsub.f32 %v9115_v38, %v3118_v4  ;;  %v3631_v22 = vrot.slane %v3622_v59, %v8088_v3 }
 0x4d8   : > { %v3123_v0 = vand.u32 2147483647, %v3119_v35  ;;  %v3124_v5 = vand.u32 2147483647, %v3120_v36  ;;  %v3125_v48 = vand.u32 2147483647, %v3121_v12  ;;  %v3635_v61 = vrot.slane %v3623_v16, %v8088_v3 }
 0x4d9   : > { %4756 = vst.msk [vmem:[#allocation3 + $0x7] ss:$8 sm:$0x3] %vm9118_vm14, %v4754_v10  ;;  %4900 = vst.msk [vmem:[#allocation3 + $0x17] ss:$8 sm:$0x3] %vm9118_vm14, %v4898_v2  ;;  %v3636_v21 = vsub.f32 %v9113_v17, %v3631_v22  ;;  %v3638_v37 = vsub.f32 %v9115_v38, %v3631_v22 }
 0x4da   : > { %v3127_v39 = vsub.f32 1.0, %v3123_v0  ;;  %v3128_v11 = vsub.f32 1.0, %v3124_v5  ;;  %v3126_v45 = vand.u32 2147483647, %v3122_v57  ;;  %v3129_v43 = vsub.f32 1.0, %v3125_v48 }
 0x4db   : > { %v3637_v2 = vsub.f32 %v9113_v17, %v3635_v61  ;;  %v3639_v30 = vsub.f32 %v9115_v38, %v3635_v61  ;;  %v3640_v15 = vand.u32 2147483647, %v3636_v21  ;;  %v3642_v53 = vand.u32 2147483647, %v3638_v37 }
 0x4dc   : > { %v3131_v63 = vmax.f32 %v3127_v39, 0.0  ;;  %v3132_v50 = vmax.f32 %v3128_v11, 0.0  ;;  %v3130_v42 = vsub.f32 1.0, %v3126_v45  ;;  %v3133_v33 = vmax.f32 %v3129_v43, 0.0 }
 0x4dd   : > { %v3641_v56 = vand.u32 2147483647, %v3637_v2  ;;  %v3643_v36 = vand.u32 2147483647, %v3639_v30  ;;  %v3644_v16 = vsub.f32 1.0, %v3640_v15  ;;  %v3646_v5 = vsub.f32 1.0, %v3642_v53 }
 0x4de   : > { %v3134_v1 = vmax.f32 %v3130_v42, 0.0 }
 0x4df   : > { %v3645_v48 = vsub.f32 1.0, %v3641_v56  ;;  %v3647_v22 = vsub.f32 1.0, %v3643_v36  ;;  %v3648_v11 = vmax.f32 %v3644_v16, 0.0  ;;  %v3650_v45 = vmax.f32 %v3646_v5, 0.0 }
 0x4e1   : > { %v3649_v21 = vmax.f32 %v3645_v48, 0.0 }
 0x575   : > { %v3569_v10 = vpop.f32.mrf.mxu1 }
 0x576   : > { %v3580_v49 = vmul.f32 %v3569_v10, %v3131_v63  ;;  %v3651_v10 = vmax.f32 %v3647_v22, 0.0 }
 0x577   : > { %v3571_v7 = vpop.f32.mrf.mxu1 }
 0x578   : > { %v3581_v25 = vmul.f32 %v3571_v7, %v3132_v50 }
 0x579   : > { %v3575_v4 = vpop.f32.mrf.mxu1 }
 0x57a   : > { %v3582_v35 = vmul.f32 %v3575_v4, %v3133_v33 }
 0x57b   : > { %v3577_v0 = vpop.f32.mrf.mxu1 }
 0x57c   : > { %v10144_v12 = vadd.f32 %v3582_v35, %v3580_v49  ;;  %v3583_v59 = vmul.f32 %v3577_v0, %v3134_v1 }
 0x57d   : > { %v4445_v57 = vpop.f32.mrf.mxu1 }
 0x57e   : > { %v10146_v39 = vadd.f32 %v3583_v59, %v3581_v25  ;;  %v4468_v43 = vmul.f32 %v4445_v57, %v3648_v11 }
 0x57f   : > { %v4447_v61 = vpop.f32.mrf.mxu1 }
 0x580   : > { %v4469_v50 = vmul.f32 %v4447_v61, %v3649_v21 }
 0x581   : > { %v4451_v63 = vpop.f32.mrf.mxu1 }
 0x582   : > { %v4470_v37 = vmul.f32 %v4451_v63, %v3650_v45 }
 0x583   : > { %v4453_v2 = vpop.f32.mrf.mxu1 }
 0x584   : > { %v4472_v49 = vadd.f32 %v4470_v37, %v4468_v43  ;;  %v4471_v42 = vmul.f32 %v4453_v2, %v3651_v10 }
 0x585   : > { %v4457_v30 = vpop.f32.mrf.mxu1 }
 0x586   : > { %v4473_v7 = vrot.slane %v4472_v49, 4  ;;  %v4479_v33 = vadd.f32 %v4471_v42, %v4469_v50  ;;  %v4486_v36 = vmul.f32 %v4457_v30, %v3648_v11 }
 0x587   : > { %v4459_v15 = vpop.f32.mrf.mxu1 }
 0x588   : > { %v4474_v25 = vadd.f32 %v4473_v7, %v4472_v49  ;;  %v4480_v53 = vrot.slane %v4479_v33, 4  ;;  %v4487_v16 = vmul.f32 %v4459_v15, %v3649_v21 }
 0x589   : > { %v4463_v4 = vpop.f32.mrf.mxu1 }
 0x58a   : > { %v4481_v35 = vadd.f32 %v4480_v53, %v4479_v33  ;;  %v4488_v1 = vmul.f32 %v4463_v4, %v3650_v45  ;;  %v4475_v56 = vrot.slane %v4474_v25, 2 }
 0x58b   : > { %v4465_v0 = vpop.f32.mrf.mxu1 }
 0x58c   : > { %v4482_v59 = vrot.slane %v4481_v35, 2  ;;  %v4490_v5 = vadd.f32 %v4488_v1, %v4486_v36  ;;  %v4489_v57 = vmul.f32 %v4465_v0, %v3651_v10  ;;  %v4476_v48 = vadd.f32 %v4475_v56, %v4474_v25 }
 0x58e   : > { %v4491_v22 = vrot.slane %v4490_v5, 4  ;;  %v4497_v61 = vadd.f32 %v4489_v57, %v4487_v16  ;;  %v4483_v63 = vadd.f32 %v4482_v59, %v4481_v35  ;;  %v4477_v2 = vrot.slane %v4476_v48, 1 }
 0x590   : > { %v4492_v43 = vadd.f32 %v4491_v22, %v4490_v5  ;;  %v4498_v37 = vrot.slane %v4497_v61, 4  ;;  %v4484_v42 = vrot.slane %v4483_v63, 1  ;;  %v4478_v45 = vadd.f32 %v4477_v2, %v4476_v48 }
 0x592   : > { %v4493_v50 = vrot.slane %v4492_v43, 2  ;;  %v4499_v49 = vadd.f32 %v4498_v37, %v4497_v61  ;;  %v4485_v30 = vadd.f32 %v4484_v42, %v4483_v63  ;;  %v4504_v10 = vmul.f32 %v8098_v8, %v4478_v45 }
 0x594   : > { %v4494_v7 = vadd.f32 %v4493_v50, %v4492_v43  ;;  %v4500_v33 = vrot.slane %v4499_v49, 2  ;;  %v4505_v35 = vmul.f32 %v8098_v8, %v4485_v30 }
 0x596   : > { %v4495_v53 = vrot.slane %v4494_v7, 1  ;;  %v4501_v11 = vadd.f32 %v4500_v33, %v4499_v49 }
 0x598   : > { %v4496_v4 = vadd.f32 %v4495_v53, %v4494_v7  ;;  %v4502_v21 = vrot.slane %v4501_v11, 1 }
 0x59a   : > { %v4506_v15 = vmul.f32 %v8127_v20, %v4496_v4  ;;  %v4503_v25 = vadd.f32 %v4502_v21, %v4501_v11 }
 0x59c   : > { %v4508_v1 = vadd.f32 %v4506_v15, %v4504_v10  ;;  %v4507_v56 = vmul.f32 %v8127_v20, %v4503_v25  ;;  %v4902_v15 = vld [vmem:[#allocation3] sm:$0xff]  ;;  %v4903_v25 = vld [vmem:[#allocation3 + $0x10] sm:$0xff] }
 0x59e   : > { %v4510_v36 = vadd.f32 %v4508_v1, %v9249_v27  ;;  %v4509_v0 = vadd.f32 %v4507_v56, %v4505_v35 }
 0x5a0   : > { %v4511_v59 = vadd.f32 %v4509_v0, %v9255_v41  ;;  %v4514_v16 = vadd.f32 %v4510_v36, %v9080_v51  ;;  %v4512_v35 = vadd.f32 %v4510_v36, %v9963_v34 }
 0x5a2   : > { %v4515_v5 = vadd.f32 %v4511_v59, %v9085_v44  ;;  %v4520_v57 = vmax.f32 %v4514_v16, 0.0  ;;  %v4513_v1 = vadd.f32 %v4511_v59, %v9966_v60  ;;  %v4516_v56 = vmax.f32 %v4512_v35, 0.0 }
 0x5a3   : > { %v3585_v59 = vrot.slane %v10144_v12, 4 }
 0x5a4   : > { %v4521_v48 = vmax.f32 %v4515_v5, 0.0  ;;  %v4522_v22 = vmin.f32 %v4520_v57, 15.0  ;;  %v4517_v0 = vmax.f32 %v4513_v1, 0.0  ;;  %v4518_v16 = vmin.f32 %v4516_v56, 15.0 }
 0x5a6   : > { %v4523_v61 = vmin.f32 %v4521_v48, 15.0  ;;  %v4551_v63 = vrot.slane %v4522_v22, %v8101_v9  ;;  %v4519_v5 = vmin.f32 %v4517_v0, 15.0  ;;  %v4527_v57 = vrot.slane %v4518_v16, %v8088_v3 }
 0x5a8   : > { %v4555_v43 = vrot.slane %v4523_v61, %v8101_v9  ;;  %v4558_v37 = vsub.f32 %v9115_v38, %v4551_v63  ;;  %v4556_v2 = vsub.f32 %v9113_v17, %v4551_v63  ;;  %v4531_v48 = vrot.slane %v4519_v5, %v8088_v3 }
 0x5a9   : > { %v4532_v22 = vsub.f32 %v9113_v17, %v4527_v57  ;;  %v4534_v61 = vsub.f32 %v9115_v38, %v4527_v57 }
 0x5aa   : > { %v4559_v27 = vsub.f32 %v9115_v38, %v4555_v43  ;;  %v4562_v50 = vand.u32 2147483647, %v4558_v37  ;;  %v4557_v41 = vsub.f32 %v9113_v17, %v4555_v43  ;;  %v4560_v49 = vand.u32 2147483647, %v4556_v2 }
 0x5ab   : > { %v4533_v63 = vsub.f32 %v9113_v17, %v4531_v48  ;;  %v4535_v43 = vsub.f32 %v9115_v38, %v4531_v48  ;;  %v4536_v37 = vand.u32 2147483647, %v4532_v22  ;;  %v4538_v36 = vand.u32 2147483647, %v4534_v61 }
 0x5ac   : > { %v4563_v42 = vand.u32 2147483647, %v4559_v27  ;;  %v4561_v7 = vand.u32 2147483647, %v4557_v41  ;;  %v4566_v33 = vsub.f32 1.0, %v4562_v50  ;;  %v4564_v11 = vsub.f32 1.0, %v4560_v49 }
 0x5ad   : > { %v4537_v2 = vand.u32 2147483647, %v4533_v63  ;;  %v4539_v27 = vand.u32 2147483647, %v4535_v43  ;;  %v3592_v50 = vrot.slane %v10146_v39, 4  ;;  %v4540_v41 = vsub.f32 1.0, %v4536_v37 }
 0x5ae   : > { %v4567_v45 = vsub.f32 1.0, %v4563_v42  ;;  %v4565_v53 = vsub.f32 1.0, %v4561_v7  ;;  %v4570_v4 = vmax.f32 %v4566_v33, 0.0  ;;  %v4568_v10 = vmax.f32 %v4564_v11, 0.0 }
 0x5af   : > { %v4542_v49 = vsub.f32 1.0, %v4538_v36  ;;  %v3586_v42 = vadd.f32 %v3585_v59, %v10144_v12  ;;  %v4541_v33 = vsub.f32 1.0, %v4537_v2  ;;  %v3593_v11 = vadd.f32 %v3592_v50, %v10146_v39 }
 0x5b0   : > { %v4571_v30 = vmax.f32 %v4567_v45, 0.0  ;;  %v4569_v21 = vmax.f32 %v4565_v53, 0.0  ;;  %v4543_v45 = vsub.f32 1.0, %v4539_v27 }
 0x5b1   : > { %v3594_v0 = vrot.slane %v3593_v11, 2 }
 0x5b2   : > { %4938 = vmatprep.subr.mxu0 %v4571_v30  ;;  %v4544_v30 = vmax.f32 %v4540_v41, 0.0  ;;  %v4547_v1 = vmax.f32 %v4543_v45, 0.0 }
 0x5b3   : > { %4939 = vmatpush1.msra.mxu0 %v4570_v4  ;;  %v4546_v4 = vmax.f32 %v4542_v49, 0.0  ;;  %v3595_v61 = vadd.f32 %v3594_v0, %v3593_v11  ;;  %v5165_v0 = vld [vmem:[#allocation4 + $0x7] ss:$8 sm:$0x3] }
 0x5b4   : > { %4940 = vmatprep.subr.mxu0 %v4569_v21  ;;  %v3587_v21 = vrot.slane %v3586_v42, 2 }
 0x5b5   : > { %4941 = vmatpush1.msra.mxu0 %v4568_v10  ;;  %v3596_v59 = vrot.slane %v3595_v61, 1 }
 0x5b6   : > { %7908 = vmatmul.mubr.msk.f32.vlgmr.msra.gmra.mxu0 %vm2953_vm3, %v4902_v15  ;;  %v3588_v12 = vadd.f32 %v3587_v21, %v3586_v42 }
 0x5b7   : > { %4980 = vmatprep.mubr.f32.mxu0 %v11477_v62 }
 0x5b8   : > { %v3589_v39 = vrot.slane %v3588_v12, 1 }
 0x5ba   : > { %7909 = vmatmul.mubr.msk.f32.gmra.mxu0 %vm2953_vm3, %v4903_v25  ;;  %v4545_v25 = vmax.f32 %v4541_v33, 0.0  ;;  %v10178_v50 = vadd.f32 %v3589_v39, %v3588_v12 }
 0x5bb   : > { %5588 = vmatprep.mubr.f32.mxu0 %v11477_v62 }
 0x5bc   : > { %v5005_v45 = vmul.f32 %v8098_v8, %v10178_v50 }
 0x676   : > { %v4976_v7 = vpop.f32.mrf.mxu0 }
 0x677   : > { %v4987_v15 = vmul.f32 %v4976_v7, %v4544_v30  ;;  %v10180_v7 = vadd.f32 %v3596_v59, %v3595_v61  ;;  %v5170_v61 = vrot.slane %v5165_v0, %v8088_v3 }
 0x678   : > { %v4978_v53 = vpop.f32.mrf.mxu0 }
 0x679   : > { %v4988_v16 = vmul.f32 %v4978_v53, %v4545_v25  ;;  %v5187_v25 = vld [vmem:[#allocation4 + $0x20] ss:$8 sm:$0x3] }
 0x67a   : > { %v4982_v10 = vpop.f32.mrf.mxu0 }
 0x67b   : > { %v4989_v35 = vmul.f32 %v4982_v10, %v4546_v4  ;;  %v5006_v4 = vmul.f32 %v8098_v8, %v10180_v7 }
 0x67c   : > { %v4984_v56 = vpop.f32.mrf.mxu0 }
 0x67d   : > { %v4991_v5 = vadd.f32 %v4989_v35, %v4987_v15  ;;  %v4990_v57 = vmul.f32 %v4984_v56, %v4547_v1  ;;  %v5222_v15 = vld [vmem:[%s11276_s6] sm:$0xff]  ;;  %v5192_v1 = vrot.slane %v5187_v25, %v8088_v3  ;;  %v5196_v56 = vrot.slane %v5187_v25, %v8101_v9 }
 0x67f   : > { %v4992_v48 = vrot.slane %v4991_v5, 4  ;;  %v4998_v22 = vadd.f32 %v4990_v57, %v4988_v16 }
 0x681   : > { %v4993_v63 = vadd.f32 %v4992_v48, %v4991_v5  ;;  %v4999_v43 = vrot.slane %v4998_v22, 4 }
 0x683   : > { %v4994_v37 = vrot.slane %v4993_v63, 2  ;;  %v5000_v36 = vadd.f32 %v4999_v43, %v4998_v22  ;;  %v5143_v43 = vld [vmem:[#allocation4 + $0x6] ss:$8 sm:$0x3] }
 0x685   : > { %v4995_v2 = vadd.f32 %v4994_v37, %v4993_v63  ;;  %v5001_v27 = vrot.slane %v5000_v36, 2  ;;  %v5174_v63 = vrot.slane %v5165_v0, %v8101_v9  ;;  %v5083_v0 = vld [vmem:[#allocation4 + $0x3] ss:$8 sm:$0x3] }
 0x687   : > { %v4996_v41 = vrot.slane %v4995_v2, 1  ;;  %v5002_v49 = vadd.f32 %v5001_v27, %v5000_v36 }
 0x689   : > { %v10182_v33 = vadd.f32 %v4996_v41, %v4995_v2  ;;  %v5003_v42 = vrot.slane %v5002_v49, 1  ;;  %v5148_v41 = vrot.slane %v5143_v43, %v8088_v3 }
 0x68b   : > { %11493 = vst [vmem:[#allocation60_spill] sm:$0xff] %v10182_v33  ;;  %v5007_v53 = vmul.f32 %v8127_v20, %v10182_v33  ;;  %v10188_v11 = vadd.f32 %v5003_v42, %v5002_v49  ;;  %v5152_v49 = vrot.slane %v5143_v43, %v8101_v9  ;;  %v5121_v42 = vld [vmem:[#allocation4 + $0x5] ss:$8 sm:$0x3]  ;;  %v5088_v43 = vrot.slane %v5083_v0, %v8088_v3 }
 0x68d   : > { %11494 = vst [vmem:[#allocation61_spill] sm:$0xff] %v10188_v11  ;;  %v10190_v30 = vadd.f32 %v5007_v53, %v5005_v45  ;;  %v5008_v21 = vmul.f32 %v8127_v20, %v10188_v11 }
 0x68f   : > { %v10196_v10 = vadd.f32 %v5008_v21, %v5006_v4  ;;  %5181 = vrot.lane.b32.xlu1 %v10190_v30, %s7990_s23 }
 0x691   : > { %5183 = vrot.lane.b32.xlu0 %v10196_v10, %s7990_s23 }
 0x693   : > { %5159 = vrot.lane.b32.xlu1 %v10190_v30, %s7992_s24 }
 0x695   : > { %5161 = vrot.lane.b32.xlu0 %v10196_v10, %s7992_s24 }
 0x697   : > { %5137 = vrot.lane.b32.xlu1 %v10190_v30, %s7993_s25 }
 0x699   : > { %5139 = vrot.lane.b32.xlu0 %v10196_v10, %s7993_s25 }
 0x69b   : > { %5115 = vrot.lane.b32.xlu1 %v10190_v30, %s7994_s26 }
 0x69d   : > { %5117 = vrot.lane.b32.xlu0 %v10196_v10, %s7994_s26 }
 0x69f   : > { %5077 = vrot.lane.b32.xlu1 %v10190_v30, %s7995_s27 }
 0x6a1   : > { %5079 = vrot.lane.b32.xlu0 %v10196_v10, %s7995_s27 }
 0x6a3   : > { %5055 = vrot.lane.b32.xlu1 %v10190_v30, %s7996_s28 }
 0x6a5   : > { %5057 = vrot.lane.b32.xlu0 %v10196_v10, %s7996_s28 }
 0x6a7   : > { %5033 = vrot.lane.b32.xlu1 %v10190_v30, %s7997_s29 }
 0x6a9   : > { %5035 = vrot.lane.b32.xlu0 %v10196_v10, %s7997_s29 }
 0x6ab   : > { %5011 = vrot.lane.b32.xlu1 %v10190_v30, %s7998_s30 }
 0x6ad   : > { %5013 = vrot.lane.b32.xlu0 %v10196_v10, %s7998_s30 }
 0x6af   : > { %5225 = vperm.xlu1 %7966, %v5222_v15  }
 0x701   : > { %v5182_v35 = vpop.permute.xlu1 %5181 }
 0x703   : > { %v5184_v16 = vpop.permute.xlu0 %5183 }
 0x704   : > { %v5185_v5 = vsel %vm1374_vm15, %v5182_v35, %v5184_v16  ;;  %v5186_v57 = vsel %vm1374_vm15, %v5184_v16, %v5182_v35  ;;  %v5126_v35 = vrot.slane %v5121_v42, %v8088_v3 }
 0x705   : > { %v5199_v12 = vmul.f32 %v5192_v1, %v5185_v5  ;;  %v5200_v48 = vmul.f32 %v5196_v56, %v5186_v57  ;;  %v5160_v22 = vpop.permute.xlu1 %5159  ;;  %v5130_v1 = vrot.slane %v5121_v42, %v8101_v9  ;;  %v5099_v56 = vld [vmem:[#allocation4 + $0x4] ss:$8 sm:$0x3] }
 0x706   : > { %v5108_v5 = vrot.slane %v5099_v56, %v8101_v9 }
 0x707   : > { %v5162_v39 = vpop.permute.xlu0 %5161  ;;  %5245 = vmatprep.subr.mxu1 %v5200_v48  ;;  %v5104_v48 = vrot.slane %v5099_v56, %v8088_v3 }
 0x708   : > { %v5163_v37 = vsel %vm1331_vm6, %v5160_v22, %v5162_v39  ;;  %v5164_v36 = vsel %vm1331_vm6, %v5162_v39, %v5160_v22  ;;  %5246 = vmatpush1.msra.mxu1 %v5199_v12  ;;  %v5092_v39 = vrot.slane %v5083_v0, %v8101_v9 }
 0x709   : > { %v5177_v59 = vmul.f32 %v5170_v61, %v5163_v37  ;;  %v5178_v2 = vmul.f32 %v5174_v63, %v5164_v36  ;;  %v5138_v27 = vpop.permute.xlu1 %5137  ;;  %v5061_v37 = vld [vmem:[#allocation4 + $0x2] ss:$8 sm:$0x3] }
 0x70b   : > { %v5140_v45 = vpop.permute.xlu0 %5139  ;;  %5247 = vmatprep.subr.mxu1 %v5178_v2 }
 0x70c   : > { %v5141_v53 = vsel %vm1288_vm8, %v5138_v27, %v5140_v45  ;;  %v5142_v4 = vsel %vm1288_vm8, %v5140_v45, %v5138_v27  ;;  %5248 = vmatpush1.msra.mxu1 %v5177_v59  ;;  %v5112_v59 = vmul.f32 %v5108_v5, %v10196_v10 }
 0x70d   : > { %v5155_v21 = vmul.f32 %v5148_v41, %v5141_v53  ;;  %v5156_v15 = vmul.f32 %v5152_v49, %v5142_v4  ;;  %v5116_v25 = vpop.permute.xlu1 %5115  ;;  %v5111_v41 = vmul.f32 %v5104_v48, %v10190_v30  ;;  %v5066_v53 = vrot.slane %v5061_v37, %v8088_v3 }
 0x70e   : > { %v5070_v4 = vrot.slane %v5061_v37, %v8101_v9 }
 0x70f   : > { %v5118_v16 = vpop.permute.xlu0 %5117  ;;  %5249 = vmatprep.subr.mxu1 %v5156_v15 }
 0x710   : > { %v5119_v57 = vsel %vm1245_vm4, %v5116_v25, %v5118_v16  ;;  %v5120_v12 = vsel %vm1245_vm4, %v5118_v16, %v5116_v25  ;;  %5250 = vmatpush1.msra.mxu1 %v5155_v21  ;;  %v5039_v21 = vld [vmem:[#allocation4 + $0x1] ss:$8 sm:$0x3]  ;;  %v5017_v16 = vld [vmem:[#allocation4] ss:$8 sm:$0x3] }
 0x711   : > { %v5133_v22 = vmul.f32 %v5126_v35, %v5119_v57  ;;  %v5134_v61 = vmul.f32 %v5130_v1, %v5120_v12  ;;  %v5078_v63 = vpop.permute.xlu1 %5077  ;;  %v5044_v56 = vrot.slane %v5039_v21, %v8088_v3  ;;  %v5048_v0 = vrot.slane %v5039_v21, %v8101_v9 }
 0x713   : > { %v5080_v36 = vpop.permute.xlu0 %5079  ;;  %5251 = vmatprep.subr.mxu1 %v5134_v61  ;;  %v5022_v61 = vrot.slane %v5017_v16, %v8088_v3 }
 0x714   : > { %v5081_v2 = vsel %vm1172_vm2, %v5078_v63, %v5080_v36  ;;  %v5082_v27 = vsel %vm1172_vm2, %v5080_v36, %v5078_v63  ;;  %5252 = vmatpush1.msra.mxu1 %v5133_v22  ;;  %v5026_v63 = vrot.slane %v5017_v16, %v8101_v9 }
 0x715   : > { %v5095_v49 = vmul.f32 %v5088_v43, %v5082_v27  ;;  %v5096_v42 = vmul.f32 %v5092_v39, %v5081_v2  ;;  %5253 = vmatprep.subr.mxu1 %v5112_v59  ;;  %v5056_v45 = vpop.permute.xlu1 %5055  ;;  %v5203_v27 = vld [vmem:[%s11275_s5] sm:$0xff] }
 0x716   : > { %5254 = vmatpush1.msra.mxu1 %v5111_v41 }
 0x717   : > { %v5058_v10 = vpop.permute.xlu0 %5057  ;;  %5255 = vmatprep.subr.mxu1 %v5096_v42 }
 0x718   : > { %v5059_v15 = vsel %vm1129_vm9, %v5056_v45, %v5058_v10  ;;  %v5060_v25 = vsel %vm1129_vm9, %v5058_v10, %v5056_v45  ;;  %5256 = vmatpush1.msra.mxu1 %v5095_v49  ;;  %v5515_v10 = vld [vmem:[%s11278_s8] sm:$0x3] }
 0x719   : > { %v5073_v30 = vmul.f32 %v5066_v53, %v5060_v25  ;;  %v5074_v35 = vmul.f32 %v5070_v4, %v5059_v15  ;;  %v5034_v1 = vpop.permute.xlu1 %5033  ;;  %v5480_v15 = vld [vmem:[#allocation4 + $0x20] ss:$8 sm:$0x3] }
 0x71b   : > { %v5036_v5 = vpop.permute.xlu0 %5035  ;;  %5257 = vmatprep.subr.mxu1 %v5074_v35  ;;  %v5489_v35 = vrot.slane %v5480_v15, %v8101_v9 }
 0x71c   : > { %v5037_v57 = vsel %vm1086_vm10, %v5034_v1, %v5036_v5  ;;  %v5038_v12 = vsel %vm1086_vm10, %v5036_v5, %v5034_v1  ;;  %5258 = vmatpush1.msra.mxu1 %v5073_v30  ;;  %v5485_v30 = vrot.slane %v5480_v15, %v8088_v3  ;;  %v5458_v1 = vld [vmem:[#allocation4 + $0x7] ss:$8 sm:$0x3] }
 0x71d   : > { %v5051_v48 = vmul.f32 %v5044_v56, %v5038_v12  ;;  %v5052_v22 = vmul.f32 %v5048_v0, %v5037_v57  ;;  %v5012_v43 = vpop.permute.xlu1 %5011 }
 0x71f   : > { %v5014_v39 = vpop.permute.xlu0 %5013  ;;  %5259 = vmatprep.subr.mxu1 %v5052_v22  ;;  %v5467_v22 = vrot.slane %v5458_v1, %v8101_v9 }
 0x720   : > { %v5015_v37 = vsel %vm1043_vm12, %v5012_v43, %v5014_v39  ;;  %v5016_v36 = vsel %vm1043_vm12, %v5014_v39, %v5012_v43  ;;  %5260 = vmatpush1.msra.mxu1 %v5051_v48  ;;  %v5463_v48 = vrot.slane %v5458_v1, %v8088_v3  ;;  %v5376_v1 = vld [vmem:[#allocation4 + $0x3] ss:$8 sm:$0x3] }
 0x721   : > { %v5029_v59 = vmul.f32 %v5022_v61, %v5016_v36  ;;  %v5030_v2 = vmul.f32 %v5026_v63, %v5015_v37  ;;  %v5436_v61 = vld [vmem:[#allocation4 + $0x6] ss:$8 sm:$0x3] }
 0x723   : > { %5261 = vmatprep.subr.mxu1 %v5030_v2  ;;  %v5441_v2 = vrot.slane %v5436_v61, %v8088_v3 }
 0x724   : > { %5262 = vmatpush1.msra.mxu1 %v5029_v59 }
 0x725   : > { %7910 = vmatmul.mubr.msk.f32.vlgmr.msra.gmra.mxu1 %vm1452_vm5, %v5203_v27  ;;  %v5445_v27 = vrot.slane %v5436_v61, %v8101_v9  ;;  %v5381_v61 = vrot.slane %v5376_v1, %v8088_v3 }
 0x726   : > { %6426 = vmatprep.mubr.f32.mxu1 %v11477_v62 }
 0x72a   : > { %v5226_v41 = vpop.permute.xlu1 %5225 }
 0x7e5   : > { %v5297_v49 = vpop.f32.mrf.mxu1 }
 0x7e6   : > { %v5298_v42 = vadd.f32 %v5297_v49, %v5226_v41 }
 0x7e7   : > { %v5299_v45 = vpop.f32.mrf.mxu1 }
 0x7e8   : > { %v10290_v53 = vmax.f32 %v5298_v42, 0.0  ;;  %v5300_v4 = vadd.f32 %v5299_v45, %v5226_v41  ;;  %v5414_v41 = vld [vmem:[#allocation4 + $0x5] ss:$8 sm:$0x3] }
 0x7ea   : > { %v10292_v21 = vmax.f32 %v5300_v4, 0.0  ;;  %5474 = vrot.lane.b32.xlu0 %v10290_v53, %s7990_s23 }
 0x7ec   : > { %5476 = vrot.lane.b32.xlu1 %v10292_v21, %s7990_s23 }
 0x7ee   : > { %5452 = vrot.lane.b32.xlu0 %v10290_v53, %s7992_s24 }
 0x7f0   : > { %5454 = vrot.lane.b32.xlu1 %v10292_v21, %s7992_s24 }
 0x7f2   : > { %5430 = vrot.lane.b32.xlu0 %v10290_v53, %s7993_s25 }
 0x7f4   : > { %5432 = vrot.lane.b32.xlu1 %v10292_v21, %s7993_s25 }
 0x7f6   : > { %5408 = vrot.lane.b32.xlu0 %v10290_v53, %s7994_s26 }
 0x7f8   : > { %5410 = vrot.lane.b32.xlu1 %v10292_v21, %s7994_s26 }
 0x7fa   : > { %5370 = vrot.lane.b32.xlu0 %v10290_v53, %s7995_s27 }
 0x7fc   : > { %5372 = vrot.lane.b32.xlu1 %v10292_v21, %s7995_s27 }
 0x7fe   : > { %5348 = vrot.lane.b32.xlu0 %v10290_v53, %s7996_s28 }
 0x800   : > { %5350 = vrot.lane.b32.xlu1 %v10292_v21, %s7996_s28 }
 0x802   : > { %5326 = vrot.lane.b32.xlu0 %v10290_v53, %s7997_s29 }
 0x804   : > { %5328 = vrot.lane.b32.xlu1 %v10292_v21, %s7997_s29 }
 0x806   : > { %5304 = vrot.lane.b32.xlu0 %v10290_v53, %s7998_s30 }
 0x808   : > { %5306 = vrot.lane.b32.xlu1 %v10292_v21, %s7998_s30 }
 0x80a   : > { %5518 = vperm.xlu0 %7965, %v5515_v10  }
 0x85c   : > { %v5475_v25 = vpop.permute.xlu0 %5474 }
 0x85e   : > { %v5477_v56 = vpop.permute.xlu1 %5476 }
 0x85f   : > { %v5478_v0 = vsel %vm1374_vm15, %v5475_v25, %v5477_v56  ;;  %v5479_v16 = vsel %vm1374_vm15, %v5477_v56, %v5475_v25  ;;  %v5419_v25 = vrot.slane %v5414_v41, %v8088_v3  ;;  %vm3602_vm15 = vcmask 1040384  }
 0x860   : > { %v5492_v5 = vmul.f32 %v5485_v30, %v5478_v0  ;;  %v5493_v57 = vmul.f32 %v5489_v35, %v5479_v16  ;;  %v5453_v12 = vpop.permute.xlu0 %5452  ;;  %v5423_v30 = vrot.slane %v5414_v41, %v8101_v9  ;;  %v5392_v35 = vld [vmem:[#allocation4 + $0x4] ss:$8 sm:$0x3] }
 0x861   : > { %v5401_v0 = vrot.slane %v5392_v35, %v8101_v9 }
 0x862   : > { %v5455_v63 = vpop.permute.xlu1 %5454  ;;  %5538 = vmatprep.subr.mxu0 %v5493_v57  ;;  %v5397_v57 = vrot.slane %v5392_v35, %v8088_v3 }
 0x863   : > { %v5456_v43 = vsel %vm1331_vm6, %v5453_v12, %v5455_v63  ;;  %v5457_v39 = vsel %vm1331_vm6, %v5455_v63, %v5453_v12  ;;  %5539 = vmatpush1.msra.mxu0 %v5492_v5  ;;  %v5385_v63 = vrot.slane %v5376_v1, %v8101_v9 }
 0x864   : > { %v5470_v37 = vmul.f32 %v5463_v48, %v5456_v43  ;;  %v5471_v36 = vmul.f32 %v5467_v22, %v5457_v39  ;;  %v5431_v59 = vpop.permute.xlu0 %5430  ;;  %v5354_v43 = vld [vmem:[#allocation4 + $0x2] ss:$8 sm:$0x3] }
 0x866   : > { %v5433_v49 = vpop.permute.xlu1 %5432  ;;  %5540 = vmatprep.subr.mxu0 %v5471_v36 }
 0x867   : > { %v5434_v42 = vsel %vm1288_vm8, %v5431_v59, %v5433_v49  ;;  %v5435_v45 = vsel %vm1288_vm8, %v5433_v49, %v5431_v59  ;;  %5541 = vmatpush1.msra.mxu0 %v5470_v37  ;;  %v5405_v37 = vmul.f32 %v5401_v0, %v10292_v21 }
 0x868   : > { %v5448_v4 = vmul.f32 %v5441_v2, %v5434_v42  ;;  %v5449_v10 = vmul.f32 %v5445_v27, %v5435_v45  ;;  %v5409_v15 = vpop.permute.xlu0 %5408  ;;  %v5404_v2 = vmul.f32 %v5397_v57, %v10290_v53  ;;  %v5359_v42 = vrot.slane %v5354_v43, %v8088_v3 }
 0x869   : > { %v5363_v45 = vrot.slane %v5354_v43, %v8101_v9 }
 0x86a   : > { %v5411_v56 = vpop.permute.xlu1 %5410  ;;  %5542 = vmatprep.subr.mxu0 %v5449_v10 }
 0x86b   : > { %v5412_v16 = vsel %vm1245_vm4, %v5409_v15, %v5411_v56  ;;  %v5413_v5 = vsel %vm1245_vm4, %v5411_v56, %v5409_v15  ;;  %5543 = vmatpush1.msra.mxu0 %v5448_v4  ;;  %v5332_v4 = vld [vmem:[#allocation4 + $0x1] ss:$8 sm:$0x3]  ;;  %v5310_v56 = vld [vmem:[#allocation4] ss:$8 sm:$0x3] }
 0x86c   : > { %v5426_v12 = vmul.f32 %v5419_v25, %v5412_v16  ;;  %v5427_v48 = vmul.f32 %v5423_v30, %v5413_v5  ;;  %v5371_v22 = vpop.permute.xlu0 %5370  ;;  %v5337_v35 = vrot.slane %v5332_v4, %v8088_v3  ;;  %v5341_v1 = vrot.slane %v5332_v4, %v8101_v9 }
 0x86e   : > { %v5373_v39 = vpop.permute.xlu1 %5372  ;;  %5544 = vmatprep.subr.mxu0 %v5427_v48  ;;  %v5315_v48 = vrot.slane %v5310_v56, %v8088_v3 }
 0x86f   : > { %v5374_v36 = vsel %vm1172_vm2, %v5371_v22, %v5373_v39  ;;  %v5375_v59 = vsel %vm1172_vm2, %v5373_v39, %v5371_v22  ;;  %5545 = vmatpush1.msra.mxu0 %v5426_v12  ;;  %v5319_v22 = vrot.slane %v5310_v56, %v8101_v9 }
 0x870   : > { %v5388_v27 = vmul.f32 %v5381_v61, %v5375_v59  ;;  %v5389_v41 = vmul.f32 %v5385_v63, %v5374_v36  ;;  %5546 = vmatprep.subr.mxu0 %v5405_v37  ;;  %v5349_v49 = vpop.permute.xlu0 %5348  ;;  %v5496_v59 = vld [vmem:[%s11277_s7] sm:$0x3] }
 0x871   : > { %5547 = vmatpush1.msra.mxu0 %v5404_v2 }
 0x872   : > { %v5351_v21 = vpop.permute.xlu1 %5350  ;;  %5548 = vmatprep.subr.mxu0 %v5389_v41 }
 0x873   : > { %v5352_v10 = vsel %vm1129_vm9, %v5349_v49, %v5351_v21  ;;  %v5353_v15 = vsel %vm1129_vm9, %v5351_v21, %v5349_v49  ;;  %5549 = vmatpush1.msra.mxu0 %v5388_v27 }
 0x874   : > { %v5366_v53 = vmul.f32 %v5359_v42, %v5353_v15  ;;  %v5367_v25 = vmul.f32 %v5363_v45, %v5352_v10  ;;  %v5327_v30 = vpop.permute.xlu0 %5326 }
 0x876   : > { %v5329_v0 = vpop.permute.xlu1 %5328  ;;  %5550 = vmatprep.subr.mxu0 %v5367_v25 }
 0x877   : > { %v5330_v16 = vsel %vm1086_vm10, %v5327_v30, %v5329_v0  ;;  %v5331_v5 = vsel %vm1086_vm10, %v5329_v0, %v5327_v30  ;;  %5551 = vmatpush1.msra.mxu0 %v5366_v53 }
 0x878   : > { %v5344_v57 = vmul.f32 %v5337_v35, %v5331_v5  ;;  %v5345_v12 = vmul.f32 %v5341_v1, %v5330_v16  ;;  %v5305_v61 = vpop.permute.xlu0 %5304 }
 0x87a   : > { %v5307_v63 = vpop.permute.xlu1 %5306  ;;  %5552 = vmatprep.subr.mxu0 %v5345_v12 }
 0x87b   : > { %v5308_v43 = vsel %vm1043_vm12, %v5305_v61, %v5307_v63  ;;  %v5309_v39 = vsel %vm1043_vm12, %v5307_v63, %v5305_v61  ;;  %5553 = vmatpush1.msra.mxu0 %v5344_v57 }
 0x87c   : > { %v5322_v37 = vmul.f32 %v5315_v48, %v5309_v39  ;;  %v5323_v36 = vmul.f32 %v5319_v22, %v5308_v43 }
 0x87e   : > { %5554 = vmatprep.subr.mxu0 %v5323_v36 }
 0x87f   : > { %5555 = vmatpush1.msra.mxu0 %v5322_v37 }
 0x880   : > { %7911 = vmatmul.mubr.msk.f32.vlgmr.msra.gmra.mxu0 %vm1452_vm5, %v5496_v59 }
 0x881   : > { %6973 = vmatprep.mubr.f32.mxu0 %v11477_v62 }
 0x885   : > { %v5519_v2 = vpop.permute.xlu0 %5518 }
 0x940   : > { %v5590_v27 = vpop.f32.mrf.mxu0 }
 0x941   : > { %v5591_v41 = vadd.f32 %v5590_v27, %v5519_v2 }
 0x942   : > { %v5592_v49 = vpop.f32.mrf.mxu0 }
 0x943   : > { %7975 = vtanh.f32 %v5591_v41  ;;  %v5593_v42 = vadd.f32 %v5592_v49, %v5519_v2 }
 0x945   : > { %7977 = vtanh.f32 %v5593_v42 }
 0x950   : > { %v7976_v45 = vpop.eup %7975 }
 0x951   : > { %v10386_v4 = vmul.f32 2.0, %v7976_v45 }
 0x952   : > { %v7978_v21 = vpop.eup %7977 }
 0x953   : > { %11495 = vst [vmem:[#allocation62_spill] sm:$0xff] %v10386_v4  ;;  %v10388_v10 = vmul.f32 2.0, %v7978_v21  ;;  %5679 = vrot.lane.b32.xlu1 %v10386_v4, %s7992_s24  ;;  %v5601_v15 = vadd.f32 %v10386_v4, %v9080_v51  ;;  %v10403_v1 = vrot.slane %v10386_v4, 1 }
 0x955   : > { %11496 = vst [vmem:[#allocation63_spill] sm:$0xff] %v10388_v10  ;;  %v5661_v53 = vcombine.low %v10386_v4, %v10388_v10  ;;  %v5861_v25 = vcombine.low %v10388_v10, %v10386_v4  ;;  %5681 = vrot.lane.b32.xlu0 %v10388_v10, %s7992_s24  ;;  %v5602_v30 = vadd.f32 %v10388_v10, %v9085_v44  ;;  %v5607_v35 = vmax.f32 %v5601_v15, 0.0 }
 0x956   : > { %v10406_v56 = vrot.slane %v10388_v10, 1 }
 0x957   : > { %v5668_v0 = vrot.slane %v5661_v53, %v8219_v24  ;;  %v5868_v16 = vrot.slane %v5861_v25, %v8219_v24  ;;  %5705 = vrot.lane.b32.xlu1 %v10386_v4, %s8000_s12  ;;  %v5608_v5 = vmax.f32 %v5602_v30, 0.0  ;;  %v5609_v57 = vmin.f32 %v5607_v35, 15.0 }
 0x958   : > { %v6202_v12 = vcombine.low %v10406_v56, %v10403_v1 }
 0x959   : > { %v10415_v48 = vrot.slane %v5668_v0, %v8219_v24  ;;  %v10418_v22 = vrot.slane %v5868_v16, %v8219_v24  ;;  %v6005_v61 = vcombine.high %v5668_v0, %v5668_v0  ;;  %5707 = vrot.lane.b32.xlu0 %v10388_v10, %s8000_s12  ;;  %v5610_v63 = vmin.f32 %v5608_v5, 15.0 }
 0x95a   : > { %v5638_v43 = vrot.slane %v5609_v57, %v8101_v9  ;;  %v6209_v39 = vrot.slane %v6202_v12, %v8219_v24 }
 0x95b   : > { %5677 = vst.msk [vmem:[#allocation3] ss:$8 sm:$0x3] %vm9118_vm14, %v10415_v48  ;;  %5877 = vst.msk [vmem:[#allocation3 + $0x10] ss:$8 sm:$0x3] %vm9118_vm14, %v10418_v22  ;;  %v10431_v37 = vrot.slane %v6005_v61, %v8219_v24  ;;  %5731 = vrot.lane.b32.xlu1 %v10386_v4, %s8001_s13  ;;  %v5642_v36 = vrot.slane %v5610_v63, %v8101_v9 }
 0x95c   : > { %v5645_v59 = vsub.f32 %v9115_v38, %v5638_v43  ;;  %v5643_v2 = vsub.f32 %v9113_v17, %v5638_v43  ;;  %v10439_v27 = vrot.slane %v6209_v39, %v8219_v24 }
 0x95d   : > { %6014 = vst.msk [vmem:[#allocation3 + $0x20] ss:$8 sm:$0x3] %vm9118_vm14, %v10431_v37  ;;  %5733 = vrot.lane.b32.xlu0 %v10388_v10, %s8001_s13  ;;  %v5646_v41 = vsub.f32 %v9115_v38, %v5642_v36  ;;  %v5644_v49 = vsub.f32 %v9113_v17, %v5642_v36 }
 0x95e   : > { %v5649_v42 = vand.u32 2147483647, %v5645_v59  ;;  %v5647_v45 = vand.u32 2147483647, %v5643_v2 }
 0x95f   : > { %6218 = vst.msk [vmem:[#allocation3 + $0x30] ss:$8 sm:$0x3] %vm9118_vm14, %v10439_v27  ;;  %5757 = vrot.lane.b32.xlu1 %v10386_v4, %s8002_s14  ;;  %v5650_v21 = vand.u32 2147483647, %v5646_v41 }
 0x960   : > { %v5648_v15 = vand.u32 2147483647, %v5644_v49  ;;  %v5653_v53 = vsub.f32 1.0, %v5649_v42  ;;  %v5651_v35 = vsub.f32 1.0, %v5647_v45 }
 0x961   : > { %5759 = vrot.lane.b32.xlu0 %v10388_v10, %s8002_s14  ;;  %v5654_v25 = vsub.f32 1.0, %v5650_v21 }
 0x962   : > { %v5652_v30 = vsub.f32 1.0, %v5648_v15  ;;  %v5657_v16 = vmax.f32 %v5653_v53, 0.0  ;;  %v5655_v57 = vmax.f32 %v5651_v35, 0.0 }
 0x963   : > { %5783 = vrot.lane.b32.xlu1 %v10386_v4, %s8003_s15  ;;  %v5658_v0 = vmax.f32 %v5654_v25, 0.0 }
 0x964   : > { %v5656_v5 = vmax.f32 %v5652_v30, 0.0 }
 0x965   : > { %5785 = vrot.lane.b32.xlu0 %v10388_v10, %s8003_s15  ;;  %6390 = vmatprep.subr.mxu1 %v5658_v0 }
 0x966   : > { %6391 = vmatpush1.msra.mxu1 %v5657_v16 }
 0x967   : > { %5809 = vrot.lane.b32.xlu1 %v10386_v4, %s8004_s16  ;;  %6392 = vmatprep.subr.mxu1 %v5656_v5 }
 0x968   : > { %6393 = vmatpush1.msra.mxu1 %v5655_v57 }
 0x969   : > { %5811 = vrot.lane.b32.xlu0 %v10388_v10, %s8004_s16 }
 0x96b   : > { %5835 = vrot.lane.b32.xlu1 %v10386_v4, %s7997_s29 }
 0x96d   : > { %5837 = vrot.lane.b32.xlu0 %v10388_v10, %s7997_s29 }
 0x96f   : > { %6020 = vrot.lane.b32.xlu1 %v10403_v1, %s7992_s24 }
 0x971   : > { %6022 = vrot.lane.b32.xlu0 %v10406_v56, %s7992_s24 }
 0x973   : > { %6046 = vrot.lane.b32.xlu1 %v10403_v1, %s8000_s12 }
 0x975   : > { %6048 = vrot.lane.b32.xlu0 %v10406_v56, %s8000_s12 }
 0x977   : > { %6072 = vrot.lane.b32.xlu1 %v10403_v1, %s8001_s13 }
 0x979   : > { %6074 = vrot.lane.b32.xlu0 %v10406_v56, %s8001_s13 }
 0x97b   : > { %6098 = vrot.lane.b32.xlu1 %v10403_v1, %s8002_s14 }
 0x97d   : > { %6100 = vrot.lane.b32.xlu0 %v10406_v56, %s8002_s14 }
 0x97f   : > { %6124 = vrot.lane.b32.xlu1 %v10403_v1, %s8003_s15 }
 0x981   : > { %6126 = vrot.lane.b32.xlu0 %v10406_v56, %s8003_s15 }
 0x983   : > { %6150 = vrot.lane.b32.xlu1 %v10403_v1, %s8004_s16 }
 0x985   : > { %6152 = vrot.lane.b32.xlu0 %v10406_v56, %s8004_s16 }
 0x987   : > { %6176 = vrot.lane.b32.xlu1 %v10403_v1, %s7997_s29  ;;  %v3599_v1 = vsub.f32 %v10180_v7, %v8114_v14 }
 0x989   : > { %6178 = vrot.lane.b32.xlu0 %v10406_v56, %s7997_s29  ;;  %v3598_v56 = vsub.f32 %v10178_v50, %v8112_v13  ;;  %v3601_v12 = vmul.f32 %v3599_v1, %v3599_v1 }
 0x98b   : > { %6575 = vrot.lane.b32.xlu1 %v10178_v50, %s7992_s24  ;;  %v3600_v61 = vmul.f32 %v3598_v56, %v3598_v56  ;;  %v3604_v63 = vsel %vm3602_vm15, %v3601_v12, 0.0 }
 0x98d   : > { %6577 = vrot.lane.b32.xlu0 %v10180_v7, %s7992_s24  ;;  %v3603_v43 = vsel %vm3602_vm15, %v3600_v61, 0.0 }
 0x98e   : > { %v3605_v36 = vadd.f32 %v3604_v63, %v3603_v43 }
 0x98f   : > { %6601 = vrot.lane.b32.xlu1 %v10178_v50, %s8000_s12 }
 0x991   : > { %6603 = vrot.lane.b32.xlu0 %v10180_v7, %s8000_s12  ;;  %s405_s12 = scalar_lea.vmem %s11281_s11, %s11557_s18 }
 0x993   : > { %6627 = vrot.lane.b32.xlu1 %v10178_v50, %s8001_s13 }
 0x995   : > { %6629 = vrot.lane.b32.xlu0 %v10180_v7, %s8001_s13  ;;  %s7932_s13 = sshll.u32 %s11557_s18, 2 }
 0x997   : > { %6653 = vrot.lane.b32.xlu1 %v10178_v50, %s8002_s14 }
 0x999   : > { %6655 = vrot.lane.b32.xlu0 %v10180_v7, %s8002_s14 }
 0x99b   : > { %6679 = vrot.lane.b32.xlu1 %v10178_v50, %s8003_s15 }
 0x99d   : > { %6681 = vrot.lane.b32.xlu0 %v10180_v7, %s8003_s15 }
 0x99f   : > { %6705 = vrot.lane.b32.xlu1 %v10178_v50, %s8004_s16 }
 0x9a1   : > { %6707 = vrot.lane.b32.xlu0 %v10180_v7, %s8004_s16  ;;  %s402_s16 = scalar_lea.vmem %s11280_s10, %s7932_s13 }
 0x9a3   : > { %6731 = vrot.lane.b32.xlu1 %v10178_v50, %s7997_s29 }
 0x9a5   : > { %6733 = vrot.lane.b32.xlu0 %v10180_v7, %s7997_s29 }
 0x9c5   : > { %v5680_v39 = vpop.permute.xlu1 %5679 }
 0x9c7   : > { %v5682_v59 = vpop.permute.xlu0 %5681  ;;  %3606 = vadd.xlane.f32.xlu1 %v3605_v36 }
 0x9c8   : > { %v5683_v2 = vsel %vm1331_vm6, %v5680_v39, %v5682_v59  ;;  %v5684_v14 = vsel %vm1331_vm6, %v5682_v59, %v5680_v39 }
 0x9c9   : > { %v5687_v41 = vcombine.low %v5683_v2, %v5684_v14  ;;  %v5879_v49 = vcombine.low %v5684_v14, %v5683_v2  ;;  %v5706_v13 = vpop.permute.xlu1 %5705 }
 0x9cb   : > { %v5694_v42 = vrot.slane %v5687_v41, %v8219_v24  ;;  %v5886_v45 = vrot.slane %v5879_v49, %v8219_v24  ;;  %v5708_v21 = vpop.permute.xlu0 %5707 }
 0x9cc   : > { %v5709_v15 = vsel %vm2277_vm11, %v5706_v13, %v5708_v21  ;;  %v5710_v53 = vsel %vm2277_vm11, %v5708_v21, %v5706_v13 }
 0x9cd   : > { %v10540_v25 = vrot.slane %v5694_v42, %v8219_v24  ;;  %v10543_v30 = vrot.slane %v5886_v45, %v8219_v24  ;;  %v5713_v35 = vcombine.low %v5709_v15, %v5710_v53  ;;  %v5897_v0 = vcombine.low %v5710_v53, %v5709_v15  ;;  %v5732_v16 = vpop.permute.xlu1 %5731 }
 0x9cf   : > { %5703 = vst.msk [vmem:[#allocation3 + $0x1] ss:$8 sm:$0x3] %vm9118_vm14, %v10540_v25  ;;  %5895 = vst.msk [vmem:[#allocation3 + $0x11] ss:$8 sm:$0x3] %vm9118_vm14, %v10543_v30  ;;  %v5720_v5 = vrot.slane %v5713_v35, %v8219_v24  ;;  %v5904_v57 = vrot.slane %v5897_v0, %v8219_v24  ;;  %v5734_v1 = vpop.permute.xlu0 %5733 }
 0x9d0   : > { %v5735_v56 = vsel %vm2305_vm7, %v5732_v16, %v5734_v1  ;;  %v5736_v12 = vsel %vm2305_vm7, %v5734_v1, %v5732_v16 }
 0x9d1   : > { %v10558_v61 = vrot.slane %v5720_v5, %v8219_v24  ;;  %v10561_v63 = vrot.slane %v5904_v57, %v8219_v24  ;;  %v5739_v43 = vcombine.low %v5735_v56, %v5736_v12  ;;  %v5915_v39 = vcombine.low %v5736_v12, %v5735_v56  ;;  %v5758_v36 = vpop.permute.xlu1 %5757 }
 0x9d3   : > { %5729 = vst.msk [vmem:[#allocation3 + $0x2] ss:$8 sm:$0x3] %vm9118_vm14, %v10558_v61  ;;  %5913 = vst.msk [vmem:[#allocation3 + $0x12] ss:$8 sm:$0x3] %vm9118_vm14, %v10561_v63  ;;  %v5746_v59 = vrot.slane %v5739_v43, %v8219_v24  ;;  %v5922_v2 = vrot.slane %v5915_v39, %v8219_v24  ;;  %v5760_v14 = vpop.permute.xlu0 %5759 }
 0x9d4   : > { %v5761_v41 = vsel %vm2333_vm1, %v5758_v36, %v5760_v14  ;;  %v5762_v49 = vsel %vm2333_vm1, %v5760_v14, %v5758_v36 }
 0x9d5   : > { %v10576_v13 = vrot.slane %v5746_v59, %v8219_v24  ;;  %v10579_v42 = vrot.slane %v5922_v2, %v8219_v24  ;;  %v5765_v45 = vcombine.low %v5761_v41, %v5762_v49  ;;  %v5933_v21 = vcombine.low %v5762_v49, %v5761_v41  ;;  %v5784_v15 = vpop.permute.xlu1 %5783 }
 0x9d7   : > { %5755 = vst.msk [vmem:[#allocation3 + $0x3] ss:$8 sm:$0x3] %vm9118_vm14, %v10576_v13  ;;  %5931 = vst.msk [vmem:[#allocation3 + $0x13] ss:$8 sm:$0x3] %vm9118_vm14, %v10579_v42  ;;  %v5772_v53 = vrot.slane %v5765_v45, %v8219_v24  ;;  %v5940_v35 = vrot.slane %v5933_v21, %v8219_v24  ;;  %v5786_v0 = vpop.permute.xlu0 %5785 }
 0x9d8   : > { %v5787_v16 = vsel %vm2361_vm0, %v5784_v15, %v5786_v0  ;;  %v5788_v5 = vsel %vm2361_vm0, %v5786_v0, %v5784_v15 }
 0x9d9   : > { %v10594_v57 = vrot.slane %v5772_v53, %v8219_v24  ;;  %v10597_v1 = vrot.slane %v5940_v35, %v8219_v24  ;;  %v5791_v56 = vcombine.low %v5787_v16, %v5788_v5  ;;  %v5951_v12 = vcombine.low %v5788_v5, %v5787_v16  ;;  %v5810_v43 = vpop.permute.xlu1 %5809 }
 0x9db   : > { %5781 = vst.msk [vmem:[#allocation3 + $0x4] ss:$8 sm:$0x3] %vm9118_vm14, %v10594_v57  ;;  %5949 = vst.msk [vmem:[#allocation3 + $0x14] ss:$8 sm:$0x3] %vm9118_vm14, %v10597_v1  ;;  %v5798_v39 = vrot.slane %v5791_v56, %v8219_v24  ;;  %v5958_v36 = vrot.slane %v5951_v12, %v8219_v24  ;;  %v5812_v59 = vpop.permute.xlu0 %5811 }
 0x9dc   : > { %v5813_v2 = vsel %vm2389_vm13, %v5810_v43, %v5812_v59  ;;  %v5814_v14 = vsel %vm2389_vm13, %v5812_v59, %v5810_v43 }
 0x9dd   : > { %v10612_v41 = vrot.slane %v5798_v39, %v8219_v24  ;;  %v10615_v49 = vrot.slane %v5958_v36, %v8219_v24  ;;  %v5817_v45 = vcombine.low %v5813_v2, %v5814_v14  ;;  %v5969_v21 = vcombine.low %v5814_v14, %v5813_v2  ;;  %v5836_v15 = vpop.permute.xlu1 %5835 }
 0x9df   : > { %5807 = vst.msk [vmem:[#allocation3 + $0x5] ss:$8 sm:$0x3] %vm9118_vm14, %v10612_v41  ;;  %5967 = vst.msk [vmem:[#allocation3 + $0x15] ss:$8 sm:$0x3] %vm9118_vm14, %v10615_v49  ;;  %v5824_v53 = vrot.slane %v5817_v45, %v8219_v24  ;;  %v5976_v35 = vrot.slane %v5969_v21, %v8219_v24  ;;  %v5838_v0 = vpop.permute.xlu0 %5837  ;;  %v6557_v45 = vcombine.low %v10178_v50, %v10180_v7 }
 0x9e0   : > { %v5839_v16 = vsel %vm1086_vm10, %v5836_v15, %v5838_v0  ;;  %v5840_v5 = vsel %vm1086_vm10, %v5838_v0, %v5836_v15  ;;  %v6757_v21 = vcombine.low %v10180_v7, %v10178_v50 }
 0x9e1   : > { %v10630_v56 = vrot.slane %v5824_v53, %v8219_v24  ;;  %v10633_v12 = vrot.slane %v5976_v35, %v8219_v24  ;;  %v5843_v43 = vcombine.low %v5839_v16, %v5840_v5  ;;  %v5987_v39 = vcombine.low %v5840_v5, %v5839_v16  ;;  %v6021_v36 = vpop.permute.xlu1 %6020 }
 0x9e3   : > { %5833 = vst.msk [vmem:[#allocation3 + $0x6] ss:$8 sm:$0x3] %vm9118_vm14, %v10630_v56  ;;  %5985 = vst.msk [vmem:[#allocation3 + $0x16] ss:$8 sm:$0x3] %vm9118_vm14, %v10633_v12  ;;  %v5850_v59 = vrot.slane %v5843_v43, %v8219_v24  ;;  %v5994_v2 = vrot.slane %v5987_v39, %v8219_v24  ;;  %v6023_v14 = vpop.permute.xlu0 %6022 }
 0x9e4   : > { %v6024_v15 = vsel %vm1331_vm6, %v6021_v36, %v6023_v14  ;;  %v6025_v53 = vsel %vm1331_vm6, %v6023_v14, %v6021_v36  ;;  %v6564_v36 = vrot.slane %v6557_v45, %v8219_v24 }
 0x9e5   : > { %v10652_v35 = vrot.slane %v5850_v59, %v8219_v24  ;;  %v10655_v0 = vrot.slane %v5994_v2, %v8219_v24  ;;  %v6028_v16 = vcombine.low %v6024_v15, %v6025_v53  ;;  %v6220_v5 = vcombine.low %v6025_v53, %v6024_v15  ;;  %v6047_v43 = vpop.permute.xlu1 %6046 }
 0x9e6   : > { %v6764_v59 = vrot.slane %v6757_v21, %v8219_v24 }
 0x9e7   : > { %5859 = vst.msk [vmem:[#allocation3 + $0x7] ss:$8 sm:$0x3] %vm9118_vm14, %v10652_v35  ;;  %6003 = vst.msk [vmem:[#allocation3 + $0x17] ss:$8 sm:$0x3] %vm9118_vm14, %v10655_v0  ;;  %v6035_v50 = vrot.slane %v6028_v16, %v8219_v24  ;;  %v6227_v7 = vrot.slane %v6220_v5, %v8219_v24  ;;  %v6049_v39 = vpop.permute.xlu0 %6048 }
 0x9e8   : > { %v6050_v2 = vsel %vm2277_vm11, %v6047_v43, %v6049_v39  ;;  %v6051_v14 = vsel %vm2277_vm11, %v6049_v39, %v6047_v43 }
 0x9e9   : > { %v10672_v15 = vrot.slane %v6035_v50, %v8219_v24  ;;  %v10675_v53 = vrot.slane %v6227_v7, %v8219_v24  ;;  %v6054_v16 = vcombine.low %v6050_v2, %v6051_v14  ;;  %v6238_v11 = vcombine.low %v6051_v14, %v6050_v2  ;;  %v6073_v5 = vpop.permute.xlu1 %6072 }
 0x9ea   : > { %v6571_v50 = vrot.slane %v6564_v36, %v8219_v24  ;;  %v6771_v7 = vrot.slane %v6764_v59, %v8219_v24 }
 0x9eb   : > { %6044 = vst.msk [vmem:[#allocation3 + $0x21] ss:$8 sm:$0x3] %vm9118_vm14, %v10672_v15  ;;  %6236 = vst.msk [vmem:[#allocation3 + $0x31] ss:$8 sm:$0x3] %vm9118_vm14, %v10675_v53  ;;  %v6061_v45 = vrot.slane %v6054_v16, %v8219_v24  ;;  %v6245_v21 = vrot.slane %v6238_v11, %v8219_v24  ;;  %v6075_v43 = vpop.permute.xlu0 %6074 }
 0x9ec   : > { %v6076_v39 = vsel %vm2305_vm7, %v6073_v5, %v6075_v43  ;;  %v6077_v2 = vsel %vm2305_vm7, %v6075_v43, %v6073_v5 }
 0x9ed   : > { %v10692_v14 = vrot.slane %v6061_v45, %v8219_v24  ;;  %v10695_v33 = vrot.slane %v6245_v21, %v8219_v24  ;;  %v6080_v16 = vcombine.low %v6076_v39, %v6077_v2  ;;  %v6256_v55 = vcombine.low %v6077_v2, %v6076_v39  ;;  %v6099_v11 = vpop.permute.xlu1 %6098 }
 0x9ee   : > { %v6346_v46 = vld [vmem:[#allocation3] sm:$0xff]  ;;  %v6347_v9 = vld [vmem:[#allocation3 + $0x10] sm:$0xff] }
 0x9ef   : > { %6573 = vst.msk [vmem:[#allocation3] ss:$8 sm:$0x3] %vm9118_vm14, %v6571_v50  ;;  %6773 = vst.msk [vmem:[#allocation3 + $0x10] ss:$8 sm:$0x3] %vm9118_vm14, %v6771_v7  ;;  %v6087_v36 = vrot.slane %v6080_v16, %v8219_v24  ;;  %v6263_v59 = vrot.slane %v6256_v55, %v8219_v24  ;;  %v6101_v5 = vpop.permute.xlu0 %6100  ;;  %7912 = vmatmul.mubr.msk.f32.vlgmr.msra.gmra.mxu1 %vm2953_vm3, %v6346_v46 }
 0x9f0   : > { %6070 = vst.msk [vmem:[#allocation3 + $0x22] ss:$8 sm:$0x3] %vm9118_vm14, %v10692_v14  ;;  %6254 = vst.msk [vmem:[#allocation3 + $0x32] ss:$8 sm:$0x3] %vm9118_vm14, %v10695_v33  ;;  %v6102_v45 = vsel %vm2333_vm1, %v6099_v11, %v6101_v5  ;;  %v6103_v21 = vsel %vm2333_vm1, %v6101_v5, %v6099_v11  ;;  %6432 = vmatprep.mubr.f32.mxu1 %v11477_v62 }
 0x9f1   : > { %v10716_v43 = vrot.slane %v6087_v36, %v8219_v24  ;;  %v10719_v50 = vrot.slane %v6263_v59, %v8219_v24  ;;  %v6106_v7 = vcombine.low %v6102_v45, %v6103_v21  ;;  %v6274_v39 = vcombine.low %v6103_v21, %v6102_v45  ;;  %v6125_v55 = vpop.permute.xlu1 %6124 }
 0x9f3   : > { %6096 = vst.msk [vmem:[#allocation3 + $0x23] ss:$8 sm:$0x3] %vm9118_vm14, %v10716_v43  ;;  %6272 = vst.msk [vmem:[#allocation3 + $0x33] ss:$8 sm:$0x3] %vm9118_vm14, %v10719_v50  ;;  %v6113_v46 = vrot.slane %v6106_v7, %v8219_v24  ;;  %v6281_v2 = vrot.slane %v6274_v39, %v8219_v24  ;;  %v6127_v16 = vpop.permute.xlu0 %6126  ;;  %7913 = vmatmul.mubr.msk.f32.gmra.mxu1 %vm2953_vm3, %v6347_v9 }
 0x9f4   : > { %v6128_v11 = vsel %vm2361_vm0, %v6125_v55, %v6127_v16  ;;  %v6129_v36 = vsel %vm2361_vm0, %v6127_v16, %v6125_v55  ;;  %6438 = vmatprep.mubr.f32.mxu1 %v11477_v62 }
 0x9f5   : > { %v10736_v59 = vrot.slane %v6113_v46, %v8219_v24  ;;  %v10739_v5 = vrot.slane %v6281_v2, %v8219_v24  ;;  %v6132_v45 = vcombine.low %v6128_v11, %v6129_v36  ;;  %v6292_v21 = vcombine.low %v6129_v36, %v6128_v11  ;;  %v6151_v7 = vpop.permute.xlu1 %6150 }
 0x9f7   : > { %6122 = vst.msk [vmem:[#allocation3 + $0x24] ss:$8 sm:$0x3] %vm9118_vm14, %v10736_v59  ;;  %6290 = vst.msk [vmem:[#allocation3 + $0x34] ss:$8 sm:$0x3] %vm9118_vm14, %v10739_v5  ;;  %v6139_v9 = vrot.slane %v6132_v45, %v8219_v24  ;;  %v6299_v39 = vrot.slane %v6292_v21, %v8219_v24  ;;  %v6153_v55 = vpop.permute.xlu0 %6152 }
 0x9f8   : > { %v6154_v46 = vsel %vm2389_vm13, %v6151_v7, %v6153_v55  ;;  %v6155_v2 = vsel %vm2389_vm13, %v6153_v55, %v6151_v7 }
 0x9f9   : > { %v6146_v16 = vrot.slane %v6139_v9, %v8219_v24  ;;  %v10755_v11 = vrot.slane %v6299_v39, %v8219_v24  ;;  %v6158_v36 = vcombine.low %v6154_v46, %v6155_v2  ;;  %v6310_v44 = vcombine.low %v6155_v2, %v6154_v46  ;;  %v6177_v51 = vpop.permute.xlu1 %6176 }
 0x9fb   : > { %6148 = vst.msk [vmem:[#allocation3 + $0x25] ss:$8 sm:$0x3] %vm9118_vm14, %v6146_v16  ;;  %6308 = vst.msk [vmem:[#allocation3 + $0x35] ss:$8 sm:$0x3] %vm9118_vm14, %v10755_v11  ;;  %v6165_v45 = vrot.slane %v6158_v36, %v8219_v24  ;;  %v6317_v21 = vrot.slane %v6310_v44, %v8219_v24  ;;  %v6179_v7 = vpop.permute.xlu0 %6178 }
 0x9fc   : > { %v6180_v9 = vsel %vm1086_vm10, %v6177_v51, %v6179_v7  ;;  %v6181_v39 = vsel %vm1086_vm10, %v6179_v7, %v6177_v51 }
 0x9fd   : > { %v6172_v55 = vrot.slane %v6165_v45, %v8219_v24  ;;  %v6324_v46 = vrot.slane %v6317_v21, %v8219_v24  ;;  %v6184_v2 = vcombine.low %v6180_v9, %v6181_v39  ;;  %v6328_v20 = vcombine.low %v6181_v39, %v6180_v9  ;;  %v6576_v8 = vpop.permute.xlu1 %6575 }
 0x9ff   : > { %6174 = vst.msk [vmem:[#allocation3 + $0x26] ss:$8 sm:$0x3] %vm9118_vm14, %v6172_v55  ;;  %6326 = vst.msk [vmem:[#allocation3 + $0x36] ss:$8 sm:$0x3] %vm9118_vm14, %v6324_v46  ;;  %v6191_v44 = vrot.slane %v6184_v2, %v8219_v24  ;;  %v6335_v36 = vrot.slane %v6328_v20, %v8219_v24  ;;  %v6578_v17 = vpop.permute.xlu0 %6577 }
 0xa00   : > { %v6579_v51 = vsel %vm1331_vm6, %v6576_v8, %v6578_v17  ;;  %v6580_v45 = vsel %vm1331_vm6, %v6578_v17, %v6576_v8 }
 0xa01   : > { %v6198_v21 = vrot.slane %v6191_v44, %v8219_v24  ;;  %v6342_v7 = vrot.slane %v6335_v36, %v8219_v24  ;;  %v6583_v9 = vcombine.low %v6579_v51, %v6580_v45  ;;  %v6775_v39 = vcombine.low %v6580_v45, %v6579_v51  ;;  %v6602_v38 = vpop.permute.xlu1 %6601 }
 0xa03   : > { %6200 = vst.msk [vmem:[#allocation3 + $0x27] ss:$8 sm:$0x3] %vm9118_vm14, %v6198_v21  ;;  %6344 = vst.msk [vmem:[#allocation3 + $0x37] ss:$8 sm:$0x3] %vm9118_vm14, %v6342_v7  ;;  %v6590_v20 = vrot.slane %v6583_v9, %v8219_v24  ;;  %v6782_v2 = vrot.slane %v6775_v39, %v8219_v24  ;;  %v6604_v3 = vpop.permute.xlu0 %6603 }
 0xa04   : > { %v6605_v8 = vsel %vm2277_vm11, %v6602_v38, %v6604_v3  ;;  %v6606_v17 = vsel %vm2277_vm11, %v6604_v3, %v6602_v38 }
 0xa05   : > { %v6597_v44 = vrot.slane %v6590_v20, %v8219_v24  ;;  %v6789_v36 = vrot.slane %v6782_v2, %v8219_v24  ;;  %v6609_v51 = vcombine.low %v6605_v8, %v6606_v17  ;;  %v6793_v45 = vcombine.low %v6606_v17, %v6605_v8  ;;  %v6628_v10 = vpop.permute.xlu1 %6627 }
 0xa07   : > { %6599 = vst.msk [vmem:[#allocation3 + $0x1] ss:$8 sm:$0x3] %vm9118_vm14, %v6597_v44  ;;  %6791 = vst.msk [vmem:[#allocation3 + $0x11] ss:$8 sm:$0x3] %vm9118_vm14, %v6789_v36  ;;  %v6616_v9 = vrot.slane %v6609_v51, %v8219_v24  ;;  %v6800_v39 = vrot.slane %v6793_v45, %v8219_v24  ;;  %v6630_v60 = vpop.permute.xlu0 %6629 }
 0xa08   : > { %v6631_v3 = vsel %vm2305_vm7, %v6628_v10, %v6630_v60  ;;  %v6632_v38 = vsel %vm2305_vm7, %v6630_v60, %v6628_v10 }
 0xa09   : > { %v6623_v20 = vrot.slane %v6616_v9, %v8219_v24  ;;  %v6807_v2 = vrot.slane %v6800_v39, %v8219_v24  ;;  %v6635_v8 = vcombine.low %v6631_v3, %v6632_v38  ;;  %v6811_v17 = vcombine.low %v6632_v38, %v6631_v3  ;;  %v6654_v44 = vpop.permute.xlu1 %6653 }
 0xa0a   : > { %v6348_v4 = vld [vmem:[#allocation3 + $0x20] sm:$0xff]  ;;  %v6349_v36 = vld [vmem:[#allocation3 + $0x30] sm:$0xff] }
 0xa0b   : > { %7067 = vst.msk [vmem:[#allocation3 + $0x27] ss:$8 sm:$0x3] %vm9118_vm14, %v6198_v21  ;;  %7083 = vst.msk [vmem:[#allocation3 + $0x37] ss:$8 sm:$0x3] %vm9118_vm14, %v6342_v7  ;;  %v6642_v60 = vrot.slane %v6635_v8, %v8219_v24  ;;  %v6656_v10 = vpop.permute.xlu0 %6655  ;;  %7914 = vmatmul.mubr.msk.f32.gmra.mxu1 %vm2953_vm3, %v6348_v4 }
 0xa0c   : > { %7053 = vst.msk [vmem:[#allocation3 + $0x20] ss:$8 sm:$0x3] %vm9118_vm14, %v10431_v37  ;;  %7055 = vst.msk [vmem:[#allocation3 + $0x21] ss:$8 sm:$0x3] %vm9118_vm14, %v10672_v15  ;;  %v6657_v37 = vsel %vm2333_vm1, %v6654_v44, %v6656_v10  ;;  %6444 = vmatprep.mubr.f32.mxu1 %v11477_v62 }
 0xa0d   : > { %7057 = vst.msk [vmem:[#allocation3 + $0x22] ss:$8 sm:$0x3] %vm9118_vm14, %v10692_v14  ;;  %7059 = vst.msk [vmem:[#allocation3 + $0x23] ss:$8 sm:$0x3] %vm9118_vm14, %v10716_v43  ;;  %v6649_v15 = vrot.slane %v6642_v60, %v8219_v24 }
 0xa0e   : > { %7061 = vst.msk [vmem:[#allocation3 + $0x24] ss:$8 sm:$0x3] %vm9118_vm14, %v10736_v59  ;;  %7063 = vst.msk [vmem:[#allocation3 + $0x25] ss:$8 sm:$0x3] %vm9118_vm14, %v6146_v16 }
 0xa0f   : > { %7065 = vst.msk [vmem:[#allocation3 + $0x26] ss:$8 sm:$0x3] %vm9118_vm14, %v6172_v55  ;;  %7069 = vst.msk [vmem:[#allocation3 + $0x30] ss:$8 sm:$0x3] %vm9118_vm14, %v10439_v27  ;;  %v6658_v27 = vsel %vm2333_vm1, %v6656_v10, %v6654_v44  ;;  %7915 = vmatmul.mubr.msk.f32.gmra.mxu1 %vm2953_vm3, %v6349_v36 }
 0xa10   : > { %7071 = vst.msk [vmem:[#allocation3 + $0x31] ss:$8 sm:$0x3] %vm9118_vm14, %v10675_v53  ;;  %7073 = vst.msk [vmem:[#allocation3 + $0x32] ss:$8 sm:$0x3] %vm9118_vm14, %v10695_v33  ;;  %v6818_v33 = vrot.slane %v6811_v17, %v8219_v24  ;;  %v6661_v14 = vcombine.low %v6657_v37, %v6658_v27  ;;  %v6829_v43 = vcombine.low %v6658_v27, %v6657_v37  ;;  %7438 = vmatprep.mubr.f32.mxu1 %v11477_v62 }
 0xa11   : > { %7075 = vst.msk [vmem:[#allocation3 + $0x33] ss:$8 sm:$0x3] %vm9118_vm14, %v10719_v50  ;;  %7077 = vst.msk [vmem:[#allocation3 + $0x34] ss:$8 sm:$0x3] %vm9118_vm14, %v10739_v5  ;;  %v6680_v50 = vpop.permute.xlu1 %6679  ;;  %v6682_v5 = vpop.permute.xlu0 %6681 }
 0xa12   : > { %7079 = vst.msk [vmem:[#allocation3 + $0x35] ss:$8 sm:$0x3] %vm9118_vm14, %v10755_v11  ;;  %7081 = vst.msk [vmem:[#allocation3 + $0x36] ss:$8 sm:$0x3] %vm9118_vm14, %v6324_v46  ;;  %v6825_v53 = vrot.slane %v6818_v33, %v8219_v24  ;;  %v6668_v4 = vrot.slane %v6661_v14, %v8219_v24  ;;  %v6836_v59 = vrot.slane %v6829_v43, %v8219_v24 }
 0xa13   : > { %6625 = vst.msk [vmem:[#allocation3 + $0x2] ss:$8 sm:$0x3] %vm9118_vm14, %v6623_v20  ;;  %6809 = vst.msk [vmem:[#allocation3 + $0x12] ss:$8 sm:$0x3] %vm9118_vm14, %v6807_v2  ;;  %v6683_v16 = vsel %vm2361_vm0, %v6680_v50, %v6682_v5  ;;  %v6684_v11 = vsel %vm2361_vm0, %v6682_v5, %v6680_v50 }
 0xa14   : > { %6651 = vst.msk [vmem:[#allocation3 + $0x3] ss:$8 sm:$0x3] %vm9118_vm14, %v6649_v15  ;;  %6827 = vst.msk [vmem:[#allocation3 + $0x13] ss:$8 sm:$0x3] %vm9118_vm14, %v6825_v53  ;;  %v6675_v55 = vrot.slane %v6668_v4, %v8219_v24  ;;  %v6843_v46 = vrot.slane %v6836_v59, %v8219_v24  ;;  %v6687_v21 = vcombine.low %v6683_v16, %v6684_v11 }
 0xa15   : > { %v6847_v7 = vcombine.low %v6684_v11, %v6683_v16  ;;  %v6706_v51 = vpop.permute.xlu1 %6705  ;;  %v6708_v38 = vpop.permute.xlu0 %6707  ;;  %v11515_v14 = vld [vmem:[#allocation32_spill] sm:$0xff]  ;;  %v11516_v43 = vld [vmem:[#allocation34_spill] sm:$0xff]  ;;  %v11517_v59 = vld [vmem:[#allocation35_spill] sm:$0xff] }
 0xa16   : > { %v10877_v45 = vld [vmem:[#allocation3 + $0x20] sm:$0xff]  ;;  %6677 = vst.msk [vmem:[#allocation3 + $0x4] ss:$8 sm:$0x3] %vm9118_vm14, %v6675_v55  ;;  %v6694_v39 = vrot.slane %v6687_v21, %v8219_v24  ;;  %v11519_v16 = vld [vmem:[#allocation43_spill] sm:$0xff] }
 0xa17   : > { %6845 = vst.msk [vmem:[#allocation3 + $0x14] ss:$8 sm:$0x3] %vm9118_vm14, %v6843_v46  ;;  %v6854_v3 = vrot.slane %v6847_v7, %v8219_v24  ;;  %7326 = vst.msk [vmem:[#allocation3 + $0x20] ss:$8 sm:$0x3] %vm9118_vm14, %v9141_v52 }
 0xa18   : > { %7328 = vst.msk [vmem:[#allocation3 + $0x21] ss:$8 sm:$0x3] %vm9118_vm14, %v9472_v58  ;;  %7330 = vst.msk [vmem:[#allocation3 + $0x22] ss:$8 sm:$0x3] %vm9118_vm14, %v9500_v40  ;;  %v6710_v40 = vsel %vm2389_vm13, %v6708_v38, %v6706_v51 }
 0xa19   : > { %v10879_v9 = vld [vmem:[#allocation3 + $0x30] sm:$0xff]  ;;  %7332 = vst.msk [vmem:[#allocation3 + $0x23] ss:$8 sm:$0x3] %vm9118_vm14, %v9530_v47  ;;  %v11497_v52 = vld [vmem:[#allocation37_spill] sm:$0xff]  ;;  %v11500_v58 = vld [vmem:[#allocation40_spill] sm:$0xff]  ;;  %v6861_v47 = vrot.slane %v6854_v3, %v8219_v24  ;;  %v6732_v20 = vpop.permute.xlu1 %6731  ;;  %v6734_v2 = vpop.permute.xlu0 %6733 }
 0xa1a   : > { %7334 = vst.msk [vmem:[#allocation3 + $0x24] ss:$8 sm:$0x3] %vm9118_vm14, %v9554_v31  ;;  %7336 = vst.msk [vmem:[#allocation3 + $0x25] ss:$8 sm:$0x3] %vm9118_vm14, %v9576_v26  ;;  %v6735_v8 = vsel %vm1086_vm10, %v6732_v20, %v6734_v2  ;;  %v6736_v17 = vsel %vm1086_vm10, %v6734_v2, %v6732_v20 }
 0xa1b   : > { %7338 = vst.msk [vmem:[#allocation3 + $0x26] ss:$8 sm:$0x3] %vm9118_vm14, %v9598_v32  ;;  %7340 = vst.msk [vmem:[#allocation3 + $0x27] ss:$8 sm:$0x3] %vm9118_vm14, %v9621_v23  ;;  %v6739_v60 = vcombine.low %v6735_v8, %v6736_v17  ;;  %v6883_v33 = vcombine.low %v6736_v17, %v6735_v8 }
 0xa1c   : > { %7342 = vst.msk [vmem:[#allocation3 + $0x30] ss:$8 sm:$0x3] %vm9118_vm14, %v9149_v54  ;;  %7344 = vst.msk [vmem:[#allocation3 + $0x31] ss:$8 sm:$0x3] %vm9118_vm14, %v9475_v28  ;;  %v6709_v28 = vsel %vm2389_vm13, %v6706_v51, %v6708_v38 }
 0xa1d   : > { %7346 = vst.msk [vmem:[#allocation3 + $0x32] ss:$8 sm:$0x3] %vm9118_vm14, %v9503_v6  ;;  %7348 = vst.msk [vmem:[#allocation3 + $0x33] ss:$8 sm:$0x3] %vm9118_vm14, %v9533_v18  ;;  %v6701_v6 = vrot.slane %v6694_v39, %v8219_v24  ;;  %v6713_v18 = vcombine.low %v6709_v28, %v6710_v40  ;;  %v6865_v31 = vcombine.low %v6710_v40, %v6709_v28 }
 0xa1e   : > { %7350 = vst.msk [vmem:[#allocation3 + $0x34] ss:$8 sm:$0x3] %vm9118_vm14, %v11497_v52  ;;  %v11498_v23 = vld [vmem:[#allocation38_spill] sm:$0xff]  ;;  %v11499_v54 = vld [vmem:[#allocation39_spill] sm:$0xff]  ;;  %v6746_v10 = vrot.slane %v6739_v60, %v8219_v24  ;;  %v6890_v37 = vrot.slane %v6883_v33, %v8219_v24  ;;  %v11518_v5 = vld [vmem:[#allocation41_spill] sm:$0xff] }
 0xa1f   : > { %7352 = vst.msk [vmem:[#allocation3 + $0x35] ss:$8 sm:$0x3] %vm9118_vm14, %v11498_v23  ;;  %7354 = vst.msk [vmem:[#allocation3 + $0x36] ss:$8 sm:$0x3] %vm9118_vm14, %v11499_v54  ;;  %v6720_v26 = vrot.slane %v6713_v18, %v8219_v24  ;;  %v6872_v32 = vrot.slane %v6865_v31, %v8219_v24 }
 0xa20   : > { %7356 = vst.msk [vmem:[#allocation3 + $0x37] ss:$8 sm:$0x3] %vm9118_vm14, %v11500_v58  ;;  %6703 = vst.msk [vmem:[#allocation3 + $0x5] ss:$8 sm:$0x3] %vm9118_vm14, %v6701_v6  ;;  %v6753_v27 = vrot.slane %v6746_v10, %v8219_v24  ;;  %v6897_v19 = vrot.slane %v6890_v37, %v8219_v24 }
 0xa21   : > { %6863 = vst.msk [vmem:[#allocation3 + $0x15] ss:$8 sm:$0x3] %vm9118_vm14, %v6861_v47  ;;  %v6727_v44 = vrot.slane %v6720_v26, %v8219_v24  ;;  %v6879_v36 = vrot.slane %v6872_v32, %v8219_v24  ;;  %v11520_v11 = vld [vmem:[#allocation45_spill] sm:$0xff]  ;;  %v11521_v55 = vld [vmem:[#allocation47_spill] sm:$0xff]  ;;  %v11525_v51 = vld [vmem:[#allocation36_spill] sm:$0xff] }
 0xa22   : > { %6755 = vst.msk [vmem:[#allocation3 + $0x7] ss:$8 sm:$0x3] %vm9118_vm14, %v6753_v27  ;;  %6899 = vst.msk [vmem:[#allocation3 + $0x17] ss:$8 sm:$0x3] %vm9118_vm14, %v6897_v19 }
 0xa23   : > { %6729 = vst.msk [vmem:[#allocation3 + $0x6] ss:$8 sm:$0x3] %vm9118_vm14, %v6727_v44  ;;  %6881 = vst.msk [vmem:[#allocation3 + $0x16] ss:$8 sm:$0x3] %vm9118_vm14, %v6879_v36 }
 0xa24   : > { %v11522_v46 = vld [vmem:[#allocation49_spill] sm:$0xff]  ;;  %v11523_v21 = vld [vmem:[#allocation51_spill] sm:$0xff]  ;;  %v11526_v39 = vld [vmem:[#allocation42_spill] sm:$0xff] }
 0xa25   : > { %v11524_v7 = vld [vmem:[#allocation53_spill] sm:$0xff]  ;;  %v11527_v3 = vld [vmem:[#allocation44_spill] sm:$0xff]  ;;  %v11528_v38 = vld [vmem:[#allocation46_spill] sm:$0xff] }
 0xa26   : > { %v11529_v52 = vld [vmem:[#allocation48_spill] sm:$0xff]  ;;  %v11530_v23 = vld [vmem:[#allocation50_spill] sm:$0xff]  ;;  %v11534_v2 = vld [vmem:[#allocation55_spill] sm:$0xff] }
 0xa27   : > { %v11531_v54 = vld [vmem:[#allocation52_spill] sm:$0xff]  ;;  %v11532_v58 = vld [vmem:[#allocation54_spill] sm:$0xff]  ;;  %v11535_v8 = vld [vmem:[#allocation63_spill] sm:$0xff] }
 0xa28   : > { %v11533_v32 = vld [vmem:[#allocation62_spill] sm:$0xff]  ;;  %v5600_v17 = vadd.f32 %v11535_v8, %v11534_v2  ;;  %v11536_v10 = vld [vmem:[#allocation5_spill] sm:$0xff] }
 0xa29   : > { %v5599_v20 = vadd.f32 %v11533_v32, %v9963_v34  ;;  %v11537_v19 = vld [vmem:[#allocation14_spill] sm:$0xff] }
 0xa2a   : > { %v10965_v15 = vld [vmem:[#allocation3] sm:$0xff]  ;;  %v10967_v53 = vld [vmem:[#allocation3 + $0x10] sm:$0xff]  ;;  %v5604_v36 = vmax.f32 %v5600_v17, 0.0 }
 0xa2b   : > { %7035 = vst.msk [vmem:[#allocation3 + $0x7] ss:$8 sm:$0x3] %vm9118_vm14, %v10652_v35  ;;  %7051 = vst.msk [vmem:[#allocation3 + $0x17] ss:$8 sm:$0x3] %vm9118_vm14, %v10655_v0 }
 0xa2c   : > { %7021 = vst.msk [vmem:[#allocation3] ss:$8 sm:$0x3] %vm9118_vm14, %v10415_v48  ;;  %7023 = vst.msk [vmem:[#allocation3 + $0x1] ss:$8 sm:$0x3] %vm9118_vm14, %v10540_v25 }
 0xa2d   : > { %7025 = vst.msk [vmem:[#allocation3 + $0x2] ss:$8 sm:$0x3] %vm9118_vm14, %v10558_v61  ;;  %7027 = vst.msk [vmem:[#allocation3 + $0x3] ss:$8 sm:$0x3] %vm9118_vm14, %v10576_v13 }
 0xa2e   : > { %7029 = vst.msk [vmem:[#allocation3 + $0x4] ss:$8 sm:$0x3] %vm9118_vm14, %v10594_v57  ;;  %7031 = vst.msk [vmem:[#allocation3 + $0x5] ss:$8 sm:$0x3] %vm9118_vm14, %v10612_v41 }
 0xa2f   : > { %7033 = vst.msk [vmem:[#allocation3 + $0x6] ss:$8 sm:$0x3] %vm9118_vm14, %v10630_v56  ;;  %7037 = vst.msk [vmem:[#allocation3 + $0x10] ss:$8 sm:$0x3] %vm9118_vm14, %v10418_v22 }
 0xa30   : > { %7039 = vst.msk [vmem:[#allocation3 + $0x11] ss:$8 sm:$0x3] %vm9118_vm14, %v10543_v30  ;;  %7041 = vst.msk [vmem:[#allocation3 + $0x12] ss:$8 sm:$0x3] %vm9118_vm14, %v10561_v63 }
 0xa31   : > { %7043 = vst.msk [vmem:[#allocation3 + $0x13] ss:$8 sm:$0x3] %vm9118_vm14, %v10579_v42  ;;  %7045 = vst.msk [vmem:[#allocation3 + $0x14] ss:$8 sm:$0x3] %vm9118_vm14, %v10597_v1 }
 0xa32   : > { %7047 = vst.msk [vmem:[#allocation3 + $0x15] ss:$8 sm:$0x3] %vm9118_vm14, %v10615_v49  ;;  %7049 = vst.msk [vmem:[#allocation3 + $0x16] ss:$8 sm:$0x3] %vm9118_vm14, %v10633_v12 }
 0xa33   : > { %v11501_v25 = vld [vmem:[#allocation15_spill] sm:$0xff]  ;;  %v11502_v30 = vld [vmem:[#allocation21_spill] sm:$0xff]  ;;  %v11509_v41 = vld [vmem:[#allocation16_spill] sm:$0xff]  ;;  %v5603_v44 = vmax.f32 %v5599_v20, 0.0  ;;  %v5606_v33 = vmin.f32 %v5604_v36, 15.0 }
 0xa34   : > { %v11503_v61 = vld [vmem:[#allocation23_spill] sm:$0xff]  ;;  %v11504_v63 = vld [vmem:[#allocation25_spill] sm:$0xff]  ;;  %v11510_v49 = vld [vmem:[#allocation22_spill] sm:$0xff] }
 0xa35   : > { %v11505_v13 = vld [vmem:[#allocation27_spill] sm:$0xff]  ;;  %v11506_v42 = vld [vmem:[#allocation29_spill] sm:$0xff]  ;;  %v11511_v56 = vld [vmem:[#allocation24_spill] sm:$0xff]  ;;  %v5605_v60 = vmin.f32 %v5603_v44, 15.0  ;;  %v5618_v27 = vrot.slane %v5606_v33, %v11536_v10 }
 0xa36   : > { %v11017_v48 = vld [vmem:[#allocation3] sm:$0xff]  ;;  %v11507_v57 = vld [vmem:[#allocation31_spill] sm:$0xff]  ;;  %v11512_v12 = vld [vmem:[#allocation26_spill] sm:$0xff] }
 0xa37   : > { %7294 = vst.msk [vmem:[#allocation3] ss:$8 sm:$0x3] %vm9118_vm14, %v11501_v25  ;;  %7296 = vst.msk [vmem:[#allocation3 + $0x1] ss:$8 sm:$0x3] %vm9118_vm14, %v11502_v30  ;;  %v5614_v37 = vrot.slane %v5605_v60, %v11536_v10 }
 0xa38   : > { %7298 = vst.msk [vmem:[#allocation3 + $0x2] ss:$8 sm:$0x3] %vm9118_vm14, %v11503_v61  ;;  %7300 = vst.msk [vmem:[#allocation3 + $0x3] ss:$8 sm:$0x3] %vm9118_vm14, %v11504_v63 }
 0xa39   : > { %v11019_v22 = vld [vmem:[#allocation3 + $0x10] sm:$0xff]  ;;  %7302 = vst.msk [vmem:[#allocation3 + $0x4] ss:$8 sm:$0x3] %vm9118_vm14, %v11505_v13  ;;  %v11508_v1 = vld [vmem:[#allocation33_spill] sm:$0xff]  ;;  %v11513_v35 = vld [vmem:[#allocation28_spill] sm:$0xff]  ;;  %v5621_v25 = vsub.f32 %v11537_v19, %v5614_v37  ;;  %v5622_v13 = vsub.f32 %v11537_v19, %v5618_v27 }
 0xa3a   : > { %7304 = vst.msk [vmem:[#allocation3 + $0x5] ss:$8 sm:$0x3] %vm9118_vm14, %v11506_v42  ;;  %7306 = vst.msk [vmem:[#allocation3 + $0x6] ss:$8 sm:$0x3] %vm9118_vm14, %v11507_v57 }
 0xa3b   : > { %7308 = vst.msk [vmem:[#allocation3 + $0x7] ss:$8 sm:$0x3] %vm9118_vm14, %v11508_v1  ;;  %7310 = vst.msk [vmem:[#allocation3 + $0x10] ss:$8 sm:$0x3] %vm9118_vm14, %v11509_v41 }
 0xa3c   : > { %7312 = vst.msk [vmem:[#allocation3 + $0x11] ss:$8 sm:$0x3] %vm9118_vm14, %v11510_v49  ;;  %7314 = vst.msk [vmem:[#allocation3 + $0x12] ss:$8 sm:$0x3] %vm9118_vm14, %v11511_v56 }
 0xa3d   : > { %7316 = vst.msk [vmem:[#allocation3 + $0x13] ss:$8 sm:$0x3] %vm9118_vm14, %v11512_v12  ;;  %7318 = vst.msk [vmem:[#allocation3 + $0x14] ss:$8 sm:$0x3] %vm9118_vm14, %v11513_v35 }
 0xa3e   : > { %v11514_v0 = vld [vmem:[#allocation30_spill] sm:$0xff]  ;;  %7322 = vst.msk [vmem:[#allocation3 + $0x16] ss:$8 sm:$0x3] %vm9118_vm14, %v11515_v14  ;;  %v11538_v61 = vld [vmem:[#allocation13_spill] sm:$0xff] }
 0xa3f   : > { %7320 = vst.msk [vmem:[#allocation3 + $0x15] ss:$8 sm:$0x3] %vm9118_vm14, %v11514_v0  ;;  %7324 = vst.msk [vmem:[#allocation3 + $0x17] ss:$8 sm:$0x3] %vm9118_vm14, %v11516_v43  ;;  %v5619_v63 = vsub.f32 %v11538_v61, %v5614_v37  ;;  %v5620_v42 = vsub.f32 %v11538_v61, %v5618_v27 }
 0xa40   : > { %v5625_v57 = vand.u32 2147483647, %v5621_v25  ;;  %v5626_v49 = vand.u32 2147483647, %v5622_v13 }
 0xa41   : > { %v5623_v41 = vand.u32 2147483647, %v5619_v63  ;;  %v5624_v56 = vand.u32 2147483647, %v5620_v42 }
 0xa42   : > { %v11069_v50 = vld [vmem:[#allocation3] sm:$0xff]  ;;  %v5629_v12 = vsub.f32 1.0, %v5625_v57  ;;  %v5630_v14 = vsub.f32 1.0, %v5626_v49 }
 0xa43   : > { %7567 = vst.msk [vmem:[#allocation3] ss:$8 sm:$0x3] %vm9118_vm14, %v11517_v59  ;;  %7569 = vst.msk [vmem:[#allocation3 + $0x1] ss:$8 sm:$0x3] %vm9118_vm14, %v11518_v5 }
 0xa44   : > { %7571 = vst.msk [vmem:[#allocation3 + $0x2] ss:$8 sm:$0x3] %vm9118_vm14, %v11519_v16  ;;  %7573 = vst.msk [vmem:[#allocation3 + $0x3] ss:$8 sm:$0x3] %vm9118_vm14, %v11520_v11 }
 0xa45   : > { %7575 = vst.msk [vmem:[#allocation3 + $0x4] ss:$8 sm:$0x3] %vm9118_vm14, %v11521_v55  ;;  %7577 = vst.msk [vmem:[#allocation3 + $0x5] ss:$8 sm:$0x3] %vm9118_vm14, %v11522_v46 }
 0xa46   : > { %v11071_v4 = vld [vmem:[#allocation3 + $0x10] sm:$0xff]  ;;  %7579 = vst.msk [vmem:[#allocation3 + $0x6] ss:$8 sm:$0x3] %vm9118_vm14, %v11523_v21  ;;  %v5627_v0 = vsub.f32 1.0, %v5623_v41  ;;  %v5628_v43 = vsub.f32 1.0, %v5624_v56 }
 0xa47   : > { %7581 = vst.msk [vmem:[#allocation3 + $0x7] ss:$8 sm:$0x3] %vm9118_vm14, %v11524_v7  ;;  %7583 = vst.msk [vmem:[#allocation3 + $0x10] ss:$8 sm:$0x3] %vm9118_vm14, %v11525_v51 }
 0xa48   : > { %7585 = vst.msk [vmem:[#allocation3 + $0x11] ss:$8 sm:$0x3] %vm9118_vm14, %v11526_v39  ;;  %7587 = vst.msk [vmem:[#allocation3 + $0x12] ss:$8 sm:$0x3] %vm9118_vm14, %v11527_v3 }
 0xa49   : > { %7589 = vst.msk [vmem:[#allocation3 + $0x13] ss:$8 sm:$0x3] %vm9118_vm14, %v11528_v38  ;;  %7591 = vst.msk [vmem:[#allocation3 + $0x14] ss:$8 sm:$0x3] %vm9118_vm14, %v11529_v52 }
 0xa4a   : > { %7593 = vst.msk [vmem:[#allocation3 + $0x15] ss:$8 sm:$0x3] %vm9118_vm14, %v11530_v23  ;;  %7595 = vst.msk [vmem:[#allocation3 + $0x16] ss:$8 sm:$0x3] %vm9118_vm14, %v11531_v54 }
 0xa4b   : > { %7597 = vst.msk [vmem:[#allocation3 + $0x17] ss:$8 sm:$0x3] %vm9118_vm14, %v11532_v58  ;;  %v5633_v59 = vmax.f32 %v5629_v12, 0.0  ;;  %v5631_v16 = vmax.f32 %v5627_v0, 0.0  ;;  %v5634_v55 = vmax.f32 %v5630_v14, 0.0 }
 0xa4c   : > { %v5632_v21 = vmax.f32 %v5628_v43, 0.0  ;;  %v11539_v14 = vld [vmem:[#allocation6_spill] sm:$0xff] }
 0xa50   : > { %v3607_v28 = vpop.xlane.xlu1 %3606 }
 0xa51   : > { %v3608_v40 = vrot.slane %v3607_v28, 4 }
 0xa53   : > { %v3609_v6 = vadd.f32 %v3608_v40, %v3607_v28 }
 0xa55   : > { %v3610_v47 = vrot.slane %v3609_v6, 2 }
 0xa57   : > { %v3611_v18 = vadd.f32 %v3610_v47, %v3609_v6 }
 0xa59   : > { %v3612_v31 = vrot.slane %v3611_v18, 1 }
 0xa5b   : > { %v3613_v26 = vadd.f32 %v3612_v31, %v3611_v18 }
 0xa5d   : > { %7937 = vpush %v3613_v26 }
 0xa8e   : > { %s7938_s24 = spop %7937 }
 0xaaf   : > { %v6428_v30 = vpop.f32.mrf.mxu1 }
 0xab0   : > { %v6451_v46 = vmul.f32 %v6428_v30, %v5631_v16 }
 0xab1   : > { %v6430_v1 = vpop.f32.mrf.mxu1 }
 0xab2   : > { %v6452_v51 = vmul.f32 %v6430_v1, %v5632_v21 }
 0xab3   : > { %v6434_v35 = vpop.f32.mrf.mxu1 }
 0xab4   : > { %v6453_v11 = vmul.f32 %v6434_v35, %v5633_v59 }
 0xab5   : > { %v6436_v5 = vpop.f32.mrf.mxu1 }
 0xab6   : > { %v6454_v7 = vmul.f32 %v6436_v5, %v5634_v55  ;;  %v6455_v39 = vadd.f32 %v6453_v11, %v6451_v46 }
 0xab8   : > { %v6462_v3 = vadd.f32 %v6454_v7, %v6452_v51  ;;  %v6456_v38 = vrot.slane %v6455_v39, 4 }
 0xaba   : > { %v6463_v52 = vrot.slane %v6462_v3, 4  ;;  %v6457_v54 = vadd.f32 %v6456_v38, %v6455_v39  ;;  %v11541_v39 = vld [vmem:[#allocation9_spill] sm:$0xff]  ;;  %v11542_v38 = vld [vmem:[#allocation11_spill] sm:$0xff] }
 0xabc   : > { %v6464_v28 = vadd.f32 %v6463_v52, %v6462_v3  ;;  %v6458_v6 = vrot.slane %v6457_v54, 2 }
 0xabe   : > { %v6465_v26 = vrot.slane %v6464_v28, 2  ;;  %v6459_v36 = vadd.f32 %v6458_v6, %v6457_v54 }
 0xac0   : > { %v6466_v37 = vadd.f32 %v6465_v26, %v6464_v28  ;;  %v6460_v30 = vrot.slane %v6459_v36, 1 }
 0xac2   : > { %v6467_v42 = vrot.slane %v6466_v37, 1  ;;  %v6461_v41 = vadd.f32 %v6460_v30, %v6459_v36 }
 0xac4   : > { %v6468_v12 = vadd.f32 %v6467_v42, %v6466_v37  ;;  %v6487_v43 = vmul.f32 %v11539_v14, %v6461_v41  ;;  %v11545_v42 = vld [vmem:[#allocation18_spill] sm:$0xff] }
 0xac6   : > { %v6488_v11 = vmul.f32 %v11539_v14, %v6468_v12 }
 0xacb   : > { %v6440_v23 = vpop.f32.mrf.mxu1 }
 0xacc   : > { %v6469_v47 = vmul.f32 %v6440_v23, %v5631_v16 }
 0xacd   : > { %v6442_v58 = vpop.f32.mrf.mxu1 }
 0xace   : > { %v6470_v20 = vmul.f32 %v6442_v58, %v5632_v21 }
 0xacf   : > { %v6446_v40 = vpop.f32.mrf.mxu1 }
 0xad0   : > { %v6471_v18 = vmul.f32 %v6446_v40, %v5633_v59  ;;  %v11540_v59 = vld [vmem:[#allocation8_spill] sm:$0xff]  ;;  %v11543_v40 = vld [vmem:[#allocation7_spill] sm:$0xff] }
 0xad1   : > { %v6448_v31 = vpop.f32.mrf.mxu1 }
 0xad2   : > { %v6473_v17 = vadd.f32 %v6471_v18, %v6469_v47  ;;  %v6472_v44 = vmul.f32 %v6448_v31, %v5634_v55 }
 0xad4   : > { %v6474_v60 = vrot.slane %v6473_v17, 4  ;;  %v6480_v33 = vadd.f32 %v6472_v44, %v6470_v20 }
 0xad6   : > { %v6475_v27 = vadd.f32 %v6474_v60, %v6473_v17  ;;  %v6481_v25 = vrot.slane %v6480_v33, 4 }
 0xad8   : > { %v6476_v63 = vrot.slane %v6475_v27, 2  ;;  %v6482_v13 = vadd.f32 %v6481_v25, %v6480_v33 }
 0xada   : > { %v6477_v57 = vadd.f32 %v6476_v63, %v6475_v27  ;;  %v6483_v1 = vrot.slane %v6482_v13, 2 }
 0xadc   : > { %v6478_v49 = vrot.slane %v6477_v57, 1  ;;  %v6484_v56 = vadd.f32 %v6483_v1, %v6482_v13  ;;  %v11544_v13 = vld [vmem:[#allocation17_spill] sm:$0xff]  ;;  %v11547_v1 = vld [vmem:[#allocation20_spill] sm:$0xff] }
 0xade   : > { %v6479_v35 = vadd.f32 %v6478_v49, %v6477_v57  ;;  %v6485_v0 = vrot.slane %v6484_v56, 1  ;;  %v11546_v57 = vld [vmem:[#allocation19_spill] sm:$0xff] }
 0xae0   : > { %v6489_v5 = vmul.f32 %v11540_v59, %v6479_v35  ;;  %v6486_v16 = vadd.f32 %v6485_v0, %v6484_v56 }
 0xae2   : > { %v6491_v55 = vadd.f32 %v6489_v5, %v6487_v43  ;;  %v6490_v46 = vmul.f32 %v11540_v59, %v6486_v16 }
 0xae4   : > { %v6493_v21 = vadd.f32 %v6491_v55, %v11533_v32  ;;  %v6492_v7 = vadd.f32 %v6490_v46, %v6488_v11 }
 0xae6   : > { %v6494_v51 = vadd.f32 %v6492_v7, %v11535_v8  ;;  %v6497_v3 = vadd.f32 %v6493_v21, %v11541_v39 }
 0xae8   : > { %v6498_v52 = vadd.f32 %v6494_v51, %v11542_v38  ;;  %v6503_v23 = vmax.f32 %v6497_v3, 0.0 }
 0xaea   : > { %v6504_v54 = vmax.f32 %v6498_v52, 0.0  ;;  %v6505_v58 = vmin.f32 %v6503_v23, 15.0 }
 0xaec   : > { %v6506_v28 = vmin.f32 %v6504_v54, 15.0  ;;  %v6534_v6 = vrot.slane %v6505_v58, %v11543_v40 }
 0xaee   : > { %v6538_v47 = vrot.slane %v6506_v28, %v11543_v40  ;;  %v6541_v18 = vsub.f32 %v11537_v19, %v6534_v6  ;;  %v6539_v31 = vsub.f32 %v11538_v61, %v6534_v6 }
 0xaf0   : > { %v6542_v32 = vsub.f32 %v11537_v19, %v6538_v47  ;;  %v6545_v26 = vand.u32 2147483647, %v6541_v18  ;;  %v6540_v8 = vsub.f32 %v11538_v61, %v6538_v47  ;;  %v6543_v20 = vand.u32 2147483647, %v6539_v31 }
 0xaf2   : > { %v6546_v17 = vand.u32 2147483647, %v6542_v32  ;;  %v6544_v44 = vand.u32 2147483647, %v6540_v8  ;;  %v6549_v36 = vsub.f32 1.0, %v6545_v26  ;;  %v6547_v37 = vsub.f32 1.0, %v6543_v20 }
 0xaf4   : > { %v6550_v60 = vsub.f32 1.0, %v6546_v17  ;;  %v6548_v33 = vsub.f32 1.0, %v6544_v44  ;;  %v6553_v25 = vmax.f32 %v6549_v36, 0.0  ;;  %v6551_v63 = vmax.f32 %v6547_v37, 0.0 }
 0xaf6   : > { %v6554_v27 = vmax.f32 %v6550_v60, 0.0  ;;  %v6552_v30 = vmax.f32 %v6548_v33, 0.0 }
 0xaf8   : > { %6937 = vmatprep.subr.mxu0 %v6554_v27 }
 0xaf9   : > { %6938 = vmatpush1.msra.mxu0 %v6553_v25  ;;  %v11548_v25 = vld [vmem:[#allocation57_spill] sm:$0xff] }
 0xafa   : > { %6939 = vmatprep.subr.mxu0 %v6552_v30 }
 0xafb   : > { %6940 = vmatpush1.msra.mxu0 %v6551_v63  ;;  %v11549_v63 = vld [vmem:[#allocation56_spill] sm:$0xff] }
 0xafc   : > { %7916 = vmatmul.mubr.msk.f32.vlgmr.msra.gmra.mxu0 %vm2953_vm3, %v10965_v15  ;;  %7129 = vmatprep.subr.mxu0 %v11544_v13  ;;  %v6495_v15 = vadd.f32 %v6493_v21, %v9963_v34 }
 0xafd   : > { %7130 = vmatpush1.msra.mxu0 %v11545_v42  ;;  %6979 = vmatprep.mubr.f32.mxu0 %v11477_v62  ;;  %v11550_v42 = vld [vmem:[#allocation59_spill] sm:$0xff] }
 0xafe   : > { %7131 = vmatprep.subr.mxu0 %v11546_v57 }
 0xaff   : > { %7132 = vmatpush1.msra.mxu0 %v11547_v1 }
 0xb00   : > { %7917 = vmatmul.mubr.msk.f32.gmra.mxu0 %vm2953_vm3, %v10967_v53  ;;  %v6496_v53 = vadd.f32 %v6494_v51, %v11534_v2 }
 0xb01   : > { %7165 = vmatprep.mubr.f32.mxu0 %v11477_v62 }
 0xb02   : > { %v6500_v41 = vmax.f32 %v6496_v53, 0.0 }
 0xb04   : > { %7918 = vmatmul.mubr.msk.f32.vlgmr.msra.gmra.mxu0 %vm2953_vm3, %v11017_v48  ;;  %v6499_v48 = vmax.f32 %v6495_v15, 0.0 }
 0xb05   : > { %7171 = vmatprep.mubr.f32.mxu0 %v11477_v62 }
 0xb06   : > { %v6501_v49 = vmin.f32 %v6499_v48, 15.0 }
 0xb08   : > { %7919 = vmatmul.mubr.msk.f32.gmra.mxu0 %vm2953_vm3, %v11019_v22  ;;  %v6502_v22 = vmin.f32 %v6500_v41, 15.0  ;;  %v6510_v56 = vrot.slane %v6501_v49, %v11536_v10  ;;  %v11551_v41 = vld [vmem:[#allocation58_spill] sm:$0xff] }
 0xb09   : > { %7177 = vmatprep.mubr.f32.mxu0 %v11477_v62 }
 0xb0a   : > { %v6514_v12 = vrot.slane %v6502_v22, %v11536_v10  ;;  %v6517_v35 = vsub.f32 %v11537_v19, %v6510_v56 }
 0xb0c   : > { %7920 = vmatmul.mubr.msk.f32.gmra.mxu0 %vm2953_vm3, %v10877_v45  ;;  %v6515_v45 = vsub.f32 %v11538_v61, %v6510_v56  ;;  %v6518_v0 = vsub.f32 %v11537_v19, %v6514_v12  ;;  %v6521_v5 = vand.u32 2147483647, %v6517_v35 }
 0xb0d   : > { %7183 = vmatprep.mubr.f32.mxu0 %v11477_v62 }
 0xb0e   : > { %v6519_v43 = vand.u32 2147483647, %v6515_v45  ;;  %v6522_v11 = vand.u32 2147483647, %v6518_v0  ;;  %v6525_v46 = vsub.f32 1.0, %v6521_v5 }
 0xb10   : > { %7921 = vmatmul.mubr.msk.f32.gmra.mxu0 %vm2953_vm3, %v10879_v9  ;;  %v6516_v9 = vsub.f32 %v11538_v61, %v6514_v12  ;;  %v6523_v55 = vsub.f32 1.0, %v6519_v43  ;;  %v6526_v51 = vsub.f32 1.0, %v6522_v11  ;;  %v6529_v23 = vmax.f32 %v6525_v46, 0.0 }
 0xb11   : > { %7671 = vmatprep.mubr.f32.mxu0 %v11477_v62 }
 0xb12   : > { %v6520_v16 = vand.u32 2147483647, %v6516_v9  ;;  %v6527_v52 = vmax.f32 %v6523_v55, 0.0  ;;  %v6530_v47 = vmax.f32 %v6526_v51, 0.0 }
 0xb14   : > { %v6524_v7 = vsub.f32 1.0, %v6520_v16 }
 0xb16   : > { %v6528_v28 = vmax.f32 %v6524_v7, 0.0 }
 0xbbc   : > { %v6975_v21 = vpop.f32.mrf.mxu0 }
 0xbbd   : > { %v6986_v58 = vmul.f32 %v6975_v21, %v6527_v52  ;;  %v11552_v52 = vld [vmem:[#allocation60_spill] sm:$0xff] }
 0xbbe   : > { %v6977_v3 = vpop.f32.mrf.mxu0 }
 0xbbf   : > { %v6987_v31 = vmul.f32 %v6977_v3, %v6528_v28 }
 0xbc0   : > { %v6981_v54 = vpop.f32.mrf.mxu0 }
 0xbc1   : > { %v6988_v6 = vmul.f32 %v6981_v54, %v6529_v23 }
 0xbc2   : > { %v6983_v18 = vpop.f32.mrf.mxu0 }
 0xbc3   : > { %v6990_v32 = vadd.f32 %v6988_v6, %v6986_v58  ;;  %v6989_v26 = vmul.f32 %v6983_v18, %v6530_v47  ;;  %v11553_v47 = vld [vmem:[#allocation61_spill] sm:$0xff] }
 0xbc4   : > { %v7167_v8 = vpop.f32.mrf.mxu0 }
 0xbc5   : > { %v6991_v20 = vrot.slane %v6990_v32, 4  ;;  %v6997_v17 = vadd.f32 %v6989_v26, %v6987_v31  ;;  %v7190_v30 = vmul.f32 %v7167_v8, %v11548_v25 }
 0xbc6   : > { %v7169_v44 = vpop.f32.mrf.mxu0 }
 0xbc7   : > { %v6992_v36 = vadd.f32 %v6991_v20, %v6990_v32  ;;  %v6998_v60 = vrot.slane %v6997_v17, 4  ;;  %v7191_v57 = vmul.f32 %v7169_v44, %v11550_v42 }
 0xbc8   : > { %v7173_v33 = vpop.f32.mrf.mxu0 }
 0xbc9   : > { %v6993_v37 = vrot.slane %v6992_v36, 2  ;;  %v6999_v27 = vadd.f32 %v6998_v60, %v6997_v17  ;;  %v7192_v13 = vmul.f32 %v7173_v33, %v11549_v63 }
 0xbca   : > { %v7175_v1 = vpop.f32.mrf.mxu0 }
 0xbcb   : > { %v6994_v15 = vadd.f32 %v6993_v37, %v6992_v36  ;;  %v7000_v53 = vrot.slane %v6999_v27, 2  ;;  %v7194_v48 = vadd.f32 %v7192_v13, %v7190_v30  ;;  %v7193_v49 = vmul.f32 %v7175_v1, %v11551_v41 }
 0xbcc   : > { %v7179_v22 = vpop.f32.mrf.mxu0 }
 0xbcd   : > { %v6995_v56 = vrot.slane %v6994_v15, 1  ;;  %v7001_v12 = vadd.f32 %v7000_v53, %v6999_v27  ;;  %v7195_v45 = vrot.slane %v7194_v48, 4  ;;  %v7201_v35 = vadd.f32 %v7193_v49, %v7191_v57 }
 0xbce   : > { %v7181_v9 = vpop.f32.mrf.mxu0  ;;  %v7208_v11 = vmul.f32 %v7179_v22, %v11548_v25 }
 0xbcf   : > { %v6996_v0 = vadd.f32 %v6995_v56, %v6994_v15  ;;  %v7002_v43 = vrot.slane %v7001_v12, 1  ;;  %v7196_v5 = vadd.f32 %v7195_v45, %v7194_v48  ;;  %v7202_v16 = vrot.slane %v7201_v35, 4 }
 0xbd0   : > { %v7185_v55 = vpop.f32.mrf.mxu0  ;;  %v7209_v58 = vmul.f32 %v7181_v9, %v11550_v42  ;;  %v11554_v9 = vld [vmem:[#allocation10_spill] sm:$0xff] }
 0xbd1   : > { %v7003_v46 = vadd.f32 %v7002_v43, %v7001_v12  ;;  %v7197_v21 = vrot.slane %v7196_v5, 2  ;;  %v7203_v7 = vadd.f32 %v7202_v16, %v7201_v35  ;;  %v7210_v51 = vmul.f32 %v7185_v55, %v11549_v63 }
 0xbd2   : > { %v7187_v3 = vpop.f32.mrf.mxu0  ;;  %v7004_v23 = vsub.f32 %v6996_v0, %v11552_v52 }
 0xbd3   : > { %v7204_v54 = vrot.slane %v7203_v7, 2  ;;  %v7212_v28 = vadd.f32 %v7210_v51, %v7208_v11  ;;  %v7211_v6 = vmul.f32 %v7187_v3, %v11551_v41  ;;  %v7005_v18 = vsub.f32 %v7003_v46, %v11553_v47 }
 0xbd4   : > { %v7198_v31 = vadd.f32 %v7197_v21, %v7196_v5  ;;  %v7006_v8 = vmul.f32 %v7004_v23, %v7004_v23  ;;  %v11555_v5 = vld [vmem:[#allocation12_spill] sm:$0xff] }
 0xbd5   : > { %v7213_v32 = vrot.slane %v7212_v28, 4  ;;  %v7219_v26 = vadd.f32 %v7211_v6, %v7209_v58  ;;  %v7007_v20 = vmul.f32 %v7005_v18, %v7005_v18  ;;  %v7205_v17 = vadd.f32 %v7204_v54, %v7203_v7 }
 0xbd6   : > { %v7199_v33 = vrot.slane %v7198_v31, 1  ;;  %v7008_v25 = vsel %vm3602_vm15, %v7006_v8, 0.0 }
 0xbd7   : > { %v7214_v44 = vadd.f32 %v7213_v32, %v7212_v28  ;;  %v7220_v36 = vrot.slane %v7219_v26, 4  ;;  %v7009_v60 = vsel %vm3602_vm15, %v7007_v20, 0.0  ;;  %v7206_v63 = vrot.slane %v7205_v17, 1 }
 0xbd8   : > { %v7010_v30 = vadd.f32 %v7009_v60, %v7008_v25  ;;  %v7200_v57 = vadd.f32 %v7199_v33, %v7198_v31  ;;  %v7360_v33 = vld [vmem:[#allocation3 + $0x20] sm:$0xff] }
 0xbd9   : > { %v7215_v37 = vrot.slane %v7214_v44, 2  ;;  %v7221_v27 = vadd.f32 %v7220_v36, %v7219_v26  ;;  %v7207_v53 = vadd.f32 %v7206_v63, %v7205_v17 }
 0xbda   : > { %7011 = vadd.xlane.f32.xlu0 %v7010_v30  ;;  %v7226_v49 = vmul.f32 %v11539_v14, %v7200_v57 }
 0xbdb   : > { %v7216_v13 = vadd.f32 %v7215_v37, %v7214_v44  ;;  %v7222_v42 = vrot.slane %v7221_v27, 2  ;;  %v7227_v12 = vmul.f32 %v11539_v14, %v7207_v53  ;;  %v7361_v37 = vld [vmem:[#allocation3 + $0x30] sm:$0xff] }
 0xbdd   : > { %v7217_v1 = vrot.slane %v7216_v13, 1  ;;  %v7223_v15 = vadd.f32 %v7222_v42, %v7221_v27 }
 0xbdf   : > { %v7218_v48 = vadd.f32 %v7217_v1, %v7216_v13  ;;  %v7224_v41 = vrot.slane %v7223_v15, 1 }
 0xbe1   : > { %v7228_v22 = vmul.f32 %v11540_v59, %v7218_v48  ;;  %v7225_v56 = vadd.f32 %v7224_v41, %v7223_v15 }
 0xbe3   : > { %v7230_v45 = vadd.f32 %v7228_v22, %v7226_v49  ;;  %v7229_v35 = vmul.f32 %v11540_v59, %v7225_v56 }
 0xbe5   : > { %v11192_v0 = vadd.f32 %v7230_v45, %v11554_v9  ;;  %v7231_v43 = vadd.f32 %v7229_v35, %v7227_v12 }
 0xbe7   : > { %v11195_v16 = vadd.f32 %v7231_v43, %v11555_v5  ;;  %v7236_v11 = vadd.f32 %v11192_v0, %v11541_v39  ;;  %v7234_v1 = vadd.f32 %v11192_v0, %v9963_v34 }
 0xbe9   : > { %v7237_v55 = vadd.f32 %v11195_v16, %v11542_v38  ;;  %v7242_v46 = vmax.f32 %v7236_v11, 0.0  ;;  %v7235_v53 = vadd.f32 %v11195_v16, %v11534_v2  ;;  %v7238_v48 = vmax.f32 %v7234_v1, 0.0 }
 0xbeb   : > { %v7243_v21 = vmax.f32 %v7237_v55, 0.0  ;;  %v7244_v7 = vmin.f32 %v7242_v46, 15.0  ;;  %v7239_v41 = vmax.f32 %v7235_v53, 0.0  ;;  %v7240_v49 = vmin.f32 %v7238_v48, 15.0 }
 0xbed   : > { %v7245_v51 = vmin.f32 %v7243_v21, 15.0  ;;  %v7273_v3 = vrot.slane %v7244_v7, %v11543_v40  ;;  %v7241_v22 = vmin.f32 %v7239_v41, 15.0  ;;  %v7249_v56 = vrot.slane %v7240_v49, %v11536_v10 }
 0xbef   : > { %v7277_v52 = vrot.slane %v7245_v51, %v11543_v40  ;;  %v7280_v23 = vsub.f32 %v11537_v19, %v7273_v3  ;;  %v7278_v54 = vsub.f32 %v11538_v61, %v7273_v3  ;;  %v7253_v12 = vrot.slane %v7241_v22, %v11536_v10 }
 0xbf0   : > { %v7254_v45 = vsub.f32 %v11538_v61, %v7249_v56  ;;  %v7256_v35 = vsub.f32 %v11537_v19, %v7249_v56 }
 0xbf1   : > { %v7281_v58 = vsub.f32 %v11537_v19, %v7277_v52  ;;  %v7284_v28 = vand.u32 2147483647, %v7280_v23  ;;  %v7279_v6 = vsub.f32 %v11538_v61, %v7277_v52  ;;  %v7282_v47 = vand.u32 2147483647, %v7278_v54 }
 0xbf2   : > { %v7255_v9 = vsub.f32 %v11538_v61, %v7253_v12  ;;  %v7257_v43 = vsub.f32 %v11537_v19, %v7253_v12  ;;  %v7258_v5 = vand.u32 2147483647, %v7254_v45  ;;  %v7260_v11 = vand.u32 2147483647, %v7256_v35 }
 0xbf3   : > { %v7285_v18 = vand.u32 2147483647, %v7281_v58  ;;  %v7283_v31 = vand.u32 2147483647, %v7279_v6  ;;  %v7288_v32 = vsub.f32 1.0, %v7284_v28  ;;  %v7286_v20 = vsub.f32 1.0, %v7282_v47 }
 0xbf4   : > { %v7259_v55 = vand.u32 2147483647, %v7255_v9  ;;  %v7261_v46 = vand.u32 2147483647, %v7257_v43  ;;  %v7262_v21 = vsub.f32 1.0, %v7258_v5  ;;  %v7264_v7 = vsub.f32 1.0, %v7260_v11 }
 0xbf5   : > { %v7289_v26 = vsub.f32 1.0, %v7285_v18  ;;  %v7287_v8 = vsub.f32 1.0, %v7283_v31  ;;  %v7292_v44 = vmax.f32 %v7288_v32, 0.0  ;;  %v7290_v60 = vmax.f32 %v7286_v20, 0.0 }
 0xbf6   : > { %v7263_v3 = vsub.f32 1.0, %v7259_v55  ;;  %v7265_v52 = vsub.f32 1.0, %v7261_v46  ;;  %v7266_v54 = vmax.f32 %v7262_v21, 0.0  ;;  %v7268_v58 = vmax.f32 %v7264_v7, 0.0 }
 0xbf7   : > { %v7293_v17 = vmax.f32 %v7289_v26, 0.0  ;;  %v7291_v36 = vmax.f32 %v7287_v8, 0.0 }
 0xbf8   : > { %v7267_v47 = vmax.f32 %v7263_v3, 0.0  ;;  %v7269_v31 = vmax.f32 %v7265_v52, 0.0 }
 0xbf9   : > { %7402 = vmatprep.subr.mxu1 %v7293_v17 }
 0xbfa   : > { %7403 = vmatpush1.msra.mxu1 %v7292_v44 }
 0xbfb   : > { %7404 = vmatprep.subr.mxu1 %v7291_v36 }
 0xbfc   : > { %7405 = vmatpush1.msra.mxu1 %v7290_v60 }
 0xbfd   : > { %7922 = vmatmul.mubr.msk.f32.vlgmr.msra.gmra.mxu1 %vm2953_vm3, %v11069_v50 }
 0xbfe   : > { %7444 = vmatprep.mubr.f32.mxu1 %v11477_v62 }
 0xc01   : > { %7923 = vmatmul.mubr.msk.f32.gmra.mxu1 %vm2953_vm3, %v11071_v4  ;;  %v3615_v4 = vstv %s7938_s24 }
 0xc02   : > { %7450 = vmatprep.mubr.f32.mxu1 %v11477_v62 }
 0xc05   : > { %7924 = vmatmul.mubr.msk.f32.gmra.mxu1 %vm2953_vm3, %v7360_v33 }
 0xc06   : > { %7456 = vmatprep.mubr.f32.mxu1 %v11477_v62 }
 0xc09   : > { %7925 = vmatmul.mubr.msk.f32.gmra.mxu1 %vm2953_vm3, %v7361_v37 }
 0xc63   : > { %v7012_v27 = vpop.xlane.xlu0 %7011 }
 0xc64   : > { %v7013_v25 = vrot.slane %v7012_v27, 4 }
 0xc66   : > { %v7014_v30 = vadd.f32 %v7013_v25, %v7012_v27 }
 0xc68   : > { %v7015_v50 = vrot.slane %v7014_v30, 2 }
 0xc6a   : > { %v7016_v63 = vadd.f32 %v7015_v50, %v7014_v30 }
 0xc6c   : > { %v7017_v13 = vrot.slane %v7016_v63, 1 }
 0xc6e   : > { %v7018_v42 = vadd.f32 %v7017_v13, %v7016_v63 }
 0xc70   : > { %7939 = vpush %v7018_v42 }
 0xca1   : > { %s7940_s28 = spop %7939 }
 0xca2   : > { %v7020_v57 = vstv %s7940_s28 }
 0xca3   : > { %v7733_v15 = vadd.f32 %v7020_v57, %v3615_v4 }
 0xca5   : > { %7734 = vst [vmem:[%s405_s12] sm:$0x1] %v7733_v15 }
 0xcbd   : > { %v7440_v51 = vpop.f32.mrf.mxu1 }
 0xcbe   : > { %v7463_v6 = vmul.f32 %v7440_v51, %v7266_v54 }
 0xcbf   : > { %v7442_v23 = vpop.f32.mrf.mxu1 }
 0xcc0   : > { %v7464_v26 = vmul.f32 %v7442_v23, %v7267_v47 }
 0xcc1   : > { %v7446_v28 = vpop.f32.mrf.mxu1 }
 0xcc2   : > { %v7465_v18 = vmul.f32 %v7446_v28, %v7268_v58 }
 0xcc3   : > { %v7448_v32 = vpop.f32.mrf.mxu1 }
 0xcc4   : > { %v7467_v8 = vadd.f32 %v7465_v18, %v7463_v6  ;;  %v7466_v20 = vmul.f32 %v7448_v32, %v7269_v31 }
 0xcc5   : > { %v7452_v17 = vpop.f32.mrf.mxu1 }
 0xcc6   : > { %v7468_v44 = vrot.slane %v7467_v8, 4  ;;  %v7474_v36 = vadd.f32 %v7466_v20, %v7464_v26  ;;  %v7481_v50 = vmul.f32 %v7452_v17, %v7266_v54 }
 0xcc7   : > { %v7454_v60 = vpop.f32.mrf.mxu1 }
 0xcc8   : > { %v7469_v33 = vadd.f32 %v7468_v44, %v7467_v8  ;;  %v7475_v37 = vrot.slane %v7474_v36, 4  ;;  %v7482_v4 = vmul.f32 %v7454_v60, %v7267_v47 }
 0xcc9   : > { %v7458_v27 = vpop.f32.mrf.mxu1 }
 0xcca   : > { %v7470_v25 = vrot.slane %v7469_v33, 2  ;;  %v7476_v30 = vadd.f32 %v7475_v37, %v7474_v36  ;;  %v7483_v63 = vmul.f32 %v7458_v27, %v7268_v58 }
 0xccb   : > { %v7460_v13 = vpop.f32.mrf.mxu1 }
 0xccc   : > { %v7477_v42 = vrot.slane %v7476_v30, 2  ;;  %v7485_v57 = vadd.f32 %v7483_v63, %v7481_v50  ;;  %v7484_v1 = vmul.f32 %v7460_v13, %v7269_v31  ;;  %v7471_v15 = vadd.f32 %v7470_v25, %v7469_v33 }
 0xcce   : > { %v7486_v53 = vrot.slane %v7485_v57, 4  ;;  %v7492_v48 = vadd.f32 %v7484_v1, %v7482_v4  ;;  %v7478_v41 = vadd.f32 %v7477_v42, %v7476_v30  ;;  %v7472_v56 = vrot.slane %v7471_v15, 1  ;;  %v7599_v42 = vld [vmem:[#allocation3] sm:$0xff]  ;;  %v7600_v4 = vld [vmem:[#allocation3 + $0x10] sm:$0xff] }
 0xcd0   : > { %v7487_v49 = vadd.f32 %v7486_v53, %v7485_v57  ;;  %v7493_v22 = vrot.slane %v7492_v48, 4  ;;  %v7479_v35 = vrot.slane %v7478_v41, 1  ;;  %v7473_v5 = vadd.f32 %v7472_v56, %v7471_v15 }
 0xcd2   : > { %v7488_v12 = vrot.slane %v7487_v49, 2  ;;  %v7494_v45 = vadd.f32 %v7493_v22, %v7492_v48  ;;  %v7480_v46 = vadd.f32 %v7479_v35, %v7478_v41  ;;  %v7499_v51 = vmul.f32 %v11539_v14, %v7473_v5 }
 0xcd4   : > { %v7489_v9 = vadd.f32 %v7488_v12, %v7487_v49  ;;  %v7495_v43 = vrot.slane %v7494_v45, 2  ;;  %v7500_v23 = vmul.f32 %v11539_v14, %v7480_v46 }
 0xcd6   : > { %v7490_v11 = vrot.slane %v7489_v9, 1  ;;  %v7496_v55 = vadd.f32 %v7495_v43, %v7494_v45 }
 0xcd8   : > { %v7491_v21 = vadd.f32 %v7490_v11, %v7489_v9  ;;  %v7497_v7 = vrot.slane %v7496_v55, 1 }
 0xcda   : > { %v7501_v3 = vmul.f32 %v11540_v59, %v7491_v21  ;;  %v7498_v52 = vadd.f32 %v7497_v7, %v7496_v55 }
 0xcdc   : > { %v7503_v54 = vadd.f32 %v7501_v3, %v7499_v51  ;;  %v7502_v58 = vmul.f32 %v11540_v59, %v7498_v52 }
 0xcde   : > { %v7505_v28 = vadd.f32 %v7503_v54, %v11192_v0  ;;  %v7504_v6 = vadd.f32 %v7502_v58, %v7500_v23 }
 0xce0   : > { %v7506_v47 = vadd.f32 %v7504_v6, %v11195_v16  ;;  %v7509_v18 = vadd.f32 %v7505_v28, %v11541_v39  ;;  %v7507_v57 = vadd.f32 %v7505_v28, %v9963_v34 }
 0xce2   : > { %v7723_v31 = vcombine.low %v7505_v28, %v7506_v47  ;;  %v7510_v32 = vadd.f32 %v7506_v47, %v11542_v38  ;;  %v7515_v26 = vmax.f32 %v7509_v18, 0.0  ;;  %v7508_v1 = vadd.f32 %v7506_v47, %v11534_v2 }
 0xce3   : > { %v7511_v15 = vmax.f32 %v7507_v57, 0.0 }
 0xce4   : > { %7928 = vst.sshfl [vmem:[%s402_s16] sm:$0x33 pattern:$0x76325410] %v7723_v31  ;;  %v7516_v14 = vmax.f32 %v7510_v32, 0.0  ;;  %v7517_v8 = vmin.f32 %v7515_v26, 15.0  ;;  %v7512_v53 = vmax.f32 %v7508_v1, 0.0 }
 0xce5   : > { %v7513_v48 = vmin.f32 %v7511_v15, 15.0 }
 0xce6   : > { %v7518_v59 = vmin.f32 %v7516_v14, 15.0  ;;  %v7546_v0 = vrot.slane %v7517_v8, %v11543_v40  ;;  %v7514_v41 = vmin.f32 %v7512_v53, 15.0 }
 0xce7   : > { %v7522_v49 = vrot.slane %v7513_v48, %v11536_v10 }
 0xce8   : > { %v7550_v20 = vrot.slane %v7518_v59, %v11543_v40  ;;  %v7553_v16 = vsub.f32 %v11537_v19, %v7546_v0  ;;  %v7551_v39 = vsub.f32 %v11538_v61, %v7546_v0  ;;  %v7526_v22 = vrot.slane %v7514_v41, %v11536_v10 }
 0xce9   : > { %v7527_v56 = vsub.f32 %v11538_v61, %v7522_v49  ;;  %v7529_v12 = vsub.f32 %v11537_v19, %v7522_v49 }
 0xcea   : > { %v7554_v17 = vsub.f32 %v11537_v19, %v7550_v20  ;;  %v7557_v44 = vand.u32 2147483647, %v7553_v16  ;;  %v7552_v36 = vsub.f32 %v11538_v61, %v7550_v20  ;;  %v7555_v60 = vand.u32 2147483647, %v7551_v39 }
 0xceb   : > { %v7530_v45 = vsub.f32 %v11537_v19, %v7526_v22  ;;  %v7531_v35 = vand.u32 2147483647, %v7527_v56  ;;  %v7533_v34 = vand.u32 2147483647, %v7529_v12 }
 0xcec   : > { %v7558_v38 = vand.u32 2147483647, %v7554_v17  ;;  %v7556_v33 = vand.u32 2147483647, %v7552_v36  ;;  %v7561_v37 = vsub.f32 1.0, %v7557_v44  ;;  %v7559_v30 = vsub.f32 1.0, %v7555_v60 }
 0xced   : > { %v7534_v2 = vand.u32 2147483647, %v7530_v45  ;;  %v7535_v43 = vsub.f32 1.0, %v7531_v35  ;;  %v7537_v5 = vsub.f32 1.0, %v7533_v34 }
 0xcee   : > { %v7562_v27 = vsub.f32 1.0, %v7558_v38  ;;  %v7560_v25 = vsub.f32 1.0, %v7556_v33  ;;  %v7565_v63 = vmax.f32 %v7561_v37, 0.0  ;;  %v7563_v13 = vmax.f32 %v7559_v30, 0.0 }
 0xcef   : > { %v7538_v46 = vsub.f32 1.0, %v7534_v2  ;;  %v7539_v7 = vmax.f32 %v7535_v43, 0.0  ;;  %v7541_v10 = vmax.f32 %v7537_v5, 0.0 }
 0xcf0   : > { %v7566_v50 = vmax.f32 %v7562_v27, 0.0  ;;  %v7564_v40 = vmax.f32 %v7560_v25, 0.0 }
 0xcf1   : > { %v7542_v54 = vmax.f32 %v7538_v46, 0.0 }
 0xcf2   : > { %7635 = vmatprep.subr.mxu0 %v7566_v50 }
 0xcf3   : > { %7636 = vmatpush1.msra.mxu0 %v7565_v63 }
 0xcf4   : > { %7637 = vmatprep.subr.mxu0 %v7564_v40 }
 0xcf5   : > { %7638 = vmatpush1.msra.mxu0 %v7563_v13 }
 0xcf6   : > { %7926 = vmatmul.mubr.msk.f32.vlgmr.msra.gmra.mxu0 %vm2953_vm3, %v7599_v42 }
 0xcf7   : > { %7677 = vmatprep.mubr.f32.mxu0 %v11477_v62  ;;  %v7528_v62 = vsub.f32 %v11538_v61, %v7526_v22 }
 0xcf9   : > { %v7532_v9 = vand.u32 2147483647, %v7528_v62 }
 0xcfa   : > { %7927 = vmatmul.mubr.msk.f32.gmra.mxu0 %vm2953_vm3, %v7600_v4 }
 0xcfb   : > { %v7536_v55 = vsub.f32 1.0, %v7532_v9 }
 0xcfd   : > { %v7540_v52 = vmax.f32 %v7536_v55, 0.0 }
 0xdb6   : > { %v7673_v11 = vpop.f32.mrf.mxu0 }
 0xdb7   : > { %v7684_v3 = vmul.f32 %v7673_v11, %v7539_v7 }
 0xdb8   : > { %v7675_v21 = vpop.f32.mrf.mxu0 }
 0xdb9   : > { %v7685_v58 = vmul.f32 %v7675_v21, %v7540_v52 }
 0xdba   : > { %v7679_v51 = vpop.f32.mrf.mxu0 }
 0xdbb   : > { %v7686_v23 = vmul.f32 %v7679_v51, %v7541_v10 }
 0xdbc   : > { %v7681_v61 = vpop.f32.mrf.mxu0 }
 0xdbd   : > { %v7688_v19 = vadd.f32 %v7686_v23, %v7684_v3  ;;  %v7687_v28 = vmul.f32 %v7681_v61, %v7542_v54 }
 0xdbf   : > { %v7689_v6 = vrot.slane %v7688_v19, 4  ;;  %v7695_v47 = vadd.f32 %v7687_v28, %v7685_v58 }
 0xdc1   : > { %v7690_v18 = vadd.f32 %v7689_v6, %v7688_v19  ;;  %v7696_v31 = vrot.slane %v7695_v47, 4 }
 0xdc3   : > { %v7691_v32 = vrot.slane %v7690_v18, 2  ;;  %v7697_v26 = vadd.f32 %v7696_v31, %v7695_v47 }
 0xdc5   : > { %v7692_v14 = vadd.f32 %v7691_v32, %v7690_v18  ;;  %v7698_v8 = vrot.slane %v7697_v26, 2 }
 0xdc7   : > { %v7693_v59 = vrot.slane %v7692_v14, 1  ;;  %v7699_v0 = vadd.f32 %v7698_v8, %v7697_v26 }
 0xdc9   : > { %v7700_v20 = vrot.slane %v7699_v0, 1  ;;  %v7694_v16 = vadd.f32 %v7693_v59, %v7692_v14 }
 0xdcb   : > { %v7701_v39 = vadd.f32 %v7700_v20, %v7699_v0 }
 0xdcd   : > { %v7704_v17 = vcombine.low %v7694_v16, %v7701_v39 }
 0xdcf   : > { %v7711_v44 = vrot.slane %v7704_v17, %v8219_v24 }
 0xdd1   : > { %v7718_v36 = vrot.slane %v7711_v44, %v8219_v24 }
 0xdd3   : > { %7720 = vst.msk [vmem:[%s397_s21] sm:$0x3] %vm9118_vm14, %v7718_v36 }
 0xdd4 PF: > { %s22_s17 = sadd.s32 1, %s7987_s17  }
 0xdd5   : > { %p19_p4 = scmp.ge.s32.totalorder %s22_s17, 4  }
 0xdd7   :  { %21 = sbr.rel (!%p19_p4) target bundleno = 1 (0x1), region = 149 }

</bundles_post_ra>
